<compile_context>
chip_gen: v7x
topology: tpu7x:2x2x1
jax: 0.10.0
libtpu: 0.0.40
codegen_flags: <defaults>
</compile_context>

<pallas_src>
import functools

import jax
import jax.numpy as jnp
import numpy as np
from jax import lax
from jax.experimental import pallas as pl
from jax.experimental.pallas import tpu as pltpu

NUM_JOINTS = 24
NUM_LATENT_CODE = 4
LATENT_DIM = 128
XYZ_EMBED_DIM = 63                      # 3 + 3*2*10 (NeRF PE, multires=10, include input)
XYZ_PAD = 8                             # raw xyz padded 3 -> 8 channels
PE_PAD = 64                             # 60 sin/cos channels padded to 64
INPUT_CH = XYZ_EMBED_DIM + LATENT_DIM   # 191 (original Conv1d fan-in)
W_HID = 256

# Channel order of the 63 PE features produced by xyz_embedder below:
#   [x, y, z, sin(f0){x,y,z}, cos(f0){x,y,z}, sin(f1)..., cos(f1)..., ...]
_SIN_ROWS = np.array([3 + 6 * k + d for k in range(10) for d in range(3)], np.int32)
_COS_ROWS = _SIN_ROWS + 3


def _round_up(x, m):
    return (x + m - 1) // m * m


def _cdiv(a, b):
    return -(-a // b)


def _has_bf16_vpu():
    # v5e has no bf16 VALU -> keep the f32 elementwise path there (perf only; bf16
    # elementwise would still be *correct* everywhere).
    try:
        kind = jax.devices()[0].device_kind.lower()
    except Exception:
        return True
    return "v5" not in kind


def _pick_tile(B, N, tile_m):
    """Largest lane-aligned point tile such that the (batch, tile) grid keeps both
    v7x TensorCores busy (>= 2 grid steps, prefer >= 4)."""
    n128 = _round_up(max(N, 1), 128)
    tile = max(128, min(tile_m, 2048) // 128 * 128)
    tile = min(tile, n128)
    while tile > 128 and B * _cdiv(n128, tile) < 2:
        tile = max(128, (tile // 2) // 128 * 128)
    while tile > 512 and B * _cdiv(n128, tile) < 4:
        tile = max(512, (tile // 2) // 128 * 128)
    n_pad = _round_up(N, tile)
    return tile, n_pad


# ---------------------------------------------------------------------------
# NeRF xyz positional embedder (reference path only; the kernel does this inline)
# ---------------------------------------------------------------------------
def xyz_embedder(x):
    # x: (..., 3) -> (..., 63)  [x, sin(x*2^0), cos(x*2^0), ..., sin(x*2^9), cos(x*2^9)]
    freqs = 2.0 ** jnp.arange(10, dtype=jnp.float32)
    xb = x[..., None, :] * freqs[:, None]                 # (..., 10, 3)
    sc = jnp.stack([jnp.sin(xb), jnp.cos(xb)], axis=-2)   # (..., 10, 2, 3)
    sc = sc.reshape(*x.shape[:-1], 60)
    return jnp.concatenate([x, sc], axis=-1)


def _pe_matrix():
    # rows 0..7 map the zero-padded xyz channels to the 64 sine arguments:
    #   col 3k+d    -> x_d * 2^k               (sin block)
    #   col 32+3k+d -> x_d * 2^k (+ pi/2)      (cos block, cos t = sin(t + pi/2))
    # row 8 is the additive pi/2 phase shift for the cos block.
    m = np.zeros((XYZ_PAD + 1, PE_PAD), np.float32)
    for k in range(10):
        for d in range(3):
            m[d, 3 * k + d] = 2.0 ** k
            m[d, 32 + 3 * k + d] = 2.0 ** k
    m[XYZ_PAD, 32:62] = np.pi / 2
    return jnp.asarray(m)


def _split_pe_rows(w):
    """w: (191, 256). Returns (w_x (8,256), w_sc (64,256)) with rows permuted to the
    kernel's [sin-block | cos-block] feature order (latent rows 63: are handled by the
    per-batch folded offsets)."""
    w_x = jnp.pad(w[0:3], ((0, XYZ_PAD - 3), (0, 0)))                  # (8, 256)
    w_s = jnp.pad(w[_SIN_ROWS], ((0, 2), (0, 0)))                      # (32, 256)
    w_c = jnp.pad(w[_COS_ROWS], ((0, 2), (0, 0)))                      # (32, 256)
    return w_x, jnp.concatenate([w_s, w_c], axis=0)                    # (8,256), (64,256)


# ---------------------------------------------------------------------------
# Pallas kernel: in-kernel PE + 8-layer MLP (skip at 4) + fc + log-bw + softmax
# ---------------------------------------------------------------------------
def bbw_kernel(xyz_ref, sbw_ref, off_ref, pe_ref, wx_ref, wsc_ref, wmid_ref,
               wfc_ref, bias_ref, bfc_ref, out_ref, *, bf16_act):
    act_dt = jnp.bfloat16 if bf16_act else jnp.float32

    x = xyz_ref[0]                                          # (TM, 8) f32 raw xyz
    pe = pe_ref[...]                                        # (9, 64) f32
    # Positional embedding, lane-dense: args[:, 3k+d] = x_d*2^k (sin block),
    # args[:, 32+3k+d] = x_d*2^k + pi/2 (cos block).  x @ P stays in f32 (powers of two,
    # exact) so high-frequency phases are not degraded; one sin over (TM, 64).
    args = jnp.dot(x, pe[0:XYZ_PAD], preferred_element_type=jnp.float32) + pe[XYZ_PAD:]
    feat = jnp.sin(args)                                    # (TM, 64) f32
    feat_b = feat.astype(jnp.bfloat16)
    x_b = x.astype(jnp.bfloat16)

    biases = bias_ref[...].astype(act_dt)                   # (8, 256): b1..b4, b6, b7
    off = off_ref[0].astype(act_dt)                         # (2, 256): folded latent+b0/b5

    def mm(a, w):
        # bf16 operands on the MXU, f32 accumulation.
        return jnp.dot(a, w, preferred_element_type=jnp.float32)

    def act(pre, bias_row):
        # bias-add + ReLU in bf16 on chips with a bf16 VPU (v6e/v7x), f32 on v5e.
        if bf16_act:
            pre = pre.astype(jnp.bfloat16)
        return jnp.maximum(pre + bias_row, 0).astype(jnp.bfloat16)

    # layer 0 (latent rows of W0 plus b0 are pre-folded into off[0])
    net = act(mm(x_b, wx_ref[0]) + mm(feat_b, wsc_ref[0]), off[0:1])
    # layers 1..4
    net = act(mm(net, wmid_ref[0]), biases[0:1])
    net = act(mm(net, wmid_ref[1]), biases[1:2])
    net = act(mm(net, wmid_ref[2]), biases[2:3])
    net = act(mm(net, wmid_ref[3]), biases[3:4])
    # layer 5 = skip: cat([features, net]) @ W5  (latent rows + b5 folded into off[1])
    net = act(mm(x_b, wx_ref[1]) + mm(feat_b, wsc_ref[1]) + mm(net, wmid_ref[4]),
              off[1:2])
    # layers 6, 7
    net = act(mm(net, wmid_ref[5]), biases[4:5])
    net = act(mm(net, wmid_ref[6]), biases[5:6])

    # final fc directly in (joints, points) layout: logits = Wfc^T . net^T  (A @ B^T)
    logits = lax.dot_general(wfc_ref[...], net, (((1,), (1,)), ((), ())),
                             preferred_element_type=jnp.float32)        # (24, TM)
    logits = logits + bfc_ref[...]                                      # (24, 1) bias
    logits = logits + jnp.log(sbw_ref[0] + 1e-9)                        # (24, TM)

    # softmax over the joint (sublane) axis; XLU reductions hide under the MXU.
    m = jnp.max(logits, axis=0, keepdims=True)
    e = jnp.exp(logits - m)
    s = jnp.sum(e, axis=0, keepdims=True)
    inv = pl.reciprocal(s, approx=True)
    inv = inv * (2.0 - s * inv)            # one Newton step -> f32-exact normalization
    out_ref[0] = (e * inv).astype(out_ref.dtype)


# ---------------------------------------------------------------------------
# Wrapper
# ---------------------------------------------------------------------------
def backward_blend_weight(ppts, smpl_bw, latent_index, params, *, tile_m=1024,
                          bf16_act=None):
    """ppts: (B, N, 3); smpl_bw: (B, 24, N); latent_index: (B,) int32.
    Returns bw: (B, 24, N), softmax over joints (matches the PyTorch output)."""
    B, N, _ = ppts.shape
    if bf16_act is None:
        bf16_act = _has_bf16_vpu()

    tile, n_pad = _pick_tile(B, N, tile_m)
    grid = (B, n_pad // tile)

    # raw xyz (zero-padded to 8 channels / n_pad points); the PE is computed in-kernel.
    xyz = jnp.pad(ppts.astype(jnp.float32), ((0, 0), (0, n_pad - N), (0, XYZ_PAD - 3)))
    # smpl blend weights stay in their native (B, 24, N) layout (no wrapper transpose).
    sbw = jnp.pad(smpl_bw.astype(jnp.float32), ((0, 0), (0, 0), (0, n_pad - N)))

    # Fold the per-batch latent contribution of W0 / W5a (and b0 / b5) into bias
    # offsets instead of broadcasting a (B, N, 128) latent through HBM.
    latent = params["latent"][latent_index].astype(jnp.float32)        # (B, 128)
    w0, w5a = params["w0"], params["w5a"]
    off0 = latent @ w0[XYZ_EMBED_DIM:] + params["b0"]                  # (B, 256)
    off5 = latent @ w5a[XYZ_EMBED_DIM:] + params["b5"]                 # (B, 256)
    off = jnp.stack([off0, off5], axis=1)                              # (B, 2, 256)

    # TODO(synk): when loading real PyTorch checkpoints, transpose Conv1d weights
    # (out, in, 1) -> (in, out), use the real embedder's channel order for
    # _SIN_ROWS/_COS_ROWS, and verify the skip concat order ([features, net]).
    bf16 = lambda a: a.astype(jnp.bfloat16)
    w0x, w0sc = _split_pe_rows(w0)
    w5x, w5sc = _split_pe_rows(w5a)
    wx = bf16(jnp.stack([w0x, w5x], axis=0))                           # (2, 8, 256)
    wsc = bf16(jnp.stack([w0sc, w5sc], axis=0))                        # (2, 64, 256)
    wmid = bf16(jnp.stack([params["w1"], params["w2"], params["w3"], params["w4"],
                           params["w5b"], params["w6"], params["w7"]], axis=0))
    wfc_t = bf16(jnp.transpose(params["wfc"]))                         # (24, 256)
    bias_pack = jnp.concatenate(
        [params["b1"], params["b2"], params["b3"], params["b4"],
         params["b6"], params["b7"], jnp.zeros((2, W_HID), jnp.float32)], axis=0)
    bfc_col = params["bfc"].reshape(NUM_JOINTS, 1).astype(jnp.float32)  # (24, 1)
    pe_mat = _pe_matrix()                                               # (9, 64) f32

    in_specs = [
        pl.BlockSpec((1, tile, XYZ_PAD), lambda b, i: (b, i, 0)),        # raw xyz
        pl.BlockSpec((1, NUM_JOINTS, tile), lambda b, i: (b, 0, i)),     # smpl_bw
        pl.BlockSpec((1, 2, W_HID), lambda b, i: (b, 0, 0)),             # folded offsets
        pl.BlockSpec((XYZ_PAD + 1, PE_PAD), lambda b, i: (0, 0)),        # PE matrix
        pl.BlockSpec((2, XYZ_PAD, W_HID), lambda b, i: (0, 0, 0)),       # w0x / w5ax
        pl.BlockSpec((2, PE_PAD, W_HID), lambda b, i: (0, 0, 0)),        # w0sc / w5asc
        pl.BlockSpec((7, W_HID, W_HID), lambda b, i: (0, 0, 0)),         # hidden weights
        pl.BlockSpec((NUM_JOINTS, W_HID), lambda b, i: (0, 0)),          # wfc^T
        pl.BlockSpec((8, W_HID), lambda b, i: (0, 0)),                   # packed biases
        pl.BlockSpec((NUM_JOINTS, 1), lambda b, i: (0, 0)),              # fc bias
    ]
    out_specs = pl.BlockSpec((1, NUM_JOINTS, tile), lambda b, i: (b, 0, i))

    macs = ((XYZ_PAD + PE_PAD) * W_HID * 2 + 7 * W_HID * W_HID
            + W_HID * NUM_JOINTS + XYZ_PAD * PE_PAD)
    n_pts = B * n_pad
    weight_bytes = sum(int(a.size) * a.dtype.itemsize
                       for a in (wx, wsc, wmid, wfc_t, bias_pack, bfc_col, pe_mat, off))
    cost = pl.CostEstimate(
        flops=2 * n_pts * macs,
        transcendentals=n_pts * (PE_PAD + 2 * NUM_JOINTS + 1),
        bytes_accessed=int(xyz.size * 4 + sbw.size * 4 + n_pts * NUM_JOINTS * 4
                           + weight_bytes))

    out = pl.pallas_call(
        functools.partial(bbw_kernel, bf16_act=bf16_act),
        out_shape=jax.ShapeDtypeStruct((B, NUM_JOINTS, n_pad), jnp.float32),
        grid_spec=pltpu.PrefetchScalarGridSpec(
            num_scalar_prefetch=0,
            grid=grid,
            in_specs=in_specs,
            out_specs=out_specs,
        ),
        compiler_params=pltpu.CompilerParams(
            dimension_semantics=("parallel", "parallel"),
            vmem_limit_bytes=32 * 1024 * 1024,
        ),
        cost_estimate=cost,
    )(xyz, sbw, off, pe_mat, wx, wsc, wmid, wfc_t, bias_pack, bfc_col)

    return out[:, :, :N]                                               # (B, 24, N)


# ---------------------------------------------------------------------------
# Pure-JAX f32 reference (module semantics) for validation
# ---------------------------------------------------------------------------
def backward_blend_weight_ref(ppts, smpl_bw, latent_index, params):
    B, N, _ = ppts.shape
    emb = xyz_embedder(ppts.astype(jnp.float32))                        # (B, N, 63)
    latent = params["latent"][latent_index]
    latent = jnp.broadcast_to(latent[:, None, :], (B, N, LATENT_DIM))
    feat = jnp.concatenate([emb, latent], axis=-1)                      # (B, N, 191)
    relu = lambda v: jnp.maximum(v, 0.0)
    net = relu(feat @ params["w0"] + params["b0"])
    net = relu(net @ params["w1"] + params["b1"])
    net = relu(net @ params["w2"] + params["b2"])
    net = relu(net @ params["w3"] + params["b3"])
    net = relu(net @ params["w4"] + params["b4"])
    net = relu(feat @ params["w5a"] + net @ params["w5b"] + params["b5"])
    net = relu(net @ params["w6"] + params["b6"])
    net = relu(net @ params["w7"] + params["b7"])
    logits = net @ params["wfc"] + params["bfc"]                        # (B, N, 24)
    logits = logits + jnp.log(jnp.transpose(smpl_bw, (0, 2, 1)) + 1e-9)
    out = jax.nn.softmax(logits, axis=-1)
    return jnp.transpose(out, (0, 2, 1))                                # (B, 24, N)


# ---------------------------------------------------------------------------
# Deterministic synthetic parameters (shapes from the module's __init__)
# ---------------------------------------------------------------------------
def init_params(key):
    keys = jax.random.split(key, 32)
    params = {}
    params["latent"] = 0.1 * jax.random.normal(
        keys[0], (NUM_LATENT_CODE, LATENT_DIM), jnp.float32)

    # bw_linears: Conv1d(191,256), 4x Conv1d(256,256), Conv1d(447,256), 2x Conv1d(256,256)
    in_dims = [INPUT_CH, W_HID, W_HID, W_HID, W_HID, W_HID + INPUT_CH, W_HID, W_HID]
    ki = 1
    for li, fan_in in enumerate(in_dims):
        scale = 1.0 / jnp.sqrt(jnp.float32(fan_in))
        if li == 5:
            # split the skip layer's weight: rows [0:191] hit `features`, [191:447] hit `net`
            params["w5a"] = scale * jax.random.uniform(
                keys[ki], (INPUT_CH, W_HID), jnp.float32, -1.0, 1.0); ki += 1
            params["w5b"] = scale * jax.random.uniform(
                keys[ki], (W_HID, W_HID), jnp.float32, -1.0, 1.0); ki += 1
        else:
            params[f"w{li}"] = scale * jax.random.uniform(
                keys[ki], (fan_in, W_HID), jnp.float32, -1.0, 1.0); ki += 1
        params[f"b{li}"] = scale * jax.random.uniform(
            keys[ki], (1, W_HID), jnp.float32, -1.0, 1.0); ki += 1

    scale = 1.0 / jnp.sqrt(jnp.float32(W_HID))
    params["wfc"] = scale * jax.random.uniform(
        keys[ki], (W_HID, NUM_JOINTS), jnp.float32, -1.0, 1.0); ki += 1
    params["bfc"] = scale * jax.random.uniform(
        keys[ki], (1, NUM_JOINTS), jnp.float32, -1.0, 1.0)
    return params


if __name__ == "__main__":
    key = jax.random.PRNGKey(0)
    kp, k1, k2 = jax.random.split(key, 3)
    params = init_params(kp)

    B, N = 2, 256
    ppts = jax.random.normal(k1, (B, N, 3), jnp.float32)
    smpl_bw = jax.nn.softmax(jax.random.normal(k2, (B, NUM_JOINTS, N), jnp.float32), axis=1)
    latent_index = jnp.array([0, 1], dtype=jnp.int32)

    run = jax.jit(backward_blend_weight)
    bw = jax.block_until_ready(run(ppts, smpl_bw, latent_index, params))

    assert bw.shape == (B, NUM_JOINTS, N), bw.shape
    assert bool(jnp.all(jnp.isfinite(bw)))
    sums = jnp.sum(bw, axis=1)
    assert bool(jnp.all(jnp.abs(sums - 1.0) < 2e-3)), float(jnp.max(jnp.abs(sums - 1.0)))

    ref = backward_blend_weight_ref(ppts, smpl_bw, latent_index, params)
    err = float(jnp.max(jnp.abs(bw - ref)))
    # bf16 MXU operands + bf16 bias/ReLU (on v6e/v7x) vs f32 reference: intentional tolerance.
    assert err < 2.5e-2, err
    print("KERNEL_OK")
</pallas_src>

<mosaic_0001>
module attributes {stable_mosaic.version = 11 : i64} {
  func.func @bbw_kernel(%arg0: i32, %arg1: i32, %arg2: memref<1x256x8xf32, #tpu.memory_space<vmem>>, %arg3: memref<1x24x256xf32, #tpu.memory_space<vmem>>, %arg4: memref<1x2x256xf32, #tpu.memory_space<vmem>>, %arg5: memref<9x64xf32, #tpu.memory_space<vmem>>, %arg6: memref<2x8x256xbf16, #tpu.memory_space<vmem>>, %arg7: memref<2x64x256xbf16, #tpu.memory_space<vmem>>, %arg8: memref<7x256x256xbf16, #tpu.memory_space<vmem>>, %arg9: memref<24x256xbf16, #tpu.memory_space<vmem>>, %arg10: memref<8x256xf32, #tpu.memory_space<vmem>>, %arg11: memref<24x1xf32, #tpu.memory_space<vmem>>, %arg12: memref<1x24x256xf32, #tpu.memory_space<vmem>>) attributes {dimension_semantics = [#tpu.dimension_semantics<parallel>, #tpu.dimension_semantics<parallel>], iteration_bounds = array<i64: 2, 1>, scalar_prefetch = 0 : i64, scratch_operands = 0 : i64, tpu.core_type = #tpu.core_type<tc>, window_params = [{transform_indices = @transform_0, window_bounds = array<i64: 1, 256, 8>}, {transform_indices = @transform_1, window_bounds = array<i64: 1, 24, 256>}, {transform_indices = @transform_2, window_bounds = array<i64: 1, 2, 256>}, {pipeline_mode = #tpu.pipeline_mode<synchronous>, transform_indices = @transform_3, window_bounds = array<i64: 9, 64>}, {pipeline_mode = #tpu.pipeline_mode<synchronous>, transform_indices = @transform_4, window_bounds = array<i64: 2, 8, 256>}, {pipeline_mode = #tpu.pipeline_mode<synchronous>, transform_indices = @transform_5, window_bounds = array<i64: 2, 64, 256>}, {pipeline_mode = #tpu.pipeline_mode<synchronous>, transform_indices = @transform_6, window_bounds = array<i64: 7, 256, 256>}, {pipeline_mode = #tpu.pipeline_mode<synchronous>, transform_indices = @transform_7, window_bounds = array<i64: 24, 256>}, {pipeline_mode = #tpu.pipeline_mode<synchronous>, transform_indices = @transform_8, window_bounds = array<i64: 8, 256>}, {pipeline_mode = #tpu.pipeline_mode<synchronous>, transform_indices = @transform_9, window_bounds = array<i64: 24, 1>}, {transform_indices = @transform_10, window_bounds = array<i64: 1, 24, 256>}]} {
    %c0 = arith.constant 0 : index
    %c0_0 = arith.constant 0 : index
    %c0_1 = arith.constant 0 : index
    %0 = vector.load %arg2[%c0, %c0_0, %c0_1] : memref<1x256x8xf32, #tpu.memory_space<vmem>>, vector<1x256x8xf32>
    %1 = vector.shape_cast %0 : vector<1x256x8xf32> to vector<256x8xf32>
    %c0_2 = arith.constant 0 : index
    %c0_3 = arith.constant 0 : index
    %2 = vector.load %arg5[%c0_2, %c0_3] : memref<9x64xf32, #tpu.memory_space<vmem>>, vector<9x64xf32>
    %3 = vector.extract_strided_slice %2 {offsets = [0, 0], sizes = [8, 64], strides = [1, 1]} : vector<9x64xf32> to vector<8x64xf32>
    %cst = arith.constant dense<0.000000e+00> : vector<256x64xf32>
    %4 = tpu.matmul %1, %3, %cst {dimension_numbers = #tpu.dot_dimension_numbers<[1], [0], [0], [1], [0, 0, 1, 1], [], []>} : vector<256x8xf32>, vector<8x64xf32>, vector<256x64xf32> -> vector<256x64xf32>
    %5 = vector.extract_strided_slice %2 {offsets = [8, 0], sizes = [1, 64], strides = [1, 1]} : vector<9x64xf32> to vector<1x64xf32>
    %6 = vector.broadcast %5 : vector<1x64xf32> to vector<256x64xf32>
    %7 = arith.addf %4, %6 : vector<256x64xf32>
    %8 = math.sin %7 : vector<256x64xf32>
    %9 = arith.truncf %8 : vector<256x64xf32> to vector<256x64xbf16>
    %10 = arith.truncf %1 : vector<256x8xf32> to vector<256x8xbf16>
    %c0_4 = arith.constant 0 : index
    %c0_5 = arith.constant 0 : index
    %11 = vector.load %arg10[%c0_4, %c0_5] : memref<8x256xf32, #tpu.memory_space<vmem>>, vector<8x256xf32>
    %12 = arith.truncf %11 : vector<8x256xf32> to vector<8x256xbf16>
    %c0_6 = arith.constant 0 : index
    %c0_7 = arith.constant 0 : index
    %c0_8 = arith.constant 0 : index
    %13 = vector.load %arg4[%c0_6, %c0_7, %c0_8] : memref<1x2x256xf32, #tpu.memory_space<vmem>>, vector<1x2x256xf32>
    %14 = vector.shape_cast %13 : vector<1x2x256xf32> to vector<2x256xf32>
    %15 = arith.truncf %14 : vector<2x256xf32> to vector<2x256xbf16>
    %c0_9 = arith.constant 0 : index
    %c0_10 = arith.constant 0 : index
    %c0_11 = arith.constant 0 : index
    %16 = vector.load %arg6[%c0_9, %c0_10, %c0_11] : memref<2x8x256xbf16, #tpu.memory_space<vmem>>, vector<1x8x256xbf16>
    %17 = vector.shape_cast %16 : vector<1x8x256xbf16> to vector<8x256xbf16>
    %cst_12 = arith.constant dense<0.000000e+00> : vector<256x256xf32>
    %18 = tpu.matmul %10, %17, %cst_12 {dimension_numbers = #tpu.dot_dimension_numbers<[1], [0], [0], [1], [0, 0, 1, 1], [], []>} : vector<256x8xbf16>, vector<8x256xbf16>, vector<256x256xf32> -> vector<256x256xf32>
    %c0_13 = arith.constant 0 : index
    %c0_14 = arith.constant 0 : index
    %c0_15 = arith.constant 0 : index
    %19 = vector.load %arg7[%c0_13, %c0_14, %c0_15] : memref<2x64x256xbf16, #tpu.memory_space<vmem>>, vector<1x64x256xbf16>
    %20 = vector.shape_cast %19 : vector<1x64x256xbf16> to vector<64x256xbf16>
    %cst_16 = arith.constant dense<0.000000e+00> : vector<256x256xf32>
    %21 = tpu.matmul %9, %20, %cst_16 {dimension_numbers = #tpu.dot_dimension_numbers<[1], [0], [0], [1], [0, 0, 1, 1], [], []>} : vector<256x64xbf16>, vector<64x256xbf16>, vector<256x256xf32> -> vector<256x256xf32>
    %22 = arith.addf %18, %21 : vector<256x256xf32>
    %23 = vector.extract_strided_slice %15 {offsets = [0, 0], sizes = [1, 256], strides = [1, 1]} : vector<2x256xbf16> to vector<1x256xbf16>
    %24 = arith.truncf %22 : vector<256x256xf32> to vector<256x256xbf16>
    %25 = vector.broadcast %23 : vector<1x256xbf16> to vector<256x256xbf16>
    %26 = arith.addf %24, %25 : vector<256x256xbf16>
    %cst_17 = arith.constant 0.000000e+00 : bf16
    %27 = vector.broadcast %cst_17 : bf16 to vector<256x256xbf16>
    %28 = arith.maximumf %26, %27 : vector<256x256xbf16>
    %c0_18 = arith.constant 0 : index
    %c0_19 = arith.constant 0 : index
    %c0_20 = arith.constant 0 : index
    %29 = vector.load %arg8[%c0_18, %c0_19, %c0_20] : memref<7x256x256xbf16, #tpu.memory_space<vmem>>, vector<1x256x256xbf16>
    %30 = vector.shape_cast %29 : vector<1x256x256xbf16> to vector<256x256xbf16>
    %cst_21 = arith.constant dense<0.000000e+00> : vector<256x256xf32>
    %31 = tpu.matmul %28, %30, %cst_21 {dimension_numbers = #tpu.dot_dimension_numbers<[1], [0], [0], [1], [0, 0, 1, 1], [], []>} : vector<256x256xbf16>, vector<256x256xbf16>, vector<256x256xf32> -> vector<256x256xf32>
    %32 = vector.extract_strided_slice %12 {offsets = [0, 0], sizes = [1, 256], strides = [1, 1]} : vector<8x256xbf16> to vector<1x256xbf16>
    %33 = arith.truncf %31 : vector<256x256xf32> to vector<256x256xbf16>
    %34 = vector.broadcast %32 : vector<1x256xbf16> to vector<256x256xbf16>
    %35 = arith.addf %33, %34 : vector<256x256xbf16>
    %cst_22 = arith.constant 0.000000e+00 : bf16
    %36 = vector.broadcast %cst_22 : bf16 to vector<256x256xbf16>
    %37 = arith.maximumf %35, %36 : vector<256x256xbf16>
    %c1 = arith.constant 1 : index
    %c0_23 = arith.constant 0 : index
    %c0_24 = arith.constant 0 : index
    %38 = vector.load %arg8[%c1, %c0_23, %c0_24] : memref<7x256x256xbf16, #tpu.memory_space<vmem>>, vector<1x256x256xbf16>
    %39 = vector.shape_cast %38 : vector<1x256x256xbf16> to vector<256x256xbf16>
    %cst_25 = arith.constant dense<0.000000e+00> : vector<256x256xf32>
    %40 = tpu.matmul %37, %39, %cst_25 {dimension_numbers = #tpu.dot_dimension_numbers<[1], [0], [0], [1], [0, 0, 1, 1], [], []>} : vector<256x256xbf16>, vector<256x256xbf16>, vector<256x256xf32> -> vector<256x256xf32>
    %41 = vector.extract_strided_slice %12 {offsets = [1, 0], sizes = [1, 256], strides = [1, 1]} : vector<8x256xbf16> to vector<1x256xbf16>
    %42 = arith.truncf %40 : vector<256x256xf32> to vector<256x256xbf16>
    %43 = vector.broadcast %41 : vector<1x256xbf16> to vector<256x256xbf16>
    %44 = arith.addf %42, %43 : vector<256x256xbf16>
    %cst_26 = arith.constant 0.000000e+00 : bf16
    %45 = vector.broadcast %cst_26 : bf16 to vector<256x256xbf16>
    %46 = arith.maximumf %44, %45 : vector<256x256xbf16>
    %c2 = arith.constant 2 : index
    %c0_27 = arith.constant 0 : index
    %c0_28 = arith.constant 0 : index
    %47 = vector.load %arg8[%c2, %c0_27, %c0_28] : memref<7x256x256xbf16, #tpu.memory_space<vmem>>, vector<1x256x256xbf16>
    %48 = vector.shape_cast %47 : vector<1x256x256xbf16> to vector<256x256xbf16>
    %cst_29 = arith.constant dense<0.000000e+00> : vector<256x256xf32>
    %49 = tpu.matmul %46, %48, %cst_29 {dimension_numbers = #tpu.dot_dimension_numbers<[1], [0], [0], [1], [0, 0, 1, 1], [], []>} : vector<256x256xbf16>, vector<256x256xbf16>, vector<256x256xf32> -> vector<256x256xf32>
    %50 = vector.extract_strided_slice %12 {offsets = [2, 0], sizes = [1, 256], strides = [1, 1]} : vector<8x256xbf16> to vector<1x256xbf16>
    %51 = arith.truncf %49 : vector<256x256xf32> to vector<256x256xbf16>
    %52 = vector.broadcast %50 : vector<1x256xbf16> to vector<256x256xbf16>
    %53 = arith.addf %51, %52 : vector<256x256xbf16>
    %cst_30 = arith.constant 0.000000e+00 : bf16
    %54 = vector.broadcast %cst_30 : bf16 to vector<256x256xbf16>
    %55 = arith.maximumf %53, %54 : vector<256x256xbf16>
    %c3 = arith.constant 3 : index
    %c0_31 = arith.constant 0 : index
    %c0_32 = arith.constant 0 : index
    %56 = vector.load %arg8[%c3, %c0_31, %c0_32] : memref<7x256x256xbf16, #tpu.memory_space<vmem>>, vector<1x256x256xbf16>
    %57 = vector.shape_cast %56 : vector<1x256x256xbf16> to vector<256x256xbf16>
    %cst_33 = arith.constant dense<0.000000e+00> : vector<256x256xf32>
    %58 = tpu.matmul %55, %57, %cst_33 {dimension_numbers = #tpu.dot_dimension_numbers<[1], [0], [0], [1], [0, 0, 1, 1], [], []>} : vector<256x256xbf16>, vector<256x256xbf16>, vector<256x256xf32> -> vector<256x256xf32>
    %59 = vector.extract_strided_slice %12 {offsets = [3, 0], sizes = [1, 256], strides = [1, 1]} : vector<8x256xbf16> to vector<1x256xbf16>
    %60 = arith.truncf %58 : vector<256x256xf32> to vector<256x256xbf16>
    %61 = vector.broadcast %59 : vector<1x256xbf16> to vector<256x256xbf16>
    %62 = arith.addf %60, %61 : vector<256x256xbf16>
    %cst_34 = arith.constant 0.000000e+00 : bf16
    %63 = vector.broadcast %cst_34 : bf16 to vector<256x256xbf16>
    %64 = arith.maximumf %62, %63 : vector<256x256xbf16>
    %c1_35 = arith.constant 1 : index
    %c0_36 = arith.constant 0 : index
    %c0_37 = arith.constant 0 : index
    %65 = vector.load %arg6[%c1_35, %c0_36, %c0_37] : memref<2x8x256xbf16, #tpu.memory_space<vmem>>, vector<1x8x256xbf16>
    %66 = vector.shape_cast %65 : vector<1x8x256xbf16> to vector<8x256xbf16>
    %cst_38 = arith.constant dense<0.000000e+00> : vector<256x256xf32>
    %67 = tpu.matmul %10, %66, %cst_38 {dimension_numbers = #tpu.dot_dimension_numbers<[1], [0], [0], [1], [0, 0, 1, 1], [], []>} : vector<256x8xbf16>, vector<8x256xbf16>, vector<256x256xf32> -> vector<256x256xf32>
    %c1_39 = arith.constant 1 : index
    %c0_40 = arith.constant 0 : index
    %c0_41 = arith.constant 0 : index
    %68 = vector.load %arg7[%c1_39, %c0_40, %c0_41] : memref<2x64x256xbf16, #tpu.memory_space<vmem>>, vector<1x64x256xbf16>
    %69 = vector.shape_cast %68 : vector<1x64x256xbf16> to vector<64x256xbf16>
    %cst_42 = arith.constant dense<0.000000e+00> : vector<256x256xf32>
    %70 = tpu.matmul %9, %69, %cst_42 {dimension_numbers = #tpu.dot_dimension_numbers<[1], [0], [0], [1], [0, 0, 1, 1], [], []>} : vector<256x64xbf16>, vector<64x256xbf16>, vector<256x256xf32> -> vector<256x256xf32>
    %71 = arith.addf %67, %70 : vector<256x256xf32>
    %c4 = arith.constant 4 : index
    %c0_43 = arith.constant 0 : index
    %c0_44 = arith.constant 0 : index
    %72 = vector.load %arg8[%c4, %c0_43, %c0_44] : memref<7x256x256xbf16, #tpu.memory_space<vmem>>, vector<1x256x256xbf16>
    %73 = vector.shape_cast %72 : vector<1x256x256xbf16> to vector<256x256xbf16>
    %cst_45 = arith.constant dense<0.000000e+00> : vector<256x256xf32>
    %74 = tpu.matmul %64, %73, %cst_45 {dimension_numbers = #tpu.dot_dimension_numbers<[1], [0], [0], [1], [0, 0, 1, 1], [], []>} : vector<256x256xbf16>, vector<256x256xbf16>, vector<256x256xf32> -> vector<256x256xf32>
    %75 = arith.addf %71, %74 : vector<256x256xf32>
    %76 = vector.extract_strided_slice %15 {offsets = [1, 0], sizes = [1, 256], strides = [1, 1]} : vector<2x256xbf16> to vector<1x256xbf16>
    %77 = arith.truncf %75 : vector<256x256xf32> to vector<256x256xbf16>
    %78 = vector.broadcast %76 : vector<1x256xbf16> to vector<256x256xbf16>
    %79 = arith.addf %77, %78 : vector<256x256xbf16>
    %cst_46 = arith.constant 0.000000e+00 : bf16
    %80 = vector.broadcast %cst_46 : bf16 to vector<256x256xbf16>
    %81 = arith.maximumf %79, %80 : vector<256x256xbf16>
    %c5 = arith.constant 5 : index
    %c0_47 = arith.constant 0 : index
    %c0_48 = arith.constant 0 : index
    %82 = vector.load %arg8[%c5, %c0_47, %c0_48] : memref<7x256x256xbf16, #tpu.memory_space<vmem>>, vector<1x256x256xbf16>
    %83 = vector.shape_cast %82 : vector<1x256x256xbf16> to vector<256x256xbf16>
    %cst_49 = arith.constant dense<0.000000e+00> : vector<256x256xf32>
    %84 = tpu.matmul %81, %83, %cst_49 {dimension_numbers = #tpu.dot_dimension_numbers<[1], [0], [0], [1], [0, 0, 1, 1], [], []>} : vector<256x256xbf16>, vector<256x256xbf16>, vector<256x256xf32> -> vector<256x256xf32>
    %85 = vector.extract_strided_slice %12 {offsets = [4, 0], sizes = [1, 256], strides = [1, 1]} : vector<8x256xbf16> to vector<1x256xbf16>
    %86 = arith.truncf %84 : vector<256x256xf32> to vector<256x256xbf16>
    %87 = vector.broadcast %85 : vector<1x256xbf16> to vector<256x256xbf16>
    %88 = arith.addf %86, %87 : vector<256x256xbf16>
    %cst_50 = arith.constant 0.000000e+00 : bf16
    %89 = vector.broadcast %cst_50 : bf16 to vector<256x256xbf16>
    %90 = arith.maximumf %88, %89 : vector<256x256xbf16>
    %c6 = arith.constant 6 : index
    %c0_51 = arith.constant 0 : index
    %c0_52 = arith.constant 0 : index
    %91 = vector.load %arg8[%c6, %c0_51, %c0_52] : memref<7x256x256xbf16, #tpu.memory_space<vmem>>, vector<1x256x256xbf16>
    %92 = vector.shape_cast %91 : vector<1x256x256xbf16> to vector<256x256xbf16>
    %cst_53 = arith.constant dense<0.000000e+00> : vector<256x256xf32>
    %93 = tpu.matmul %90, %92, %cst_53 {dimension_numbers = #tpu.dot_dimension_numbers<[1], [0], [0], [1], [0, 0, 1, 1], [], []>} : vector<256x256xbf16>, vector<256x256xbf16>, vector<256x256xf32> -> vector<256x256xf32>
    %94 = vector.extract_strided_slice %12 {offsets = [5, 0], sizes = [1, 256], strides = [1, 1]} : vector<8x256xbf16> to vector<1x256xbf16>
    %95 = arith.truncf %93 : vector<256x256xf32> to vector<256x256xbf16>
    %96 = vector.broadcast %94 : vector<1x256xbf16> to vector<256x256xbf16>
    %97 = arith.addf %95, %96 : vector<256x256xbf16>
    %cst_54 = arith.constant 0.000000e+00 : bf16
    %98 = vector.broadcast %cst_54 : bf16 to vector<256x256xbf16>
    %99 = arith.maximumf %97, %98 : vector<256x256xbf16>
    %c0_55 = arith.constant 0 : index
    %c0_56 = arith.constant 0 : index
    %100 = vector.load %arg9[%c0_55, %c0_56] : memref<24x256xbf16, #tpu.memory_space<vmem>>, vector<24x256xbf16>
    %cst_57 = arith.constant dense<0.000000e+00> : vector<24x256xf32>
    %101 = tpu.matmul %100, %99, %cst_57 {dimension_numbers = #tpu.dot_dimension_numbers<[1], [1], [0], [0], [0, 0, 1, 0], [], []>} : vector<24x256xbf16>, vector<256x256xbf16>, vector<24x256xf32> -> vector<24x256xf32>
    %c0_58 = arith.constant 0 : index
    %c0_59 = arith.constant 0 : index
    %102 = vector.load %arg11[%c0_58, %c0_59] : memref<24x1xf32, #tpu.memory_space<vmem>>, vector<24x1xf32>
    %103 = vector.broadcast %102 : vector<24x1xf32> to vector<24x256xf32>
    %104 = arith.addf %101, %103 : vector<24x256xf32>
    %c0_60 = arith.constant 0 : index
    %c0_61 = arith.constant 0 : index
    %c0_62 = arith.constant 0 : index
    %105 = vector.load %arg3[%c0_60, %c0_61, %c0_62] : memref<1x24x256xf32, #tpu.memory_space<vmem>>, vector<1x24x256xf32>
    %106 = vector.shape_cast %105 : vector<1x24x256xf32> to vector<24x256xf32>
    %cst_63 = arith.constant 9.99999971E-10 : f32
    %107 = vector.broadcast %cst_63 : f32 to vector<24x256xf32>
    %108 = arith.addf %106, %107 : vector<24x256xf32>
    %109 = math.log %108 : vector<24x256xf32>
    %110 = arith.addf %104, %109 : vector<24x256xf32>
    %cst_64 = arith.constant dense<0xFF800000> : vector<256xf32>
    %111 = vector.multi_reduction <maximumf>, %110, %cst_64 [0] : vector<24x256xf32> to vector<256xf32>
    %112 = vector.shape_cast %111 : vector<256xf32> to vector<1x256xf32>
    %113 = vector.broadcast %112 : vector<1x256xf32> to vector<24x256xf32>
    %114 = arith.subf %110, %113 : vector<24x256xf32>
    %115 = math.exp %114 : vector<24x256xf32>
    %cst_65 = arith.constant dense<0.000000e+00> : vector<256xf32>
    %116 = vector.multi_reduction <add>, %115, %cst_65 [0] : vector<24x256xf32> to vector<256xf32>
    %117 = vector.shape_cast %116 : vector<256xf32> to vector<1x256xf32>
    %118 = tpu.reciprocal %117 {approx = true} : vector<1x256xf32> -> vector<1x256xf32>
    %119 = arith.mulf %117, %118 : vector<1x256xf32>
    %cst_66 = arith.constant 2.000000e+00 : f32
    %120 = vector.broadcast %cst_66 : f32 to vector<1x256xf32>
    %121 = arith.subf %120, %119 : vector<1x256xf32>
    %122 = arith.mulf %118, %121 : vector<1x256xf32>
    %123 = vector.broadcast %122 : vector<1x256xf32> to vector<24x256xf32>
    %124 = arith.mulf %115, %123 : vector<24x256xf32>
    %c0_67 = arith.constant 0 : index
    %c0_68 = arith.constant 0 : index
    %c0_69 = arith.constant 0 : index
    %125 = vector.load %arg12[%c0_67, %c0_68, %c0_69] : memref<1x24x256xf32, #tpu.memory_space<vmem>>, vector<1x24x256xf32>
    %126 = vector.shape_cast %125 : vector<1x24x256xf32> to vector<24x256xf32>
    %127 = vector.shape_cast %124 : vector<24x256xf32> to vector<1x24x256xf32>
    tpu.vector_store %arg12[%c0_67, %c0_68, %c0_69], %127 {strides = array<i32>} : memref<1x24x256xf32, #tpu.memory_space<vmem>>, vector<1x24x256xf32>,
    return
  }
  func.func @transform_0(%arg0: i32, %arg1: i32) -> (i32, i32, i32) {
    %c0_i32 = arith.constant 0 : i32
    %c0_i32_0 = arith.constant 0 : i32
    return %arg0, %arg1, %c0_i32 : i32, i32, i32
  }
  func.func @transform_1(%arg0: i32, %arg1: i32) -> (i32, i32, i32) {
    %c0_i32 = arith.constant 0 : i32
    %c0_i32_0 = arith.constant 0 : i32
    return %arg0, %c0_i32, %arg1 : i32, i32, i32
  }
  func.func @transform_2(%arg0: i32, %arg1: i32) -> (i32, i32, i32) {
    %c0_i32 = arith.constant 0 : i32
    %c0_i32_0 = arith.constant 0 : i32
    %c0_i32_1 = arith.constant 0 : i32
    return %arg0, %c0_i32, %c0_i32_0 : i32, i32, i32
  }
  func.func @transform_3(%arg0: i32, %arg1: i32) -> (i32, i32) {
    %c0_i32 = arith.constant 0 : i32
    %c0_i32_0 = arith.constant 0 : i32
    %c0_i32_1 = arith.constant 0 : i32
    return %c0_i32, %c0_i32_0 : i32, i32
  }
  func.func @transform_4(%arg0: i32, %arg1: i32) -> (i32, i32, i32) {
    %c0_i32 = arith.constant 0 : i32
    %c0_i32_0 = arith.constant 0 : i32
    %c0_i32_1 = arith.constant 0 : i32
    %c0_i32_2 = arith.constant 0 : i32
    return %c0_i32, %c0_i32_0, %c0_i32_1 : i32, i32, i32
  }
  func.func @transform_5(%arg0: i32, %arg1: i32) -> (i32, i32, i32) {
    %c0_i32 = arith.constant 0 : i32
    %c0_i32_0 = arith.constant 0 : i32
    %c0_i32_1 = arith.constant 0 : i32
    %c0_i32_2 = arith.constant 0 : i32
    return %c0_i32, %c0_i32_0, %c0_i32_1 : i32, i32, i32
  }
  func.func @transform_6(%arg0: i32, %arg1: i32) -> (i32, i32, i32) {
    %c0_i32 = arith.constant 0 : i32
    %c0_i32_0 = arith.constant 0 : i32
    %c0_i32_1 = arith.constant 0 : i32
    %c0_i32_2 = arith.constant 0 : i32
    return %c0_i32, %c0_i32_0, %c0_i32_1 : i32, i32, i32
  }
  func.func @transform_7(%arg0: i32, %arg1: i32) -> (i32, i32) {
    %c0_i32 = arith.constant 0 : i32
    %c0_i32_0 = arith.constant 0 : i32
    %c0_i32_1 = arith.constant 0 : i32
    return %c0_i32, %c0_i32_0 : i32, i32
  }
  func.func @transform_8(%arg0: i32, %arg1: i32) -> (i32, i32) {
    %c0_i32 = arith.constant 0 : i32
    %c0_i32_0 = arith.constant 0 : i32
    %c0_i32_1 = arith.constant 0 : i32
    return %c0_i32, %c0_i32_0 : i32, i32
  }
  func.func @transform_9(%arg0: i32, %arg1: i32) -> (i32, i32) {
    %c0_i32 = arith.constant 0 : i32
    %c0_i32_0 = arith.constant 0 : i32
    %c0_i32_1 = arith.constant 0 : i32
    return %c0_i32, %c0_i32_0 : i32, i32
  }
  func.func @transform_10(%arg0: i32, %arg1: i32) -> (i32, i32, i32) {
    %c0_i32 = arith.constant 0 : i32
    %c0_i32_0 = arith.constant 0 : i32
    return %arg0, %c0_i32, %arg1 : i32, i32, i32
  }
}

</mosaic_0001>

<bundles_post_ra>
// kernel: backward_blend_weight.1
= control target key start
LH: loop header
LB: loop body
LE: loop exit
PB: predicated region body
PF: predicated region fallthrough
CT: control target
= control target key end

     0   :  { %s15860_s0 = inlined_call_operand.vmem [shape: f32[2,256,8], index: 0, kind: input, shape index: {}]   ;;  %s15861_s1 = inlined_call_operand.vmem [shape: f32[2,24,256], index: 1, kind: input, shape index: {}]   ;;  %s15862_s2 = inlined_call_operand.vmem [shape: f32[2,2,256], index: 2, kind: input, shape index: {}]   ;;  %s15863_s3 = inlined_call_operand.vmem [shape: f32[9,64], index: 3, kind: input, shape index: {}]   ;;  %s15864_s4 = inlined_call_operand.vmem [shape: bf16[2,8,256], index: 4, kind: input, shape index: {}]   ;;  %s15865_s5 = inlined_call_operand.vmem [shape: bf16[2,64,256], index: 5, kind: input, shape index: {}]   ;;  %s15866_s6 = inlined_call_operand.vmem [shape: bf16[7,256,256], index: 6, kind: input, shape index: {}]   ;;  %s15867_s7 = inlined_call_operand.vmem [shape: bf16[24,256], index: 7, kind: input, shape index: {}]   ;;  %s15868_s8 = inlined_call_operand.vmem [shape: f32[8,256], index: 8, kind: input, shape index: {}]   ;;  %s15869_s9 = inlined_call_operand.vmem [shape: f32[24,1], index: 9, kind: input, shape index: {}]   ;;  %s15870_s10 = inlined_call_operand.hbm [shape: f32[2,24,256], index: 10, kind: output, shape index: {}]  }
   0x1   :  { %16136 = sst [smem:[#allocation139_spill]] %s15860_s0 }
   0x2   :  { %15 = vsyncpa [#allocation3], 0 }
   0x3   :  { %17 = vsyncpa [#allocation3 + $0x1], 0  ;;  %s10949_s13 = smov 0   ;;  %s10951_s14 = smov 0  }
   0x4   :  { %s10953_s15 = smov 0   ;;  %s10955_s16 = smov 0  }
   0x5   :  { %s10957_s17 = smov 0   ;;  %s10959_s18 = smov 0  }
   0x6 LB: > { %s9111_s19 = sadd.s32 4294967295, %s10882_s18   ;;  %s9112_s20 = sadd.s32 4294967294, %s10882_s18   ;;  %s10882_s18 = sphi %s10959_s18, %s23_s18   ;;  %s10878_s17 = sphi %s10957_s17, %s16696_s17   ;;  %s10874_s16 = sphi %s10955_s16, %s16695_s16   ;;  %s10870_s15 = sphi %s10953_s15, %s16694_s15   ;;  %s10866_s14 = sphi %s10951_s14, %s16693_s14   ;;  %s10862_s13 = sphi %s10949_s13, %s16692_s13  }
   0x7   : > { %s35_s21 = sadd.s32 1, %s10878_s17  ;;  %s273_s22 = sadd.s32 1, %s10870_s15 }
   0x8   : > { %p37_p0 = scmp.ge.s32.totalorder %s35_s21, 2  ;;  %p283_p1 = scmp.ne.s32.totalorder %s10870_s15, %s10866_s14 }
   0x9   : > { %p284_p2 = scmp.eq.s32.totalorder %s9111_s19, 1  ;;  %p289_p3 = scmp.ne.s32.totalorder %s10866_s14, %s10862_s13 }
   0xa   : > { %s16698_s21 = smov (%p37_p0, %s35_s21), 0  ;;  %p290_p5 = scmp.eq.s32.totalorder %s9112_s20, 1 }
   0xb   : > { %p10989_p4 = por %p284_p2, %p283_p1  ;;  %s268_s24 = ssub.s32 %s10878_s17, %s16698_s21 }
   0xc   : > { %p9115_p6 = scmp.ge.s32.totalorder %s10882_s18, 1  ;;  %p271_p7 = scmp.eq.s32.totalorder %s268_s24, 0 }
   0xd   : > { %p10996_p8 = por %p290_p5, %p289_p3  ;;  %p363_p9 = scmp.lt.s32.totalorder %s10882_s18, 3 }
   0xe   : > { %s11002_s26 = scalar_select %p271_p7, %s10870_s15, %s273_s22  }
   0xf   : > { %p364_p10 = pnand %p9115_p6, %p363_p9 }
  0x11   : > { %367 = sbr.rel (%p364_p10) target bundleno = 3315 (0xcf3), region = 60 }
  0x18   : > { %v478_v0 = vld [vmem:[%s15863_s3] sm:$0xff]  ;;  %p420_p11 = scmp.lt.s32.totalorder %s10874_s16, 1  ;;  %vm15936_vm0 = vcmask 64512   ;;  %s16139_s0 = sld [smem:[#allocation139_spill]]  ;;  %v11116_v49 = vld [vmem:[%s15863_s3 + $0x8] ss:$0 sm:$0xff] }
  0x19   : > { %9836 = vmatprep.subr.mxu0 %v478_v0  ;;  %s10208_s11 = smul.u32 768, %s10874_s16 }
  0x1a   : > { %9837 = vmatpush3.msra.mxu0 %v478_v0  ;;  %s11009_s29 = scalar_select %p420_p11, %s10874_s16, 1 }
  0x1c   : > { %s9801_s30 = sshll.u32 %s11009_s29, 8  ;;  %s9802_s28 = sshll.u32 %s11009_s29, 2 }
  0x1d   : > { %s443_s12 = scalar_lea.vmem %s15862_s2, %s9802_s28  ;;  %s10079_s24 = smul.u32 48, %s11009_s29 }
  0x1e   : > { %s11015_s19 = scalar_lea.vmem %s16139_s0, %s9801_s30  ;;  %s416_s29 = sand.u32 1, %s10866_s14  }
  0x1f   : > { %v446_v1 = vld [vmem:[%s11015_s19] sm:$0xff]  ;;  %v447_v2 = vld [vmem:[%s11015_s19 + $0x8] sm:$0xff]  ;;  %v448_v3 = vld [vmem:[%s11015_s19 + $0x10] sm:$0xff]  ;;  %s437_s28 = scalar_lea.vmem %s15861_s1, %s10079_s24  ;;  %s10078_s30 = smul.u32 48, %s416_s29 }
  0x20   : > { %9838 = vmatprep.mubr.msk.f32.mxu0 %vm15936_vm0, %v446_v1  ;;  %v11021_v4 = vpack.c.bf16 %v447_v2, %v446_v1  ;;  %v449_v5 = vld [vmem:[%s11015_s19 + $0x18] sm:$0xff]  ;;  %v450_v6 = vld [vmem:[%s11015_s19 + $0x20] sm:$0xff]  ;;  %v451_v7 = vld [vmem:[%s11015_s19 + $0x28] sm:$0xff]  ;;  %s15810_s24 = scalar_lea.hbm %s15870_s10, %s10208_s11  ;;  %s15814_s16 = scalar_lea.sflag [#allocation3], %s416_s29 }
  0x21   : > { %9839 = vmatmul.mubr.msk.f32.vlgmr.msra.gmra.mrb[0].mxu0 %vm15936_vm0, %v447_v2  ;;  %v11027_v8 = vpack.c.bf16 %v449_v5, %v448_v3  ;;  %v11029_v9 = vpack.c.bf16 %v451_v7, %v450_v6  ;;  %v452_v10 = vld [vmem:[%s11015_s19 + $0x30] sm:$0xff]  ;;  %v453_v11 = vld [vmem:[%s11015_s19 + $0x38] sm:$0xff]  ;;  %v454_v12 = vld [vmem:[%s11015_s19 + $0x40] sm:$0xff]  ;;  %s10891_s0 = smov [#allocation2]  }
  0x22   : > { %16140 = vst [vmem:[#allocation5_spill] sm:$0xff] %v11021_v4  ;;  %9841 = vmatprep.mubr.msk.f32.mxu0 %vm15936_vm0, %v448_v3  ;;  %v11035_v13 = vpack.c.bf16 %v453_v11, %v452_v10  ;;  %v455_v14 = vld [vmem:[%s11015_s19 + $0x48] sm:$0xff]  ;;  %v456_v15 = vld [vmem:[%s11015_s19 + $0x50] sm:$0xff]  ;;  %v457_v16 = vld [vmem:[%s11015_s19 + $0x58] sm:$0xff] }
  0x23   : > { %16141 = vst [vmem:[#allocation6_spill] sm:$0xff] %v11027_v8  ;;  %16142 = vst [vmem:[#allocation7_spill] sm:$0xff] %v11029_v9  ;;  %v11040_v17 = vpack.c.bf16 %v455_v14, %v454_v12  ;;  %v11042_v18 = vpack.c.bf16 %v457_v16, %v456_v15  ;;  %v458_v19 = vld [vmem:[%s11015_s19 + $0x60] sm:$0xff]  ;;  %v459_v20 = vld [vmem:[%s11015_s19 + $0x68] sm:$0xff] }
  0x24   : > { %16143 = vst [vmem:[#allocation8_spill] sm:$0xff] %v11035_v13  ;;  %v460_v21 = vld [vmem:[%s11015_s19 + $0x70] sm:$0xff]  ;;  %v11047_v22 = vpack.c.bf16 %v459_v20, %v458_v19  ;;  %v461_v23 = vld [vmem:[%s11015_s19 + $0x78] sm:$0xff]  ;;  %v462_v24 = vld [vmem:[%s11015_s19 + $0x80] sm:$0xff] }
  0x25   : > { %16144 = vst [vmem:[#allocation9_spill] sm:$0xff] %v11040_v17  ;;  %16145 = vst [vmem:[#allocation10_spill] sm:$0xff] %v11042_v18  ;;  %v463_v25 = vld [vmem:[%s11015_s19 + $0x88] sm:$0xff]  ;;  %9842 = vmatmul.mubr.msk.f32.gmra.mrb[2].mxu0 %vm15936_vm0, %v449_v5  ;;  %v11053_v26 = vpack.c.bf16 %v461_v23, %v460_v21  ;;  %v464_v28 = vld [vmem:[%s11015_s19 + $0x90] sm:$0xff] }
  0x26   : > { %16146 = vst [vmem:[#allocation11_spill] sm:$0xff] %v11047_v22  ;;  %v11055_v27 = vpack.c.bf16 %v463_v25, %v462_v24  ;;  %v465_v29 = vld [vmem:[%s11015_s19 + $0x98] sm:$0xff]  ;;  %v466_v30 = vld [vmem:[%s11015_s19 + $0xa0] sm:$0xff]  ;;  %9844 = vmatprep.mubr.msk.f32.mxu0 %vm15936_vm0, %v450_v6  ;;  %v467_v32 = vld [vmem:[%s11015_s19 + $0xa8] sm:$0xff] }
  0x27   : > { %16147 = vst [vmem:[#allocation12_spill] sm:$0xff] %v11053_v26  ;;  %v11061_v31 = vpack.c.bf16 %v465_v29, %v464_v28  ;;  %v468_v33 = vld [vmem:[%s11015_s19 + $0xb0] sm:$0xff]  ;;  %v469_v34 = vld [vmem:[%s11015_s19 + $0xb8] sm:$0xff]  ;;  %v11066_v35 = vpack.c.bf16 %v467_v32, %v466_v30  ;;  %v470_v37 = vld [vmem:[%s11015_s19 + $0xc0] sm:$0xff] }
  0x28   : > { %16148 = vst [vmem:[#allocation13_spill] sm:$0xff] %v11055_v27  ;;  %v11068_v36 = vpack.c.bf16 %v469_v34, %v468_v33  ;;  %v471_v38 = vld [vmem:[%s11015_s19 + $0xc8] sm:$0xff]  ;;  %v472_v39 = vld [vmem:[%s11015_s19 + $0xd0] sm:$0xff]  ;;  %v473_v41 = vld [vmem:[%s11015_s19 + $0xd8] sm:$0xff] }
  0x29   : > { %16149 = vst [vmem:[#allocation14_spill] sm:$0xff] %v11061_v31  ;;  %16150 = vst [vmem:[#allocation15_spill] sm:$0xff] %v11066_v35  ;;  %v11073_v40 = vpack.c.bf16 %v471_v38, %v470_v37  ;;  %v474_v42 = vld [vmem:[%s11015_s19 + $0xe0] sm:$0xff]  ;;  %v475_v43 = vld [vmem:[%s11015_s19 + $0xe8] sm:$0xff]  ;;  %9845 = vmatmul.mubr.msk.f32.gmra.mrb[4].mxu0 %vm15936_vm0, %v451_v7  ;;  %v11079_v44 = vpack.c.bf16 %v473_v41, %v472_v39 }
  0x2a   : > { %16151 = vst [vmem:[#allocation16_spill] sm:$0xff] %v11068_v36  ;;  %v11081_v45 = vpack.c.bf16 %v475_v43, %v474_v42  ;;  %v476_v46 = vld [vmem:[%s11015_s19 + $0xf0] sm:$0xff]  ;;  %v477_v47 = vld [vmem:[%s11015_s19 + $0xf8] sm:$0xff]  ;;  %9847 = vmatprep.mubr.msk.f32.mxu0 %vm15936_vm0, %v452_v10  ;;  %v16166_v36 = vmov 1326507024  }
  0x2b   : > { %16152 = vst [vmem:[#allocation17_spill] sm:$0xff] %v11073_v40  ;;  %16153 = vst [vmem:[#allocation18_spill] sm:$0xff] %v11079_v44  ;;  %v11086_v48 = vpack.c.bf16 %v477_v47, %v476_v46 }
  0x2c   : > { %16154 = vst [vmem:[#allocation19_spill] sm:$0xff] %v11081_v45 }
  0x2d   : > { %16155 = vst [vmem:[#allocation20_spill] sm:$0xff] %v11086_v48  ;;  %9848 = vmatmul.mubr.msk.f32.gmra.mrb[6].mxu0 %vm15936_vm0, %v453_v11 }
  0x2e   : > { %9850 = vmatprep.mubr.msk.f32.mxu0 %vm15936_vm0, %v454_v12 }
  0x31   : > { %9851 = vmatmul.mubr.msk.f32.gmra.mrb[8].mxu0 %vm15936_vm0, %v455_v14 }
  0x32   : > { %9853 = vmatprep.mubr.msk.f32.mxu0 %vm15936_vm0, %v456_v15 }
  0x35   : > { %9854 = vmatmul.mubr.msk.f32.gmra.mrb[10].mxu0 %vm15936_vm0, %v457_v16 }
  0x36   : > { %9856 = vmatprep.mubr.msk.f32.mxu0 %vm15936_vm0, %v458_v19 }
  0x39   : > { %9857 = vmatmul.mubr.msk.f32.gmra.mrb[12].mxu0 %vm15936_vm0, %v459_v20 }
  0x3a   : > { %9859 = vmatprep.mubr.msk.f32.mxu0 %vm15936_vm0, %v460_v21 }
  0x3d   : > { %9860 = vmatmul.mubr.msk.f32.gmra.mrb[14].mxu0 %vm15936_vm0, %v461_v23 }
  0x3e   : > { %9862 = vmatprep.mubr.msk.f32.mxu0 %vm15936_vm0, %v462_v24 }
  0x41   : > { %9863 = vmatmul.mubr.msk.f32.gmra.mrb[16].mxu0 %vm15936_vm0, %v463_v25 }
  0x42   : > { %9865 = vmatprep.mubr.msk.f32.mxu0 %vm15936_vm0, %v464_v28 }
  0x45   : > { %9866 = vmatmul.mubr.msk.f32.gmra.mrb[18].mxu0 %vm15936_vm0, %v465_v29 }
  0x46   : > { %9868 = vmatprep.mubr.msk.f32.mxu0 %vm15936_vm0, %v466_v30 }
  0x49   : > { %9869 = vmatmul.mubr.msk.f32.gmra.mrb[20].mxu0 %vm15936_vm0, %v467_v32 }
  0x4a   : > { %9871 = vmatprep.mubr.msk.f32.mxu0 %vm15936_vm0, %v468_v33 }
  0x4d   : > { %9872 = vmatmul.mubr.msk.f32.gmra.mrb[22].mxu0 %vm15936_vm0, %v469_v34 }
  0x4e   : > { %9874 = vmatprep.mubr.msk.f32.mxu0 %vm15936_vm0, %v470_v37 }
  0x51   : > { %9875 = vmatmul.mubr.msk.f32.gmra.mrb[24].mxu0 %vm15936_vm0, %v471_v38 }
  0x52   : > { %9877 = vmatprep.mubr.msk.f32.mxu0 %vm15936_vm0, %v472_v39 }
  0x55   : > { %9878 = vmatmul.mubr.msk.f32.gmra.mrb[26].mxu0 %vm15936_vm0, %v473_v41  ;;  %v15881_v41 = vmov 683565275  }
  0x56   : > { %9880 = vmatprep.mubr.msk.f32.mxu0 %vm15936_vm0, %v474_v42 }
  0x59   : > { %9881 = vmatmul.mubr.msk.f32.gmra.mrb[28].mxu0 %vm15936_vm0, %v475_v43  ;;  %v15878_v43 = vmov 2475754826  }
  0x5a   : > { %9883 = vmatprep.mubr.msk.f32.mxu0 %vm15936_vm0, %v476_v46 }
  0x5d   : > { %9884 = vmatmul.mubr.msk.f32.gmra.mrb[30].mxu0 %vm15936_vm0, %v477_v47 }
  0xf4   : > { %v9840_v50 = vpop.f32.mrb[0].mxu0 }
  0xf5   : > { %v11119_v51 = vadd.f32 %v9840_v50, %v11116_v49  ;;  %v647_v52 = vpop.f32.mrb[1].mxu0  ;;  %v15874_v50 = vmov 2131351028  }
  0xf6   : > { %v11122_v53 = vadd.f32 %v11116_v49, %v647_v52 }
  0xf7   : > { %16156 = vst [vmem:[#allocation21_spill] sm:$0xff] %v11119_v51  ;;  %v15873_v54 = vand.u32 2147483647, %v11119_v51  ;;  %v913_v55 = vand.u32 2139095040, %v11119_v51 }
  0xf8   : > { %v15872_v56 = vand.u32 2147483647, %v11122_v53  ;;  %v809_v57 = vand.u32 2139095040, %v11122_v53  ;;  %v9843_v58 = vpop.f32.mrb[2].mxu0 }
  0xf9   : > { %v914_v59 = vshrl.u32 %v913_v55, 23  ;;  %v917_v60 = vand.u32 8388607, %v15873_v54  ;;  %v11131_v61 = vadd.f32 %v9843_v58, %v11116_v49  ;;  %v657_v62 = vpop.f32.mrb[3].mxu0  ;;  %v15876_v55 = vmov 2102212464  }
  0xfa   : > { %v810_v63 = vshrl.u32 %v809_v57, 23  ;;  %v813_v0 = vand.u32 8388607, %v15872_v56  ;;  %v11144_v16 = vadd.f32 %v11116_v49, %v657_v62  ;;  %v15885_v58 = vmov 920167782  }
  0xfb   : > { %16157 = vst [vmem:[#allocation22_spill] sm:$0xff] %v11131_v61  ;;  %v9158_v1 = vadd.s32 4294967169, %v914_v59  ;;  %v15871_v2 = vand.u32 2147483647, %v11131_v61  ;;  %v918_v3 = vor.u32 8388608, %v917_v60  ;;  %v1121_v6 = vand.u32 2139095040, %v11131_v61 }
  0xfc   : > { %v9154_v5 = vadd.s32 4294967169, %v810_v63  ;;  %v11137_v7 = vpop.f32.mrb[4].mxu0  ;;  %v814_v11 = vor.u32 8388608, %v813_v0  ;;  %16158 = vst [vmem:[#allocation23_spill] sm:$0xff] %v11144_v16  ;;  %v1017_v38 = vand.u32 2139095040, %v11144_v16 }
  0xfd   : > { %v920_v10 = vadd.s32 1, %v9158_v1  ;;  %v1122_v14 = vshrl.u32 %v1121_v6, 23  ;;  %v11141_v15 = vand.u32 8388607, %v15871_v2  ;;  %v11146_v19 = vpop.f32.mrb[5].mxu0  ;;  %v11148_v21 = vshll.u32 %v918_v3, 8 }
  0xfe   : > { %v816_v12 = vadd.s32 1, %v9154_v5  ;;  %v11152_v30 = vshll.u32 %v814_v11, 8  ;;  %v15883_v5 = vmov 1326507024  }
  0xff   : > { %vm921_vm1 = vcmp.gt.s32.totalorder %v920_v10, 0  ;;  %v9166_v23 = vadd.s32 4294967169, %v1122_v14  ;;  %v1126_v37 = vor.u32 8388608, %v11141_v15 }
 0x100   : > { %v922_v20 = vsel %vm921_vm1, %v920_v10, 0  ;;  %vm817_vm2 = vcmp.gt.s32.totalorder %v816_v12, 0  ;;  %v11150_v24 = vpop.f32.mrb[6].mxu0 }
 0x101   : > { %v923_v25 = vshrl.u32 %v922_v20, 5  ;;  %v924_v28 = vand.u32 31, %v922_v20  ;;  %v818_v29 = vsel %vm817_vm2, %v816_v12, 0  ;;  %v11154_v32 = vpop.f32.mrb[7].mxu0  ;;  %v11164_v47 = vadd.s32 1, %v9166_v23 }
 0x102   : > { %v11156_v33 = vshrl.u32 %v818_v29, 5  ;;  %v11158_v34 = vand.u32 31, %v818_v29 }
 0x103   : > { %v925_v39 = vsub.s32 32, %v924_v28  ;;  %v927_v42 = vshll.u32 %v15881_v41, %v924_v28  ;;  %v930_v46 = vshll.u32 %v15878_v43, %v924_v28  ;;  %v933_v52 = vshll.u32 %v15874_v50, %v924_v28 }
 0x104   : > { %v936_v57 = vshll.u32 %v15876_v55, %v924_v28  ;;  %v939_v59 = vshll.u32 %v15885_v58, %v924_v28  ;;  %vm942_vm3 = vcmp.lt.s32.totalorder %v923_v25, 1  ;;  %v11169_v60 = vpop.f32.mrb[8].mxu0  ;;  %vm943_vm4 = vcmp.lt.s32.totalorder %v923_v25, 2 }
 0x105   : > { %v928_v62 = vshrl.u32 %v15878_v43, %v925_v39  ;;  %v931_v63 = vshrl.u32 %v15874_v50, %v925_v39  ;;  %v934_v0 = vshrl.u32 %v15876_v55, %v925_v39  ;;  %v926_v1 = vshrl.u32 %v15881_v41, %v925_v39 }
 0x106   : > { %v937_v3 = vshrl.u32 %v15885_v58, %v925_v39  ;;  %v940_v6 = vshrl.u32 %v15883_v5, %v925_v39  ;;  %vm944_vm5 = vcmp.lt.s32.totalorder %v923_v25, 3  ;;  %v821_v14 = vsub.s32 32, %v11158_v34 }
 0x107   : > { %v929_v10 = vor.u32 %v928_v62, %v927_v42  ;;  %v932_v11 = vor.u32 %v931_v63, %v930_v46  ;;  %v935_v12 = vor.u32 %v934_v0, %v933_v52  ;;  %vm945_vm6 = vcmp.lt.s32.totalorder %v923_v25, 4 }
 0x108   : > { %v938_v20 = vor.u32 %v937_v3, %v936_v57  ;;  %v941_v23 = vor.u32 %v940_v6, %v939_v59  ;;  %v823_v28 = vshll.u32 %v15881_v41, %v11158_v34  ;;  %v826_v52 = vshll.u32 %v15878_v43, %v11158_v34 }
 0x109   : > { %v946_v29 = vsel %vm942_vm3, %v926_v1, %v929_v10  ;;  %v947_v2 = vsel %vm945_vm6, %v935_v12, 2102212464  ;;  %v950_v56 = vsel %vm942_vm3, %v929_v10, %v932_v11  ;;  %v954_v54 = vsel %vm942_vm3, %v932_v11, %v935_v12 }
 0x10a   : > { %v948_v39 = vsel %vm944_vm5, %v932_v11, %v947_v2  ;;  %v951_v42 = vsel %vm945_vm6, %v938_v20, 920167782  ;;  %v955_v46 = vsel %vm945_vm6, %v941_v23, 1326507024  ;;  %v822_v62 = vshrl.u32 %v15881_v41, %v821_v14 }
 0x10b   : > { %v952_v57 = vsel %vm944_vm5, %v935_v12, %v951_v42  ;;  %v956_v59 = vsel %vm944_vm5, %v938_v20, %v955_v46  ;;  %v824_v63 = vshrl.u32 %v15878_v43, %v821_v14  ;;  %v949_v0 = vsel %vm943_vm4, %v946_v29, %v948_v39 }
 0x10c   : > { %v953_v1 = vsel %vm943_vm4, %v950_v56, %v952_v57  ;;  %v957_v3 = vsel %vm943_vm4, %v954_v54, %v956_v59  ;;  %v827_v2 = vshrl.u32 %v15874_v50, %v821_v14  ;;  %v829_v29 = vshll.u32 %v15874_v50, %v11158_v34 }
 0x10d   : > { %v11195_v6 = vmul.u32.u64.low %v11148_v21, %v957_v3  ;;  %v11196_v10 = vmul.u32.u64.high %v11148_v21, %v957_v3, %v11195_v6  ;;  %v11199_v11 = vmul.u32.u64.low %v11148_v21, %v953_v1  ;;  %v11200_v12 = vmul.u32.u64.high %v11148_v21, %v953_v1, %v11199_v11 }
 0x10e   : > { %v825_v20 = vor.u32 %v824_v63, %v823_v28  ;;  %v828_v23 = vor.u32 %v827_v2, %v826_v52  ;;  %v830_v56 = vshrl.u32 %v15876_v55, %v821_v14  ;;  %v965_v54 = vmul.u32 %v11148_v21, %v949_v0  ;;  %v11220_v63 = vpop.f32.mrb[9].mxu0 }
 0x10f   : > { %v832_v25 = vshll.u32 %v15876_v55, %v11158_v34  ;;  %v833_v39 = vshrl.u32 %v15885_v58, %v821_v14  ;;  %v836_v42 = vshrl.u32 %v15883_v5, %v821_v14  ;;  %v835_v57 = vshll.u32 %v15885_v58, %v11158_v34 }
 0x110   : > { %v831_v46 = vor.u32 %v830_v56, %v829_v29  ;;  %vm838_vm7 = vcmp.lt.s32.totalorder %v11156_v33, 1  ;;  %vm839_vm8 = vcmp.lt.s32.totalorder %v11156_v33, 2  ;;  %vm967_vm9 = vc.u32 %v11196_v10, %v11199_v11 }
 0x111   : > { %v968_v21 = vadd.s32 1, %v11200_v12  ;;  %v834_v28 = vor.u32 %v833_v39, %v832_v25  ;;  %vm840_vm10 = vcmp.lt.s32.totalorder %v11156_v33, 3  ;;  %v837_v52 = vor.u32 %v836_v42, %v835_v57 }
 0x112   : > { %vm841_vm11 = vcmp.lt.s32.totalorder %v11156_v33, 4  ;;  %v842_v14 = vsel %vm838_vm7, %v822_v62, %v825_v20  ;;  %v846_v59 = vsel %vm838_vm7, %v825_v20, %v828_v23  ;;  %v850_v3 = vsel %vm838_vm7, %v828_v23, %v831_v46 }
 0x113   : > { %v969_v34 = vsel %vm967_vm9, %v968_v21, %v11200_v12  ;;  %v843_v0 = vsel %vm841_vm11, %v831_v46, 2102212464  ;;  %v847_v1 = vsel %vm841_vm11, %v834_v28, 920167782  ;;  %v851_v56 = vsel %vm841_vm11, %v837_v52, 1326507024 }
 0x114   : > { %v970_v2 = vadd.s32 %v969_v34, %v965_v54  ;;  %v844_v6 = vsel %vm840_vm10, %v828_v23, %v843_v0  ;;  %v848_v29 = vsel %vm840_vm10, %v831_v46, %v847_v1  ;;  %v852_v12 = vsel %vm840_vm10, %v834_v28, %v851_v56 }
 0x115   : > { %v845_v25 = vsel %vm839_vm8, %v842_v14, %v844_v6  ;;  %v849_v62 = vsel %vm839_vm8, %v846_v59, %v848_v29  ;;  %vm1129_vm12 = vcmp.gt.s32.totalorder %v11164_v47, 0  ;;  %v853_v54 = vsel %vm839_vm8, %v850_v3, %v852_v12 }
 0x116   : > { %v971_v20 = vadd.s32 536870912, %v970_v2  ;;  %v11237_v23 = vmul.u32.u64.low %v11152_v30, %v849_v62  ;;  %v11238_v39 = vmul.u32.u64.high %v11152_v30, %v849_v62, %v11237_v23  ;;  %v1130_v57 = vsel %vm1129_vm12, %v11164_v47, 0 }
 0x117   : > { %v11242_v42 = vmul.u32.u64.low %v11152_v30, %v853_v54  ;;  %v11243_v46 = vmul.u32.u64.high %v11152_v30, %v853_v54, %v11242_v42  ;;  %v1132_v28 = vand.u32 31, %v1130_v57  ;;  %v861_v52 = vmul.u32 %v11152_v30, %v845_v25 }
 0x118   : > { %v11246_v21 = vshrl.u32 %v971_v20, 30  ;;  %v11251_v33 = vshll.u32 %v1126_v37, 8  ;;  %v1018_v14 = vshrl.u32 %v1017_v38, 23  ;;  %v864_v34 = vadd.s32 1, %v11238_v39 }
 0x119   : > { %v1133_v0 = vsub.s32 32, %v1132_v28  ;;  %v1135_v1 = vshll.u32 %v15881_v41, %v1132_v28  ;;  %vm863_vm13 = vc.u32 %v11243_v46, %v11237_v23  ;;  %v1131_v47 = vshrl.u32 %v1130_v57, 5 }
 0x11a   : > { %16159 = vst [vmem:[#allocation24_spill] sm:$0xff] %v11246_v21  ;;  %v973_v59 = vshll.u32 %v11246_v21, 30  ;;  %v1138_v30 = vshll.u32 %v15878_v43, %v1132_v28  ;;  %v1141_v15 = vshll.u32 %v15874_v50, %v1132_v28  ;;  %v865_v3 = vsel %vm863_vm13, %v864_v34, %v11238_v39 }
 0x11b   : > { %v1134_v38 = vshrl.u32 %v15881_v41, %v1133_v0  ;;  %v1136_v6 = vshrl.u32 %v15878_v43, %v1133_v0  ;;  %v866_v29 = vadd.s32 %v865_v3, %v861_v52  ;;  %v1139_v56 = vshrl.u32 %v15874_v50, %v1133_v0 }
 0x11c   : > { %v11262_v37 = vsub.s32 %v970_v2, %v973_v59  ;;  %v1142_v25 = vshrl.u32 %v15876_v55, %v1133_v0  ;;  %v1144_v62 = vshll.u32 %v15876_v55, %v1132_v28  ;;  %v1145_v54 = vshrl.u32 %v15885_v58, %v1133_v0 }
 0x11d   : > { %v1137_v20 = vor.u32 %v1136_v6, %v1135_v1  ;;  %v1147_v2 = vshll.u32 %v15885_v58, %v1132_v28  ;;  %v867_v42 = vadd.s32 536870912, %v866_v29  ;;  %v1140_v39 = vor.u32 %v1139_v56, %v1138_v30 }
 0x11e   : > { %v976_v12 = vsub.s32 0, %v11262_v37  ;;  %v1143_v57 = vor.u32 %v1142_v25, %v1141_v15  ;;  %v1148_v59 = vshrl.u32 %v15883_v5, %v1133_v0  ;;  %v1146_v34 = vor.u32 %v1145_v54, %v1144_v62 }
 0x11f   : > { %vm1150_vm14 = vcmp.lt.s32.totalorder %v1131_v47, 1  ;;  %v9162_v3 = vadd.s32 4294967169, %v1018_v14  ;;  %v11275_v50 = vshrl.u32 %v867_v42, 30  ;;  %vm1151_vm15 = vcmp.lt.s32.totalorder %v1131_v47, 2 }
 0x120   : > { %v9159_v52 = vmin.u32 %v976_v12, %v11262_v37  ;;  %v1149_v55 = vor.u32 %v1148_v59, %v1147_v2  ;;  %vm1153_vm1 = vcmp.lt.s32.totalorder %v1131_v47, 4  ;;  %vm1152_vm2 = vcmp.lt.s32.totalorder %v1131_v47, 3 }
 0x121   : > { %v1155_v6 = vsel %vm1153_vm1, %v1143_v57, 2102212464  ;;  %v1158_v43 = vsel %vm1150_vm14, %v1137_v20, %v1140_v39  ;;  %v869_v28 = vshll.u32 %v11275_v50, 30  ;;  %v1154_v30 = vsel %vm1150_vm14, %v1134_v38, %v1137_v20 }
 0x122   : > { %v978_v1 = vclz %v9159_v52  ;;  %v1159_v15 = vsel %vm1153_vm1, %v1146_v34, 920167782  ;;  %v1162_v56 = vsel %vm1150_vm14, %v1140_v39, %v1143_v57  ;;  %v1156_v25 = vsel %vm1152_vm2, %v1140_v39, %v1155_v6 }
 0x123   : > { %v1160_v12 = vsel %vm1152_vm2, %v1143_v57, %v1159_v15  ;;  %v1163_v62 = vsel %vm1153_vm1, %v1149_v55, 1326507024  ;;  %v11278_v54 = vsub.s32 %v866_v29, %v869_v28  ;;  %v1157_v20 = vsel %vm1151_vm15, %v1154_v30, %v1156_v25  ;;  %v11299_v30 = vpop.f32.mrb[10].mxu0 }
 0x124   : > { %v9160_v0 = vadd.s32 4294967294, %v978_v1  ;;  %v1161_v14 = vsel %vm1151_vm15, %v1158_v43, %v1160_v12  ;;  %v1164_v2 = vsel %vm1152_vm2, %v1146_v34, %v1163_v62  ;;  %v15880_v43 = vand.u32 2147483647, %v11144_v16 }
 0x125   : > { %v1165_v42 = vsel %vm1151_vm15, %v1162_v56, %v1164_v2  ;;  %v11283_v59 = vmul.u32.u64.low %v11251_v33, %v1161_v14  ;;  %v11284_v52 = vmul.u32.u64.high %v11251_v33, %v1161_v14, %v11283_v59  ;;  %v872_v38 = vsub.s32 0, %v11278_v54 }
 0x126   : > { %vm9161_vm3 = vcmp.lt.s32.totalorder %v9160_v0, 0  ;;  %v11290_v39 = vmul.u32.u64.low %v11251_v33, %v1165_v42  ;;  %v11291_v55 = vmul.u32.u64.high %v11251_v33, %v1165_v42, %v11290_v39  ;;  %v1024_v57 = vadd.s32 1, %v9162_v3 }
 0x127   : > { %v981_v29 = vsel %vm9161_vm3, 0, %v9160_v0  ;;  %v9155_v34 = vmin.u32 %v872_v38, %v11278_v54  ;;  %v1173_v1 = vmul.u32 %v11251_v33, %v1157_v20  ;;  %v1176_v6 = vadd.s32 1, %v11284_v52 }
 0x128   : > { %vm1025_vm4 = vcmp.gt.s32.totalorder %v1024_v57, 0  ;;  %v986_v28 = vsub.s32 4294967266, %v981_v29  ;;  %vm1175_vm5 = vc.u32 %v11291_v55, %v11283_v59  ;;  %v1021_v3 = vand.u32 8388607, %v15880_v43 }
 0x129   : > { %v874_v15 = vclz %v9155_v34  ;;  %v1026_v47 = vsel %vm1025_vm4, %v1024_v57, 0  ;;  %v1177_v56 = vsel %vm1175_vm5, %v1176_v6, %v11284_v52  ;;  %v982_v33 = vsub.s32 32, %v981_v29 }
 0x12a   : > { %v1178_v0 = vadd.s32 %v1177_v56, %v1173_v1  ;;  %v1028_v25 = vand.u32 31, %v1026_v47  ;;  %v987_v62 = vadd.s32 127, %v986_v28  ;;  %v966_v42 = vadd.s32 %v11199_v11, %v11196_v10 }
 0x12b   : > { %v9156_v12 = vadd.s32 4294967294, %v874_v15  ;;  %v1022_v38 = vor.u32 8388608, %v1021_v3  ;;  %v16161_v57 = vmov 2475754826   ;;  %v11312_v34 = vadd.f32 %v11137_v7, %v11116_v49 }
 0x12c   : > { %v1179_v14 = vadd.s32 536870912, %v1178_v0  ;;  %v1029_v2 = vsub.s32 32, %v1028_v25  ;;  %v1031_v39 = vshll.u32 %v15881_v41, %v1028_v25  ;;  %v1034_v52 = vshll.u32 %v16161_v57, %v1028_v25 }
 0x12d   : > { %16162 = vst [vmem:[#allocation26_spill] sm:$0xff] %v11312_v34  ;;  %vm9157_vm6 = vcmp.lt.s32.totalorder %v9156_v12, 0  ;;  %v16163_v6 = vmov 2131351028   ;;  %v984_v56 = vshrl.u32 %v966_v42, %v982_v33  ;;  %v988_v10 = vshll.u32 %v987_v62, 23 }
 0x12e   : > { %v11306_v20 = vshrl.u32 %v1179_v14, 30  ;;  %v1032_v1 = vshrl.u32 %v16161_v57, %v1029_v2  ;;  %v1035_v28 = vshrl.u32 %v16163_v6, %v1029_v2  ;;  %v1037_v15 = vshll.u32 %v16163_v6, %v1028_v25 }
 0x12f   : > { %v16164_v3 = vmov 2102212464   ;;  %v983_v43 = vshll.u32 %v11262_v37, %v981_v29  ;;  %v862_v41 = vadd.s32 %v11237_v23, %v11243_v46  ;;  %v1027_v7 = vshrl.u32 %v1026_v47, 5 }
 0x130   : > { %16160 = vst [vmem:[#allocation25_spill] sm:$0xff] %v11306_v20  ;;  %v1181_v11 = vshll.u32 %v11306_v20, 30  ;;  %v1038_v14 = vshrl.u32 %v16164_v3, %v1029_v2  ;;  %v1040_v5 = vshll.u32 %v16164_v3, %v1028_v25  ;;  %v877_v58 = vsel %vm9157_vm6, 0, %v9156_v12 }
 0x131   : > { %v1033_v45 = vor.u32 %v1032_v1, %v1031_v39  ;;  %v1036_v44 = vor.u32 %v1035_v28, %v1034_v52  ;;  %v16165_v33 = vmov 920167782   ;;  %v1044_v35 = vshrl.u32 %v16166_v36, %v1029_v2 }
 0x132   : > { %v11323_v48 = vsub.s32 %v1178_v0, %v1181_v11  ;;  %v1039_v40 = vor.u32 %v1038_v14, %v1037_v15  ;;  %v1041_v62 = vshrl.u32 %v16165_v33, %v1029_v2  ;;  %v1043_v42 = vshll.u32 %v16165_v33, %v1028_v25 }
 0x133   : > { %v985_v31 = vor.u32 %v984_v56, %v983_v43  ;;  %v989_v37 = vor.u32 4788187, %v988_v10  ;;  %v1062_v23 = vshll.u32 %v1022_v38, 8  ;;  %v882_v46 = vsub.s32 4294967266, %v877_v58  ;;  %v11332_v43 = vpop.f32.mrb[11].mxu0 }
 0x134   : > { %v1184_v29 = vsub.s32 0, %v11323_v48  ;;  %v1042_v47 = vor.u32 %v1041_v62, %v1040_v5  ;;  %v1045_v27 = vor.u32 %v1044_v35, %v1043_v42  ;;  %vm1046_vm7 = vcmp.lt.s32.totalorder %v1027_v7, 1 }
 0x135   : > { %v16167_v12 = vmov 683565275   ;;  %vm1047_vm8 = vcmp.lt.s32.totalorder %v1027_v7, 2  ;;  %vm1049_vm9 = vcmp.lt.s32.totalorder %v1027_v7, 4  ;;  %vm1048_vm10 = vcmp.lt.s32.totalorder %v1027_v7, 3 }
 0x136   : > { %v9167_v0 = vmin.u32 %v1184_v29, %v11323_v48  ;;  %v1030_v39 = vshrl.u32 %v16167_v12, %v1029_v2  ;;  %v1051_v52 = vsel %vm1049_vm9, %v1039_v40, 2102212464  ;;  %v1054_v25 = vsel %vm1046_vm7, %v1033_v45, %v1036_v44 }
 0x137   : > { %v1055_v1 = vsel %vm1049_vm9, %v1042_v47, 920167782  ;;  %v990_v28 = vand.u32 2147483647, %v989_v37  ;;  %v878_v15 = vsub.s32 32, %v877_v58  ;;  %v883_v35 = vadd.s32 127, %v882_v46 }
 0x138   : > { %v1186_v38 = vclz %v9167_v0  ;;  %v1056_v5 = vsel %vm1048_vm10, %v1039_v40, %v1055_v1  ;;  %v1058_v10 = vsel %vm1046_vm7, %v1036_v44, %v1039_v40  ;;  %v1059_v2 = vsel %vm1049_vm9, %v1045_v27, 1326507024 }
 0x139   : > { %v1057_v56 = vsel %vm1047_vm8, %v1054_v25, %v1056_v5  ;;  %v992_v11 = vcvt.s32.f32 %v985_v31  ;;  %v1050_v14 = vsel %vm1046_vm7, %v1030_v39, %v1033_v45  ;;  %v1052_v62 = vsel %vm1048_vm10, %v1036_v44, %v1051_v52 }
 0x13a   : > { %v1060_v42 = vsel %vm1048_vm10, %v1042_v47, %v1059_v2  ;;  %v11341_v37 = vmul.u32.u64.low %v1062_v23, %v1057_v56  ;;  %v11342_v26 = vmul.u32.u64.high %v1062_v23, %v1057_v56, %v11341_v37  ;;  %v1329_v46 = vand.u32 2139095040, %v11312_v34 }
 0x13b   : > { %v1061_v29 = vsel %vm1047_vm8, %v1058_v10, %v1060_v42  ;;  %v993_v0 = vmul.f32 %v992_v11, %v990_v28  ;;  %v9168_v25 = vadd.s32 4294967294, %v1186_v38  ;;  %v880_v27 = vshrl.u32 %v862_v41, %v878_v15 }
 0x13c   : > { %v11346_v1 = vmul.u32.u64.low %v1062_v23, %v1061_v29  ;;  %v11347_v40 = vmul.u32.u64.high %v1062_v23, %v1061_v29, %v11346_v1  ;;  %v884_v31 = vshll.u32 %v883_v35, 23  ;;  %v1053_v45 = vsel %vm1047_vm8, %v1050_v14, %v1052_v62 }
 0x13d   : > { %v1330_v44 = vshrl.u32 %v1329_v46, 23  ;;  %v879_v47 = vshll.u32 %v11278_v54, %v877_v58  ;;  %v1072_v39 = vadd.s32 1, %v11342_v26  ;;  %v994_v5 = vxor.u32 2147483648, %v993_v0 }
 0x13e   : > { %vm9169_vm11 = vcmp.lt.s32.totalorder %v9168_v25, 0  ;;  %v1069_v56 = vmul.u32 %v1062_v23, %v1053_v45  ;;  %vm1071_vm12 = vc.u32 %v11347_v40, %v11341_v37  ;;  %v885_v38 = vor.u32 4788187, %v884_v31 }
 0x13f   : > { %v9174_v52 = vadd.s32 4294967169, %v1330_v44  ;;  %v881_v28 = vor.u32 %v880_v27, %v879_v47  ;;  %v1073_v10 = vsel %vm1071_vm12, %v1072_v39, %v11342_v26  ;;  %v15896_v7 = vand.u32 2147483647, %v11312_v34 }
 0x140   : > { %v1074_v15 = vadd.s32 %v1073_v10, %v1069_v56  ;;  %vm15976_vm13 = vcmp.lt.s32.totalorder %v11119_v51, 0  ;;  %v11357_v58 = vsel %vm9169_vm11, 0, %v9168_v25  ;;  %v1174_v54 = vadd.s32 %v11283_v59, %v11291_v55 }
 0x141   : > { %v1336_v41 = vadd.s32 1, %v9174_v52  ;;  %v11363_v2 = vadd.f32 %v11116_v49, %v11146_v19  ;;  %v995_v26 = vsel %vm15976_vm13, %v994_v5, %v993_v0  ;;  %v886_v11 = vand.u32 2147483647, %v885_v38 }
 0x142   : > { %v1075_v23 = vadd.s32 536870912, %v1074_v15  ;;  %v888_v14 = vcvt.s32.f32 %v881_v28  ;;  %v1190_v42 = vsub.s32 32, %v11357_v58  ;;  %v1194_v29 = vsub.s32 4294967266, %v11357_v58 }
 0x143   : > { %vm1337_vm14 = vcmp.gt.s32.totalorder %v1336_v41, 0  ;;  %v1333_v59 = vand.u32 8388607, %v15896_v7  ;;  %v1225_v45 = vand.u32 2139095040, %v11363_v2  ;;  %vm15979_vm6 = vcmp.lt.s32.totalorder %v11122_v53, 0 }
 0x144   : > { %v1338_v35 = vsel %vm1337_vm14, %v1336_v41, 0  ;;  %v11369_v46 = vshrl.u32 %v1075_v23, 30  ;;  %v1195_v10 = vadd.s32 127, %v1194_v29 }
 0x145   : > { %v1340_v62 = vand.u32 31, %v1338_v35  ;;  %v1339_v27 = vshrl.u32 %v1338_v35, 5  ;;  %v1334_v56 = vor.u32 8388608, %v1333_v59  ;;  %v1226_v18 = vshrl.u32 %v1225_v45, 23 }
 0x146   : > { %16168 = vst [vmem:[#allocation27_spill] sm:$0xff] %v11369_v46  ;;  %v1077_v0 = vshll.u32 %v11369_v46, 30 }
 0x147   : > { %v1341_v55 = vsub.s32 32, %v1340_v62  ;;  %v1343_v25 = vshll.u32 %v16167_v12, %v1340_v62  ;;  %v1346_v19 = vshll.u32 %v16161_v57, %v1340_v62  ;;  %v1349_v1 = vshll.u32 %v16163_v6, %v1340_v62 }
 0x148   : > { %v1352_v31 = vshll.u32 %v16164_v3, %v1340_v62  ;;  %v1355_v52 = vshll.u32 %v16165_v33, %v1340_v62  ;;  %v11383_v5 = vsub.s32 %v1074_v15, %v1077_v0  ;;  %vm1358_vm15 = vcmp.lt.s32.totalorder %v1339_v27, 1 }
 0x149   : > { %v1344_v44 = vshrl.u32 %v16161_v57, %v1341_v55  ;;  %v1347_v47 = vshrl.u32 %v16163_v6, %v1341_v55  ;;  %v1350_v39 = vshrl.u32 %v16164_v3, %v1341_v55  ;;  %v1353_v28 = vshrl.u32 %v16165_v33, %v1341_v55 }
 0x14a   : > { %v1356_v38 = vshrl.u32 %v16166_v36, %v1341_v55  ;;  %v1080_v7 = vsub.s32 0, %v11383_v5  ;;  %v1342_v17 = vshrl.u32 %v16167_v12, %v1341_v55  ;;  %vm1360_vm1 = vcmp.lt.s32.totalorder %v1339_v27, 3 }
 0x14b   : > { %v1345_v41 = vor.u32 %v1344_v44, %v1343_v25  ;;  %v1348_v23 = vor.u32 %v1347_v47, %v1346_v19  ;;  %v1351_v35 = vor.u32 %v1350_v39, %v1349_v1  ;;  %v1354_v22 = vor.u32 %v1353_v28, %v1352_v31 }
 0x14c   : > { %v1357_v13 = vor.u32 %v1356_v38, %v1355_v52  ;;  %vm1361_vm2 = vcmp.lt.s32.totalorder %v1339_v27, 4  ;;  %v889_v15 = vmul.f32 %v888_v14, %v886_v11  ;;  %v1192_v62 = vshrl.u32 %v1174_v54, %v1190_v42  ;;  %v11396_v42 = vpop.f32.mrb[12].mxu0 }
 0x14d   : > { %vm1359_vm3 = vcmp.lt.s32.totalorder %v1339_v27, 2  ;;  %v1374_v59 = vshll.u32 %v1334_v56, 8  ;;  %v1363_v0 = vsel %vm1361_vm2, %v1351_v35, 2102212464  ;;  %v1366_v29 = vsel %vm1358_vm15, %v1345_v41, %v1348_v23 }
 0x14e   : > { %v1367_v25 = vsel %vm1361_vm2, %v1354_v22, 920167782  ;;  %v15901_v19 = vand.u32 2147483647, %v11363_v2  ;;  %v1196_v1 = vshll.u32 %v1195_v10, 23  ;;  %v9163_v31 = vmin.u32 %v1080_v7, %v11383_v5 }
 0x14f   : > { %v1368_v45 = vsel %vm1360_vm1, %v1351_v35, %v1367_v25  ;;  %v1370_v55 = vsel %vm1358_vm15, %v1348_v23, %v1351_v35  ;;  %v1362_v44 = vsel %vm1358_vm15, %v1342_v17, %v1345_v41  ;;  %v1371_v54 = vsel %vm1361_vm2, %v1357_v13, 1326507024 }
 0x150   : > { %v1369_v11 = vsel %vm1359_vm3, %v1366_v29, %v1368_v45  ;;  %v9170_v14 = vadd.s32 4294967169, %v1226_v18  ;;  %v1364_v47 = vsel %vm1360_vm1, %v1348_v23, %v1363_v0  ;;  %v1372_v39 = vsel %vm1360_vm1, %v1354_v22, %v1371_v54 }
 0x151   : > { %v11400_v52 = vmul.u32.u64.low %v1374_v59, %v1369_v11  ;;  %v11401_v56 = vmul.u32.u64.high %v1374_v59, %v1369_v11, %v11400_v52  ;;  %v16169_v7 = vand.u32 2147483647, %v11119_v51  ;;  %v16170_v28 = vmov 0 }
 0x152   : > { %v1191_v13 = vshll.u32 %v11323_v48, %v11357_v58  ;;  %v1373_v17 = vsel %vm1359_vm3, %v1370_v55, %v1372_v39  ;;  %v1232_v18 = vadd.s32 1, %v9170_v14  ;;  %v890_v38 = vxor.u32 2147483648, %v889_v15 }
 0x153   : > { %vm11406_vm4 = vcmp.le.f32.partialorder %v16169_v7, 0.7853982  ;;  %v11418_v10 = vmul.u32.u64.low %v1374_v59, %v1373_v17  ;;  %v11419_v41 = vmul.u32.u64.high %v1374_v59, %v1373_v17, %v11418_v10  ;;  %v1082_v35 = vclz %v9163_v31 }
 0x154   : > { %v16171_v28 = vsel %vm11406_vm4, 4294967295, %v16170_v28  ;;  %v11416_v22 = vsel %vm11406_vm4, %v11119_v51, %v995_v26  ;;  %v1193_v23 = vor.u32 %v1192_v62, %v1191_v13  ;;  %v1365_v0 = vsel %vm1359_vm3, %v1362_v44, %v1364_v47 }
 0x155   : > { %16172 = vst [vmem:[#allocation28_spill] sm:$0xff] %v16171_v28  ;;  %vm1233_vm5 = vcmp.gt.s32.totalorder %v1232_v18, 0  ;;  %v1197_v29 = vor.u32 4788187, %v1196_v1  ;;  %v1384_v48 = vadd.s32 1, %v11401_v56  ;;  %v11427_v25 = vadd.f32 %v11150_v24, %v11116_v49 }
 0x156   : > { %v1229_v58 = vand.u32 8388607, %v15901_v19  ;;  %10644 = vcosq.f32 %v11416_v22  ;;  %v1234_v26 = vsel %vm1233_vm5, %v1232_v18, 0  ;;  %v11433_v27 = vsel %vm15979_vm6, %v890_v38, %v889_v15 }
 0x157   : > { %16173 = vst [vmem:[#allocation29_spill] sm:$0xff] %v11427_v25  ;;  %v11437_v62 = vadd.s32 %v11341_v37, %v11347_v40  ;;  %v1381_v1 = vmul.u32 %v1374_v59, %v1365_v0  ;;  %vm1383_vm7 = vc.u32 %v11419_v41, %v11400_v52  ;;  %v1200_v31 = vcvt.s32.f32 %v1193_v23 }
 0x158   : > { %v9164_v24 = vadd.s32 4294967294, %v1082_v35  ;;  %v1385_v45 = vsel %vm1383_vm7, %v1384_v48, %v11401_v56  ;;  %v1236_v55 = vand.u32 31, %v1234_v26  ;;  %v1198_v44 = vand.u32 2147483647, %v1197_v29 }
 0x159   : > { %v1386_v11 = vadd.s32 %v1385_v45, %v1381_v1  ;;  %v1230_v54 = vor.u32 8388608, %v1229_v58  ;;  %v1537_v14 = vand.u32 2139095040, %v11427_v25  ;;  %v1235_v39 = vshrl.u32 %v1234_v26, 5 }
 0x15a   : > { %v1237_v15 = vsub.s32 32, %v1236_v55  ;;  %v1239_v47 = vshll.u32 %v16167_v12, %v1236_v55  ;;  %v1242_v37 = vshll.u32 %v16161_v57, %v1236_v55  ;;  %v1245_v40 = vshll.u32 %v16163_v6, %v1236_v55 }
 0x15b   : > { %v1387_v59 = vadd.s32 536870912, %v1386_v11  ;;  %v1248_v7 = vshll.u32 %v16164_v3, %v1236_v55  ;;  %vm9165_vm8 = vcmp.lt.s32.totalorder %v9164_v24, 0  ;;  %v1251_v23 = vshll.u32 %v16165_v33, %v1236_v55 }
 0x15c   : > { %v1240_v56 = vshrl.u32 %v16161_v57, %v1237_v15  ;;  %v1243_v17 = vshrl.u32 %v16163_v6, %v1237_v15  ;;  %v1246_v18 = vshrl.u32 %v16164_v3, %v1237_v15  ;;  %v1249_v10 = vshrl.u32 %v16165_v33, %v1237_v15 }
 0x15d   : > { %v11451_v38 = vshrl.u32 %v1387_v59, 30  ;;  %v1538_v35 = vshrl.u32 %v1537_v14, 23  ;;  %v1252_v58 = vshrl.u32 %v16166_v36, %v1237_v15  ;;  %v1085_v26 = vsel %vm9165_vm8, 0, %v9164_v24 }
 0x15e   : > { %v1241_v0 = vor.u32 %v1240_v56, %v1239_v47  ;;  %v1244_v29 = vor.u32 %v1243_v17, %v1242_v37  ;;  %v1247_v48 = vor.u32 %v1246_v18, %v1245_v40  ;;  %v1250_v45 = vor.u32 %v1249_v10, %v1248_v7 }
 0x15f   : > { %16174 = vst [vmem:[#allocation30_spill] sm:$0xff] %v11451_v38  ;;  %v1389_v1 = vshll.u32 %v11451_v38, 30  ;;  %vm1254_vm9 = vcmp.lt.s32.totalorder %v1235_v39, 1  ;;  %v16176_v59 = vand.u32 2147483647, %v11122_v53  ;;  %v1238_v55 = vshrl.u32 %v16167_v12, %v1237_v15 }
 0x160   : > { %v11457_v19 = vpop.eup %10644  ;;  %v1253_v14 = vor.u32 %v1252_v58, %v1251_v23  ;;  %vm1256_vm11 = vcmp.lt.s32.totalorder %v1235_v39, 3  ;;  %vm1257_vm12 = vcmp.lt.s32.totalorder %v1235_v39, 4  ;;  %v11466_v47 = vmul.f32 %v1200_v31, %v1198_v44  ;;  %v11476_v31 = vpop.f32.mrb[13].mxu0 }
 0x161   : > { %16175 = vst [vmem:[#allocation31_spill] sm:$0xff] %v11457_v19  ;;  %vm11461_vm10 = vcmp.le.f32.partialorder %v16176_v59, 0.7853982  ;;  %v11468_v24 = vsub.s32 %v1386_v11, %v1389_v1  ;;  %vm1255_vm14 = vcmp.lt.s32.totalorder %v1235_v39, 2  ;;  %v9182_v37 = vadd.s32 4294967169, %v1538_v35 }
 0x162   : > { %v1090_v40 = vsub.s32 4294967266, %v1085_v26  ;;  %v1259_v7 = vsel %vm1257_vm12, %v1247_v48, 2102212464  ;;  %v1262_v56 = vsel %vm1254_vm9, %v1241_v0, %v1244_v29  ;;  %v1263_v17 = vsel %vm1257_vm12, %v1250_v45, 920167782 }
 0x163   : > { %v1392_v18 = vsub.s32 0, %v11468_v24  ;;  %v1264_v15 = vsel %vm1256_vm11, %v1247_v48, %v1263_v17  ;;  %v1266_v10 = vsel %vm1254_vm9, %v1244_v29, %v1247_v48  ;;  %v1270_v23 = vshll.u32 %v1230_v54, 8 }
 0x164   : > { %v1086_v44 = vsub.s32 32, %v1085_v26  ;;  %v1258_v11 = vsel %vm1254_vm9, %v1238_v55, %v1241_v0  ;;  %v1265_v35 = vsel %vm1255_vm14, %v1262_v56, %v1264_v15  ;;  %v1267_v58 = vsel %vm1257_vm12, %v1253_v14, 1326507024 }
 0x165   : > { %v9175_v1 = vmin.u32 %v1392_v18, %v11468_v24  ;;  %v1260_v59 = vsel %vm1256_vm11, %v1244_v29, %v1259_v7  ;;  %v1268_v9 = vsel %vm1256_vm11, %v1250_v45, %v1267_v58  ;;  %v1544_v8 = vadd.s32 1, %v9182_v37 }
 0x166   : > { %v1091_v17 = vadd.s32 127, %v1090_v40  ;;  %v1269_v48 = vsel %vm1255_vm14, %v1266_v10, %v1268_v9  ;;  %v11485_v54 = vmul.u32.u64.low %v1270_v23, %v1265_v35  ;;  %v11486_v4 = vmul.u32.u64.high %v1270_v23, %v1265_v35, %v11485_v54 }
 0x167   : > { %v1394_v38 = vclz %v9175_v1  ;;  %v11489_v0 = vmul.u32.u64.low %v1270_v23, %v1269_v48  ;;  %v11490_v55 = vmul.u32.u64.high %v1270_v23, %v1269_v48, %v11489_v0  ;;  %vm1545_vm15 = vcmp.gt.s32.totalorder %v1544_v8, 0 }
 0x168   : > { %v1088_v14 = vshrl.u32 %v11437_v62, %v1086_v44  ;;  %v1261_v56 = vsel %vm1255_vm14, %v1258_v11, %v1260_v59  ;;  %v16179_v29 = vand.u32 2147483647, %v11427_v25  ;;  %v1546_v37 = vsel %vm1545_vm15, %v1544_v8, 0 }
 0x169   : > { %10646 = vsinq.f32 %v11416_v22  ;;  %v11501_v9 = vsel %vm11461_vm10, %v11122_v53, %v11433_v27  ;;  %v9176_v40 = vadd.s32 4294967294, %v1394_v38  ;;  %v1548_v7 = vand.u32 31, %v1546_v37 }
 0x16a   : > { %v1541_v45 = vand.u32 8388607, %v16179_v29  ;;  %v1087_v62 = vshll.u32 %v11383_v5, %v1085_v26  ;;  %v1280_v39 = vadd.s32 1, %v11486_v4  ;;  %v11508_v15 = vadd.f32 %v11116_v49, %v11154_v32 }
 0x16b   : > { %v1092_v8 = vshll.u32 %v1091_v17, 23  ;;  %v1277_v22 = vmul.u32 %v1270_v23, %v1261_v56  ;;  %vm1279_vm1 = vc.u32 %v11490_v55, %v11485_v54  ;;  %v1549_v10 = vsub.s32 32, %v1548_v7 }
 0x16c   : > { %16180 = vst [vmem:[#allocation32_spill] sm:$0xff] %v11508_v15  ;;  %v1089_v27 = vor.u32 %v1088_v14, %v1087_v62  ;;  %v1382_v38 = vadd.s32 %v11400_v52, %v11419_v41  ;;  %v1281_v44 = vsel %vm1279_vm1, %v1280_v39, %v11486_v4  ;;  %v1542_v11 = vor.u32 8388608, %v1541_v45 }
 0x16d   : > { %vm9177_vm2 = vcmp.lt.s32.totalorder %v9176_v40, 0  ;;  %v1282_v5 = vadd.s32 %v1281_v44, %v1277_v22  ;;  %v1551_v26 = vshll.u32 %v16167_v12, %v1548_v7  ;;  %v1554_v49 = vshll.u32 %v16161_v57, %v1548_v7 }
 0x16e   : > { %v1547_v32 = vshrl.u32 %v1546_v37, 5  ;;  %v1552_v23 = vshrl.u32 %v16161_v57, %v1549_v10  ;;  %v1555_v35 = vshrl.u32 %v16163_v6, %v1549_v10  ;;  %v1557_v58 = vshll.u32 %v16163_v6, %v1548_v7 }
 0x16f   : > { %v1093_v1 = vor.u32 4788187, %v1092_v8  ;;  %v1283_v59 = vadd.s32 536870912, %v1282_v5  ;;  %v1558_v52 = vshrl.u32 %v16164_v3, %v1549_v10  ;;  %v1433_v4 = vand.u32 2139095040, %v11508_v15 }
 0x170   : > { %v11522_v41 = vsel %vm9177_vm2, 0, %v9176_v40  ;;  %v1560_v17 = vshll.u32 %v16164_v3, %v1548_v7  ;;  %v1561_v48 = vshrl.u32 %v16165_v33, %v1549_v10  ;;  %v11526_v0 = vshll.u32 %v1542_v11, 8 }
 0x171   : > { %v11528_v14 = vshrl.u32 %v1283_v59, 30  ;;  %v1553_v56 = vor.u32 %v1552_v23, %v1551_v26  ;;  %v1556_v29 = vor.u32 %v1555_v35, %v1554_v49  ;;  %v1559_v45 = vor.u32 %v1558_v52, %v1557_v58 }
 0x172   : > { %v1562_v37 = vor.u32 %v1561_v48, %v1560_v17  ;;  %v1563_v62 = vshll.u32 %v16165_v33, %v1548_v7  ;;  %v1564_v39 = vshrl.u32 %v16166_v36, %v1549_v10  ;;  %vm1566_vm3 = vcmp.lt.s32.totalorder %v1547_v32, 1 }
 0x173   : > { %16181 = vst [vmem:[#allocation33_spill] sm:$0xff] %v11528_v14  ;;  %v11532_v8 = vpop.eup %10646  ;;  %vm15960_vm5 = vcmp.lt.s32.totalorder %v11131_v61, 0  ;;  %v1094_v40 = vand.u32 2147483647, %v1093_v1  ;;  %v1096_v22 = vcvt.s32.f32 %v1089_v27  ;;  %v1285_v44 = vshll.u32 %v11528_v14, 30 }
 0x174   : > { %16182 = vst [vmem:[#allocation34_spill] sm:$0xff] %v11532_v8  ;;  %v1434_v11 = vshrl.u32 %v1433_v4, 23  ;;  %v1402_v59 = vsub.s32 4294967266, %v11522_v41  ;;  %v1565_v26 = vor.u32 %v1564_v39, %v1563_v62  ;;  %vm1568_vm7 = vcmp.lt.s32.totalorder %v1547_v32, 3 }
 0x175   : > { %vm1569_vm8 = vcmp.lt.s32.totalorder %v1547_v32, 4  ;;  %v11537_v49 = vsub.s32 %v1282_v5, %v1285_v44  ;;  %v1550_v7 = vshrl.u32 %v16167_v12, %v1549_v10  ;;  %vm1567_vm9 = vcmp.lt.s32.totalorder %v1547_v32, 2 }
 0x176   : > { %v1574_v23 = vsel %vm1566_vm3, %v1553_v56, %v1556_v29  ;;  %v1571_v35 = vsel %vm1569_vm8, %v1559_v45, 2102212464  ;;  %v1575_v58 = vsel %vm1569_vm8, %v1562_v37, 920167782  ;;  %v1578_v1 = vsel %vm1566_vm3, %v1556_v29, %v1559_v45 }
 0x177   : > { %v1579_v27 = vsel %vm1569_vm8, %v1565_v26, 1326507024  ;;  %v1097_v52 = vmul.f32 %v1096_v22, %v1094_v40  ;;  %v1398_v4 = vsub.s32 32, %v11522_v41  ;;  %v1288_v17 = vsub.s32 0, %v11537_v49 }
 0x178   : > { %v1576_v48 = vsel %vm1568_vm7, %v1559_v45, %v1575_v58  ;;  %v1403_v62 = vadd.s32 127, %v1402_v59  ;;  %v1580_v10 = vsel %vm1568_vm7, %v1562_v37, %v1579_v27  ;;  %v9178_v39 = vadd.s32 4294967169, %v1434_v11 }
 0x179   : > { %v1577_v5 = vsel %vm1567_vm9, %v1574_v23, %v1576_v48  ;;  %v9171_v44 = vmin.u32 %v1288_v17, %v11537_v49  ;;  %v1570_v18 = vsel %vm1566_vm3, %v1550_v7, %v1553_v56  ;;  %v1572_v14 = vsel %vm1568_vm7, %v1556_v29, %v1571_v35  ;;  %v11560_v23 = vpop.f32.mrb[14].mxu0 }
 0x17a   : > { %v1581_v40 = vsel %vm1567_vm9, %v1578_v1, %v1580_v10  ;;  %v11556_v45 = vmul.u32.u64.low %v11526_v0, %v1577_v5  ;;  %v11557_v59 = vmul.u32.u64.high %v11526_v0, %v1577_v5, %v11556_v45  ;;  %10648 = vcosq.f32 %v11501_v9 }
 0x17b   : > { %v11552_v22 = vmul.u32.u64.low %v11526_v0, %v1581_v40  ;;  %v11553_v26 = vmul.u32.u64.high %v11526_v0, %v1581_v40, %v11552_v22  ;;  %v16183_v37 = vand.u32 2147483647, %v11131_v61  ;;  %v16184_v56 = vmov 0 }
 0x17c   : > { %v1400_v29 = vshrl.u32 %v1382_v38, %v1398_v4  ;;  %v1440_v11 = vadd.s32 1, %v9178_v39  ;;  %v16187_v7 = vxor.u32 2147483648, %v11466_v47  ;;  %v1098_v58 = vxor.u32 2147483648, %v1097_v52 }
 0x17d   : > { %vm11565_vm11 = vcmp.le.f32.partialorder %v16183_v37, 0.7853982  ;;  %v1573_v1 = vsel %vm1567_vm9, %v1570_v18, %v1572_v14  ;;  %v15909_v27 = vand.u32 2147483647, %v11508_v15  ;;  %v1399_v17 = vshll.u32 %v11468_v24, %v11522_v41  ;;  %v11587_v24 = vld [vmem:[%s15863_s3 + $0x8] ss:$0 sm:$0xff] }
 0x17e   : > { %v16185_v56 = vsel %vm11565_vm11, 4294967295, %v16184_v56  ;;  %v1203_v35 = vsel %vm15960_vm5, %v16187_v7, %v11466_v47  ;;  %v1404_v48 = vshll.u32 %v1403_v62, 23  ;;  %v1290_v5 = vclz %v9171_v44 }
 0x17f   : > { %16186 = vst [vmem:[#allocation35_spill] sm:$0xff] %v16185_v56  ;;  %vm1441_vm12 = vcmp.gt.s32.totalorder %v1440_v11, 0  ;;  %10650 = vsinq.f32 %v11501_v9  ;;  %vm15972_vm14 = vcmp.lt.s32.totalorder %v11144_v16, 0  ;;  %vm1591_vm15 = vc.u32 %v11553_v26, %v11556_v45 }
 0x180   : > { %v1592_v47 = vadd.s32 1, %v11557_v59  ;;  %v1401_v38 = vor.u32 %v1400_v29, %v1399_v17  ;;  %v1589_v18 = vmul.u32 %v11526_v0, %v1573_v1  ;;  %v1442_v32 = vsel %vm1441_vm12, %v1440_v11, 0 }
 0x181   : > { %v11591_v41 = vadd.f32 %v11587_v24, %v11169_v60  ;;  %v11596_v9 = vsel %vm11565_vm11, %v11131_v61, %v1203_v35  ;;  %v11600_v14 = vsel %vm15972_vm14, %v1098_v58, %v1097_v52  ;;  %v1444_v4 = vand.u32 31, %v1442_v32 }
 0x182   : > { %v1593_v0 = vsel %vm1591_vm15, %v1592_v47, %v11557_v59  ;;  %v1405_v62 = vor.u32 4788187, %v1404_v48  ;;  %v9172_v10 = vadd.s32 4294967294, %v1290_v5  ;;  %v1437_v44 = vand.u32 8388607, %v15909_v27 }
 0x183   : > { %16188 = vst [vmem:[#allocation36_spill] sm:$0xff] %v11591_v41  ;;  %v1594_v39 = vadd.s32 %v1593_v0, %v1589_v18  ;;  %v1445_v60 = vsub.s32 32, %v1444_v4  ;;  %v1447_v40 = vshll.u32 %v16167_v12, %v1444_v4  ;;  %v1450_v22 = vshll.u32 %v16161_v57, %v1444_v4 }
 0x184   : > { %v1453_v37 = vshll.u32 %v16163_v6, %v1444_v4  ;;  %v1408_v29 = vcvt.s32.f32 %v1401_v38  ;;  %v1456_v52 = vshll.u32 %v16164_v3, %v1444_v4  ;;  %v1745_v59 = vand.u32 2139095040, %v11591_v41  ;;  %v11613_v17 = vpop.eup %10648 }
 0x185   : > { %v1595_v11 = vadd.s32 536870912, %v1594_v39  ;;  %v1443_v7 = vshrl.u32 %v1442_v32, 5  ;;  %v1448_v35 = vshrl.u32 %v16161_v57, %v1445_v60  ;;  %v1451_v58 = vshrl.u32 %v16163_v6, %v1445_v60 }
 0x186   : > { %v1454_v1 = vshrl.u32 %v16164_v3, %v1445_v60  ;;  %v1406_v48 = vand.u32 2147483647, %v1405_v62  ;;  %vm9173_vm1 = vcmp.lt.s32.totalorder %v9172_v10, 0  ;;  %v1457_v47 = vshrl.u32 %v16165_v33, %v1445_v60 }
 0x187   : > { %v11615_v5 = vshrl.u32 %v1595_v11, 30  ;;  %v1449_v38 = vor.u32 %v1448_v35, %v1447_v40  ;;  %v1452_v18 = vor.u32 %v1451_v58, %v1450_v22  ;;  %v1459_v27 = vshll.u32 %v16165_v33, %v1444_v4 }
 0x188   : > { %v1455_v0 = vor.u32 %v1454_v1, %v1453_v37  ;;  %v16190_v32 = vand.u32 2147483647, %v11144_v16  ;;  %v16191_v56 = vmov 0  ;;  %v1438_v20 = vor.u32 8388608, %v1437_v44 }
 0x189   : > { %16189 = vst [vmem:[#allocation37_spill] sm:$0xff] %v11615_v5  ;;  %v1597_v61 = vshll.u32 %v11615_v5, 30  ;;  %v1458_v62 = vor.u32 %v1457_v47, %v1456_v52  ;;  %v1746_v46 = vshrl.u32 %v1745_v59, 23  ;;  %v11626_v11 = vpop.eup %10650  ;;  %v11628_v19 = vsel %vm9173_vm1, 0, %v9172_v10  ;;  %v11639_v47 = vpop.f32.mrb[15].mxu0 }
 0x18a   : > { %vm11621_vm2 = vcmp.le.f32.partialorder %v16190_v32, 0.7853982  ;;  %v1460_v40 = vshrl.u32 %v16166_v36, %v1445_v60  ;;  %vm1462_vm3 = vcmp.lt.s32.totalorder %v1443_v7, 1  ;;  %vm1464_vm7 = vcmp.lt.s32.totalorder %v1443_v7, 3 }
 0x18b   : > { %v16192_v56 = vsel %vm11621_vm2, 4294967295, %v16191_v56  ;;  %v11631_v4 = vsub.s32 %v1594_v39, %v1597_v61  ;;  %v1446_v22 = vshrl.u32 %v16167_v12, %v1445_v60  ;;  %vm1463_vm8 = vcmp.lt.s32.totalorder %v1443_v7, 2 }
 0x18c   : > { %16193 = vst [vmem:[#allocation38_spill] sm:$0xff] %v16192_v56  ;;  %vm1465_vm9 = vcmp.lt.s32.totalorder %v1443_v7, 4  ;;  %v1461_v37 = vor.u32 %v1460_v40, %v1459_v27  ;;  %v1470_v44 = vsel %vm1462_vm3, %v1449_v38, %v1452_v18  ;;  %v11635_v59 = vmul.f32 %v1408_v29, %v1406_v48 }
 0x18d   : > { %v1467_v35 = vsel %vm1465_vm9, %v1455_v0, 2102212464  ;;  %v1471_v52 = vsel %vm1465_vm9, %v1458_v62, 920167782  ;;  %v1600_v10 = vsub.s32 0, %v11631_v4  ;;  %v1478_v1 = vshll.u32 %v1438_v20, 8 }
 0x18e   : > { %v1472_v58 = vsel %vm1464_vm7, %v1455_v0, %v1471_v52  ;;  %v1298_v61 = vsub.s32 4294967266, %v11628_v19  ;;  %v1474_v60 = vsel %vm1462_vm3, %v1452_v18, %v1455_v0  ;;  %v1475_v27 = vsel %vm1465_vm9, %v1461_v37, 1326507024 }
 0x18f   : > { %v1473_v39 = vsel %vm1463_vm8, %v1470_v44, %v1472_v58  ;;  %v9183_v32 = vmin.u32 %v1600_v10, %v11631_v4  ;;  %v1466_v40 = vsel %vm1462_vm3, %v1446_v22, %v1449_v38  ;;  %v1468_v29 = vsel %vm1464_vm7, %v1452_v18, %v1467_v35 }
 0x190   : > { %v1476_v48 = vsel %vm1464_vm7, %v1458_v62, %v1475_v27  ;;  %v11649_v20 = vmul.u32.u64.low %v1478_v1, %v1473_v39  ;;  %v11650_v5 = vmul.u32.u64.high %v1478_v1, %v1473_v39, %v11649_v20  ;;  %v9190_v8 = vadd.s32 4294967169, %v1746_v46 }
 0x191   : > { %v1477_v52 = vsel %vm1463_vm8, %v1474_v60, %v1476_v48  ;;  %10652 = vcosq.f32 %v11596_v9  ;;  %v1602_v44 = vclz %v9183_v32  ;;  %v11661_v38 = vsel %vm11621_vm2, %v11144_v16, %v11600_v14 }
 0x192   : > { %v11654_v0 = vmul.u32.u64.low %v1478_v1, %v1477_v52  ;;  %v11655_v37 = vmul.u32.u64.high %v1478_v1, %v1477_v52, %v11654_v0  ;;  %v1469_v18 = vsel %vm1463_vm8, %v1466_v40, %v1468_v29  ;;  %v1752_v62 = vadd.s32 1, %v9190_v8 }
 0x193   : > { %v11666_v22 = vadd.f32 %v11587_v24, %v11220_v63  ;;  %v1278_v35 = vadd.s32 %v11485_v54, %v11490_v55  ;;  %v1299_v10 = vadd.s32 127, %v1298_v61  ;;  %v9184_v58 = vadd.s32 4294967294, %v1602_v44 }
 0x194   : > { %v1488_v39 = vadd.s32 1, %v11650_v5  ;;  %v15921_v60 = vand.u32 2147483647, %v11591_v41  ;;  %vm1753_vm12 = vcmp.gt.s32.totalorder %v1752_v62, 0  ;;  %v1485_v8 = vmul.u32 %v1478_v1, %v1469_v18 }
 0x195   : > { %16194 = vst [vmem:[#allocation39_spill] sm:$0xff] %v11666_v22  ;;  %vm9185_vm15 = vcmp.lt.s32.totalorder %v9184_v58, 0  ;;  %vm1487_vm1 = vc.u32 %v11655_v37, %v11649_v20  ;;  %v1754_v63 = vsel %vm1753_vm12, %v1752_v62, 0  ;;  %v1294_v7 = vsub.s32 32, %v11628_v19 }
 0x196   : > { %v1590_v54 = vadd.s32 %v11556_v45, %v11553_v26  ;;  %v1489_v55 = vsel %vm1487_vm1, %v1488_v39, %v11650_v5  ;;  %v1756_v61 = vand.u32 31, %v1754_v63  ;;  %v1295_v27 = vshll.u32 %v11537_v49, %v11628_v19 }
 0x197   : > { %v1300_v32 = vshll.u32 %v1299_v10, 23  ;;  %v11682_v40 = vsel %vm9185_vm15, 0, %v9184_v58  ;;  %v1490_v29 = vadd.s32 %v1489_v55, %v1485_v8  ;;  %v1749_v1 = vand.u32 8388607, %v15921_v60 }
 0x198   : > { %v1757_v48 = vsub.s32 32, %v1756_v61  ;;  %v1759_v52 = vshll.u32 %v16167_v12, %v1756_v61  ;;  %v1762_v44 = vshll.u32 %v16161_v57, %v1756_v61  ;;  %v11688_v26 = vshrl.u32 %v1754_v63, 5 }
 0x199   : > { %v1491_v0 = vadd.s32 536870912, %v1490_v29  ;;  %v1765_v45 = vshll.u32 %v16163_v6, %v1756_v61  ;;  %v1768_v5 = vshll.u32 %v16164_v3, %v1756_v61  ;;  %v1610_v19 = vsub.s32 4294967266, %v11682_v40 }
 0x19a   : > { %v1760_v49 = vshrl.u32 %v16161_v57, %v1757_v48  ;;  %v1763_v18 = vshrl.u32 %v16163_v6, %v1757_v48  ;;  %v1766_v62 = vshrl.u32 %v16164_v3, %v1757_v48  ;;  %v1296_v58 = vshrl.u32 %v1278_v35, %v1294_v7 }
 0x19b   : > { %v11696_v10 = vpop.eup %10652  ;;  %v1301_v39 = vor.u32 4788187, %v1300_v32  ;;  %v11698_v8 = vshrl.u32 %v1491_v0, 30  ;;  %v1769_v63 = vshrl.u32 %v16165_v33, %v1757_v48  ;;  %v1771_v46 = vshll.u32 %v16165_v33, %v1756_v61 }
 0x19c   : > { %16195 = vst [vmem:[#allocation40_spill] sm:$0xff] %v11696_v10  ;;  %v1761_v55 = vor.u32 %v1760_v49, %v1759_v52  ;;  %v1764_v60 = vor.u32 %v1763_v18, %v1762_v44  ;;  %v1641_v14 = vand.u32 2139095040, %v11666_v22  ;;  %v1750_v16 = vor.u32 8388608, %v1749_v1 }
 0x19d   : > { %16196 = vst [vmem:[#allocation41_spill] sm:$0xff] %v11698_v8  ;;  %v1493_v56 = vshll.u32 %v11698_v8, 30  ;;  %v1767_v28 = vor.u32 %v1766_v62, %v1765_v45  ;;  %v1770_v51 = vor.u32 %v1769_v63, %v1768_v5  ;;  %v1611_v21 = vadd.s32 127, %v1610_v19 }
 0x19e   : > { %v1772_v10 = vshrl.u32 %v16166_v36, %v1757_v48  ;;  %vm1774_vm3 = vcmp.lt.s32.totalorder %v11688_v26, 1  ;;  %vm1776_vm7 = vcmp.lt.s32.totalorder %v11688_v26, 3  ;;  %v1606_v35 = vsub.s32 32, %v11682_v40 }
 0x19f   : > { %v11708_v7 = vsub.s32 %v1490_v29, %v1493_v56  ;;  %v1758_v61 = vshrl.u32 %v16167_v12, %v1757_v48  ;;  %vm1777_vm8 = vcmp.lt.s32.totalorder %v11688_v26, 4  ;;  %vm1775_vm9 = vcmp.lt.s32.totalorder %v11688_v26, 2 }
 0x1a0   : > { %v1773_v32 = vor.u32 %v1772_v10, %v1771_v46  ;;  %v1782_v1 = vsel %vm1774_vm3, %v1761_v55, %v1764_v60  ;;  %v1783_v52 = vsel %vm1777_vm8, %v1770_v51, 920167782  ;;  %vm15942_vm12 = vcmp.lt.s32.totalorder %v11312_v34, 0 }
 0x1a1   : > { %v1297_v44 = vor.u32 %v1296_v58, %v1295_v27  ;;  %v1302_v0 = vand.u32 2147483647, %v1301_v39  ;;  %v1496_v45 = vsub.s32 0, %v11708_v7  ;;  %v1784_v56 = vsel %vm1776_vm7, %v1767_v28, %v1783_v52 }
 0x1a2   : > { %v1612_v29 = vshll.u32 %v1611_v21, 23  ;;  %v1779_v48 = vsel %vm1777_vm8, %v1767_v28, 2102212464  ;;  %v1786_v46 = vsel %vm1774_vm3, %v1764_v60, %v1767_v28  ;;  %v1787_v5 = vsel %vm1777_vm8, %v1773_v32, 1326507024 }
 0x1a3   : > { %v9179_v19 = vmin.u32 %v1496_v45, %v11708_v7  ;;  %v1785_v49 = vsel %vm1775_vm9, %v1782_v1, %v1784_v56  ;;  %v1788_v27 = vsel %vm1776_vm7, %v1770_v51, %v1787_v5  ;;  %v1790_v18 = vshll.u32 %v1750_v16, 8 }
 0x1a4   : > { %v1608_v62 = vshrl.u32 %v1590_v54, %v1606_v35  ;;  %v1778_v10 = vsel %vm1774_vm3, %v1758_v61, %v1761_v55  ;;  %v1789_v21 = vsel %vm1775_vm9, %v1786_v46, %v1788_v27  ;;  %v1642_v58 = vshrl.u32 %v1641_v14, 23  ;;  %v11741_v55 = vpop.f32.mrb[16].mxu0 }
 0x1a5   : > { %v1498_v39 = vclz %v9179_v19  ;;  %v1780_v28 = vsel %vm1776_vm7, %v1764_v60, %v1779_v48  ;;  %v11732_v63 = vmul.u32.u64.low %v1790_v18, %v1789_v21  ;;  %v11733_v32 = vmul.u32.u64.high %v1790_v18, %v1789_v21, %v11732_v63 }
 0x1a6   : > { %v1607_v1 = vshll.u32 %v11631_v4, %v11682_v40  ;;  %v1613_v51 = vor.u32 4788187, %v1612_v29  ;;  %v11737_v16 = vmul.u32.u64.low %v1790_v18, %v1785_v49  ;;  %v11738_v54 = vmul.u32.u64.high %v1790_v18, %v1785_v49, %v11737_v16 }
 0x1a7   : > { %v1304_v35 = vcvt.s32.f32 %v1297_v44  ;;  %v9180_v61 = vadd.s32 4294967294, %v1498_v39  ;;  %v9186_v14 = vadd.s32 4294967169, %v1642_v58  ;;  %v16197_v52 = vand.u32 2147483647, %v11666_v22 }
 0x1a8   : > { %10654 = vsinq.f32 %v11596_v9  ;;  %v16198_v60 = vand.u32 2147483647, %v11312_v34  ;;  %v16199_v56 = vmov 0  ;;  %v1609_v4 = vor.u32 %v1608_v62, %v1607_v1 }
 0x1a9   : > { %v1645_v45 = vand.u32 8388607, %v16197_v52  ;;  %v1781_v40 = vsel %vm1775_vm9, %v1778_v10, %v1780_v28  ;;  %10656 = vcosq.f32 %v11661_v38  ;;  %v11755_v44 = vmul.f32 %v1304_v35, %v1302_v0 }
 0x1aa   : > { %vm11748_vm15 = vcmp.le.f32.partialorder %v16198_v60, 0.7853982  ;;  %vm1799_vm1 = vc.u32 %v11733_v32, %v11737_v16  ;;  %v1648_v29 = vadd.s32 1, %v9186_v14  ;;  %v16202_v9 = vxor.u32 2147483648, %v11635_v59 }
 0x1ab   : > { %v16200_v56 = vsel %vm11748_vm15, 4294967295, %v16199_v56  ;;  %v1614_v46 = vand.u32 2147483647, %v1613_v51  ;;  %v1800_v5 = vadd.s32 1, %v11738_v54  ;;  %v11767_v26 = vadd.f32 %v11587_v24, %v11299_v30 }
 0x1ac   : > { %16201 = vst [vmem:[#allocation42_spill] sm:$0xff] %v16200_v56  ;;  %v1411_v48 = vsel %vm15942_vm12, %v16202_v9, %v11635_v59  ;;  %vm9181_vm3 = vcmp.lt.s32.totalorder %v9180_v61, 0  ;;  %v1797_v0 = vmul.u32 %v1790_v18, %v1781_v40  ;;  %v1646_v19 = vor.u32 8388608, %v1645_v45 }
 0x1ad   : > { %16203 = vst [vmem:[#allocation43_spill] sm:$0xff] %v11767_v26  ;;  %vm1649_vm7 = vcmp.gt.s32.totalorder %v1648_v29, 0  ;;  %10658 = vsinq.f32 %v11661_v38  ;;  %v1616_v49 = vcvt.s32.f32 %v1609_v4  ;;  %v1801_v27 = vsel %vm1799_vm1, %v1800_v5, %v11738_v54 }
 0x1ae   : > { %v1650_v62 = vsel %vm1649_vm7, %v1648_v29, 0  ;;  %v11774_v59 = vsel %vm11748_vm15, %v11312_v34, %v1411_v48  ;;  %v1486_v30 = vadd.s32 %v11649_v20, %v11655_v37  ;;  %v1802_v21 = vadd.s32 %v1801_v27, %v1797_v0 }
 0x1af   : > { %v11779_v18 = vmul.f32 %v1616_v49, %v1614_v46  ;;  %v1501_v58 = vsel %vm9181_vm3, 0, %v9180_v61  ;;  %v1652_v39 = vand.u32 31, %v1650_v62  ;;  %v1953_v38 = vand.u32 2139095040, %v11767_v26 }
 0x1b0   : > { %v1803_v28 = vadd.s32 536870912, %v1802_v21  ;;  %v11782_v63 = vshrl.u32 %v1650_v62, 5  ;;  %v11784_v1 = vshll.u32 %v1646_v19, 8  ;;  %v1502_v37 = vsub.s32 32, %v1501_v58 }
 0x1b1   : > { %v1653_v54 = vsub.s32 32, %v1652_v39  ;;  %v1655_v35 = vshll.u32 %v16167_v12, %v1652_v39  ;;  %v1658_v14 = vshll.u32 %v16161_v57, %v1652_v39  ;;  %v1661_v20 = vshll.u32 %v16163_v6, %v1652_v39 }
 0x1b2   : > { %v1506_v52 = vsub.s32 4294967266, %v1501_v58  ;;  %v11790_v61 = vshrl.u32 %v1803_v28, 30  ;;  %v1664_v45 = vshll.u32 %v16164_v3, %v1652_v39  ;;  %v11793_v60 = vpop.eup %10654  ;;  %v1954_v9 = vshrl.u32 %v1953_v38, 23 }
 0x1b3   : > { %16205 = vst [vmem:[#allocation45_spill] sm:$0xff] %v11793_v60  ;;  %v1656_v4 = vshrl.u32 %v16161_v57, %v1653_v54  ;;  %v1659_v40 = vshrl.u32 %v16163_v6, %v1653_v54  ;;  %v1662_v29 = vshrl.u32 %v16164_v3, %v1653_v54  ;;  %v11798_v48 = vpop.eup %10656  ;;  %v1665_v5 = vshrl.u32 %v16165_v33, %v1653_v54 }
 0x1b4   : > { %16204 = vst [vmem:[#allocation44_spill] sm:$0xff] %v11790_v61  ;;  %16206 = vst [vmem:[#allocation46_spill] sm:$0xff] %v11798_v48  ;;  %v1805_v46 = vshll.u32 %v11790_v61, 30  ;;  %v1667_v0 = vshll.u32 %v16165_v33, %v1652_v39  ;;  %vm1670_vm8 = vcmp.lt.s32.totalorder %v11782_v63, 1  ;;  %v1668_v62 = vshrl.u32 %v16166_v36, %v1653_v54 }
 0x1b5   : > { %v1657_v19 = vor.u32 %v1656_v4, %v1655_v35  ;;  %v1660_v49 = vor.u32 %v1659_v40, %v1658_v14  ;;  %v1663_v27 = vor.u32 %v1662_v29, %v1661_v20  ;;  %vm15954_vm9 = vcmp.lt.s32.totalorder %v11363_v2, 0  ;;  %v11820_v20 = vpop.f32.mrb[17].mxu0 }
 0x1b6   : > { %v1503_v28 = vshll.u32 %v11708_v7, %v1501_v58  ;;  %v1504_v38 = vshrl.u32 %v1486_v30, %v1502_v37  ;;  %v11807_v10 = vsub.s32 %v1802_v21, %v1805_v46  ;;  %v1666_v51 = vor.u32 %v1665_v5, %v1664_v45 }
 0x1b7   : > { %v11809_v61 = vpop.eup %10658  ;;  %v1507_v56 = vadd.s32 127, %v1506_v52  ;;  %v1669_v8 = vor.u32 %v1668_v62, %v1667_v0  ;;  %vm1672_vm1 = vcmp.lt.s32.totalorder %v11782_v63, 3  ;;  %vm1673_vm3 = vcmp.lt.s32.totalorder %v11782_v63, 4 }
 0x1b8   : > { %16207 = vst [vmem:[#allocation47_spill] sm:$0xff] %v11809_v61  ;;  %v1808_v39 = vsub.s32 0, %v11807_v10  ;;  %vm1671_vm7 = vcmp.lt.s32.totalorder %v11782_v63, 2  ;;  %v1678_v35 = vsel %vm1670_vm8, %v1657_v19, %v1660_v49  ;;  %v9198_v7 = vadd.s32 4294967169, %v1954_v9 }
 0x1b9   : > { %v1654_v30 = vshrl.u32 %v16167_v12, %v1653_v54  ;;  %v1679_v21 = vsel %vm1673_vm3, %v1666_v51, 920167782  ;;  %v1682_v58 = vsel %vm1670_vm8, %v1660_v49, %v1663_v27  ;;  %v1683_v14 = vsel %vm1673_vm3, %v1669_v8, 1326507024 }
 0x1ba   : > { %v1618_v37 = vxor.u32 2147483648, %v11779_v18  ;;  %v9191_v52 = vmin.u32 %v1808_v39, %v11807_v10  ;;  %v1675_v45 = vsel %vm1673_vm3, %v1663_v27, 2102212464  ;;  %v1680_v4 = vsel %vm1672_vm1, %v1663_v27, %v1679_v21 }
 0x1bb   : > { %v11826_v40 = vor.u32 %v1504_v38, %v1503_v28  ;;  %v1681_v54 = vsel %vm1671_vm7, %v1678_v35, %v1680_v4  ;;  %v1684_v29 = vsel %vm1672_vm1, %v1666_v51, %v1683_v14  ;;  %v16208_v8 = vand.u32 2147483647, %v11767_v26 }
 0x1bc   : > { %v1508_v46 = vshll.u32 %v1507_v56, 23  ;;  %v1810_v5 = vclz %v9191_v52  ;;  %v1685_v0 = vsel %vm1671_vm7, %v1682_v58, %v1684_v29  ;;  %v1960_v62 = vadd.s32 1, %v9198_v7 }
 0x1bd   : > { %v1957_v9 = vand.u32 8388607, %v16208_v8  ;;  %v1674_v27 = vsel %vm1670_vm8, %v1654_v30, %v1657_v19  ;;  %v1676_v28 = vsel %vm1672_vm1, %v1660_v49, %v1675_v45  ;;  %10660 = vcosq.f32 %v11774_v59 }
 0x1be   : > { %v11841_v38 = vmul.u32.u64.low %v11784_v1, %v1685_v0  ;;  %v11842_v39 = vmul.u32.u64.high %v11784_v1, %v1685_v0, %v11841_v38  ;;  %v9192_v51 = vadd.s32 4294967294, %v1810_v5  ;;  %vm1961_vm3 = vcmp.gt.s32.totalorder %v1960_v62, 0 }
 0x1bf   : > { %v11845_v35 = vmul.u32.u64.low %v11784_v1, %v1681_v54  ;;  %v11846_v21 = vmul.u32.u64.high %v11784_v1, %v1681_v54, %v11845_v35  ;;  %v16209_v56 = vxor.u32 2147483648, %v11755_v44  ;;  %vm15941_vm8 = vcmp.lt.s32.totalorder %v11427_v25, 0 }
 0x1c0   : > { %v1962_v49 = vsel %vm1961_vm3, %v1960_v62, 0  ;;  %v11861_v7 = vsel %vm15941_vm8, %v1618_v37, %v11779_v18  ;;  %vm9193_vm1 = vcmp.lt.s32.totalorder %v9192_v51, 0  ;;  %v1677_v30 = vsel %vm1671_vm7, %v1674_v27, %v1676_v28 }
 0x1c1   : > { %v11855_v19 = vsel %vm15954_vm9, %v16209_v56, %v11755_v44  ;;  %v1964_v58 = vand.u32 31, %v1962_v49  ;;  %v1798_v14 = vadd.s32 %v11737_v16, %v11733_v32  ;;  %vm1695_vm0 = vc.u32 %v11842_v39, %v11845_v35 }
 0x1c2   : > { %v1958_v44 = vor.u32 8388608, %v1957_v9  ;;  %v11871_v52 = vadd.f32 %v11587_v24, %v11332_v43  ;;  %v1509_v45 = vor.u32 4788187, %v1508_v46  ;;  %v1512_v18 = vcvt.s32.f32 %v11826_v40 }
 0x1c3   : > { %v11874_v37 = vsel %vm9193_vm1, 0, %v9192_v51  ;;  %v1696_v63 = vadd.s32 1, %v11846_v21  ;;  %v1693_v4 = vmul.u32 %v11784_v1, %v1677_v30  ;;  %v1965_v54 = vsub.s32 32, %v1964_v58 }
 0x1c4   : > { %v1967_v32 = vshll.u32 %v16167_v12, %v1964_v58  ;;  %v1970_v16 = vshll.u32 %v16161_v57, %v1964_v58  ;;  %v1963_v8 = vshrl.u32 %v1962_v49, 5  ;;  %v1973_v43 = vshll.u32 %v16163_v6, %v1964_v58 }
 0x1c5   : > { %v1697_v29 = vsel %vm1695_vm0, %v1696_v63, %v11846_v21  ;;  %v1976_v9 = vshll.u32 %v16164_v3, %v1964_v58  ;;  %v1818_v40 = vsub.s32 4294967266, %v11874_v37  ;;  %v1968_v5 = vshrl.u32 %v16161_v57, %v1965_v54 }
 0x1c6   : > { %v1698_v46 = vadd.s32 %v1697_v29, %v1693_v4  ;;  %v1971_v0 = vshrl.u32 %v16163_v6, %v1965_v54  ;;  %v1510_v1 = vand.u32 2147483647, %v1509_v45  ;;  %v1966_v62 = vshrl.u32 %v16167_v12, %v1965_v54 }
 0x1c7   : > { %v1974_v27 = vshrl.u32 %v16164_v3, %v1965_v54  ;;  %v1977_v28 = vshrl.u32 %v16165_v33, %v1965_v54  ;;  %v1969_v51 = vor.u32 %v1968_v5, %v1967_v32  ;;  %v1979_v56 = vshll.u32 %v16165_v33, %v1964_v58  ;;  %v11891_v29 = vpop.eup %10660 }
 0x1c8   : > { %v1699_v38 = vadd.s32 536870912, %v1698_v46  ;;  %v1972_v21 = vor.u32 %v1971_v0, %v1970_v16  ;;  %v1814_v49 = vsub.s32 32, %v11874_v37  ;;  %v1998_v4 = vshll.u32 %v1958_v44, 8  ;;  %16210 = vst [vmem:[#allocation48_spill] sm:$0xff] %v11891_v29 }
 0x1c9   : > { %v1975_v30 = vor.u32 %v1974_v27, %v1973_v43  ;;  %v1978_v63 = vor.u32 %v1977_v28, %v1976_v9  ;;  %v16211_v45 = vand.u32 2147483647, %v11363_v2  ;;  %v16212_v34 = vmov 0 }
 0x1ca   : > { %v1819_v60 = vadd.s32 127, %v1818_v40  ;;  %v11899_v48 = vshrl.u32 %v1699_v38, 30  ;;  %v1980_v32 = vshrl.u32 %v16166_v36, %v1965_v54  ;;  %vm1982_vm7 = vcmp.lt.s32.totalorder %v1963_v8, 1 }
 0x1cb   : > { %vm11895_vm0 = vcmp.le.f32.partialorder %v16211_v45, 0.7853982  ;;  %vm1983_vm3 = vcmp.lt.s32.totalorder %v1963_v8, 2  ;;  %vm1984_vm1 = vcmp.lt.s32.totalorder %v1963_v8, 3  ;;  %vm1985_vm8 = vcmp.lt.s32.totalorder %v1963_v8, 4 }
 0x1cc   : > { %v16213_v34 = vsel %vm11895_vm0, 4294967295, %v16212_v34  ;;  %16215 = vst [vmem:[#allocation50_spill] sm:$0xff] %v11899_v48  ;;  %v1986_v58 = vsel %vm1982_vm7, %v1966_v62, %v1969_v51  ;;  %v16216_v44 = vand.u32 2147483647, %v11427_v25  ;;  %v16217_v16 = vmov 0 }
 0x1cd   : > { %16214 = vst [vmem:[#allocation49_spill] sm:$0xff] %v16213_v34  ;;  %v1701_v43 = vshll.u32 %v11899_v48, 30  ;;  %v1981_v9 = vor.u32 %v1980_v32, %v1979_v56  ;;  %v1987_v5 = vsel %vm1985_vm8, %v1975_v30, 2102212464  ;;  %v1990_v40 = vsel %vm1982_vm7, %v1969_v51, %v1972_v21 }
 0x1ce   : > { %vm11904_vm12 = vcmp.le.f32.partialorder %v16216_v44, 0.7853982  ;;  %v1988_v0 = vsel %vm1984_vm1, %v1972_v21, %v1987_v5  ;;  %v1991_v27 = vsel %vm1985_vm8, %v1978_v63, 920167782  ;;  %v1994_v54 = vsel %vm1982_vm7, %v1972_v21, %v1975_v30 }
 0x1cf   : > { %v16218_v16 = vsel %vm11904_vm12, 4294967295, %v16217_v16  ;;  %v1849_v28 = vand.u32 2139095040, %v11871_v52  ;;  %v1820_v38 = vshll.u32 %v1819_v60, 23  ;;  %v11911_v45 = vsub.s32 %v1698_v46, %v1701_v43  ;;  %v11923_v60 = vpop.f32.mrb[18].mxu0 }
 0x1d0   : > { %16219 = vst [vmem:[#allocation51_spill] sm:$0xff] %v16218_v16  ;;  %v1992_v62 = vsel %vm1984_vm1, %v1975_v30, %v1991_v27  ;;  %v1995_v44 = vsel %vm1985_vm8, %v1981_v9, 1326507024  ;;  %v1816_v29 = vshrl.u32 %v1798_v14, %v1814_v49  ;;  %v1989_v61 = vsel %vm1983_vm3, %v1986_v58, %v1988_v0 }
 0x1d1   : > { %v1993_v48 = vsel %vm1983_vm3, %v1990_v40, %v1992_v62  ;;  %v1996_v56 = vsel %vm1984_vm1, %v1978_v63, %v1995_v44  ;;  %v1704_v51 = vsub.s32 0, %v11911_v45  ;;  %v1513_v46 = vmul.f32 %v1512_v18, %v1510_v1 }
 0x1d2   : > { %v1997_v32 = vsel %vm1983_vm3, %v1994_v54, %v1996_v56  ;;  %v11919_v21 = vmul.u32.u64.low %v1998_v4, %v1993_v48  ;;  %v11920_v5 = vmul.u32.u64.high %v1998_v4, %v1993_v48, %v11919_v21  ;;  %v1850_v14 = vshrl.u32 %v1849_v28, 23 }
 0x1d3   : > { %v11925_v30 = vmul.u32.u64.low %v1998_v4, %v1997_v32  ;;  %v11926_v43 = vmul.u32.u64.high %v1998_v4, %v1997_v32, %v11925_v30  ;;  %v1815_v49 = vshll.u32 %v11807_v10, %v11874_v37  ;;  %v1821_v58 = vor.u32 4788187, %v1820_v38 }
 0x1d4   : > { %v9187_v63 = vmin.u32 %v1704_v51, %v11911_v45  ;;  %v15947_v8 = vand.u32 2147483647, %v11871_v52  ;;  %10662 = vsinq.f32 %v11774_v59  ;;  %v1310_v48 = vsel %vm11895_vm0, %v11363_v2, %v11855_v19 }
 0x1d5   : > { %v2005_v18 = vmul.u32 %v1998_v4, %v1989_v61  ;;  %v9194_v1 = vadd.s32 4294967169, %v1850_v14  ;;  %v1817_v9 = vor.u32 %v1816_v29, %v1815_v49  ;;  %v2008_v0 = vadd.s32 1, %v11920_v5 }
 0x1d6   : > { %v1706_v40 = vclz %v9187_v63  ;;  %v11940_v10 = vadd.f32 %v11587_v24, %v11396_v42  ;;  %v11946_v59 = vsel %vm11904_vm12, %v11427_v25, %v11861_v7  ;;  %v1514_v37 = vxor.u32 2147483648, %v1513_v46 }
 0x1d7   : > { %vm2007_vm8 = vc.u32 %v11926_v43, %v11919_v21  ;;  %v1856_v61 = vadd.s32 1, %v9194_v1  ;;  %v1822_v19 = vand.u32 2147483647, %v1821_v58  ;;  %v1853_v27 = vand.u32 8388607, %v15947_v8 }
 0x1d8   : > { %16220 = vst [vmem:[#allocation52_spill] sm:$0xff] %v11940_v10  ;;  %v9188_v4 = vadd.s32 4294967294, %v1706_v40  ;;  %v2009_v29 = vsel %vm2007_vm8, %v2008_v0, %v11920_v5  ;;  %10664 = vcosq.f32 %v1310_v48  ;;  %vm15953_vm7 = vcmp.lt.s32.totalorder %v11508_v15, 0 }
 0x1d9   : > { %v2010_v42 = vadd.s32 %v2009_v29, %v2005_v18  ;;  %vm1857_vm3 = vcmp.gt.s32.totalorder %v1856_v61, 0  ;;  %10666 = vsinq.f32 %v1310_v48  ;;  %v1824_v7 = vcvt.s32.f32 %v1817_v9 }
 0x1da   : > { %v1858_v54 = vsel %vm1857_vm3, %v1856_v61, 0  ;;  %v2161_v28 = vand.u32 2139095040, %v11940_v10  ;;  %10668 = vcosq.f32 %v11946_v59  ;;  %v1515_v38 = vsel %vm15953_vm7, %v1514_v37, %v1513_v46 }
 0x1db   : > { %v2011_v62 = vadd.s32 536870912, %v2010_v42  ;;  %v1860_v44 = vand.u32 31, %v1858_v54  ;;  %v11958_v56 = vmul.f32 %v1824_v7, %v1822_v19  ;;  %v1694_v51 = vadd.s32 %v11845_v35, %v11842_v39 }
 0x1dc   : > { %vm9189_vm1 = vcmp.lt.s32.totalorder %v9188_v4, 0  ;;  %v1854_v32 = vor.u32 8388608, %v1853_v27  ;;  %v2162_v48 = vshrl.u32 %v2161_v28, 23  ;;  %v16223_v39 = vand.u32 2147483647, %v11508_v15 }
 0x1dd   : > { %v11962_v5 = vshrl.u32 %v2011_v62, 30  ;;  %v1861_v30 = vsub.s32 32, %v1860_v44  ;;  %v1863_v14 = vshll.u32 %v16167_v12, %v1860_v44  ;;  %v1866_v49 = vshll.u32 %v16161_v57, %v1860_v44 }
 0x1de   : > { %v1869_v58 = vshll.u32 %v16163_v6, %v1860_v44  ;;  %v1872_v46 = vshll.u32 %v16164_v3, %v1860_v44  ;;  %v11969_v18 = vpop.eup %10662  ;;  %vm11973_vm8 = vcmp.le.f32.partialorder %v16223_v39, 0.7853982  ;;  %v16224_v35 = vmov 0 }
 0x1df   : > { %16221 = vst [vmem:[#allocation53_spill] sm:$0xff] %v11962_v5  ;;  %16222 = vst [vmem:[#allocation54_spill] sm:$0xff] %v11969_v18  ;;  %v16225_v35 = vsel %vm11973_vm8, 4294967295, %v16224_v35  ;;  %v2013_v1 = vshll.u32 %v11962_v5, 30  ;;  %v1859_v9 = vshrl.u32 %v1858_v54, 5  ;;  %v1864_v40 = vshrl.u32 %v16161_v57, %v1861_v30 }
 0x1e0   : > { %16226 = vst [vmem:[#allocation55_spill] sm:$0xff] %v16225_v35  ;;  %v1867_v0 = vshrl.u32 %v16163_v6, %v1861_v30  ;;  %v1709_v37 = vsel %vm9189_vm1, 0, %v9188_v4  ;;  %v1870_v61 = vshrl.u32 %v16164_v3, %v1861_v30  ;;  %v1873_v19 = vshrl.u32 %v16165_v33, %v1861_v30 }
 0x1e1   : > { %v11983_v29 = vshll.u32 %v1854_v32, 8  ;;  %v11985_v27 = vsub.s32 %v2010_v42, %v2013_v1  ;;  %v1865_v7 = vor.u32 %v1864_v40, %v1863_v14  ;;  %v1875_v62 = vshll.u32 %v16165_v33, %v1860_v44 }
 0x1e2   : > { %v1868_v28 = vor.u32 %v1867_v0, %v1866_v49  ;;  %v1862_v54 = vshrl.u32 %v16167_v12, %v1861_v30  ;;  %v1871_v39 = vor.u32 %v1870_v61, %v1869_v58  ;;  %v1874_v8 = vor.u32 %v1873_v19, %v1872_v46  ;;  %v11989_v5 = vpop.eup %10664 }
 0x1e3   : > { %v9206_v63 = vadd.s32 4294967169, %v2162_v48  ;;  %16227 = vst [vmem:[#allocation56_spill] sm:$0xff] %v11989_v5  ;;  %v1714_v4 = vsub.s32 4294967266, %v1709_v37  ;;  %v2016_v16 = vsub.s32 0, %v11985_v27  ;;  %v1876_v25 = vshrl.u32 %v16166_v36, %v1861_v30  ;;  %v11993_v32 = vpop.eup %10666 }
 0x1e4   : > { %vm1878_vm3 = vcmp.lt.s32.totalorder %v1859_v9, 1  ;;  %16228 = vst [vmem:[#allocation57_spill] sm:$0xff] %v11993_v32  ;;  %v1710_v42 = vsub.s32 32, %v1709_v37  ;;  %vm1879_vm1 = vcmp.lt.s32.totalorder %v1859_v9, 2  ;;  %vm1880_vm7 = vcmp.lt.s32.totalorder %v1859_v9, 3  ;;  %v11995_v44 = vpop.eup %10668 }
 0x1e5   : > { %vm1881_vm9 = vcmp.lt.s32.totalorder %v1859_v9, 4  ;;  %16229 = vst [vmem:[#allocation58_spill] sm:$0xff] %v11995_v44  ;;  %v9199_v14 = vmin.u32 %v2016_v16, %v11985_v27  ;;  %v1877_v49 = vor.u32 %v1876_v25, %v1875_v62  ;;  %v1886_v46 = vsel %vm1878_vm3, %v1865_v7, %v1868_v28 }
 0x1e6   : > { %v1883_v58 = vsel %vm1881_vm9, %v1871_v39, 2102212464  ;;  %v1882_v48 = vsel %vm1878_vm3, %v1862_v54, %v1865_v7  ;;  %v1887_v40 = vsel %vm1881_vm9, %v1874_v8, 920167782  ;;  %v1890_v0 = vsel %vm1878_vm3, %v1868_v28, %v1871_v39 }
 0x1e7   : > { %v1884_v1 = vsel %vm1880_vm7, %v1868_v28, %v1883_v58  ;;  %v1715_v30 = vadd.s32 127, %v1714_v4  ;;  %v2018_v61 = vclz %v9199_v14  ;;  %v1888_v19 = vsel %vm1880_vm7, %v1871_v39, %v1887_v40  ;;  %v12014_v39 = vpop.f32.mrb[19].mxu0 }
 0x1e8   : > { %v1891_v18 = vsel %vm1881_vm9, %v1877_v49, 1326507024  ;;  %v12003_v5 = vsel %vm11973_vm8, %v11508_v15, %v1515_v38  ;;  %v1712_v44 = vshrl.u32 %v1694_v51, %v1710_v42  ;;  %v1889_v25 = vsel %vm1879_vm1, %v1886_v46, %v1888_v19 }
 0x1e9   : > { %v1892_v16 = vsel %vm1880_vm7, %v1874_v8, %v1891_v18  ;;  %v1885_v7 = vsel %vm1879_vm1, %v1882_v48, %v1884_v1  ;;  %v12010_v28 = vmul.u32.u64.low %v11983_v29, %v1889_v25  ;;  %v12011_v54 = vmul.u32.u64.high %v11983_v29, %v1889_v25, %v12010_v28 }
 0x1ea   : > { %v1893_v62 = vsel %vm1879_vm1, %v1890_v0, %v1892_v16  ;;  %v9200_v4 = vadd.s32 4294967294, %v2018_v61  ;;  %v2168_v51 = vadd.s32 1, %v9206_v63  ;;  %v1826_v42 = vxor.u32 2147483648, %v11958_v56 }
 0x1eb   : > { %v12017_v38 = vmul.u32.u64.low %v11983_v29, %v1893_v62  ;;  %v12018_v14 = vmul.u32.u64.high %v11983_v29, %v1893_v62, %v12017_v38  ;;  %v1711_v8 = vshll.u32 %v11911_v45, %v1709_v37  ;;  %v1716_v18 = vshll.u32 %v1715_v30, 23 }
 0x1ec   : > { %v16230_v9 = vand.u32 2147483647, %v11940_v10  ;;  %10670 = vsinq.f32 %v11946_v59  ;;  %vm2169_vm9 = vcmp.gt.s32.totalorder %v2168_v51, 0  ;;  %vm15959_vm7 = vcmp.lt.s32.totalorder %v11591_v41, 0 }
 0x1ed   : > { %10672 = vcosq.f32 %v12003_v5  ;;  %v12027_v58 = vor.u32 %v1712_v44, %v1711_v8  ;;  %v1901_v46 = vmul.u32 %v11983_v29, %v1885_v7  ;;  %vm9201_vm3 = vcmp.lt.s32.totalorder %v9200_v4, 0 }
 0x1ee   : > { %v2165_v49 = vand.u32 8388607, %v16230_v9  ;;  %vm1903_vm1 = vc.u32 %v12018_v14, %v12010_v28  ;;  %v1904_v45 = vadd.s32 1, %v12011_v54  ;;  %v2170_v63 = vsel %vm2169_vm9, %v2168_v51, 0 }
 0x1ef   : > { %v12036_v59 = vsel %vm15959_vm7, %v1826_v42, %v11958_v56  ;;  %v1717_v37 = vor.u32 4788187, %v1716_v18  ;;  %v2172_v1 = vand.u32 31, %v2170_v63  ;;  %v2006_v44 = vadd.s32 %v11919_v21, %v11926_v43 }
 0x1f0   : > { %v2166_v48 = vor.u32 8388608, %v2165_v49  ;;  %v1905_v29 = vsel %vm1903_vm1, %v1904_v45, %v12011_v54  ;;  %v12043_v40 = vadd.f32 %v11587_v24, %v11476_v31  ;;  %v12047_v0 = vadd.f32 %v11587_v24, %v11560_v23 }
 0x1f1   : > { %v1720_v30 = vcvt.s32.f32 %v12027_v58  ;;  %v12050_v56 = vsel %vm9201_vm3, 0, %v9200_v4  ;;  %v1906_v61 = vadd.s32 %v1905_v29, %v1901_v46  ;;  %v2173_v19 = vsub.s32 32, %v2172_v1 }
 0x1f2   : > { %16231 = vst [vmem:[#allocation59_spill] sm:$0xff] %v12043_v40  ;;  %16232 = vst [vmem:[#allocation60_spill] sm:$0xff] %v12047_v0  ;;  %v2175_v25 = vshll.u32 %v16167_v12, %v2172_v1  ;;  %v2178_v21 = vshll.u32 %v16161_v57, %v2172_v1  ;;  %v2181_v43 = vshll.u32 %v16163_v6, %v2172_v1  ;;  %v1718_v31 = vand.u32 2147483647, %v1717_v37 }
 0x1f3   : > { %v2184_v16 = vshll.u32 %v16164_v3, %v2172_v1  ;;  %v1907_v7 = vadd.s32 536870912, %v1906_v61  ;;  %v2171_v62 = vshrl.u32 %v2170_v63, 5  ;;  %v12056_v54 = vshll.u32 %v2166_v48, 8 }
 0x1f4   : > { %v2176_v23 = vshrl.u32 %v16161_v57, %v2173_v19  ;;  %v2179_v24 = vshrl.u32 %v16163_v6, %v2173_v19  ;;  %v2182_v4 = vshrl.u32 %v16164_v3, %v2173_v19  ;;  %v2185_v38 = vshrl.u32 %v16165_v33, %v2173_v19 }
 0x1f5   : > { %v2026_v51 = vsub.s32 4294967266, %v12050_v56  ;;  %v12063_v42 = vshrl.u32 %v1907_v7, 30  ;;  %v2187_v8 = vshll.u32 %v16165_v33, %v2172_v1  ;;  %v2188_v18 = vshrl.u32 %v16166_v36, %v2173_v19 }
 0x1f6   : > { %v12067_v9 = vpop.eup %10670  ;;  %v2177_v49 = vor.u32 %v2176_v23, %v2175_v25  ;;  %v2180_v58 = vor.u32 %v2179_v24, %v2178_v21  ;;  %v2183_v46 = vor.u32 %v2182_v4, %v2181_v43  ;;  %v2186_v45 = vor.u32 %v2185_v38, %v2184_v16 }
 0x1f7   : > { %16233 = vst [vmem:[#allocation61_spill] sm:$0xff] %v12063_v42  ;;  %16234 = vst [vmem:[#allocation62_spill] sm:$0xff] %v12067_v9  ;;  %v12069_v63 = vpop.eup %10672  ;;  %v16236_v37 = vand.u32 2147483647, %v11591_v41  ;;  %v16237_v48 = vmov 0  ;;  %v1909_v29 = vshll.u32 %v12063_v42, 30  ;;  %v2174_v1 = vshrl.u32 %v16167_v12, %v2173_v19 }
 0x1f8   : > { %16235 = vst [vmem:[#allocation63_spill] sm:$0xff] %v12069_v63  ;;  %v2189_v7 = vor.u32 %v2188_v18, %v2187_v8  ;;  %vm2190_vm3 = vcmp.lt.s32.totalorder %v2171_v62, 1  ;;  %v2022_v9 = vsub.s32 32, %v12050_v56  ;;  %vm2192_vm1 = vcmp.lt.s32.totalorder %v2171_v62, 3  ;;  %v12086_v42 = vpop.f32.mrb[20].mxu0 }
 0x1f9   : > { %vm12073_vm9 = vcmp.le.f32.partialorder %v16236_v37, 0.7853982  ;;  %vm2193_vm7 = vcmp.lt.s32.totalorder %v2171_v62, 4  ;;  %v2057_v25 = vand.u32 2139095040, %v12043_v40  ;;  %v12081_v21 = vsub.s32 %v1906_v61, %v1909_v29 }
 0x1fa   : > { %v16238_v48 = vsel %vm12073_vm9, 4294967295, %v16237_v48  ;;  %vm2191_vm5 = vcmp.lt.s32.totalorder %v2171_v62, 2  ;;  %v2195_v43 = vsel %vm2193_vm7, %v2183_v46, 2102212464  ;;  %v2198_v16 = vsel %vm2190_vm3, %v2177_v49, %v2180_v58 }
 0x1fb   : > { %16239 = vst [vmem:[#allocation64_spill] sm:$0xff] %v16238_v48  ;;  %v2027_v23 = vadd.s32 127, %v2026_v51  ;;  %v2199_v24 = vsel %vm2193_vm7, %v2186_v45, 920167782  ;;  %v2202_v4 = vsel %vm2190_vm3, %v2180_v58, %v2183_v46  ;;  %v2203_v38 = vsel %vm2193_vm7, %v2189_v7, 1326507024 }
 0x1fc   : > { %v1912_v37 = vsub.s32 0, %v12081_v21  ;;  %v2194_v19 = vsel %vm2190_vm3, %v2174_v1, %v2177_v49  ;;  %v2196_v8 = vsel %vm2192_vm1, %v2180_v58, %v2195_v43  ;;  %v2200_v18 = vsel %vm2192_vm1, %v2183_v46, %v2199_v24 }
 0x1fd   : > { %v1721_v63 = vmul.f32 %v1720_v30, %v1718_v31  ;;  %v2201_v61 = vsel %vm2191_vm5, %v2198_v16, %v2200_v18  ;;  %v2204_v29 = vsel %vm2192_vm1, %v2186_v45, %v2203_v38  ;;  %v15968_v35 = vand.u32 2147483647, %v12043_v40 }
 0x1fe   : > { %v2024_v51 = vshrl.u32 %v2006_v44, %v2022_v9  ;;  %v9195_v15 = vmin.u32 %v1912_v37, %v12081_v21  ;;  %v2205_v7 = vsel %vm2191_vm5, %v2202_v4, %v2204_v29  ;;  %v2058_v32 = vshrl.u32 %v2057_v25, 23 }
 0x1ff   : > { %v2028_v49 = vshll.u32 %v2027_v23, 23  ;;  %v2197_v58 = vsel %vm2191_vm5, %v2194_v19, %v2196_v8  ;;  %v12095_v46 = vmul.u32.u64.low %v12056_v54, %v2205_v7  ;;  %v12096_v1 = vmul.u32.u64.high %v12056_v54, %v2205_v7, %v12095_v46 }
 0x200   : > { %v1914_v30 = vclz %v9195_v15  ;;  %v12099_v31 = vmul.u32.u64.low %v12056_v54, %v2201_v61  ;;  %v12100_v43 = vmul.u32.u64.high %v12056_v54, %v2201_v61, %v12099_v31  ;;  %v9202_v45 = vadd.s32 4294967169, %v2058_v32 }
 0x201   : > { %10674 = vsinq.f32 %v12003_v5  ;;  %v1830_v44 = vsel %vm12073_vm9, %v11591_v41, %v12036_v59  ;;  %v2023_v62 = vshll.u32 %v11985_v27, %v12050_v56  ;;  %v1722_v9 = vxor.u32 2147483648, %v1721_v63 }
 0x202   : > { %v9196_v25 = vadd.s32 4294967294, %v1914_v30  ;;  %v2061_v15 = vand.u32 8388607, %v15968_v35  ;;  %v2064_v16 = vadd.s32 1, %v9202_v45  ;;  %v12114_v24 = vor.u32 4788187, %v2028_v49 }
 0x203   : > { %v12112_v23 = vor.u32 %v2024_v51, %v2023_v62  ;;  %v2213_v5 = vmul.u32 %v12056_v54, %v2197_v58  ;;  %vm2215_vm5 = vc.u32 %v12096_v1, %v12099_v31  ;;  %v2216_v32 = vadd.s32 1, %v12100_v43 }
 0x204   : > { %vm9197_vm7 = vcmp.lt.s32.totalorder %v9196_v25, 0  ;;  %vm2065_vm3 = vcmp.gt.s32.totalorder %v2064_v16, 0  ;;  %v2369_v27 = vand.u32 2139095040, %v12047_v0  ;;  %10676 = vcosq.f32 %v1830_v44 }
 0x205   : > { %v2066_v59 = vsel %vm2065_vm3, %v2064_v16, 0  ;;  %10678 = vsinq.f32 %v1830_v44  ;;  %vm15971_vm1 = vcmp.lt.s32.totalorder %v11666_v22, 0  ;;  %v2217_v56 = vsel %vm2215_vm5, %v2216_v32, %v12100_v43 }
 0x206   : > { %v2062_v4 = vor.u32 8388608, %v2061_v15  ;;  %v12125_v54 = vsel %vm15971_vm1, %v1722_v9, %v1721_v63  ;;  %v12127_v38 = vsel %vm9197_vm7, 0, %v9196_v25  ;;  %v2218_v37 = vadd.s32 %v2217_v56, %v2213_v5 }
 0x207   : > { %v2068_v19 = vand.u32 31, %v2066_v59  ;;  %v2030_v8 = vand.u32 2147483647, %v12114_v24  ;;  %v2032_v18 = vcvt.s32.f32 %v12112_v23  ;;  %v12133_v61 = vadd.s32 %v12010_v28, %v12018_v14 }
 0x208   : > { %v2370_v29 = vshrl.u32 %v2369_v27, 23  ;;  %v2219_v51 = vadd.s32 536870912, %v2218_v37  ;;  %v1922_v58 = vsub.s32 4294967266, %v12127_v38  ;;  %v12140_v43 = vshll.u32 %v2062_v4, 8 }
 0x209   : > { %v2069_v7 = vsub.s32 32, %v2068_v19  ;;  %v2071_v49 = vshll.u32 %v16167_v12, %v2068_v19  ;;  %v2074_v63 = vshll.u32 %v16161_v57, %v2068_v19  ;;  %v2077_v46 = vshll.u32 %v16163_v6, %v2068_v19 }
 0x20a   : > { %v2080_v30 = vshll.u32 %v16164_v3, %v2068_v19  ;;  %v12144_v44 = vshrl.u32 %v2219_v51, 30  ;;  %v2067_v28 = vshrl.u32 %v2066_v59, 5  ;;  %v9214_v16 = vadd.s32 4294967169, %v2370_v29 }
 0x20b   : > { %v12142_v45 = vpop.eup %10674  ;;  %v2072_v14 = vshrl.u32 %v16161_v57, %v2069_v7  ;;  %v2075_v62 = vshrl.u32 %v16163_v6, %v2069_v7  ;;  %v2078_v9 = vshrl.u32 %v16164_v3, %v2069_v7  ;;  %v2081_v25 = vshrl.u32 %v16165_v33, %v2069_v7 }
 0x20c   : > { %16240 = vst [vmem:[#allocation65_spill] sm:$0xff] %v12142_v45  ;;  %16241 = vst [vmem:[#allocation66_spill] sm:$0xff] %v12144_v44  ;;  %v2221_v23 = vshll.u32 %v12144_v44, 30  ;;  %v2083_v32 = vshll.u32 %v16165_v33, %v2068_v19  ;;  %v16242_v27 = vand.u32 2147483647, %v11666_v22  ;;  %v16243_v59 = vmov 0 }
 0x20d   : > { %v2073_v24 = vor.u32 %v2072_v14, %v2071_v49  ;;  %v2076_v5 = vor.u32 %v2075_v62, %v2074_v63  ;;  %v2070_v56 = vshrl.u32 %v16167_v12, %v2069_v7  ;;  %v2079_v4 = vor.u32 %v2078_v9, %v2077_v46 }
 0x20e   : > { %vm12155_vm5 = vcmp.le.f32.partialorder %v16242_v27, 0.7853982  ;;  %v2082_v51 = vor.u32 %v2081_v25, %v2080_v30  ;;  %v2084_v35 = vshrl.u32 %v16166_v36, %v2069_v7  ;;  %v12161_v15 = vpop.eup %10676  ;;  %v1923_v29 = vadd.s32 127, %v1922_v58  ;;  %v12170_v25 = vpop.f32.mrb[21].mxu0 }
 0x20f   : > { %v16244_v59 = vsel %vm12155_vm5, 4294967295, %v16243_v59  ;;  %16246 = vst [vmem:[#allocation68_spill] sm:$0xff] %v12161_v15  ;;  %v12163_v44 = vsub.s32 %v2218_v37, %v2221_v23  ;;  %vm2086_vm7 = vcmp.lt.s32.totalorder %v2067_v28, 1  ;;  %vm2088_vm3 = vcmp.lt.s32.totalorder %v2067_v28, 3  ;;  %v12165_v19 = vpop.eup %10678 }
 0x210   : > { %16245 = vst [vmem:[#allocation67_spill] sm:$0xff] %v16244_v59  ;;  %16247 = vst [vmem:[#allocation69_spill] sm:$0xff] %v12165_v19  ;;  %v2085_v49 = vor.u32 %v2084_v35, %v2083_v32  ;;  %vm2087_vm1 = vcmp.lt.s32.totalorder %v2067_v28, 2  ;;  %vm2089_vm14 = vcmp.lt.s32.totalorder %v2067_v28, 4  ;;  %v2376_v63 = vadd.s32 1, %v9214_v16 }
 0x211   : > { %v2224_v14 = vsub.s32 0, %v12163_v44  ;;  %v2091_v62 = vsel %vm2089_vm14, %v2079_v4, 2102212464  ;;  %v2094_v46 = vsel %vm2086_vm7, %v2073_v24, %v2076_v5  ;;  %v2095_v30 = vsel %vm2089_vm14, %v2082_v51, 920167782 }
 0x212   : > { %v2090_v9 = vsel %vm2086_vm7, %v2070_v56, %v2073_v24  ;;  %v2092_v7 = vsel %vm2088_vm3, %v2076_v5, %v2091_v62  ;;  %v2096_v58 = vsel %vm2088_vm3, %v2079_v4, %v2095_v30  ;;  %v2098_v37 = vsel %vm2086_vm7, %v2076_v5, %v2079_v4 }
 0x213   : > { %v12172_v23 = vmul.f32 %v2032_v18, %v2030_v8  ;;  %v9207_v35 = vmin.u32 %v2224_v14, %v12163_v44  ;;  %v2097_v32 = vsel %vm2087_vm1, %v2094_v46, %v2096_v58  ;;  %v2099_v16 = vsel %vm2089_vm14, %v2085_v49, 1326507024 }
 0x214   : > { %v1918_v27 = vsub.s32 32, %v12127_v38  ;;  %v2100_v15 = vsel %vm2088_vm3, %v2082_v51, %v2099_v16  ;;  %v12179_v24 = vmul.u32.u64.low %v12140_v43, %v2097_v32  ;;  %v12180_v56 = vmul.u32.u64.high %v12140_v43, %v2097_v32, %v12179_v24 }
 0x215   : > { %v1924_v62 = vshll.u32 %v1923_v29, 23  ;;  %v2226_v5 = vclz %v9207_v35  ;;  %v2093_v4 = vsel %vm2087_vm1, %v2090_v9, %v2092_v7  ;;  %v2101_v8 = vsel %vm2087_vm1, %v2098_v37, %v2100_v15 }
 0x216   : > { %v12186_v18 = vmul.u32.u64.low %v12140_v43, %v2101_v8  ;;  %v12187_v14 = vmul.u32.u64.high %v12140_v43, %v2101_v8, %v12186_v18  ;;  %v16248_v49 = vand.u32 2147483647, %v12047_v0  ;;  %vm2377_vm14 = vcmp.gt.s32.totalorder %v2376_v63, 0 }
 0x217   : > { %v12195_v51 = vsel %vm12155_vm5, %v11666_v22, %v12125_v54  ;;  %v9208_v30 = vadd.s32 4294967294, %v2226_v5  ;;  %v2378_v9 = vsel %vm2377_vm14, %v2376_v63, 0  ;;  %v1920_v28 = vshrl.u32 %v12133_v61, %v1918_v27  ;;  %v12208_v54 = vld [vmem:[%s15863_s3 + $0x8] ss:$0 sm:$0xff] }
 0x218   : > { %v2373_v46 = vand.u32 8388607, %v16248_v49  ;;  %v2109_v15 = vmul.u32 %v12140_v43, %v2093_v4  ;;  %v2112_v7 = vadd.s32 1, %v12180_v56  ;;  %v2380_v58 = vand.u32 31, %v2378_v9 }
 0x219   : > { %v1919_v37 = vshll.u32 %v12081_v21, %v12127_v38  ;;  %v12203_v35 = vor.u32 4788187, %v1924_v62  ;;  %vm9209_vm1 = vcmp.lt.s32.totalorder %v9208_v30, 0  ;;  %v12212_v63 = vadd.f32 %v12208_v54, %v11639_v47 }
 0x21a   : > { %v12214_v61 = vsel %vm9209_vm1, 0, %v9208_v30  ;;  %vm2111_vm7 = vc.u32 %v12187_v14, %v12179_v24  ;;  %v2374_v43 = vor.u32 8388608, %v2373_v46  ;;  %v2381_v32 = vsub.s32 32, %v2380_v58 }
 0x21b   : > { %16249 = vst [vmem:[#allocation70_spill] sm:$0xff] %v12212_v63  ;;  %v2214_v21 = vadd.s32 %v12099_v31, %v12096_v1  ;;  %v2234_v38 = vsub.s32 4294967266, %v12214_v61  ;;  %v2113_v16 = vsel %vm2111_vm7, %v2112_v7, %v12180_v56  ;;  %v12223_v62 = vor.u32 %v1920_v28, %v1919_v37 }
 0x21c   : > { %v2114_v47 = vadd.s32 %v2113_v16, %v2109_v15  ;;  %v2383_v5 = vshll.u32 %v16167_v12, %v2380_v58  ;;  %v2384_v4 = vshrl.u32 %v16161_v57, %v2381_v32  ;;  %v2379_v18 = vshrl.u32 %v2378_v9, 5 }
 0x21d   : > { %v2386_v49 = vshll.u32 %v16161_v57, %v2380_v58  ;;  %v2387_v1 = vshrl.u32 %v16163_v6, %v2381_v32  ;;  %v2389_v46 = vshll.u32 %v16163_v6, %v2380_v58  ;;  %v2390_v56 = vshrl.u32 %v16164_v3, %v2381_v32 }
 0x21e   : > { %v2115_v31 = vadd.s32 536870912, %v2114_v47  ;;  %v12232_v30 = vshll.u32 %v2374_v43, 8  ;;  %v2235_v28 = vadd.s32 127, %v2234_v38  ;;  %v2385_v15 = vor.u32 %v2384_v4, %v2383_v5 }
 0x21f   : > { %v2392_v7 = vshll.u32 %v16164_v3, %v2380_v58  ;;  %v2265_v37 = vand.u32 2139095040, %v12212_v63  ;;  %v2388_v9 = vor.u32 %v2387_v1, %v2386_v49  ;;  %v2393_v29 = vshrl.u32 %v16165_v33, %v2381_v32 }
 0x220   : > { %v12236_v16 = vshrl.u32 %v2115_v31, 30  ;;  %v2395_v8 = vshll.u32 %v16165_v33, %v2380_v58  ;;  %v2382_v27 = vshrl.u32 %v16167_v12, %v2381_v32  ;;  %v2391_v19 = vor.u32 %v2390_v56, %v2389_v46 }
 0x221   : > { %v2396_v48 = vshrl.u32 %v16166_v36, %v2381_v32  ;;  %vm2398_vm3 = vcmp.lt.s32.totalorder %v2379_v18, 1  ;;  %v2230_v43 = vsub.s32 32, %v12214_v61  ;;  %v2394_v5 = vor.u32 %v2393_v29, %v2392_v7 }
 0x222   : > { %16250 = vst [vmem:[#allocation71_spill] sm:$0xff] %v12236_v16  ;;  %v2117_v38 = vshll.u32 %v12236_v16, 30  ;;  %vm2400_vm14 = vcmp.lt.s32.totalorder %v2379_v18, 3  ;;  %v2236_v4 = vshll.u32 %v2235_v28, 23  ;;  %vm2399_vm1 = vcmp.lt.s32.totalorder %v2379_v18, 2 }
 0x223   : > { %v2397_v31 = vor.u32 %v2396_v48, %v2395_v8  ;;  %vm2401_vm7 = vcmp.lt.s32.totalorder %v2379_v18, 4  ;;  %vm15990_vm13 = vcmp.lt.s32.totalorder %v11767_v26, 0  ;;  %v2406_v1 = vsel %vm2398_vm3, %v2385_v15, %v2388_v9 }
 0x224   : > { %v12245_v49 = vsub.s32 %v2114_v47, %v2117_v38  ;;  %v2403_v58 = vsel %vm2401_vm7, %v2391_v19, 2102212464  ;;  %v2407_v46 = vsel %vm2401_vm7, %v2394_v5, 920167782  ;;  %v2402_v32 = vsel %vm2398_vm3, %v2382_v27, %v2385_v15 }
 0x225   : > { %v2404_v56 = vsel %vm2400_vm14, %v2388_v9, %v2403_v58  ;;  %v2408_v16 = vsel %vm2400_vm14, %v2391_v19, %v2407_v46  ;;  %v2410_v29 = vsel %vm2398_vm3, %v2388_v9, %v2391_v19  ;;  %v2411_v28 = vsel %vm2401_vm7, %v2397_v31, 1326507024  ;;  %v12271_v46 = vpop.f32.mrb[22].mxu0 }
 0x226   : > { %v2120_v48 = vsub.s32 0, %v12245_v49  ;;  %v2409_v8 = vsel %vm2399_vm1, %v2406_v1, %v2408_v16  ;;  %v16251_v47 = vand.u32 2147483647, %v12212_v63  ;;  %v16252_v38 = vand.u32 2147483647, %v11767_v26 }
 0x227   : > { %v16253_v41 = vmov 0  ;;  %v2232_v27 = vshrl.u32 %v2214_v21, %v2230_v43  ;;  %v2412_v15 = vsel %vm2400_vm14, %v2394_v5, %v2411_v28  ;;  %v2405_v9 = vsel %vm2399_vm1, %v2402_v32, %v2404_v56 }
 0x228   : > { %v2269_v7 = vand.u32 8388607, %v16251_v47  ;;  %vm12258_vm6 = vcmp.le.f32.partialorder %v16252_v38, 0.7853982  ;;  %v12264_v58 = vmul.u32.u64.low %v12232_v30, %v2409_v8  ;;  %v12265_v19 = vmul.u32.u64.high %v12232_v30, %v2409_v8, %v12264_v58 }
 0x229   : > { %v16254_v41 = vsel %vm12258_vm6, 4294967295, %v16253_v41  ;;  %v9203_v16 = vmin.u32 %v2120_v48, %v12245_v49  ;;  %v2413_v31 = vsel %vm2399_vm1, %v2410_v29, %v2412_v15  ;;  %v2266_v1 = vshrl.u32 %v2265_v37, 23 }
 0x22a   : > { %16255 = vst [vmem:[#allocation72_spill] sm:$0xff] %v16254_v41  ;;  %v2231_v47 = vshll.u32 %v12163_v44, %v12214_v61  ;;  %v2237_v21 = vor.u32 4788187, %v2236_v4  ;;  %v12276_v43 = vmul.u32.u64.low %v12232_v30, %v2413_v31  ;;  %v12277_v5 = vmul.u32.u64.high %v12232_v30, %v2413_v31, %v12276_v43 }
 0x22b   : > { %10680 = vcosq.f32 %v12195_v51  ;;  %v1928_v8 = vcvt.s32.f32 %v12223_v62  ;;  %v2122_v48 = vclz %v9203_v16  ;;  %v9210_v28 = vadd.s32 4294967169, %v2266_v1 }
 0x22c   : > { %10682 = vsinq.f32 %v12195_v51  ;;  %v2233_v18 = vor.u32 %v2232_v27, %v2231_v47  ;;  %v2421_v37 = vmul.u32 %v12232_v30, %v2405_v9  ;;  %v2424_v32 = vadd.s32 1, %v12265_v19 }
 0x22d   : > { %v16256_v44 = vand.u32 2147483647, %v12203_v35  ;;  %v9204_v4 = vadd.s32 4294967294, %v2122_v48  ;;  %v2272_v56 = vadd.s32 1, %v9210_v28  ;;  %v12290_v29 = vadd.f32 %v12208_v54, %v11741_v55 }
 0x22e   : > { %v16258_v62 = vxor.u32 2147483648, %v12172_v23  ;;  %v2238_v38 = vand.u32 2147483647, %v2237_v21  ;;  %vm2423_vm3 = vc.u32 %v12277_v5, %v12264_v58  ;;  %v2270_v30 = vor.u32 8388608, %v2269_v7 }
 0x22f   : > { %v12286_v61 = vmul.f32 %v1928_v8, %v16256_v44  ;;  %16257 = vst [vmem:[#allocation73_spill] sm:$0xff] %v12290_v29  ;;  %vm9205_vm14 = vcmp.lt.s32.totalorder %v9204_v4, 0  ;;  %v2425_v35 = vsel %vm2423_vm3, %v2424_v32, %v12265_v19  ;;  %vm2273_vm1 = vcmp.gt.s32.totalorder %v2272_v56, 0 }
 0x230   : > { %v2035_v51 = vsel %vm15990_vm13, %v16258_v62, %v12172_v23  ;;  %v15982_v27 = vand.u32 2147483647, %v12290_v29  ;;  %v2240_v15 = vcvt.s32.f32 %v2233_v18  ;;  %v12301_v55 = vsel %vm9205_vm14, 0, %v9204_v4 }
 0x231   : > { %v2426_v16 = vadd.s32 %v2425_v35, %v2421_v37  ;;  %v2274_v9 = vsel %vm2273_vm1, %v2272_v56, 0  ;;  %v12306_v23 = vsel %vm12258_vm6, %v11767_v26, %v2035_v51  ;;  %v2110_v7 = vadd.s32 %v12179_v24, %v12187_v14 }
 0x232   : > { %v2577_v19 = vand.u32 2139095040, %v12290_v29  ;;  %v12312_v1 = vmul.f32 %v2240_v15, %v2238_v38  ;;  %v2276_v21 = vand.u32 31, %v2274_v9  ;;  %v12314_v43 = vshll.u32 %v2270_v30, 8 }
 0x233   : > { %v2427_v47 = vadd.s32 536870912, %v2426_v16  ;;  %v2130_v8 = vsub.s32 4294967266, %v12301_v55  ;;  %v2275_v48 = vshrl.u32 %v2274_v9, 5  ;;  %v12319_v28 = vand.u32 8388607, %v15982_v27 }
 0x234   : > { %v12323_v18 = vadd.f32 %v12208_v54, %v11820_v20  ;;  %v2277_v14 = vsub.s32 32, %v2276_v21  ;;  %v2279_v37 = vshll.u32 %v16167_v12, %v2276_v21  ;;  %v2282_v32 = vshll.u32 %v16161_v57, %v2276_v21 }
 0x235   : > { %v12325_v24 = vshrl.u32 %v2427_v47, 30  ;;  %v12329_v44 = vpop.eup %10680  ;;  %v2126_v4 = vsub.s32 32, %v12301_v55  ;;  %v2285_v56 = vshll.u32 %v16163_v6, %v2276_v21  ;;  %v2288_v62 = vshll.u32 %v16164_v3, %v2276_v21 }
 0x236   : > { %16260 = vst [vmem:[#allocation75_spill] sm:$0xff] %v12329_v44  ;;  %v2578_v51 = vshrl.u32 %v2577_v19, 23  ;;  %v12334_v38 = vpop.eup %10682  ;;  %v2127_v20 = vshll.u32 %v12245_v49, %v12301_v55  ;;  %v2280_v35 = vshrl.u32 %v16161_v57, %v2277_v14  ;;  %v2283_v15 = vshrl.u32 %v16163_v6, %v2277_v14 }
 0x237   : > { %16259 = vst [vmem:[#allocation74_spill] sm:$0xff] %v12325_v24  ;;  %16261 = vst [vmem:[#allocation76_spill] sm:$0xff] %v12334_v38  ;;  %v2429_v30 = vshll.u32 %v12325_v24, 30  ;;  %v2131_v9 = vadd.s32 127, %v2130_v8  ;;  %v2286_v47 = vshrl.u32 %v16164_v3, %v2277_v14  ;;  %v2289_v27 = vshrl.u32 %v16165_v33, %v2277_v14 }
 0x238   : > { %vm2294_vm7 = vcmp.lt.s32.totalorder %v2275_v48, 1  ;;  %v2281_v19 = vor.u32 %v2280_v35, %v2279_v37  ;;  %v2284_v41 = vor.u32 %v2283_v15, %v2282_v32  ;;  %v2291_v26 = vshll.u32 %v16165_v33, %v2276_v21  ;;  %v12351_v32 = vpop.f32.mrb[23].mxu0 }
 0x239   : > { %v12343_v31 = vsub.s32 %v2426_v16, %v2429_v30  ;;  %v2278_v49 = vshrl.u32 %v16167_v12, %v2277_v14  ;;  %v2287_v55 = vor.u32 %v2286_v47, %v2285_v56  ;;  %v2290_v24 = vor.u32 %v2289_v27, %v2288_v62 }
 0x23a   : > { %v2292_v44 = vshrl.u32 %v16166_v36, %v2277_v14  ;;  %vm2295_vm3 = vcmp.lt.s32.totalorder %v2275_v48, 2  ;;  %vm2296_vm14 = vcmp.lt.s32.totalorder %v2275_v48, 3  ;;  %vm2297_vm1 = vcmp.lt.s32.totalorder %v2275_v48, 4 }
 0x23b   : > { %v2432_v38 = vsub.s32 0, %v12343_v31  ;;  %vm15997_vm13 = vcmp.lt.s32.totalorder %v11871_v52, 0  ;;  %v2132_v8 = vshll.u32 %v2131_v9, 23  ;;  %v2299_v30 = vsel %vm2297_vm1, %v2287_v55, 2102212464 }
 0x23c   : > { %v2293_v16 = vor.u32 %v2292_v44, %v2291_v26  ;;  %v2302_v37 = vsel %vm2294_vm7, %v2281_v19, %v2284_v41  ;;  %v2303_v56 = vsel %vm2297_vm1, %v2290_v24, 920167782  ;;  %v2306_v27 = vsel %vm2294_vm7, %v2284_v41, %v2287_v55 }
 0x23d   : > { %v9215_v21 = vmin.u32 %v2432_v38, %v12343_v31  ;;  %v9222_v14 = vadd.s32 4294967169, %v2578_v51  ;;  %v2298_v62 = vsel %vm2294_vm7, %v2278_v49, %v2281_v19  ;;  %v2300_v35 = vsel %vm2296_vm14, %v2284_v41, %v2299_v30 }
 0x23e   : > { %v2304_v15 = vsel %vm2296_vm14, %v2287_v55, %v2303_v56  ;;  %v2307_v47 = vsel %vm2297_vm1, %v2293_v16, 1326507024  ;;  %v2128_v9 = vshrl.u32 %v2110_v7, %v2126_v4  ;;  %v2133_v22 = vor.u32 4788187, %v2132_v8 }
 0x23f   : > { %v2434_v26 = vclz %v9215_v21  ;;  %v2305_v44 = vsel %vm2295_vm3, %v2302_v37, %v2304_v15  ;;  %v2308_v59 = vsel %vm2296_vm14, %v2290_v24, %v2307_v47  ;;  %v2301_v41 = vsel %vm2295_vm3, %v2298_v62, %v2300_v35 }
 0x240   : > { %v2309_v38 = vsel %vm2295_vm3, %v2306_v27, %v2308_v59  ;;  %v12362_v45 = vmul.u32.u64.low %v12314_v43, %v2305_v44  ;;  %v12363_v34 = vmul.u32.u64.high %v12314_v43, %v2305_v44, %v12362_v45  ;;  %10684 = vcosq.f32 %v12306_v23 }
 0x241   : > { %v9216_v51 = vadd.s32 4294967294, %v2434_v26  ;;  %v12368_v19 = vmul.u32.u64.low %v12314_v43, %v2309_v38  ;;  %v12369_v49 = vmul.u32.u64.high %v12314_v43, %v2309_v38, %v12368_v19  ;;  %vm15996_vm7 = vcmp.lt.s32.totalorder %v11940_v10, 0 }
 0x242   : > { %v2242_v7 = vxor.u32 2147483648, %v12312_v1  ;;  %v2584_v24 = vadd.s32 1, %v9222_v14  ;;  %10686 = vsinq.f32 %v12306_v23  ;;  %v2129_v59 = vor.u32 %v2128_v9, %v2127_v20 }
 0x243   : > { %vm9217_vm14 = vcmp.lt.s32.totalorder %v9216_v51, 0  ;;  %v2582_v4 = vor.u32 8388608, %v12319_v28  ;;  %v2317_v48 = vmul.u32 %v12314_v43, %v2301_v41  ;;  %v2320_v8 = vadd.s32 1, %v12363_v34 }
 0x244   : > { %v12376_v55 = vsel %vm9217_vm14, 0, %v9216_v51  ;;  %vm2585_vm3 = vcmp.gt.s32.totalorder %v2584_v24, 0  ;;  %v16262_v16 = vxor.u32 2147483648, %v12286_v61  ;;  %v2134_v37 = vand.u32 2147483647, %v2133_v22 }
 0x245   : > { %v2442_v23 = vsub.s32 4294967266, %v12376_v55  ;;  %v2473_v20 = vand.u32 2139095040, %v12323_v18  ;;  %v12392_v28 = vsel %vm15996_vm7, %v2242_v7, %v12312_v1  ;;  %v2422_v43 = vadd.s32 %v12264_v58, %v12277_v5 }
 0x246   : > { %v12385_v30 = vsel %vm15997_vm13, %v16262_v16, %v12286_v61  ;;  %vm2319_vm1 = vc.u32 %v12369_v49, %v12362_v45  ;;  %v2586_v21 = vsel %vm2585_vm3, %v2584_v24, 0  ;;  %v2136_v56 = vcvt.s32.f32 %v2129_v59 }
 0x247   : > { %v2438_v61 = vsub.s32 32, %v12376_v55  ;;  %v2443_v22 = vadd.s32 127, %v2442_v23  ;;  %v2321_v27 = vsel %vm2319_vm1, %v2320_v8, %v12363_v34  ;;  %v2587_v62 = vshrl.u32 %v2586_v21, 5 }
 0x248   : > { %v2322_v14 = vadd.s32 %v2321_v27, %v2317_v48  ;;  %v2588_v35 = vand.u32 31, %v2586_v21  ;;  %v12400_v15 = vshll.u32 %v2582_v4, 8  ;;  %v12402_v1 = vmul.f32 %v2136_v56, %v2134_v37 }
 0x249   : > { %v2439_v58 = vshll.u32 %v12343_v31, %v12376_v55  ;;  %v2474_v47 = vshrl.u32 %v2473_v20, 23  ;;  %v2440_v34 = vshrl.u32 %v2422_v43, %v2438_v61  ;;  %v2444_v51 = vshll.u32 %v2443_v22, 23 }
 0x24a   : > { %v2323_v9 = vadd.s32 536870912, %v2322_v14  ;;  %v2589_v26 = vsub.s32 32, %v2588_v35  ;;  %v2591_v44 = vshll.u32 %v16167_v12, %v2588_v35  ;;  %v2594_v38 = vshll.u32 %v16161_v57, %v2588_v35  ;;  %v12411_v7 = vpop.eup %10684 }
 0x24b   : > { %v2597_v41 = vshll.u32 %v16163_v6, %v2588_v35  ;;  %v2600_v19 = vshll.u32 %v16164_v3, %v2588_v35  ;;  %16263 = vst [vmem:[#allocation77_spill] sm:$0xff] %v12411_v7  ;;  %v2603_v16 = vshll.u32 %v16165_v33, %v2588_v35  ;;  %v16266_v37 = vand.u32 2147483647, %v11871_v52 }
 0x24c   : > { %v12413_v24 = vshrl.u32 %v2323_v9, 30  ;;  %v2592_v31 = vshrl.u32 %v16161_v57, %v2589_v26  ;;  %v2595_v59 = vshrl.u32 %v16163_v6, %v2589_v26  ;;  %v12417_v4 = vpop.eup %10686  ;;  %v2590_v55 = vshrl.u32 %v16167_v12, %v2589_v26 }
 0x24d   : > { %16265 = vst [vmem:[#allocation79_spill] sm:$0xff] %v12417_v4  ;;  %v2598_v48 = vshrl.u32 %v16164_v3, %v2589_v26  ;;  %v2601_v8 = vshrl.u32 %v16165_v33, %v2589_v26  ;;  %vm12425_vm3 = vcmp.le.f32.partialorder %v16266_v37, 0.7853982  ;;  %v16267_v23 = vmov 0 }
 0x24e   : > { %16264 = vst [vmem:[#allocation78_spill] sm:$0xff] %v12413_v24  ;;  %v16268_v23 = vsel %vm12425_vm3, 4294967295, %v16267_v23  ;;  %v16269_v20 = vand.u32 2147483647, %v11940_v10  ;;  %v16270_v43 = vmov 0  ;;  %v2325_v21 = vshll.u32 %v12413_v24, 30 }
 0x24f   : > { %v2593_v56 = vor.u32 %v2592_v31, %v2591_v44  ;;  %v2596_v61 = vor.u32 %v2595_v59, %v2594_v38  ;;  %v2604_v22 = vshrl.u32 %v16166_v36, %v2589_v26  ;;  %v2599_v27 = vor.u32 %v2598_v48, %v2597_v41 }
 0x250   : > { %vm12431_vm1 = vcmp.le.f32.partialorder %v16269_v20, 0.7853982  ;;  %v2602_v35 = vor.u32 %v2601_v8, %v2600_v19  ;;  %vm2607_vm13 = vcmp.lt.s32.totalorder %v2587_v62, 2  ;;  %vm2608_vm14 = vcmp.lt.s32.totalorder %v2587_v62, 3 }
 0x251   : > { %v16271_v43 = vsel %vm12431_vm1, 4294967295, %v16270_v43  ;;  %v2445_v9 = vor.u32 4788187, %v2444_v51  ;;  %v12438_v37 = vsub.s32 %v2322_v14, %v2325_v21  ;;  %v2605_v5 = vor.u32 %v2604_v22, %v2603_v16 }
 0x252   : > { %16272 = vst [vmem:[#allocation80_spill] sm:$0xff] %v16271_v43  ;;  %vm2609_vm6 = vcmp.lt.s32.totalorder %v2587_v62, 4  ;;  %vm16273_vm9 = vcmp.lt.s32.totalorder %v2587_v62, 1  ;;  %v9218_v31 = vadd.s32 4294967169, %v2474_v47  ;;  %v16276_v59 = vand.u32 2147483647, %v12323_v18 }
 0x253   : > { %v2610_v20 = vsel %vm16273_vm9, %v2590_v55, %v2593_v56  ;;  %v2611_v7 = vsel %vm2609_vm6, %v2599_v27, 2102212464  ;;  %vm16274_vm5 = vmmov %vm16273_vm9  ;;  %v2615_v44 = vsel %vm2609_vm6, %v2602_v35, 920167782  ;;  %v2328_v38 = vsub.s32 0, %v12438_v37 }
 0x254   : > { %v2614_v24 = vsel %vm16274_vm5, %v2593_v56, %v2596_v61  ;;  %v2612_v26 = vsel %vm2608_vm14, %v2596_v61, %v2611_v7  ;;  %v2616_v41 = vsel %vm2608_vm14, %v2599_v27, %v2615_v44  ;;  %vm16275_vm7 = vmmov %vm16274_vm5  ;;  %v2619_v14 = vsel %vm2609_vm6, %v2605_v5, 1326507024 }
 0x255   : > { %v2618_v19 = vsel %vm16275_vm7, %v2596_v61, %v2599_v27  ;;  %v2617_v51 = vsel %vm2607_vm13, %v2614_v24, %v2616_v41  ;;  %v2477_v48 = vand.u32 8388607, %v16276_v59  ;;  %v2138_v55 = vxor.u32 2147483648, %v12402_v1 }
 0x256   : > { %v2441_v8 = vor.u32 %v2440_v34, %v2439_v58  ;;  %v9211_v16 = vmin.u32 %v2328_v38, %v12438_v37  ;;  %v2620_v21 = vsel %vm2608_vm14, %v2602_v35, %v2619_v14  ;;  %v2613_v7 = vsel %vm2607_vm13, %v2610_v20, %v2612_v26  ;;  %v12463_v58 = vpop.f32.mrb[24].mxu0 }
 0x257   : > { %v2621_v56 = vsel %vm2607_vm13, %v2618_v19, %v2620_v21  ;;  %v12455_v61 = vmul.u32.u64.low %v12400_v15, %v2617_v51  ;;  %v12456_v22 = vmul.u32.u64.high %v12400_v15, %v2617_v51, %v12455_v61  ;;  %v2446_v5 = vand.u32 2147483647, %v2445_v9 }
 0x258   : > { %v2330_v47 = vclz %v9211_v16  ;;  %v12460_v24 = vmul.u32.u64.low %v12400_v15, %v2621_v56  ;;  %v12461_v27 = vmul.u32.u64.high %v12400_v15, %v2621_v56, %v12460_v24  ;;  %v12469_v34 = vsel %vm12425_vm3, %v11871_v52, %v12385_v30 }
 0x259   : > { %v12475_v62 = vsel %vm12431_vm1, %v11940_v10, %v12392_v28  ;;  %v2478_v35 = vor.u32 8388608, %v2477_v48  ;;  %v2480_v9 = vadd.s32 1, %v9218_v31  ;;  %vm16277_vm13 = vcmp.lt.s32.totalorder %v12043_v40, 0 }
 0x25a   : > { %v12480_v20 = vsel %vm16277_vm13, %v2138_v55, %v12402_v1  ;;  %v2448_v44 = vcvt.s32.f32 %v2441_v8  ;;  %v9212_v38 = vadd.s32 4294967294, %v2330_v47  ;;  %v2629_v26 = vmul.u32 %v12400_v15, %v2613_v7 }
 0x25b   : > { %v2318_v30 = vadd.s32 %v12362_v45, %v12369_v49  ;;  %v2632_v41 = vadd.s32 1, %v12456_v22  ;;  %vm2481_vm6 = vcmp.gt.s32.totalorder %v2480_v9, 0  ;;  %v12488_v28 = vadd.f32 %v12208_v54, %v11923_v60 }
 0x25c   : > { %v12490_v19 = vmul.f32 %v2448_v44, %v2446_v5  ;;  %vm9213_vm9 = vcmp.lt.s32.totalorder %v9212_v38, 0  ;;  %vm2631_vm5 = vc.u32 %v12461_v27, %v12455_v61  ;;  %v2482_v1 = vsel %vm2481_vm6, %v2480_v9, 0 }
 0x25d   : > { %16278 = vst [vmem:[#allocation81_spill] sm:$0xff] %v12488_v28  ;;  %v2333_v51 = vsel %vm9213_vm9, 0, %v9212_v38  ;;  %v2633_v15 = vsel %vm2631_vm5, %v2632_v41, %v12456_v22  ;;  %v2484_v14 = vand.u32 31, %v2482_v1  ;;  %v12495_v31 = vshll.u32 %v2478_v35, 8 }
 0x25e   : > { %v2334_v45 = vsub.s32 32, %v2333_v51  ;;  %v2338_v49 = vsub.s32 4294967266, %v2333_v51  ;;  %v2634_v59 = vadd.s32 %v2633_v15, %v2629_v26  ;;  %v2483_v48 = vshrl.u32 %v2482_v1, 5 }
 0x25f   : > { %v2485_v55 = vsub.s32 32, %v2484_v14  ;;  %v2487_v60 = vshll.u32 %v16167_v12, %v2484_v14  ;;  %v2490_v8 = vshll.u32 %v16161_v57, %v2484_v14  ;;  %v2493_v16 = vshll.u32 %v16163_v6, %v2484_v14 }
 0x260   : > { %v2336_v21 = vshrl.u32 %v2318_v30, %v2334_v45  ;;  %v2339_v7 = vadd.s32 127, %v2338_v49  ;;  %v2635_v56 = vadd.s32 536870912, %v2634_v59  ;;  %v2496_v5 = vshll.u32 %v16164_v3, %v2484_v14 }
 0x261   : > { %v2335_v22 = vshll.u32 %v12438_v37, %v2333_v51  ;;  %v2488_v47 = vshrl.u32 %v16161_v57, %v2485_v55  ;;  %v2491_v24 = vshrl.u32 %v16163_v6, %v2485_v55  ;;  %v2494_v35 = vshrl.u32 %v16164_v3, %v2485_v55 }
 0x262   : > { %v2340_v9 = vshll.u32 %v2339_v7, 23  ;;  %v12505_v44 = vshrl.u32 %v2635_v56, 30  ;;  %v2486_v38 = vshrl.u32 %v16167_v12, %v2485_v55  ;;  %v2497_v26 = vshrl.u32 %v16165_v33, %v2485_v55 }
 0x263   : > { %v2489_v30 = vor.u32 %v2488_v47, %v2487_v60  ;;  %v2492_v41 = vor.u32 %v2491_v24, %v2490_v8  ;;  %v2499_v1 = vshll.u32 %v16165_v33, %v2484_v14  ;;  %v2785_v15 = vand.u32 2139095040, %v12488_v28 }
 0x264   : > { %16279 = vst [vmem:[#allocation82_spill] sm:$0xff] %v12505_v44  ;;  %v2337_v37 = vor.u32 %v2336_v21, %v2335_v22  ;;  %v2637_v51 = vshll.u32 %v12505_v44, 30  ;;  %v2495_v45 = vor.u32 %v2494_v35, %v2493_v16  ;;  %v2498_v49 = vor.u32 %v2497_v26, %v2496_v5  ;;  %v12527_v35 = vpop.f32.mrb[25].mxu0 }
 0x265   : > { %v2341_v43 = vor.u32 4788187, %v2340_v9  ;;  %v2500_v7 = vshrl.u32 %v16166_v36, %v2485_v55  ;;  %vm2502_vm7 = vcmp.lt.s32.totalorder %v2483_v48, 1  ;;  %vm2504_vm14 = vcmp.lt.s32.totalorder %v2483_v48, 3 }
 0x266   : > { %v16280_v56 = vand.u32 2147483647, %v12043_v40  ;;  %v16281_v10 = vmov 0  ;;  %v12519_v60 = vsub.s32 %v2634_v59, %v2637_v51  ;;  %vm2503_vm6 = vcmp.lt.s32.totalorder %v2483_v48, 2 }
 0x267   : > { %vm2505_vm9 = vcmp.lt.s32.totalorder %v2483_v48, 4  ;;  %v2506_v14 = vsel %vm2502_vm7, %v2486_v38, %v2489_v30  ;;  %v2501_v8 = vor.u32 %v2500_v7, %v2499_v1  ;;  %v2510_v21 = vsel %vm2502_vm7, %v2489_v30, %v2492_v41 }
 0x268   : > { %vm12515_vm13 = vcmp.le.f32.partialorder %v16280_v56, 0.7853982  ;;  %v2507_v16 = vsel %vm2505_vm9, %v2495_v45, 2102212464  ;;  %v2511_v5 = vsel %vm2505_vm9, %v2498_v49, 920167782  ;;  %v2514_v38 = vsel %vm2502_vm7, %v2492_v41, %v2495_v45 }
 0x269   : > { %v16282_v10 = vsel %vm12515_vm13, 4294967295, %v16281_v10  ;;  %v2450_v55 = vxor.u32 2147483648, %v12490_v19  ;;  %v2640_v22 = vsub.s32 0, %v12519_v60  ;;  %v2508_v47 = vsel %vm2504_vm14, %v2492_v41, %v2507_v16 }
 0x26a   : > { %16283 = vst [vmem:[#allocation83_spill] sm:$0xff] %v16282_v10  ;;  %v2512_v24 = vsel %vm2504_vm14, %v2495_v45, %v2511_v5  ;;  %v2342_v59 = vand.u32 2147483647, %v2341_v43  ;;  %v2515_v26 = vsel %vm2505_vm9, %v2501_v8, 1326507024  ;;  %v2344_v1 = vcvt.s32.f32 %v2337_v37 }
 0x26b   : > { %v2513_v9 = vsel %vm2503_vm6, %v2510_v21, %v2512_v24  ;;  %v9223_v30 = vmin.u32 %v2640_v22, %v12519_v60  ;;  %v2509_v51 = vsel %vm2503_vm6, %v2506_v14, %v2508_v47  ;;  %v2516_v7 = vsel %vm2504_vm14, %v2498_v49, %v2515_v26 }
 0x26c   : > { %v2517_v56 = vsel %vm2503_vm6, %v2514_v38, %v2516_v7  ;;  %v12536_v16 = vmul.u32.u64.low %v12495_v31, %v2513_v9  ;;  %v12537_v5 = vmul.u32.u64.high %v12495_v31, %v2513_v9, %v12536_v16  ;;  %v2786_v43 = vshrl.u32 %v2785_v15, 23 }
 0x26d   : > { %v2642_v44 = vclz %v9223_v30  ;;  %v12541_v21 = vmul.u32.u64.low %v12495_v31, %v2517_v56  ;;  %v12542_v41 = vmul.u32.u64.high %v12495_v31, %v2517_v56, %v12541_v21  ;;  %v12546_v37 = vadd.f32 %v12208_v54, %v12014_v39 }
 0x26e   : > { %10688 = vcosq.f32 %v12469_v34  ;;  %vm16021_vm5 = vcmp.lt.s32.totalorder %v12047_v0, 0  ;;  %v2345_v48 = vmul.f32 %v2344_v1, %v2342_v59  ;;  %v9230_v45 = vadd.s32 4294967169, %v2786_v43 }
 0x26f   : > { %16284 = vst [vmem:[#allocation84_spill] sm:$0xff] %v12546_v37  ;;  %10690 = vsinq.f32 %v12469_v34  ;;  %v9224_v49 = vadd.s32 4294967294, %v2642_v44  ;;  %v2525_v15 = vmul.u32 %v12495_v31, %v2509_v51  ;;  %v16009_v14 = vand.u32 2147483647, %v12488_v28 }
 0x270   : > { %10692 = vcosq.f32 %v12475_v62  ;;  %v12558_v39 = vsel %vm12515_vm13, %v12043_v40, %v12480_v20  ;;  %v2528_v8 = vadd.s32 1, %v12537_v5  ;;  %v2792_v22 = vadd.s32 1, %v9230_v45 }
 0x271   : > { %v2451_v34 = vsel %vm16021_vm5, %v2450_v55, %v12490_v19  ;;  %vm9225_vm7 = vcmp.lt.s32.totalorder %v9224_v49, 0  ;;  %vm2527_vm14 = vc.u32 %v12542_v41, %v12536_v16  ;;  %v2681_v31 = vand.u32 2139095040, %v12546_v37 }
 0x272   : > { %v2346_v44 = vxor.u32 2147483648, %v2345_v48  ;;  %v12567_v47 = vsel %vm9225_vm7, 0, %v9224_v49  ;;  %v2529_v24 = vsel %vm2527_vm14, %v2528_v8, %v12537_v5  ;;  %vm2793_vm6 = vcmp.gt.s32.totalorder %v2792_v22, 0 }
 0x273   : > { %10694 = vsinq.f32 %v12475_v62  ;;  %v2530_v20 = vadd.s32 %v2529_v24, %v2525_v15  ;;  %v2789_v59 = vand.u32 8388607, %v16009_v14  ;;  %v16285_v19 = vand.u32 2147483647, %v12047_v0 }
 0x274   : > { %10696 = vcosq.f32 %v12558_v39  ;;  %v16286_v55 = vmov 0  ;;  %vm16022_vm7 = vcmp.lt.s32.totalorder %v12212_v63, 0  ;;  %v2794_v9 = vsel %vm2793_vm6, %v2792_v22, 0 }
 0x275   : > { %vm12576_vm9 = vcmp.le.f32.partialorder %v16285_v19, 0.7853982  ;;  %v2650_v62 = vsub.s32 4294967266, %v12567_v47  ;;  %v2531_v26 = vadd.s32 536870912, %v2530_v20  ;;  %v2682_v1 = vshrl.u32 %v2681_v31, 23 }
 0x276   : > { %v16287_v55 = vsel %vm12576_vm9, 4294967295, %v16286_v55  ;;  %v12584_v38 = vsel %vm12576_vm9, %v12047_v0, %v2451_v34  ;;  %v12589_v30 = vsel %vm16022_vm7, %v2346_v44, %v2345_v48  ;;  %v2630_v51 = vadd.s32 %v12455_v61, %v12461_v27 }
 0x277   : > { %16288 = vst [vmem:[#allocation85_spill] sm:$0xff] %v16287_v55  ;;  %v2796_v7 = vand.u32 31, %v2794_v9  ;;  %v12595_v56 = vadd.f32 %v12208_v54, %v12086_v42  ;;  %v12597_v5 = vshrl.u32 %v2531_v26, 30  ;;  %v2790_v43 = vor.u32 8388608, %v2789_v59 }
 0x278   : > { %v2795_v21 = vshrl.u32 %v2794_v9, 5  ;;  %v12600_v49 = vpop.eup %10688  ;;  %v2651_v22 = vadd.s32 127, %v2650_v62  ;;  %v9226_v31 = vadd.s32 4294967169, %v2682_v1  ;;  %v2646_v24 = vsub.s32 32, %v12567_v47 }
 0x279   : > { %16289 = vst [vmem:[#allocation86_spill] sm:$0xff] %v12595_v56  ;;  %16290 = vst [vmem:[#allocation87_spill] sm:$0xff] %v12597_v5  ;;  %v2797_v15 = vsub.s32 32, %v2796_v7  ;;  %v2799_v48 = vshll.u32 %v16167_v12, %v2796_v7  ;;  %v2802_v8 = vshll.u32 %v16161_v57, %v2796_v7  ;;  %v2805_v61 = vshll.u32 %v16163_v6, %v2796_v7  ;;  %v12605_v27 = vpop.eup %10690 }
 0x27a   : > { %16291 = vst [vmem:[#allocation88_spill] sm:$0xff] %v12600_v49  ;;  %16292 = vst [vmem:[#allocation89_spill] sm:$0xff] %v12605_v27  ;;  %v2533_v42 = vshll.u32 %v12597_v5, 30  ;;  %v2808_v34 = vshll.u32 %v16164_v3, %v2796_v7  ;;  %v12609_v44 = vpop.eup %10692  ;;  %v2811_v62 = vshll.u32 %v16165_v33, %v2796_v7  ;;  %vm2814_vm14 = vcmp.lt.s32.totalorder %v2795_v21, 1 }
 0x27b   : > { %16293 = vst [vmem:[#allocation90_spill] sm:$0xff] %v12609_v44  ;;  %v2800_v59 = vshrl.u32 %v16161_v57, %v2797_v15  ;;  %v2803_v19 = vshrl.u32 %v16163_v6, %v2797_v15  ;;  %v2806_v9 = vshrl.u32 %v16164_v3, %v2797_v15  ;;  %v2809_v14 = vshrl.u32 %v16165_v33, %v2797_v15 }
 0x27c   : > { %v12615_v26 = vsub.s32 %v2530_v20, %v2533_v42  ;;  %v2812_v0 = vshrl.u32 %v16166_v36, %v2797_v15  ;;  %v2652_v44 = vshll.u32 %v2651_v22, 23  ;;  %v2688_v40 = vadd.s32 1, %v9226_v31 }
 0x27d   : > { %v2801_v45 = vor.u32 %v2800_v59, %v2799_v48  ;;  %v2804_v55 = vor.u32 %v2803_v19, %v2802_v8  ;;  %v2807_v1 = vor.u32 %v2806_v9, %v2805_v61  ;;  %v12620_v5 = vpop.eup %10694  ;;  %v2810_v4 = vor.u32 %v2809_v14, %v2808_v34 }
 0x27e   : > { %16294 = vst [vmem:[#allocation91_spill] sm:$0xff] %v12620_v5  ;;  %v2536_v10 = vsub.s32 0, %v12615_v26  ;;  %v12623_v49 = vpop.eup %10696  ;;  %v2798_v20 = vshrl.u32 %v16167_v12, %v2797_v15  ;;  %v2813_v42 = vor.u32 %v2812_v0, %v2811_v62  ;;  %vm2816_vm6 = vcmp.lt.s32.totalorder %v2795_v21, 3 }
 0x27f   : > { %16295 = vst [vmem:[#allocation92_spill] sm:$0xff] %v12623_v49  ;;  %vm2817_vm5 = vcmp.lt.s32.totalorder %v2795_v21, 4  ;;  %vm2815_vm7 = vcmp.lt.s32.totalorder %v2795_v21, 2  ;;  %v2822_v8 = vsel %vm2814_vm14, %v2801_v45, %v2804_v55  ;;  %v2826_v22 = vsel %vm2814_vm14, %v2804_v55, %v2807_v1 }
 0x280   : > { %v9219_v7 = vmin.u32 %v2536_v10, %v12615_v26  ;;  %v2819_v48 = vsel %vm2817_vm5, %v2807_v1, 2102212464  ;;  %v2823_v61 = vsel %vm2817_vm5, %v2810_v4, 920167782  ;;  %v2827_v59 = vsel %vm2817_vm5, %v2813_v42, 1326507024 }
 0x281   : > { %v2830_v19 = vshll.u32 %v2790_v43, 8  ;;  %v2648_v14 = vshrl.u32 %v2630_v51, %v2646_v24  ;;  %v2824_v31 = vsel %vm2816_vm6, %v2807_v1, %v2823_v61  ;;  %v16296_v15 = vand.u32 2147483647, %v12546_v37 }
 0x282   : > { %v2538_v34 = vclz %v9219_v7  ;;  %v2818_v9 = vsel %vm2814_vm14, %v2798_v20, %v2801_v45  ;;  %v2820_v10 = vsel %vm2816_vm6, %v2804_v55, %v2819_v48  ;;  %v2825_v62 = vsel %vm2815_vm7, %v2822_v8, %v2824_v31 }
 0x283   : > { %v2685_v0 = vand.u32 8388607, %v16296_v15  ;;  %v2828_v5 = vsel %vm2816_vm6, %v2810_v4, %v2827_v59  ;;  %v12636_v49 = vor.u32 4788187, %v2652_v44  ;;  %vm2689_vm5 = vcmp.gt.s32.totalorder %v2688_v40, 0 }
 0x284   : > { %v9220_v27 = vadd.s32 4294967294, %v2538_v34  ;;  %v2829_v43 = vsel %vm2815_vm7, %v2826_v22, %v2828_v5  ;;  %v2647_v51 = vshll.u32 %v12519_v60, %v12567_v47  ;;  %v2690_v42 = vsel %vm2689_vm5, %v2688_v40, 0  ;;  %v12653_v40 = vpop.f32.mrb[26].mxu0 }
 0x285   : > { %v12641_v24 = vmul.u32.u64.low %v2830_v19, %v2829_v43  ;;  %v12642_v1 = vmul.u32.u64.high %v2830_v19, %v2829_v43, %v12641_v24  ;;  %v2821_v55 = vsel %vm2815_vm7, %v2818_v9, %v2820_v10  ;;  %v2526_v4 = vadd.s32 %v12536_v16, %v12542_v41 }
 0x286   : > { %vm9221_vm14 = vcmp.lt.s32.totalorder %v9220_v27, 0  ;;  %v12645_v45 = vmul.u32.u64.low %v2830_v19, %v2825_v62  ;;  %v12646_v20 = vmul.u32.u64.high %v2830_v19, %v2825_v62, %v12645_v45  ;;  %v2686_v5 = vor.u32 8388608, %v2685_v0 }
 0x287   : > { %v2541_v44 = vsel %vm9221_vm14, 0, %v9220_v27  ;;  %v2692_v7 = vand.u32 31, %v2690_v42  ;;  %v2649_v48 = vor.u32 %v2648_v14, %v2647_v51  ;;  %v2654_v60 = vand.u32 2147483647, %v12636_v49 }
 0x288   : > { %v2546_v47 = vsub.s32 4294967266, %v2541_v44  ;;  %v2837_v21 = vmul.u32 %v2830_v19, %v2821_v55  ;;  %vm2839_vm7 = vc.u32 %v12642_v1, %v12645_v45  ;;  %v2691_v61 = vshrl.u32 %v2690_v42, 5 }
 0x289   : > { %v2693_v22 = vsub.s32 32, %v2692_v7  ;;  %v2840_v16 = vadd.s32 1, %v12646_v20  ;;  %v2695_v41 = vshll.u32 %v16167_v12, %v2692_v7  ;;  %v2698_v27 = vshll.u32 %v16161_v57, %v2692_v7 }
 0x28a   : > { %v2547_v59 = vadd.s32 127, %v2546_v47  ;;  %v2701_v34 = vshll.u32 %v16163_v6, %v2692_v7  ;;  %v12663_v31 = vshll.u32 %v2686_v5, 8  ;;  %v2542_v19 = vsub.s32 32, %v2541_v44 }
 0x28b   : > { %v2696_v49 = vshrl.u32 %v16161_v57, %v2693_v22  ;;  %v2699_v14 = vshrl.u32 %v16163_v6, %v2693_v22  ;;  %v2543_v15 = vshll.u32 %v12615_v26, %v2541_v44  ;;  %v2841_v0 = vsel %vm2839_vm7, %v2840_v16, %v12646_v20 }
 0x28c   : > { %v2702_v9 = vshrl.u32 %v16164_v3, %v2693_v22  ;;  %v2842_v10 = vadd.s32 %v2841_v0, %v2837_v21  ;;  %v2694_v62 = vshrl.u32 %v16167_v12, %v2693_v22  ;;  %v2704_v43 = vshll.u32 %v16164_v3, %v2692_v7 }
 0x28d   : > { %v2548_v51 = vshll.u32 %v2547_v59, 23  ;;  %v2697_v24 = vor.u32 %v2696_v49, %v2695_v41  ;;  %v2700_v42 = vor.u32 %v2699_v14, %v2698_v27  ;;  %v2705_v55 = vshrl.u32 %v16165_v33, %v2693_v22 }
 0x28e   : > { %v2843_v5 = vadd.s32 536870912, %v2842_v10  ;;  %v2703_v47 = vor.u32 %v2702_v9, %v2701_v34  ;;  %v2707_v8 = vshll.u32 %v16165_v33, %v2692_v7  ;;  %v2708_v26 = vshrl.u32 %v16166_v36, %v2693_v22 }
 0x28f   : > { %v2544_v20 = vshrl.u32 %v2526_v4, %v2542_v19  ;;  %v2706_v44 = vor.u32 %v2705_v55, %v2704_v43  ;;  %vm2712_vm5 = vcmp.lt.s32.totalorder %v2691_v61, 3  ;;  %vm2713_vm14 = vcmp.lt.s32.totalorder %v2691_v61, 4  ;;  %v12691_v55 = vpop.f32.mrb[27].mxu0 }
 0x290   : > { %v16297_v21 = vand.u32 2147483647, %v12212_v63  ;;  %v16298_v16 = vmov 0  ;;  %v12679_v59 = vshrl.u32 %v2843_v5, 30  ;;  %v2709_v41 = vor.u32 %v2708_v26, %v2707_v8 }
 0x291   : > { %vm2711_vm6 = vcmp.lt.s32.totalorder %v2691_v61, 2  ;;  %v2715_v27 = vsel %vm2713_vm14, %v2703_v47, 2102212464  ;;  %v2549_v49 = vor.u32 4788187, %v2548_v51  ;;  %vm16302_vm9 = vcmp.lt.s32.totalorder %v2691_v61, 1 }
 0x292   : > { %vm12675_vm7 = vcmp.le.f32.partialorder %v16297_v21, 0.7853982  ;;  %16301 = vst [vmem:[#allocation94_spill] sm:$0xff] %v12679_v59  ;;  %v2714_v7 = vsel %vm16302_vm9, %v2694_v62, %v2697_v24  ;;  %vm16303_vm1 = vmmov %vm16302_vm9  ;;  %v2719_v22 = vsel %vm2713_vm14, %v2706_v44, 920167782  ;;  %v2845_v14 = vshll.u32 %v12679_v59, 30 }
 0x293   : > { %v16299_v16 = vsel %vm12675_vm7, 4294967295, %v16298_v16  ;;  %v2718_v4 = vsel %vm16303_vm1, %v2697_v24, %v2700_v42  ;;  %v2716_v34 = vsel %vm2712_vm5, %v2700_v42, %v2715_v27  ;;  %v2720_v19 = vsel %vm2712_vm5, %v2703_v47, %v2719_v22  ;;  %vm16304_vm13 = vmmov %vm16303_vm1 }
 0x294   : > { %16300 = vst [vmem:[#allocation93_spill] sm:$0xff] %v16299_v16  ;;  %v2722_v0 = vsel %vm16304_vm13, %v2700_v42, %v2703_v47  ;;  %v2656_v9 = vcvt.s32.f32 %v2649_v48  ;;  %v2545_v8 = vor.u32 %v2544_v20, %v2543_v15  ;;  %v2721_v43 = vsel %vm2711_vm6, %v2718_v4, %v2720_v19 }
 0x295   : > { %v2723_v51 = vsel %vm2713_vm14, %v2709_v41, 1326507024  ;;  %vm16038_vm1 = vcmp.lt.s32.totalorder %v12290_v29, 0  ;;  %v12694_v62 = vsub.s32 %v2842_v10, %v2845_v14  ;;  %v2717_v48 = vsel %vm2711_vm6, %v2714_v7, %v2716_v34 }
 0x296   : > { %v2724_v24 = vsel %vm2712_vm5, %v2706_v44, %v2723_v51  ;;  %v12698_v5 = vmul.u32.u64.low %v12663_v31, %v2721_v43  ;;  %v12699_v26 = vmul.u32.u64.high %v12663_v31, %v2721_v43, %v12698_v5  ;;  %v2657_v42 = vmul.f32 %v2656_v9, %v2654_v60 }
 0x297   : > { %v2725_v15 = vsel %vm2711_vm6, %v2722_v0, %v2724_v24  ;;  %v2993_v47 = vand.u32 2139095040, %v12595_v56  ;;  %v2550_v20 = vand.u32 2147483647, %v2549_v49  ;;  %v2848_v21 = vsub.s32 0, %v12694_v62 }
 0x298   : > { %v12707_v10 = vmul.u32.u64.low %v12663_v31, %v2725_v15  ;;  %v12708_v41 = vmul.u32.u64.high %v12663_v31, %v2725_v15, %v12707_v10  ;;  %10698 = vsinq.f32 %v12558_v39  ;;  %v16305_v27 = vand.u32 2147483647, %v12595_v56 }
 0x299   : > { %v2994_v44 = vshrl.u32 %v2993_v47, 23  ;;  %v12715_v60 = vadd.f32 %v12208_v54, %v12170_v25  ;;  %v2552_v61 = vcvt.s32.f32 %v2545_v8  ;;  %v9231_v7 = vmin.u32 %v2848_v21, %v12694_v62  ;;  %v12744_v21 = vld [vmem:[%s15863_s3 + $0x8] ss:$0 sm:$0xff] }
 0x29a   : > { %v2997_v4 = vand.u32 8388607, %v16305_v27  ;;  %v2733_v49 = vmul.u32 %v12663_v31, %v2717_v48  ;;  %v2736_v22 = vadd.s32 1, %v12699_v26  ;;  %10700 = vcosq.f32 %v12584_v38 }
 0x29b   : > { %16306 = vst [vmem:[#allocation95_spill] sm:$0xff] %v12715_v60  ;;  %v2350_v39 = vsel %vm12675_vm7, %v12212_v63, %v12589_v30  ;;  %v2658_v14 = vxor.u32 2147483648, %v2657_v42  ;;  %v9238_v34 = vadd.s32 4294967169, %v2994_v44  ;;  %v12725_v19 = vmul.f32 %v2552_v61, %v2550_v20 }
 0x29c   : > { %v2850_v25 = vclz %v9231_v7  ;;  %vm2735_vm13 = vc.u32 %v12708_v41, %v12698_v5  ;;  %v2889_v54 = vand.u32 2139095040, %v12715_v60  ;;  %10702 = vsinq.f32 %v12584_v38 }
 0x29d   : > { %v2737_v31 = vsel %vm2735_vm13, %v2736_v22, %v12699_v26  ;;  %v2998_v0 = vor.u32 8388608, %v2997_v4  ;;  %v3000_v9 = vadd.s32 1, %v9238_v34  ;;  %10704 = vcosq.f32 %v2350_v39 }
 0x29e   : > { %v9232_v8 = vadd.s32 4294967294, %v2850_v25  ;;  %v2738_v43 = vadd.s32 %v2737_v31, %v2733_v49  ;;  %v2890_v30 = vshrl.u32 %v2889_v54, 23  ;;  %10706 = vsinq.f32 %v2350_v39 }
 0x29f   : > { %v12734_v51 = vsel %vm16038_vm1, %v2658_v14, %v2657_v42  ;;  %v2838_v24 = vadd.s32 %v12645_v45, %v12642_v1  ;;  %vm3001_vm9 = vcmp.gt.s32.totalorder %v3000_v9, 0  ;;  %v12739_v20 = vshll.u32 %v2998_v0, 8 }
 0x2a0   : > { %vm9233_vm6 = vcmp.lt.s32.totalorder %v9232_v8, 0  ;;  %v2739_v38 = vadd.s32 536870912, %v2738_v43  ;;  %v3002_v26 = vsel %vm3001_vm9, %v3000_v9, 0  ;;  %v12748_v42 = vadd.f32 %v12744_v21, %v12271_v46 }
 0x2a1   : > { %v2853_v15 = vsel %vm9233_vm6, 0, %v9232_v8  ;;  %v3004_v47 = vand.u32 31, %v3002_v26  ;;  %v9234_v44 = vadd.s32 4294967169, %v2890_v30  ;;  %v3003_v25 = vshrl.u32 %v3002_v26, 5 }
 0x2a2   : > { %16307 = vst [vmem:[#allocation96_spill] sm:$0xff] %v12748_v42  ;;  %v2858_v1 = vsub.s32 4294967266, %v2853_v15  ;;  %v12750_v45 = vshrl.u32 %v2739_v38, 30  ;;  %v12753_v27 = vpop.eup %10698  ;;  %v2854_v4 = vsub.s32 32, %v2853_v15  ;;  %v2855_v48 = vshll.u32 %v12694_v62, %v2853_v15 }
 0x2a3   : > { %16309 = vst [vmem:[#allocation98_spill] sm:$0xff] %v12753_v27  ;;  %v3005_v61 = vsub.s32 32, %v3004_v47  ;;  %v3007_v7 = vshll.u32 %v16167_v12, %v3004_v47  ;;  %v3010_v49 = vshll.u32 %v16161_v57, %v3004_v47  ;;  %v3013_v46 = vshll.u32 %v16163_v6, %v3004_v47 }
 0x2a4   : > { %16308 = vst [vmem:[#allocation97_spill] sm:$0xff] %v12750_v45  ;;  %v2859_v22 = vadd.s32 127, %v2858_v1  ;;  %v2741_v39 = vshll.u32 %v12750_v45, 30  ;;  %v3016_v14 = vshll.u32 %v16164_v3, %v3004_v47  ;;  %v12760_v34 = vpop.eup %10700  ;;  %v3019_v26 = vshll.u32 %v16165_v33, %v3004_v47 }
 0x2a5   : > { %16310 = vst [vmem:[#allocation99_spill] sm:$0xff] %v12760_v34  ;;  %v3008_v54 = vshrl.u32 %v16161_v57, %v3005_v61  ;;  %v3011_v31 = vshrl.u32 %v16163_v6, %v3005_v61  ;;  %v3014_v0 = vshrl.u32 %v16164_v3, %v3005_v61  ;;  %v3006_v30 = vshrl.u32 %v16167_v12, %v3005_v61 }
 0x2a6   : > { %v2860_v9 = vshll.u32 %v2859_v22, 23  ;;  %v12765_v8 = vsub.s32 %v2738_v43, %v2741_v39  ;;  %v3017_v38 = vshrl.u32 %v16165_v33, %v3005_v61  ;;  %v12769_v1 = vpop.eup %10702  ;;  %v16313_v34 = vand.u32 2147483647, %v12290_v29 }
 0x2a7   : > { %16311 = vst [vmem:[#allocation100_spill] sm:$0xff] %v12769_v1  ;;  %v3009_v10 = vor.u32 %v3008_v54, %v3007_v7  ;;  %v3012_v59 = vor.u32 %v3011_v31, %v3010_v49  ;;  %v12773_v45 = vpop.eup %10704  ;;  %v16314_v22 = vmov 0  ;;  %v2856_v43 = vshrl.u32 %v2838_v24, %v2854_v4  ;;  %v12791_v31 = vpop.f32.mrb[28].mxu0 }
 0x2a8   : > { %16312 = vst [vmem:[#allocation101_spill] sm:$0xff] %v12773_v45  ;;  %vm12777_vm5 = vcmp.le.f32.partialorder %v16313_v34, 0.7853982  ;;  %v2744_v39 = vsub.s32 0, %v12765_v8  ;;  %v3015_v16 = vor.u32 %v3014_v0, %v3013_v46  ;;  %v3018_v63 = vor.u32 %v3017_v38, %v3016_v14  ;;  %v12782_v1 = vpop.eup %10706 }
 0x2a9   : > { %v16315_v22 = vsel %vm12777_vm5, 4294967295, %v16314_v22  ;;  %16317 = vst [vmem:[#allocation103_spill] sm:$0xff] %v12782_v1  ;;  %v2861_v62 = vor.u32 4788187, %v2860_v9  ;;  %v3020_v15 = vshrl.u32 %v16166_v36, %v3005_v61  ;;  %vm3022_vm14 = vcmp.lt.s32.totalorder %v3003_v25, 1 }
 0x2aa   : > { %16316 = vst [vmem:[#allocation102_spill] sm:$0xff] %v16315_v22  ;;  %vm3024_vm13 = vcmp.lt.s32.totalorder %v3003_v25, 3  ;;  %v9227_v47 = vmin.u32 %v2744_v39, %v12765_v8  ;;  %vm3023_vm9 = vcmp.lt.s32.totalorder %v3003_v25, 2  ;;  %vm3025_vm6 = vcmp.lt.s32.totalorder %v3003_v25, 4 }
 0x2ab   : > { %v3026_v7 = vsel %vm3022_vm14, %v3006_v30, %v3009_v10  ;;  %vm16043_vm1 = vcmp.lt.s32.totalorder %v12323_v18, 0  ;;  %v3021_v24 = vor.u32 %v3020_v15, %v3019_v26  ;;  %v3027_v4 = vsel %vm3025_vm6, %v3015_v16, 2102212464 }
 0x2ac   : > { %v3030_v49 = vsel %vm3022_vm14, %v3009_v10, %v3012_v59  ;;  %v3031_v46 = vsel %vm3025_vm6, %v3018_v63, 920167782  ;;  %v2857_v14 = vor.u32 %v2856_v43, %v2855_v48  ;;  %v2746_v34 = vclz %v9227_v47 }
 0x2ad   : > { %v3028_v54 = vsel %vm3024_vm13, %v3012_v59, %v3027_v4  ;;  %v3032_v61 = vsel %vm3024_vm13, %v3015_v16, %v3031_v46  ;;  %v3034_v9 = vsel %vm3022_vm14, %v3012_v59, %v3015_v16  ;;  %v3035_v30 = vsel %vm3025_vm6, %v3021_v24, 1326507024 }
 0x2ae   : > { %v3033_v0 = vsel %vm3023_vm9, %v3030_v49, %v3032_v61  ;;  %v16318_v38 = vand.u32 2147483647, %v12715_v60  ;;  %v2862_v39 = vand.u32 2147483647, %v2861_v62  ;;  %v9228_v15 = vadd.s32 4294967294, %v2746_v34 }
 0x2af   : > { %v3029_v10 = vsel %vm3023_vm9, %v3026_v7, %v3028_v54  ;;  %v3036_v48 = vsel %vm3024_vm13, %v3018_v63, %v3035_v30  ;;  %v12801_v47 = vmul.u32.u64.low %v12739_v20, %v3033_v0  ;;  %v12802_v4 = vmul.u32.u64.high %v12739_v20, %v3033_v0, %v12801_v47 }
 0x2b0   : > { %v2893_v26 = vand.u32 8388607, %v16318_v38  ;;  %v3037_v43 = vsel %vm3023_vm9, %v3034_v9, %v3036_v48  ;;  %v2896_v49 = vadd.s32 1, %v9234_v44  ;;  %v2864_v46 = vcvt.s32.f32 %v2857_v14 }
 0x2b1   : > { %vm9229_vm14 = vcmp.lt.s32.totalorder %v9228_v15, 0  ;;  %v12806_v16 = vmul.u32.u64.low %v12739_v20, %v3037_v43  ;;  %v12807_v59 = vmul.u32.u64.high %v12739_v20, %v3037_v43, %v12806_v16  ;;  %v12813_v62 = vsel %vm12777_vm5, %v12290_v29, %v12734_v51 }
 0x2b2   : > { %v2749_v63 = vsel %vm9229_vm14, 0, %v9228_v15  ;;  %v2894_v25 = vor.u32 8388608, %v2893_v26  ;;  %vm2897_vm13 = vcmp.gt.s32.totalorder %v2896_v49, 0  ;;  %v12815_v7 = vmul.f32 %v2864_v46, %v2862_v39 }
 0x2b3   : > { %v2750_v24 = vsub.s32 32, %v2749_v63  ;;  %v2754_v34 = vsub.s32 4294967266, %v2749_v63  ;;  %v3045_v44 = vmul.u32 %v12739_v20, %v3029_v10  ;;  %v2734_v14 = vadd.s32 %v12698_v5, %v12708_v41 }
 0x2b4   : > { %v3048_v54 = vadd.s32 1, %v12802_v4  ;;  %v2898_v61 = vsel %vm2897_vm13, %v2896_v49, 0  ;;  %v3201_v0 = vand.u32 2139095040, %v12748_v42  ;;  %v16319_v51 = vxor.u32 2147483648, %v12725_v19 }
 0x2b5   : > { %v2755_v30 = vadd.s32 127, %v2754_v34  ;;  %vm3047_vm9 = vc.u32 %v12807_v59, %v12801_v47  ;;  %v2751_v38 = vshll.u32 %v12765_v8, %v2749_v63  ;;  %v2752_v5 = vshrl.u32 %v2734_v14, %v2750_v24 }
 0x2b6   : > { %v2555_v9 = vsel %vm16043_vm1, %v16319_v51, %v12725_v19  ;;  %v3049_v41 = vsel %vm3047_vm9, %v3048_v54, %v12802_v4  ;;  %v2900_v26 = vand.u32 31, %v2898_v61  ;;  %v2866_v39 = vxor.u32 2147483648, %v12815_v7 }
 0x2b7   : > { %v2756_v15 = vshll.u32 %v2755_v30, 23  ;;  %v3050_v10 = vadd.s32 %v3049_v41, %v3045_v44  ;;  %v12833_v48 = vshll.u32 %v2894_v25, 8  ;;  %v3202_v46 = vshrl.u32 %v3201_v0, 23 }
 0x2b8   : > { %v2901_v43 = vsub.s32 32, %v2900_v26  ;;  %v2903_v19 = vshll.u32 %v16167_v12, %v2900_v26  ;;  %v2906_v49 = vshll.u32 %v16161_v57, %v2900_v26  ;;  %v16320_v16 = vand.u32 2147483647, %v12323_v18 }
 0x2b9   : > { %v16321_v8 = vmov 0  ;;  %v3051_v4 = vadd.s32 536870912, %v3050_v10  ;;  %v2899_v63 = vshrl.u32 %v2898_v61, 5  ;;  %v2909_v24 = vshll.u32 %v16163_v6, %v2900_v26 }
 0x2ba   : > { %vm12839_vm6 = vcmp.le.f32.partialorder %v16320_v16, 0.7853982  ;;  %v2912_v34 = vshll.u32 %v16164_v3, %v2900_v26  ;;  %v2753_v25 = vor.u32 %v2752_v5, %v2751_v38  ;;  %v2904_v44 = vshrl.u32 %v16161_v57, %v2901_v43 }
 0x2bb   : > { %v16322_v8 = vsel %vm12839_vm6, 4294967295, %v16321_v8  ;;  %v2907_v14 = vshrl.u32 %v16163_v6, %v2901_v43  ;;  %v2910_v54 = vshrl.u32 %v16164_v3, %v2901_v43  ;;  %v2757_v0 = vor.u32 4788187, %v2756_v15 }
 0x2bc   : > { %v12849_v51 = vshrl.u32 %v3051_v4, 30  ;;  %v2913_v30 = vshrl.u32 %v16165_v33, %v2901_v43  ;;  %v2915_v61 = vshll.u32 %v16165_v33, %v2900_v26  ;;  %v2902_v41 = vshrl.u32 %v16167_v12, %v2901_v43 }
 0x2bd   : > { %v2905_v16 = vor.u32 %v2904_v44, %v2903_v19  ;;  %v2908_v20 = vor.u32 %v2907_v14, %v2906_v49  ;;  %v2916_v22 = vshrl.u32 %v16166_v36, %v2901_v43  ;;  %v2911_v5 = vor.u32 %v2910_v54, %v2909_v24 }
 0x2be   : > { %16323 = vst [vmem:[#allocation104_spill] sm:$0xff] %v12849_v51  ;;  %v3053_v38 = vshll.u32 %v12849_v51, 30  ;;  %v2914_v29 = vor.u32 %v2913_v30, %v2912_v34  ;;  %vm2918_vm13 = vcmp.lt.s32.totalorder %v2899_v63, 1  ;;  %vm2920_vm9 = vcmp.lt.s32.totalorder %v2899_v63, 3 }
 0x2bf   : > { %v2917_v45 = vor.u32 %v2916_v22, %v2915_v61  ;;  %vm2921_vm1 = vcmp.lt.s32.totalorder %v2899_v63, 4  ;;  %v9246_v15 = vadd.s32 4294967169, %v3202_v46  ;;  %v2758_v4 = vand.u32 2147483647, %v2757_v0  ;;  %v12875_v0 = vpop.f32.mrb[29].mxu0 }
 0x2c0   : > { %v12856_v1 = vsub.s32 %v3050_v10, %v3053_v38  ;;  %vm2919_vm14 = vcmp.lt.s32.totalorder %v2899_v63, 2  ;;  %v2923_v26 = vsel %vm2921_vm1, %v2911_v5, 2102212464  ;;  %v2760_v27 = vcvt.s32.f32 %v2753_v25 }
 0x2c1   : > { %v2922_v19 = vsel %vm2918_vm13, %v2902_v41, %v2905_v16  ;;  %v2926_v43 = vsel %vm2918_vm13, %v2905_v16, %v2908_v20  ;;  %v2927_v49 = vsel %vm2921_vm1, %v2914_v29, 920167782  ;;  %v2924_v22 = vsel %vm2920_vm9, %v2908_v20, %v2923_v26 }
 0x2c2   : > { %v3056_v24 = vsub.s32 0, %v12856_v1  ;;  %v2928_v34 = vsel %vm2920_vm9, %v2911_v5, %v2927_v49  ;;  %v2930_v46 = vsel %vm2918_vm13, %v2908_v20, %v2911_v5  ;;  %v12869_v10 = vsel %vm12839_vm6, %v12323_v18, %v2555_v9 }
 0x2c3   : > { %v2929_v25 = vsel %vm2919_vm14, %v2926_v43, %v2928_v34  ;;  %v2931_v44 = vsel %vm2921_vm1, %v2917_v45, 1326507024  ;;  %v16324_v14 = vand.u32 2147483647, %v12748_v42  ;;  %vm16325_vm5 = vcmp.lt.s32.totalorder %v12488_v28, 0 }
 0x2c4   : > { %v2867_v30 = vsel %vm16325_vm5, %v2866_v39, %v12815_v7  ;;  %v12880_v61 = vmul.f32 %v2760_v27, %v2758_v4  ;;  %v9239_v20 = vmin.u32 %v3056_v24, %v12856_v1  ;;  %v2932_v9 = vsel %vm2920_vm9, %v2914_v29, %v2931_v44 }
 0x2c5   : > { %v3205_v54 = vand.u32 8388607, %v16324_v14  ;;  %v2925_v41 = vsel %vm2919_vm14, %v2922_v19, %v2924_v22  ;;  %v2933_v16 = vsel %vm2919_vm14, %v2930_v46, %v2932_v9  ;;  %v3208_v27 = vadd.s32 1, %v9246_v15 }
 0x2c6   : > { %v12887_v45 = vmul.u32.u64.low %v12833_v48, %v2929_v25  ;;  %v12888_v38 = vmul.u32.u64.high %v12833_v48, %v2929_v25, %v12887_v45  ;;  %v3058_v5 = vclz %v9239_v20  ;;  %10708 = vcosq.f32 %v12813_v62 }
 0x2c7   : > { %v12892_v26 = vmul.u32.u64.low %v12833_v48, %v2933_v16  ;;  %v12893_v43 = vmul.u32.u64.high %v12833_v48, %v2933_v16, %v12892_v26  ;;  %v16326_v7 = vand.u32 2147483647, %v12488_v28  ;;  %v16327_v29 = vmov 0 }
 0x2c8   : > { %v3206_v39 = vor.u32 8388608, %v3205_v54  ;;  %10710 = vsinq.f32 %v12813_v62  ;;  %v9240_v63 = vadd.s32 4294967294, %v3058_v5  ;;  %v2941_v4 = vmul.u32 %v12833_v48, %v2925_v41 }
 0x2c9   : > { %vm12898_vm1 = vcmp.le.f32.partialorder %v16326_v7, 0.7853982  ;;  %vm3209_vm5 = vcmp.gt.s32.totalorder %v3208_v27, 0  ;;  %10712 = vcosq.f32 %v12869_v10  ;;  %v2944_v19 = vadd.s32 1, %v12888_v38 }
 0x2ca   : > { %v16328_v29 = vsel %vm12898_vm1, 4294967295, %v16327_v29  ;;  %v12908_v15 = vsel %vm12898_vm1, %v12488_v28, %v2867_v30  ;;  %v3210_v49 = vsel %vm3209_vm5, %v3208_v27, 0  ;;  %v2762_v24 = vxor.u32 2147483648, %v12880_v61 }
 0x2cb   : > { %16329 = vst [vmem:[#allocation105_spill] sm:$0xff] %v16328_v29  ;;  %v3046_v22 = vadd.s32 %v12801_v47, %v12807_v59  ;;  %vm9241_vm14 = vcmp.lt.s32.totalorder %v9240_v63, 0  ;;  %vm2943_vm13 = vc.u32 %v12893_v43, %v12887_v45  ;;  %v3212_v34 = vand.u32 31, %v3210_v49 }
 0x2cc   : > { %v3061_v62 = vsel %vm9241_vm14, 0, %v9240_v63  ;;  %v2945_v48 = vsel %vm2943_vm13, %v2944_v19, %v12888_v38  ;;  %v12917_v46 = vshll.u32 %v3206_v39, 8  ;;  %v3211_v5 = vshrl.u32 %v3210_v49, 5 }
 0x2cd   : > { %v3062_v25 = vsub.s32 32, %v3061_v62  ;;  %v3063_v44 = vshll.u32 %v12856_v1, %v3061_v62  ;;  %v3066_v14 = vsub.s32 4294967266, %v3061_v62  ;;  %v2946_v54 = vadd.s32 %v2945_v48, %v2941_v4 }
 0x2ce   : > { %v3213_v30 = vsub.s32 32, %v3212_v34  ;;  %v3215_v20 = vshll.u32 %v16167_v12, %v3212_v34  ;;  %v3218_v47 = vshll.u32 %v16161_v57, %v3212_v34  ;;  %v3221_v59 = vshll.u32 %v16163_v6, %v3212_v34 }
 0x2cf   : > { %v3064_v9 = vshrl.u32 %v3046_v22, %v3062_v25  ;;  %v3067_v41 = vadd.s32 127, %v3066_v14  ;;  %v2947_v16 = vadd.s32 536870912, %v2946_v54  ;;  %v3224_v38 = vshll.u32 %v16164_v3, %v3212_v34 }
 0x2d0   : > { %v3216_v26 = vshrl.u32 %v16161_v57, %v3213_v30  ;;  %v3219_v1 = vshrl.u32 %v16163_v6, %v3213_v30  ;;  %v3222_v27 = vshrl.u32 %v16164_v3, %v3213_v30  ;;  %v3214_v63 = vshrl.u32 %v16167_v12, %v3213_v30  ;;  %v12932_v19 = vpop.eup %10708 }
 0x2d1   : > { %v3068_v7 = vshll.u32 %v3067_v41, 23  ;;  %v12928_v39 = vshrl.u32 %v2947_v16, 30  ;;  %v3225_v4 = vshrl.u32 %v16165_v33, %v3213_v30  ;;  %16331 = vst [vmem:[#allocation107_spill] sm:$0xff] %v12932_v19  ;;  %v3227_v48 = vshll.u32 %v16165_v33, %v3212_v34 }
 0x2d2   : > { %v3217_v22 = vor.u32 %v3216_v26, %v3215_v20  ;;  %v3220_v62 = vor.u32 %v3219_v1, %v3218_v47  ;;  %v12937_v49 = vadd.f32 %v12744_v21, %v12351_v32  ;;  %v12939_v25 = vpop.eup %10710  ;;  %v3065_v14 = vor.u32 %v3064_v9, %v3063_v44 }
 0x2d3   : > { %16330 = vst [vmem:[#allocation106_spill] sm:$0xff] %v12928_v39  ;;  %v2949_v41 = vshll.u32 %v12928_v39, 30  ;;  %v3223_v16 = vor.u32 %v3222_v27, %v3221_v59  ;;  %v3226_v51 = vor.u32 %v3225_v4, %v3224_v38  ;;  %v12942_v29 = vpop.eup %10712  ;;  %v3069_v28 = vor.u32 4788187, %v3068_v7 }
 0x2d4   : > { %16332 = vst [vmem:[#allocation108_spill] sm:$0xff] %v12937_v49  ;;  %v3228_v19 = vshrl.u32 %v16166_v36, %v3213_v30  ;;  %vm3230_vm5 = vcmp.lt.s32.totalorder %v3211_v5, 1  ;;  %vm3232_vm14 = vcmp.lt.s32.totalorder %v3211_v5, 3  ;;  %vm3231_vm13 = vcmp.lt.s32.totalorder %v3211_v5, 2 }
 0x2d5   : > { %v12945_v20 = vsub.s32 %v2946_v54, %v2949_v41  ;;  %vm3233_vm9 = vcmp.lt.s32.totalorder %v3211_v5, 4  ;;  %v3234_v32 = vsel %vm3230_vm5, %v3214_v63, %v3217_v22  ;;  %v3238_v44 = vsel %vm3230_vm5, %v3217_v22, %v3220_v62  ;;  %v12967_v41 = vpop.f32.mrb[30].mxu0 }
 0x2d6   : > { %v3229_v34 = vor.u32 %v3228_v19, %v3227_v48  ;;  %v3235_v47 = vsel %vm3233_vm9, %v3223_v16, 2102212464  ;;  %v3239_v9 = vsel %vm3233_vm9, %v3226_v51, 920167782  ;;  %v3072_v59 = vcvt.s32.f32 %v3065_v14 }
 0x2d7   : > { %v2952_v38 = vsub.s32 0, %v12945_v20  ;;  %v3236_v26 = vsel %vm3232_vm14, %v3220_v62, %v3235_v47  ;;  %v3240_v30 = vsel %vm3232_vm14, %v3223_v16, %v3239_v9  ;;  %v3070_v1 = vand.u32 2147483647, %v3069_v28 }
 0x2d8   : > { %v3241_v54 = vsel %vm3231_vm13, %v3238_v44, %v3240_v30  ;;  %v3242_v27 = vsel %vm3230_vm5, %v3220_v62, %v3223_v16  ;;  %v3243_v7 = vsel %vm3233_vm9, %v3229_v34, 1326507024  ;;  %vm16333_vm1 = vcmp.lt.s32.totalorder %v12546_v37, 0 }
 0x2d9   : > { %v2763_v63 = vsel %vm16333_vm1, %v2762_v24, %v12880_v61  ;;  %v9235_v4 = vmin.u32 %v2952_v38, %v12945_v20  ;;  %v3237_v19 = vsel %vm3231_vm13, %v3234_v32, %v3236_v26  ;;  %v3244_v22 = vsel %vm3232_vm14, %v3226_v51, %v3243_v7 }
 0x2da   : > { %v3245_v48 = vsel %vm3231_vm13, %v3242_v27, %v3244_v22  ;;  %v12962_v14 = vmul.u32.u64.low %v12917_v46, %v3241_v54  ;;  %v12963_v28 = vmul.u32.u64.high %v12917_v46, %v3241_v54, %v12962_v14  ;;  %v3097_v62 = vand.u32 2139095040, %v12937_v49 }
 0x2db   : > { %v2954_v16 = vclz %v9235_v4  ;;  %v12970_v61 = vmul.u32.u64.low %v12917_v46, %v3245_v48  ;;  %v12971_v24 = vmul.u32.u64.high %v12917_v46, %v3245_v48, %v12970_v61  ;;  %v12975_v32 = vadd.f32 %v12744_v21, %v12463_v58 }
 0x2dc   : > { %10714 = vsinq.f32 %v12869_v10  ;;  %v16335_v51 = vand.u32 2147483647, %v12546_v37  ;;  %v16336_v5 = vmov 0  ;;  %v3073_v34 = vmul.f32 %v3072_v59, %v3070_v1 }
 0x2dd   : > { %16334 = vst [vmem:[#allocation109_spill] sm:$0xff] %v12975_v32  ;;  %v3098_v47 = vshrl.u32 %v3097_v62, 23  ;;  %10716 = vcosq.f32 %v12908_v15  ;;  %v9236_v44 = vadd.s32 4294967294, %v2954_v16  ;;  %v3253_v9 = vmul.u32 %v12917_v46, %v3237_v19 }
 0x2de   : > { %vm12980_vm1 = vcmp.le.f32.partialorder %v16335_v51, 0.7853982  ;;  %v16054_v38 = vand.u32 2147483647, %v12937_v49  ;;  %10718 = vsinq.f32 %v12908_v15  ;;  %v3256_v10 = vadd.s32 1, %v12963_v28 }
 0x2df   : > { %v16337_v5 = vsel %vm12980_vm1, 4294967295, %v16336_v5  ;;  %v12991_v58 = vsel %vm12980_vm1, %v12546_v37, %v2763_v63  ;;  %v9242_v26 = vadd.s32 4294967169, %v3098_v47  ;;  %v2942_v59 = vadd.s32 %v12887_v45, %v12893_v43 }
 0x2e0   : > { %16338 = vst [vmem:[#allocation110_spill] sm:$0xff] %v16337_v5  ;;  %vm9237_vm9 = vcmp.lt.s32.totalorder %v9236_v44, 0  ;;  %vm3255_vm5 = vc.u32 %v12971_v24, %v12962_v14  ;;  %v3409_v46 = vand.u32 2139095040, %v12975_v32  ;;  %v3074_v30 = vxor.u32 2147483648, %v3073_v34 }
 0x2e1   : > { %v2957_v1 = vsel %vm9237_vm9, 0, %v9236_v44  ;;  %v3257_v15 = vsel %vm3255_vm5, %v3256_v10, %v12963_v28  ;;  %v3104_v54 = vadd.s32 1, %v9242_v26  ;;  %v3101_v4 = vand.u32 8388607, %v16054_v38 }
 0x2e2   : > { %v2958_v27 = vsub.s32 32, %v2957_v1  ;;  %v2962_v7 = vsub.s32 4294967266, %v2957_v1  ;;  %v3258_v63 = vadd.s32 %v3257_v15, %v3253_v9  ;;  %10720 = vcosq.f32 %v12991_v58 }
 0x2e3   : > { %vm16062_vm14 = vcmp.lt.s32.totalorder %v12595_v56, 0  ;;  %vm3105_vm13 = vcmp.gt.s32.totalorder %v3104_v54, 0  ;;  %v13006_v45 = vadd.f32 %v12744_v21, %v12527_v35  ;;  %v3410_v48 = vshrl.u32 %v3409_v46, 23 }
 0x2e4   : > { %v2963_v43 = vadd.s32 127, %v2962_v7  ;;  %v3259_v19 = vadd.s32 536870912, %v3258_v63  ;;  %v3106_v22 = vsel %vm3105_vm13, %v3104_v54, 0  ;;  %v13010_v28 = vsel %vm16062_vm14, %v3074_v30, %v3073_v34 }
 0x2e5   : > { %16339 = vst [vmem:[#allocation111_spill] sm:$0xff] %v13006_v45  ;;  %v2959_v62 = vshll.u32 %v12945_v20, %v2957_v1  ;;  %v2960_v16 = vshrl.u32 %v2942_v59, %v2958_v27  ;;  %v3108_v61 = vand.u32 31, %v3106_v22  ;;  %v3102_v44 = vor.u32 8388608, %v3101_v4 }
 0x2e6   : > { %v2964_v51 = vshll.u32 %v2963_v43, 23  ;;  %v13013_v47 = vshrl.u32 %v3259_v19, 30  ;;  %v13016_v35 = vpop.eup %10714  ;;  %v3107_v10 = vshrl.u32 %v3106_v22, 5  ;;  %v9254_v1 = vadd.s32 4294967169, %v3410_v48 }
 0x2e7   : > { %v3109_v26 = vsub.s32 32, %v3108_v61  ;;  %v3111_v46 = vshll.u32 %v16167_v12, %v3108_v61  ;;  %v3114_v15 = vshll.u32 %v16161_v57, %v3108_v61  ;;  %v13020_v34 = vpop.eup %10716  ;;  %v3117_v59 = vshll.u32 %v16163_v6, %v3108_v61 }
 0x2e8   : > { %16340 = vst [vmem:[#allocation112_spill] sm:$0xff] %v13013_v47  ;;  %16341 = vst [vmem:[#allocation113_spill] sm:$0xff] %v13020_v34  ;;  %v3261_v20 = vshll.u32 %v13013_v47, 30  ;;  %v3120_v30 = vshll.u32 %v16164_v3, %v3108_v61  ;;  %v13025_v54 = vpop.eup %10718  ;;  %v2961_v27 = vor.u32 %v2960_v16, %v2959_v62  ;;  %v2965_v19 = vor.u32 4788187, %v2964_v51 }
 0x2e9   : > { %16342 = vst [vmem:[#allocation114_spill] sm:$0xff] %v13025_v54  ;;  %v3112_v7 = vshrl.u32 %v16161_v57, %v3109_v26  ;;  %v3115_v4 = vshrl.u32 %v16163_v6, %v3109_v26  ;;  %v3118_v43 = vshrl.u32 %v16164_v3, %v3109_v26  ;;  %v3121_v38 = vshrl.u32 %v16165_v33, %v3109_v26 }
 0x2ea   : > { %v13030_v22 = vsub.s32 %v3258_v63, %v3261_v20  ;;  %v3123_v9 = vshll.u32 %v16165_v33, %v3108_v61  ;;  %v3110_v47 = vshrl.u32 %v16167_v12, %v3109_v26  ;;  %v3124_v39 = vshrl.u32 %v16166_v36, %v3109_v26 }
 0x2eb   : > { %v3113_v34 = vor.u32 %v3112_v7, %v3111_v46  ;;  %v3116_v48 = vor.u32 %v3115_v4, %v3114_v15  ;;  %v16343_v62 = vand.u32 2147483647, %v12595_v56  ;;  %v16344_v16 = vmov 0  ;;  %v13045_v46 = vpop.f32.mrb[31].mxu0 }
 0x2ec   : > { %v3264_v51 = vsub.s32 0, %v13030_v22  ;;  %v3119_v63 = vor.u32 %v3118_v43, %v3117_v59  ;;  %v3122_v20 = vor.u32 %v3121_v38, %v3120_v30  ;;  %vm3126_vm5 = vcmp.lt.s32.totalorder %v3107_v10, 1  ;;  %v13043_v54 = vpop.eup %10720 }
 0x2ed   : > { %vm13038_vm9 = vcmp.le.f32.partialorder %v16343_v62, 0.7853982  ;;  %16347 = vst [vmem:[#allocation116_spill] sm:$0xff] %v13043_v54  ;;  %v2968_v61 = vcvt.s32.f32 %v2961_v27  ;;  %v3125_v5 = vor.u32 %v3124_v39, %v3123_v9  ;;  %vm3128_vm13 = vcmp.lt.s32.totalorder %v3107_v10, 3 }
 0x2ee   : > { %v16345_v16 = vsel %vm13038_vm9, 4294967295, %v16344_v16  ;;  %vm3129_vm14 = vcmp.lt.s32.totalorder %v3107_v10, 4  ;;  %v2966_v26 = vand.u32 2147483647, %v2965_v19  ;;  %v9247_v15 = vmin.u32 %v3264_v51, %v13030_v22 }
 0x2ef   : > { %16346 = vst [vmem:[#allocation115_spill] sm:$0xff] %v16345_v16  ;;  %vm3127_vm1 = vcmp.lt.s32.totalorder %v3107_v10, 2  ;;  %v3131_v7 = vsel %vm3129_vm14, %v3119_v63, 2102212464  ;;  %v3130_v4 = vsel %vm3126_vm5, %v3110_v47, %v3113_v34  ;;  %v3134_v59 = vsel %vm3126_vm5, %v3113_v34, %v3116_v48 }
 0x2f0   : > { %v3135_v38 = vsel %vm3129_vm14, %v3122_v20, 920167782  ;;  %v3142_v30 = vshll.u32 %v3102_v44, 8  ;;  %v3266_v43 = vclz %v9247_v15  ;;  %v3132_v39 = vsel %vm3128_vm13, %v3116_v48, %v3131_v7 }
 0x2f1   : > { %v3136_v9 = vsel %vm3128_vm13, %v3119_v63, %v3135_v38  ;;  %v3138_v27 = vsel %vm3126_vm5, %v3116_v48, %v3119_v63  ;;  %v3254_v19 = vadd.s32 %v12962_v14, %v12971_v24  ;;  %v3139_v51 = vsel %vm3129_vm14, %v3125_v5, 1326507024 }
 0x2f2   : > { %v3137_v62 = vsel %vm3127_vm1, %v3134_v59, %v3136_v9  ;;  %v16348_v47 = vand.u32 2147483647, %v12975_v32  ;;  %v13063_v54 = vmul.f32 %v2968_v61, %v2966_v26  ;;  %v9248_v44 = vadd.s32 4294967294, %v3266_v43 }
 0x2f3   : > { %v3140_v15 = vsel %vm3128_vm13, %v3122_v20, %v3139_v51  ;;  %v3416_v7 = vadd.s32 1, %v9254_v1  ;;  %v3133_v38 = vsel %vm3127_vm1, %v3130_v4, %v3132_v39  ;;  %v13079_v61 = vsel %vm13038_vm9, %v12595_v56, %v13010_v28 }
 0x2f4   : > { %v13061_v34 = vand.u32 8388607, %v16348_v47  ;;  %v3141_v48 = vsel %vm3127_vm1, %v3138_v27, %v3140_v15  ;;  %v13068_v63 = vmul.u32.u64.low %v3142_v30, %v3137_v62  ;;  %v13069_v14 = vmul.u32.u64.high %v3142_v30, %v3137_v62, %v13068_v63 }
 0x2f5   : > { %vm9249_vm5 = vcmp.lt.s32.totalorder %v9248_v44, 0  ;;  %v13072_v24 = vmul.u32.u64.low %v3142_v30, %v3141_v48  ;;  %v13073_v5 = vmul.u32.u64.high %v3142_v30, %v3141_v48, %v13072_v24  ;;  %vm3417_vm14 = vcmp.gt.s32.totalorder %v3416_v7, 0 }
 0x2f6   : > { %v3269_v1 = vsel %vm9249_vm5, 0, %v9248_v44  ;;  %v3418_v20 = vsel %vm3417_vm14, %v3416_v7, 0  ;;  %v13083_v10 = vadd.f32 %v12744_v21, %v12653_v40  ;;  %v3149_v43 = vmul.u32 %v3142_v30, %v3133_v38 }
 0x2f7   : > { %v3270_v26 = vsub.s32 32, %v3269_v1  ;;  %v3271_v4 = vshll.u32 %v13030_v22, %v3269_v1  ;;  %v3274_v59 = vsub.s32 4294967266, %v3269_v1  ;;  %v3152_v9 = vadd.s32 1, %v13069_v14 }
 0x2f8   : > { %v3414_v27 = vor.u32 8388608, %v13061_v34  ;;  %v3420_v62 = vand.u32 31, %v3418_v20  ;;  %vm3151_vm1 = vc.u32 %v13073_v5, %v13068_v63  ;;  %v3419_v47 = vshrl.u32 %v3418_v20, 5 }
 0x2f9   : > { %v3272_v28 = vshrl.u32 %v3254_v19, %v3270_v26  ;;  %v3275_v51 = vadd.s32 127, %v3274_v59  ;;  %v3153_v40 = vsel %vm3151_vm1, %v3152_v9, %v13069_v14  ;;  %10722 = vsinq.f32 %v12991_v58 }
 0x2fa   : > { %v3421_v44 = vsub.s32 32, %v3420_v62  ;;  %v3423_v22 = vshll.u32 %v16167_v12, %v3420_v62  ;;  %v3426_v30 = vshll.u32 %v16161_v57, %v3420_v62  ;;  %v3154_v38 = vadd.s32 %v3153_v40, %v3149_v43 }
 0x2fb   : > { %v3273_v15 = vor.u32 %v3272_v28, %v3271_v4  ;;  %v3276_v7 = vshll.u32 %v3275_v51, 23  ;;  %v3429_v48 = vshll.u32 %v16163_v6, %v3420_v62  ;;  %v3432_v59 = vshll.u32 %v16164_v3, %v3420_v62 }
 0x2fc   : > { %v3422_v34 = vshrl.u32 %v16167_v12, %v3421_v44  ;;  %v3424_v19 = vshrl.u32 %v16161_v57, %v3421_v44  ;;  %v3427_v24 = vshrl.u32 %v16163_v6, %v3421_v44  ;;  %v3430_v1 = vshrl.u32 %v16164_v3, %v3421_v44 }
 0x2fd   : > { %v3277_v20 = vor.u32 4788187, %v3276_v7  ;;  %v3280_v14 = vcvt.s32.f32 %v3273_v15  ;;  %v3155_v26 = vadd.s32 536870912, %v3154_v38  ;;  %v3433_v43 = vshrl.u32 %v16165_v33, %v3421_v44 }
 0x2fe   : > { %v3425_v9 = vor.u32 %v3424_v19, %v3423_v22  ;;  %v3428_v39 = vor.u32 %v3427_v24, %v3426_v30  ;;  %v3431_v4 = vor.u32 %v3430_v1, %v3429_v48  ;;  %v3435_v40 = vshll.u32 %v16165_v33, %v3420_v62 }
 0x2ff   : > { %v3278_v28 = vand.u32 2147483647, %v3277_v20  ;;  %v13102_v51 = vshrl.u32 %v3155_v26, 30  ;;  %v3436_v16 = vshrl.u32 %v16166_v36, %v3421_v44  ;;  %v3434_v56 = vor.u32 %v3433_v43, %v3432_v59 }
 0x300   : > { %vm3438_vm5 = vcmp.lt.s32.totalorder %v3419_v47, 1  ;;  %vm3439_vm14 = vcmp.lt.s32.totalorder %v3419_v47, 2  ;;  %vm3440_vm1 = vcmp.lt.s32.totalorder %v3419_v47, 3  ;;  %vm3441_vm6 = vcmp.lt.s32.totalorder %v3419_v47, 4 }
 0x301   : > { %16349 = vst [vmem:[#allocation117_spill] sm:$0xff] %v13102_v51  ;;  %v3281_v22 = vmul.f32 %v3280_v14, %v3278_v28  ;;  %v3157_v30 = vshll.u32 %v13102_v51, 30  ;;  %v3437_v15 = vor.u32 %v3436_v16, %v3435_v40  ;;  %v16350_v7 = vand.u32 2147483647, %v12715_v60 }
 0x302   : > { %v16351_v48 = vmov 0  ;;  %v3443_v62 = vsel %vm3441_vm6, %v3431_v4, 2102212464  ;;  %v3446_v44 = vsel %vm3438_vm5, %v3425_v9, %v3428_v39  ;;  %v3447_v19 = vsel %vm3441_vm6, %v3434_v56, 920167782 }
 0x303   : > { %vm13110_vm13 = vcmp.le.f32.partialorder %v16350_v7, 0.7853982  ;;  %v3454_v24 = vshll.u32 %v3414_v27, 8  ;;  %v13115_v1 = vsub.s32 %v3154_v38, %v3157_v30  ;;  %v3442_v20 = vsel %vm3438_vm5, %v3422_v34, %v3425_v9 }
 0x304   : > { %v16352_v48 = vsel %vm13110_vm13, 4294967295, %v16351_v48  ;;  %v3444_v14 = vsel %vm3440_vm1, %v3428_v39, %v3443_v62  ;;  %v3448_v16 = vsel %vm3440_vm1, %v3431_v4, %v3447_v19  ;;  %v16354_v26 = vand.u32 2147483647, %v12748_v42 }
 0x305   : > { %16353 = vst [vmem:[#allocation118_spill] sm:$0xff] %v16352_v48  ;;  %v16355_v59 = vmov 0  ;;  %v3449_v43 = vsel %vm3439_vm14, %v3446_v44, %v3448_v16  ;;  %v3450_v28 = vsel %vm3438_vm5, %v3428_v39, %v3431_v4  ;;  %v3451_v40 = vsel %vm3441_vm6, %v3437_v15, 1326507024 }
 0x306   : > { %vm13122_vm9 = vcmp.le.f32.partialorder %v16354_v26, 0.7853982  ;;  %v3305_v27 = vand.u32 2139095040, %v13006_v45  ;;  %v3282_v38 = vxor.u32 2147483648, %v3281_v22  ;;  %v3160_v34 = vsub.s32 0, %v13115_v1 }
 0x307   : > { %v16356_v59 = vsel %vm13122_vm9, 4294967295, %v16355_v59  ;;  %v3452_v9 = vsel %vm3440_vm1, %v3434_v56, %v3451_v40  ;;  %v16071_v30 = vand.u32 2147483647, %v13006_v45  ;;  %v3445_v7 = vsel %vm3439_vm14, %v3442_v20, %v3444_v14 }
 0x308   : > { %16357 = vst [vmem:[#allocation119_spill] sm:$0xff] %v16356_v59  ;;  %v3453_v62 = vsel %vm3439_vm14, %v3450_v28, %v3452_v9  ;;  %v13134_v19 = vmul.u32.u64.low %v3454_v24, %v3449_v43  ;;  %v13135_v26 = vmul.u32.u64.high %v3454_v24, %v3449_v43, %v13134_v19  ;;  %v9243_v39 = vmin.u32 %v3160_v34, %v13115_v1 }
 0x309   : > { %v13139_v4 = vmul.u32.u64.low %v3454_v24, %v3453_v62  ;;  %v13140_v15 = vmul.u32.u64.high %v3454_v24, %v3453_v62, %v13139_v4  ;;  %10724 = vcosq.f32 %v13079_v61  ;;  %v16358_v56 = vxor.u32 2147483648, %v13063_v54  ;;  %v10275_v62 = vld [vmem:[%s15865_s5 + $0x4] ss:$8 sps:$4 sm:$0xff]  }
 0x30a   : > { %vm16359_vm6 = vcmp.lt.s32.totalorder %v12715_v60, 0  ;;  %v3306_v47 = vshrl.u32 %v3305_v27, 23  ;;  %v13150_v20 = vadd.f32 %v12744_v21, %v12691_v55  ;;  %v3162_v14 = vclz %v9243_v39  ;;  %4282 = vmatprep.subr.bf16.mxu1 %v10275_v62 }
 0x30b   : > { %v2971_v44 = vsel %vm16359_vm6, %v16358_v56, %v13063_v54  ;;  %v3461_v58 = vmul.u32 %v3454_v24, %v3445_v7  ;;  %v3309_v16 = vand.u32 8388607, %v16071_v30  ;;  %v3617_v43 = vand.u32 2139095040, %v13083_v10 }
 0x30c   : > { %vm16360_vm5 = vcmp.lt.s32.totalorder %v12748_v42, 0  ;;  %v3464_v40 = vadd.s32 1, %v13135_v26  ;;  %v9250_v34 = vadd.s32 4294967169, %v3306_v47  ;;  %v16070_v54 = vand.u32 2147483647, %v13083_v10 }
 0x30d   : > { %v3283_v28 = vsel %vm16360_vm5, %v3282_v38, %v3281_v22  ;;  %10726 = vsinq.f32 %v13079_v61  ;;  %v2974_v55 = vsel %vm13110_vm13, %v12715_v60, %v2971_v44  ;;  %v9244_v21 = vadd.s32 4294967294, %v3162_v14 }
 0x30e   : > { %vm3463_vm14 = vc.u32 %v13140_v15, %v13134_v19  ;;  %v3150_v24 = vadd.s32 %v13068_v63, %v13073_v5  ;;  %v3312_v22 = vadd.s32 1, %v9250_v34  ;;  %v3618_v38 = vshrl.u32 %v3617_v43, 23  ;;  %v10277_v5 = vld [vmem:[%s15865_s5] ss:$8 sps:$4 sm:$0xff]   ;;  %v10278_v34 = vld [vmem:[%s15865_s5 + $0x14] ss:$8 sps:$4 sm:$0xff]  }
 0x30f   : > { %v3465_v27 = vsel %vm3463_vm14, %v3464_v40, %v13135_v26  ;;  %v13170_v9 = vsel %vm13122_vm9, %v12748_v42, %v3283_v28  ;;  %vm9245_vm1 = vcmp.lt.s32.totalorder %v9244_v21, 0  ;;  %v3310_v7 = vor.u32 8388608, %v3309_v16  ;;  %4283 = vmatpush1.bf16.msra.mxu1 %v10277_v5  ;;  %v10280_v5 = vld [vmem:[%s15865_s5 + $0x10] ss:$8 sps:$4 sm:$0xff]  }
 0x310   : > { %v3466_v61 = vadd.s32 %v3465_v27, %v3461_v58  ;;  %10728 = vcosq.f32 %v2974_v55  ;;  %v3165_v39 = vsel %vm9245_vm1, 0, %v9244_v21  ;;  %vm3313_vm6 = vcmp.gt.s32.totalorder %v3312_v22, 0  ;;  %v13184_v58 = vpop.eup %10722  ;;  %4284 = vmatprep.subr.bf16.mxu1 %v10278_v34  ;;  %v10281_v34 = vld [vmem:[%s15865_s5 + $0x24] ss:$8 sps:$4 sm:$0xff]  }
 0x311   : > { %v13177_v63 = vand.u32 8388607, %v16070_v54  ;;  %10730 = vsinq.f32 %v2974_v55  ;;  %v3166_v26 = vsub.s32 32, %v3165_v39  ;;  %v3170_v4 = vsub.s32 4294967266, %v3165_v39  ;;  %16361 = vst [vmem:[#allocation120_spill] sm:$0xff] %v13184_v58 }
 0x312   : > { %v3467_v56 = vadd.s32 536870912, %v3466_v61  ;;  %10732 = vcosq.f32 %v13170_v9  ;;  %v3314_v44 = vsel %vm3313_vm6, %v3312_v22, 0  ;;  %v9262_v47 = vadd.s32 4294967169, %v3618_v38 }
 0x313   : > { %v3167_v16 = vshll.u32 %v13115_v1, %v3165_v39  ;;  %v3168_v43 = vshrl.u32 %v3150_v24, %v3166_v26  ;;  %v3171_v28 = vadd.s32 127, %v3170_v4  ;;  %v13192_v55 = vpop.eup %10724  ;;  %v13195_v21 = vadd.s32 %v13134_v19, %v13140_v15  ;;  %4285 = vmatpush1.bf16.msra.mxu1 %v10280_v5 }
 0x314   : > { %v13187_v40 = vshrl.u32 %v3467_v56, 30  ;;  %16363 = vst [vmem:[#allocation122_spill] sm:$0xff] %v13192_v55  ;;  %v3316_v27 = vand.u32 31, %v3314_v44  ;;  %v13197_v22 = vshll.u32 %v3310_v7, 8  ;;  %v13201_v24 = vshrl.u32 %v3314_v44, 5  ;;  %4286 = vmatprep.subr.bf16.mxu1 %v10281_v34 }
 0x315   : > { %v3172_v62 = vshll.u32 %v3171_v28, 23  ;;  %v3513_v39 = vand.u32 2139095040, %v13150_v20  ;;  %v3169_v56 = vor.u32 %v3168_v43, %v3167_v16  ;;  %v3624_v54 = vadd.s32 1, %v9262_v47 }
 0x316   : > { %16362 = vst [vmem:[#allocation121_spill] sm:$0xff] %v13187_v40  ;;  %v3469_v1 = vshll.u32 %v13187_v40, 30  ;;  %v3317_v26 = vsub.s32 32, %v3316_v27  ;;  %v3319_v19 = vshll.u32 %v16167_v12, %v3316_v27  ;;  %v3322_v15 = vshll.u32 %v16161_v57, %v3316_v27 }
 0x317   : > { %v3325_v7 = vshll.u32 %v16163_v6, %v3316_v27  ;;  %v13210_v4 = vpop.eup %10726  ;;  %v3328_v44 = vshll.u32 %v16164_v3, %v3316_v27  ;;  %v3173_v30 = vor.u32 4788187, %v3172_v62  ;;  %v3331_v43 = vshll.u32 %v16165_v33, %v3316_v27  ;;  %v10284_v27 = vld [vmem:[%s15865_s5 + $0x34] ss:$8 sps:$4 sm:$0xff]  }
 0x318   : > { %16364 = vst [vmem:[#allocation123_spill] sm:$0xff] %v13210_v4  ;;  %v13212_v28 = vsub.s32 %v3466_v61, %v3469_v1  ;;  %v3320_v14 = vshrl.u32 %v16161_v57, %v3317_v26  ;;  %v3323_v38 = vshrl.u32 %v16163_v6, %v3317_v26  ;;  %v3326_v40 = vshrl.u32 %v16164_v3, %v3317_v26  ;;  %v10283_v61 = vld [vmem:[%s15865_s5 + $0x20] ss:$8 sps:$4 sm:$0xff]  }
 0x319   : > { %v3329_v47 = vshrl.u32 %v16165_v33, %v3317_v26  ;;  %v3332_v42 = vshrl.u32 %v16166_v36, %v3317_v26  ;;  %v3176_v55 = vcvt.s32.f32 %v3169_v56  ;;  %v3318_v48 = vshrl.u32 %v16167_v12, %v3317_v26  ;;  %4287 = vmatpush1.bf16.msra.mxu1 %v10283_v61 }
 0x31a   : > { %v3472_v16 = vsub.s32 0, %v13212_v28  ;;  %v13228_v62 = vpop.eup %10728  ;;  %v3321_v1 = vor.u32 %v3320_v14, %v3319_v19  ;;  %v3324_v5 = vor.u32 %v3323_v38, %v3322_v15  ;;  %v3327_v59 = vor.u32 %v3326_v40, %v3325_v7  ;;  %v10286_v40 = vld [vmem:[%s15865_s5 + $0x30] ss:$8 sps:$4 sm:$0xff]   ;;  %4288 = vmatprep.subr.bf16.mxu1 %v10284_v27 }
 0x31b   : > { %16365 = vst [vmem:[#allocation124_spill] sm:$0xff] %v13228_v62  ;;  %v13231_v51 = vpop.eup %10730  ;;  %v3330_v60 = vor.u32 %v3329_v47, %v3328_v44  ;;  %v3174_v14 = vand.u32 2147483647, %v3173_v30  ;;  %v3333_v38 = vor.u32 %v3332_v42, %v3331_v43  ;;  %vm3337_vm1 = vcmp.lt.s32.totalorder %v13201_v24, 4 }
 0x31c   : > { %16366 = vst [vmem:[#allocation125_spill] sm:$0xff] %v13231_v51  ;;  %v9255_v4 = vmin.u32 %v3472_v16, %v13212_v28  ;;  %v13238_v34 = vpop.eup %10732  ;;  %v3339_v26 = vsel %vm3337_vm1, %v3327_v59, 2102212464  ;;  %vm3625_vm5 = vcmp.gt.s32.totalorder %v3624_v54, 0  ;;  %vm16368_vm9 = vcmp.lt.s32.totalorder %v13201_v24, 1 }
 0x31d   : > { %16367 = vst [vmem:[#allocation126_spill] sm:$0xff] %v13238_v34  ;;  %v3342_v15 = vsel %vm16368_vm9, %v3321_v1, %v3324_v5  ;;  %v3343_v7 = vsel %vm3337_vm1, %v3330_v60, 920167782  ;;  %vm16369_vm13 = vmmov %vm16368_vm9  ;;  %v3347_v30 = vsel %vm3337_vm1, %v3333_v38, 1326507024  ;;  %vm16371_vm7 = vcmp.lt.s32.totalorder %v13201_v24, 3  ;;  %4289 = vmatpush1.bf16.msra.mxu1 %v10286_v40 }
 0x31e   : > { %v3474_v19 = vclz %v9255_v4  ;;  %v3346_v42 = vsel %vm16369_vm13, %v3324_v5, %v3327_v59  ;;  %vm16370_vm14 = vmmov %vm16368_vm9  ;;  %v3340_v4 = vsel %vm16371_vm7, %v3324_v5, %v3339_v26  ;;  %v13256_v16 = vmul.f32 %v3176_v55, %v3174_v14 }
 0x31f   : > { %v3338_v44 = vsel %vm16370_vm14, %v3318_v48, %v3321_v1  ;;  %vm16372_vm6 = vmmov %vm16371_vm7  ;;  %v16374_v43 = vor.u32 8388608, %v13177_v63  ;;  %v3514_v38 = vshrl.u32 %v3513_v39, 23  ;;  %vm16375_vm14 = vcmp.lt.s32.totalorder %v13201_v24, 2 }
 0x320   : > { %v9256_v56 = vadd.s32 4294967294, %v3474_v19  ;;  %v3344_v61 = vsel %vm16372_vm6, %v3327_v59, %v3343_v7  ;;  %vm16373_vm9 = vmmov %vm16372_vm6  ;;  %v3626_v59 = vsel %vm3625_vm5, %v3624_v54, 0  ;;  %10734 = vsinq.f32 %v13170_v9 }
 0x321   : > { %v3348_v47 = vsel %vm16373_vm9, %v3330_v60, %v3347_v30  ;;  %v13262_v27 = vshll.u32 %v16374_v43, 8  ;;  %v3345_v48 = vsel %vm16375_vm14, %v3342_v15, %v3344_v61  ;;  %vm16376_vm7 = vmmov %vm16375_vm14  ;;  %v3627_v19 = vshrl.u32 %v3626_v59, 5 }
 0x322   : > { %vm9257_vm13 = vcmp.lt.s32.totalorder %v9256_v56, 0  ;;  %v3349_v1 = vsel %vm16376_vm7, %v3346_v42, %v3348_v47  ;;  %vm16377_vm1 = vmmov %vm16376_vm7  ;;  %v13277_v26 = vmul.u32.u64.low %v13197_v22, %v3345_v48  ;;  %v13278_v15 = vmul.u32.u64.high %v13197_v22, %v3345_v48, %v13277_v26 }
 0x323   : > { %v3477_v5 = vsel %vm9257_vm13, 0, %v9256_v56  ;;  %v3341_v55 = vsel %vm16377_vm1, %v3338_v44, %v3340_v4  ;;  %v13272_v60 = vmul.u32.u64.low %v13197_v22, %v3349_v1  ;;  %v13273_v14 = vmul.u32.u64.high %v13197_v22, %v3349_v1, %v13272_v60 }
 0x324   : > { %v3478_v63 = vsub.s32 32, %v3477_v5  ;;  %v3479_v39 = vshll.u32 %v13212_v28, %v3477_v5  ;;  %v3482_v40 = vsub.s32 4294967266, %v3477_v5  ;;  %v3628_v7 = vand.u32 31, %v3626_v59 }
 0x325   : > { %v9258_v54 = vadd.s32 4294967169, %v3514_v38  ;;  %v3178_v42 = vxor.u32 2147483648, %v13256_v16  ;;  %v3357_v56 = vmul.u32 %v13197_v22, %v3341_v55  ;;  %vm3359_vm5 = vc.u32 %v13273_v14, %v13277_v26 }
 0x326   : > { %v3480_v24 = vshrl.u32 %v13195_v21, %v3478_v63  ;;  %v3483_v30 = vadd.s32 127, %v3482_v40  ;;  %v3629_v28 = vsub.s32 32, %v3628_v7  ;;  %v3631_v44 = vshll.u32 %v16167_v12, %v3628_v7 }
 0x327   : > { %vm3646_vm6 = vcmp.lt.s32.totalorder %v3627_v19, 1  ;;  %vm16105_vm9 = vcmp.lt.s32.totalorder %v12937_v49, 0  ;;  %v3634_v47 = vshll.u32 %v16161_v57, %v3628_v7  ;;  %v3637_v43 = vshll.u32 %v16163_v6, %v3628_v7 }
 0x328   : > { %v3481_v4 = vor.u32 %v3480_v24, %v3479_v39  ;;  %v3484_v61 = vshll.u32 %v3483_v30, 23  ;;  %v3360_v21 = vadd.s32 1, %v13278_v15  ;;  %v3630_v38 = vshrl.u32 %v16167_v12, %v3629_v28 }
 0x329   : > { %v3632_v22 = vshrl.u32 %v16161_v57, %v3629_v28  ;;  %v3635_v48 = vshrl.u32 %v16163_v6, %v3629_v28  ;;  %v3638_v5 = vshrl.u32 %v16164_v3, %v3629_v28  ;;  %v3640_v55 = vshll.u32 %v16164_v3, %v3628_v7 }
 0x32a   : > { %v3485_v1 = vor.u32 4788187, %v3484_v61  ;;  %v3488_v59 = vcvt.s32.f32 %v3481_v4  ;;  %v3361_v60 = vsel %vm3359_vm5, %v3360_v21, %v13278_v15  ;;  %v3641_v40 = vshrl.u32 %v16165_v33, %v3629_v28 }
 0x32b   : > { %v3633_v63 = vor.u32 %v3632_v22, %v3631_v44  ;;  %v3636_v39 = vor.u32 %v3635_v48, %v3634_v47  ;;  %v3362_v30 = vadd.s32 %v3361_v60, %v3357_v56  ;;  %v3639_v34 = vor.u32 %v3638_v5, %v3637_v43 }
 0x32c   : > { %v3486_v24 = vand.u32 2147483647, %v3485_v1  ;;  %v3643_v62 = vshll.u32 %v16165_v33, %v3628_v7  ;;  %v3642_v61 = vor.u32 %v3641_v40, %v3640_v55  ;;  %v3644_v4 = vshrl.u32 %v16166_v36, %v3629_v28 }
 0x32d   : > { %vm3648_vm13 = vcmp.lt.s32.totalorder %v3627_v19, 3  ;;  %vm3649_vm14 = vcmp.lt.s32.totalorder %v3627_v19, 4  ;;  %v3363_v58 = vadd.s32 536870912, %v3362_v30  ;;  %vm3647_vm7 = vcmp.lt.s32.totalorder %v3627_v19, 2 }
 0x32e   : > { %v3489_v51 = vmul.f32 %v3488_v59, %v3486_v24  ;;  %v3651_v37 = vsel %vm3649_vm14, %v3639_v34, 2102212464  ;;  %v3645_v15 = vor.u32 %v3644_v4, %v3643_v62  ;;  %v3654_v44 = vsel %vm3646_vm6, %v3633_v63, %v3636_v39 }
 0x32f   : > { %v3655_v47 = vsel %vm3649_vm14, %v3642_v61, 920167782  ;;  %v16378_v56 = vand.u32 2147483647, %v13150_v20  ;;  %v13308_v21 = vshrl.u32 %v3363_v58, 30  ;;  %v3650_v7 = vsel %vm3646_vm6, %v3630_v38, %v3633_v63 }
 0x330   : > { %v3652_v28 = vsel %vm3648_vm13, %v3636_v39, %v3651_v37  ;;  %v3656_v22 = vsel %vm3648_vm13, %v3639_v34, %v3655_v47  ;;  %v3179_v48 = vsel %vm16105_vm9, %v3178_v42, %v13256_v16  ;;  %v3658_v1 = vsel %vm3646_vm6, %v3636_v39, %v3639_v34 }
 0x331   : > { %v3517_v43 = vand.u32 8388607, %v16378_v56  ;;  %16379 = vst [vmem:[#allocation127_spill] sm:$0xff] %v13308_v21  ;;  %v3657_v62 = vsel %vm3647_vm7, %v3654_v44, %v3656_v22  ;;  %v3659_v59 = vsel %vm3649_vm14, %v3645_v15, 1326507024  ;;  %v3490_v5 = vxor.u32 2147483648, %v3489_v51 }
 0x332   : > { %v3365_v58 = vshll.u32 %v13308_v21, 30  ;;  %v3660_v55 = vsel %vm3648_vm13, %v3642_v61, %v3659_v59  ;;  %v3520_v38 = vadd.s32 1, %v9258_v54  ;;  %v3653_v37 = vsel %vm3647_vm7, %v3650_v7, %v3652_v28 }
 0x333   : > { %v3661_v60 = vsel %vm3647_vm7, %v3658_v1, %v3660_v55  ;;  %v13324_v63 = vmul.u32.u64.low %v13262_v27, %v3657_v62  ;;  %v13325_v40 = vmul.u32.u64.high %v13262_v27, %v3657_v62, %v13324_v63  ;;  %v3518_v39 = vor.u32 8388608, %v3517_v43 }
 0x334   : > { %v13328_v16 = vsub.s32 %v3362_v30, %v3365_v58  ;;  %v13331_v34 = vmul.u32.u64.low %v13262_v27, %v3661_v60  ;;  %v13332_v42 = vmul.u32.u64.high %v13262_v27, %v3661_v60, %v13331_v34  ;;  %v16380_v54 = vand.u32 2147483647, %v12937_v49 }
 0x335   : > { %v16381_v24 = vmov 0  ;;  %vm16096_vm5 = vcmp.lt.s32.totalorder %v12975_v32, 0  ;;  %vm3521_vm6 = vcmp.gt.s32.totalorder %v3520_v38, 0  ;;  %v3669_v61 = vmul.u32 %v13262_v27, %v3653_v37  ;;  %v13364_v27 = vld [vmem:[%s15863_s3 + $0x8] ss:$0 sm:$0xff] }
 0x336   : > { %vm13337_vm1 = vcmp.le.f32.partialorder %v16380_v54, 0.7853982  ;;  %v3368_v30 = vsub.s32 0, %v13328_v16  ;;  %v3522_v4 = vsel %vm3521_vm6, %v3520_v38, 0  ;;  %v13351_v9 = vsel %vm16096_vm5, %v3490_v5, %v3489_v51 }
 0x337   : > { %v16382_v24 = vsel %vm13337_vm1, 4294967295, %v16381_v24  ;;  %v13345_v19 = vsel %vm13337_vm1, %v12937_v49, %v3179_v48  ;;  %v3358_v15 = vadd.s32 %v13277_v26, %v13273_v14  ;;  %v3672_v44 = vadd.s32 1, %v13325_v40 }
 0x338   : > { %16383 = vst [vmem:[#allocation128_spill] sm:$0xff] %v16382_v24  ;;  %v3524_v47 = vand.u32 31, %v3522_v4  ;;  %v9251_v56 = vmin.u32 %v3368_v30, %v13328_v16  ;;  %vm3671_vm13 = vc.u32 %v13332_v42, %v13324_v63  ;;  %v13359_v43 = vshll.u32 %v3518_v39, 8 }
 0x339   : > { %v13368_v51 = vadd.f32 %v13364_v27, %v12791_v31  ;;  %v3673_v14 = vsel %vm3671_vm13, %v3672_v44, %v13325_v40  ;;  %v3523_v26 = vshrl.u32 %v3522_v4, 5  ;;  %v13385_v44 = vpop.eup %10734  ;;  %10736 = vcosq.f32 %v13345_v19 }
 0x33a   : > { %v3525_v7 = vsub.s32 32, %v3524_v47  ;;  %v3527_v28 = vshll.u32 %v16167_v12, %v3524_v47  ;;  %v3370_v22 = vclz %v9251_v56  ;;  %v3674_v48 = vadd.s32 %v3673_v14, %v3669_v61  ;;  %16385 = vst [vmem:[#allocation130_spill] sm:$0xff] %v13385_v44 }
 0x33b   : > { %v3530_v62 = vshll.u32 %v16161_v57, %v3524_v47  ;;  %v3533_v1 = vshll.u32 %v16163_v6, %v3524_v47  ;;  %v3536_v31 = vshll.u32 %v16164_v3, %v3524_v47  ;;  %v3539_v60 = vshll.u32 %v16165_v33, %v3524_v47 }
 0x33c   : > { %v3528_v59 = vshrl.u32 %v16161_v57, %v3525_v7  ;;  %v3531_v5 = vshrl.u32 %v16163_v6, %v3525_v7  ;;  %v3534_v58 = vshrl.u32 %v16164_v3, %v3525_v7  ;;  %v9252_v55 = vadd.s32 4294967294, %v3370_v22 }
 0x33d   : > { %v3675_v38 = vadd.s32 536870912, %v3674_v48  ;;  %v3537_v37 = vshrl.u32 %v16165_v33, %v3525_v7  ;;  %v3526_v40 = vshrl.u32 %v16167_v12, %v3525_v7  ;;  %v3540_v39 = vshrl.u32 %v16166_v36, %v3525_v7 }
 0x33e   : > { %v3529_v34 = vor.u32 %v3528_v59, %v3527_v28  ;;  %vm9253_vm14 = vcmp.lt.s32.totalorder %v9252_v55, 0  ;;  %v3532_v61 = vor.u32 %v3531_v5, %v3530_v62  ;;  %v3535_v4 = vor.u32 %v3534_v58, %v3533_v1 }
 0x33f   : > { %v13383_v30 = vshrl.u32 %v3675_v38, 30  ;;  %v3373_v56 = vsel %vm9253_vm14, 0, %v9252_v55  ;;  %v3538_v14 = vor.u32 %v3537_v37, %v3536_v31  ;;  %v3541_v22 = vor.u32 %v3540_v39, %v3539_v60 }
 0x340   : > { %vm3542_vm7 = vcmp.lt.s32.totalorder %v3523_v26, 1  ;;  %v3374_v21 = vsub.s32 32, %v3373_v56  ;;  %v3375_v47 = vshll.u32 %v13328_v16, %v3373_v56  ;;  %v3378_v24 = vsub.s32 4294967266, %v3373_v56 }
 0x341   : > { %16384 = vst [vmem:[#allocation129_spill] sm:$0xff] %v13383_v30  ;;  %v3677_v28 = vshll.u32 %v13383_v30, 30  ;;  %vm3543_vm6 = vcmp.lt.s32.totalorder %v3523_v26, 2  ;;  %vm3544_vm13 = vcmp.lt.s32.totalorder %v3523_v26, 3  ;;  %vm3545_vm5 = vcmp.lt.s32.totalorder %v3523_v26, 4 }
 0x342   : > { %v3546_v7 = vsel %vm3542_vm7, %v3526_v40, %v3529_v34  ;;  %v3376_v59 = vshrl.u32 %v3358_v15, %v3374_v21  ;;  %v3379_v62 = vadd.s32 127, %v3378_v24  ;;  %v3547_v5 = vsel %vm3545_vm5, %v3535_v4, 2102212464 }
 0x343   : > { %v3678_v1 = vsub.s32 %v3674_v48, %v3677_v28  ;;  %v3548_v58 = vsel %vm3544_vm13, %v3532_v61, %v3547_v5  ;;  %v3550_v31 = vsel %vm3542_vm7, %v3529_v34, %v3532_v61  ;;  %v3551_v55 = vsel %vm3545_vm5, %v3538_v14, 920167782 }
 0x344   : > { %v3555_v38 = vsel %vm3545_vm5, %v3541_v22, 1326507024  ;;  %v3377_v37 = vor.u32 %v3376_v59, %v3375_v47  ;;  %v3380_v16 = vshll.u32 %v3379_v62, 23  ;;  %v3554_v39 = vsel %vm3542_vm7, %v3532_v61, %v3535_v4 }
 0x345   : > { %v3680_v60 = vsub.s32 0, %v3678_v1  ;;  %v3549_v56 = vsel %vm3543_vm6, %v3546_v7, %v3548_v58  ;;  %v3552_v54 = vsel %vm3544_vm13, %v3535_v4, %v3551_v55  ;;  %v3556_v21 = vsel %vm3544_vm13, %v3538_v14, %v3555_v38 }
 0x346   : > { %v3825_v24 = vand.u32 2139095040, %v13368_v51  ;;  %v3381_v15 = vor.u32 4788187, %v3380_v16  ;;  %v3384_v48 = vcvt.s32.f32 %v3377_v37  ;;  %v3553_v34 = vsel %vm3543_vm6, %v3550_v31, %v3552_v54 }
 0x347   : > { %v9263_v40 = vmin.u32 %v3680_v60, %v3678_v1  ;;  %v3557_v22 = vsel %vm3543_vm6, %v3554_v39, %v3556_v21  ;;  %v13400_v47 = vmul.u32.u64.low %v13359_v43, %v3553_v34  ;;  %v13401_v28 = vmul.u32.u64.high %v13359_v43, %v3553_v34, %v13400_v47 }
 0x348   : > { %v3826_v61 = vshrl.u32 %v3825_v24, 23  ;;  %v3382_v7 = vand.u32 2147483647, %v3381_v15  ;;  %v13405_v4 = vmul.u32.u64.low %v13359_v43, %v3557_v22  ;;  %v13406_v14 = vmul.u32.u64.high %v13359_v43, %v3557_v22, %v13405_v4 }
 0x349   : > { %v3682_v59 = vclz %v9263_v40  ;;  %v13411_v54 = vadd.f32 %v13364_v27, %v12875_v0  ;;  %10738 = vsinq.f32 %v13345_v19  ;;  %v16386_v26 = vand.u32 2147483647, %v12975_v32 }
 0x34a   : > { %v9270_v62 = vadd.s32 4294967169, %v3826_v61  ;;  %v16387_v5 = vmov 0  ;;  %v16390_v31 = vand.u32 2147483647, %v13368_v51  ;;  %v3565_v0 = vmul.u32 %v13359_v43, %v3549_v56 }
 0x34b   : > { %vm13416_vm5 = vcmp.le.f32.partialorder %v16386_v26, 0.7853982  ;;  %v9264_v58 = vadd.s32 4294967294, %v3682_v59  ;;  %v3568_v37 = vadd.s32 1, %v13401_v28  ;;  %v13428_v16 = vmul.f32 %v3384_v48, %v3382_v7  ;;  %v13442_v26 = vpop.eup %10736 }
 0x34c   : > { %v16388_v5 = vsel %vm13416_vm5, 4294967295, %v16387_v5  ;;  %v3829_v55 = vand.u32 8388607, %v16390_v31  ;;  %v3494_v38 = vsel %vm13416_vm5, %v12975_v32, %v13351_v9  ;;  %v3832_v19 = vadd.s32 1, %v9270_v62  ;;  %16391 = vst [vmem:[#allocation132_spill] sm:$0xff] %v13442_v26 }
 0x34d   : > { %16389 = vst [vmem:[#allocation131_spill] sm:$0xff] %v16388_v5  ;;  %v3670_v60 = vadd.s32 %v13324_v63, %v13332_v42  ;;  %vm9265_vm14 = vcmp.lt.s32.totalorder %v9264_v58, 0  ;;  %vm3567_vm7 = vc.u32 %v13406_v14, %v13400_v47  ;;  %v3721_v9 = vand.u32 2139095040, %v13411_v54 }
 0x34e   : > { %v3685_v39 = vsel %vm9265_vm14, 0, %v9264_v58  ;;  %v3569_v21 = vsel %vm3567_vm7, %v3568_v37, %v13401_v28  ;;  %vm3833_vm6 = vcmp.gt.s32.totalorder %v3832_v19, 0  ;;  %v3830_v15 = vor.u32 8388608, %v3829_v55 }
 0x34f   : > { %v3686_v24 = vsub.s32 32, %v3685_v39  ;;  %v3687_v43 = vshll.u32 %v3678_v1, %v3685_v39  ;;  %v3690_v56 = vsub.s32 4294967266, %v3685_v39  ;;  %10740 = vcosq.f32 %v3494_v38 }
 0x350   : > { %v3570_v48 = vadd.s32 %v3569_v21, %v3565_v0  ;;  %v3834_v40 = vsel %vm3833_vm6, %v3832_v19, 0  ;;  %10742 = vsinq.f32 %v3494_v38  ;;  %v3386_v22 = vxor.u32 2147483648, %v13428_v16 }
 0x351   : > { %v3688_v34 = vshrl.u32 %v3670_v60, %v3686_v24  ;;  %v3691_v63 = vadd.s32 127, %v3690_v56  ;;  %v13436_v42 = vshrl.u32 %v3834_v40, 5  ;;  %v3836_v7 = vand.u32 31, %v3834_v40 }
 0x352   : > { %v3571_v61 = vadd.s32 536870912, %v3570_v48  ;;  %v13440_v62 = vshll.u32 %v3830_v15, 8  ;;  %v3722_v1 = vshrl.u32 %v3721_v9, 23  ;;  %vm16403_vm6 = vcmp.lt.s32.totalorder %v13006_v45, 0 }
 0x353   : > { %v3689_v59 = vor.u32 %v3688_v34, %v3687_v43  ;;  %v3692_v4 = vshll.u32 %v3691_v63, 23  ;;  %v3837_v31 = vsub.s32 32, %v3836_v7  ;;  %v3839_v55 = vshll.u32 %v16167_v12, %v3836_v7  ;;  %v13448_v0 = vpop.eup %10738 }
 0x354   : > { %v13444_v58 = vshrl.u32 %v3571_v61, 30  ;;  %v3842_v38 = vshll.u32 %v16161_v57, %v3836_v7  ;;  %16393 = vst [vmem:[#allocation134_spill] sm:$0xff] %v13448_v0  ;;  %v3845_v19 = vshll.u32 %v16163_v6, %v3836_v7  ;;  %v3848_v60 = vshll.u32 %v16164_v3, %v3836_v7 }
 0x355   : > { %v3693_v37 = vor.u32 4788187, %v3692_v4  ;;  %vm3854_vm14 = vcmp.lt.s32.totalorder %v13436_v42, 1  ;;  %v3696_v39 = vcvt.s32.f32 %v3689_v59  ;;  %v3840_v9 = vshrl.u32 %v16161_v57, %v3837_v31 }
 0x356   : > { %16392 = vst [vmem:[#allocation133_spill] sm:$0xff] %v13444_v58  ;;  %v3573_v21 = vshll.u32 %v13444_v58, 30  ;;  %v3843_v24 = vshrl.u32 %v16163_v6, %v3837_v31  ;;  %v3838_v43 = vshrl.u32 %v16167_v12, %v3837_v31  ;;  %v3846_v56 = vshrl.u32 %v16164_v3, %v3837_v31 }
 0x357   : > { %v3849_v15 = vshrl.u32 %v16165_v33, %v3837_v31  ;;  %v3851_v40 = vshll.u32 %v16165_v33, %v3836_v7  ;;  %v16394_v34 = vand.u32 2147483647, %v13006_v45  ;;  %v16395_v63 = vmov 0 }
 0x358   : > { %v13467_v61 = vsub.s32 %v3570_v48, %v3573_v21  ;;  %v3841_v59 = vor.u32 %v3840_v9, %v3839_v55  ;;  %v3844_v4 = vor.u32 %v3843_v24, %v3842_v38  ;;  %v3852_v28 = vshrl.u32 %v16166_v36, %v3837_v31 }
 0x359   : > { %vm13463_vm7 = vcmp.le.f32.partialorder %v16394_v34, 0.7853982  ;;  %v3694_v30 = vand.u32 2147483647, %v3693_v37  ;;  %v3847_v58 = vor.u32 %v3846_v56, %v3845_v19  ;;  %v3850_v5 = vor.u32 %v3849_v15, %v3848_v60  ;;  %v13471_v32 = vpop.eup %10740 }
 0x35a   : > { %v16396_v63 = vsel %vm13463_vm7, 4294967295, %v16395_v63  ;;  %16398 = vst [vmem:[#allocation136_spill] sm:$0xff] %v13471_v32  ;;  %v3576_v7 = vsub.s32 0, %v13467_v61  ;;  %v3853_v44 = vor.u32 %v3852_v28, %v3851_v40  ;;  %vm3857_vm13 = vcmp.lt.s32.totalorder %v13436_v42, 4  ;;  %v13476_v48 = vpop.eup %10742 }
 0x35b   : > { %16397 = vst [vmem:[#allocation135_spill] sm:$0xff] %v16396_v63  ;;  %16399 = vst [vmem:[#allocation137_spill] sm:$0xff] %v13476_v48  ;;  %v3858_v55 = vsel %vm3854_vm14, %v3838_v43, %v3841_v59  ;;  %v3859_v31 = vsel %vm3857_vm13, %v3847_v58, 2102212464  ;;  %v3862_v38 = vsel %vm3854_vm14, %v3841_v59, %v3844_v4  ;;  %v3863_v37 = vsel %vm3857_vm13, %v3850_v5, 920167782 }
 0x35c   : > { %v9259_v19 = vmin.u32 %v3576_v7, %v13467_v61  ;;  %vm16400_vm5 = vcmp.lt.s32.totalorder %v13436_v42, 3  ;;  %v3866_v21 = vsel %vm3854_vm14, %v3844_v4, %v3847_v58  ;;  %v3697_v9 = vmul.f32 %v3696_v39, %v3694_v30 }
 0x35d   : > { %v3860_v28 = vsel %vm16400_vm5, %v3844_v4, %v3859_v31  ;;  %vm16401_vm9 = vmmov %vm16400_vm5  ;;  %vm16402_vm1 = vcmp.lt.s32.totalorder %v13436_v42, 2  ;;  %v3867_v43 = vsel %vm3857_vm13, %v3853_v44, 1326507024  ;;  %v9266_v56 = vadd.s32 4294967169, %v3722_v1 }
 0x35e   : > { %v3864_v60 = vsel %vm16401_vm9, %v3847_v58, %v3863_v37  ;;  %v3387_v15 = vsel %vm16403_vm6, %v3386_v22, %v13428_v16  ;;  %v3578_v40 = vclz %v9259_v19  ;;  %vm16404_vm3 = vmmov %vm16400_vm5  ;;  %v13499_v59 = vadd.f32 %v13364_v27, %v12967_v41 }
 0x35f   : > { %v3865_v24 = vsel %vm16402_vm1, %v3862_v38, %v3864_v60  ;;  %v3868_v34 = vsel %vm16404_vm3, %v3850_v5, %v3867_v43  ;;  %vm16405_vm9 = vmmov %vm16402_vm1  ;;  %v13518_v41 = vsel %vm13463_vm7, %v13006_v45, %v3387_v15  ;;  %v3698_v4 = vxor.u32 2147483648, %v3697_v9 }
 0x360   : > { %v3861_v30 = vsel %vm16405_vm9, %v3858_v55, %v3860_v28  ;;  %vm16406_vm5 = vmmov %vm16402_vm1  ;;  %v13506_v44 = vmul.u32.u64.low %v13440_v62, %v3865_v24  ;;  %v13507_v1 = vmul.u32.u64.high %v13440_v62, %v3865_v24, %v13506_v44  ;;  %v9260_v16 = vadd.s32 4294967294, %v3578_v40 }
 0x361   : > { %v3869_v58 = vsel %vm16406_vm5, %v3866_v21, %v3868_v34  ;;  %v16109_v5 = vand.u32 2147483647, %v13499_v59  ;;  %v16407_v42 = vand.u32 2147483647, %v13411_v54  ;;  %v3728_v55 = vadd.s32 1, %v9266_v56 }
 0x362   : > { %v13511_v22 = vmul.u32.u64.low %v13440_v62, %v3869_v58  ;;  %v13512_v39 = vmul.u32.u64.high %v13440_v62, %v3869_v58, %v13511_v22  ;;  %v3566_v31 = vadd.s32 %v13400_v47, %v13406_v14  ;;  %vm9261_vm3 = vcmp.lt.s32.totalorder %v9260_v16, 0 }
 0x363   : > { %v3725_v7 = vand.u32 8388607, %v16407_v42  ;;  %v3877_v38 = vmul.u32 %v13440_v62, %v3861_v30  ;;  %v4033_v37 = vand.u32 2139095040, %v13499_v59  ;;  %v3581_v19 = vsel %vm9261_vm3, 0, %v9260_v16 }
 0x364   : > { %v3880_v28 = vadd.s32 1, %v13507_v1  ;;  %vm3729_vm1 = vcmp.gt.s32.totalorder %v3728_v55, 0  ;;  %10744 = vcosq.f32 %v13518_v41  ;;  %v3582_v21 = vsub.s32 32, %v3581_v19 }
 0x365   : > { %v3726_v60 = vor.u32 8388608, %v3725_v7  ;;  %v3583_v24 = vshll.u32 %v13467_v61, %v3581_v19  ;;  %v3586_v43 = vsub.s32 4294967266, %v3581_v19  ;;  %vm16408_vm13 = vcmp.lt.s32.totalorder %v13083_v10, 0 }
 0x366   : > { %v13531_v56 = vsel %vm16408_vm13, %v3698_v4, %v3697_v9  ;;  %vm3879_vm14 = vc.u32 %v13512_v39, %v13506_v44  ;;  %v3730_v47 = vsel %vm3729_vm1, %v3728_v55, 0  ;;  %v13537_v14 = vand.u32 8388607, %v16109_v5 }
 0x367   : > { %v3584_v62 = vshrl.u32 %v3566_v31, %v3582_v21  ;;  %v3587_v15 = vadd.s32 127, %v3586_v43  ;;  %v3881_v40 = vsel %vm3879_vm14, %v3880_v28, %v13507_v1  ;;  %v3731_v34 = vshrl.u32 %v3730_v47, 5 }
 0x368   : > { %v3882_v30 = vadd.s32 %v3881_v40, %v3877_v38  ;;  %v3732_v61 = vand.u32 31, %v3730_v47  ;;  %v13540_v58 = vshll.u32 %v3726_v60, 8  ;;  %v4034_v16 = vshrl.u32 %v4033_v37, 23 }
 0x369   : > { %v3585_v9 = vor.u32 %v3584_v62, %v3583_v24  ;;  %v3588_v22 = vshll.u32 %v3587_v15, 23  ;;  %vm3750_vm6 = vcmp.lt.s32.totalorder %v3731_v34, 1  ;;  %vm3751_vm9 = vcmp.lt.s32.totalorder %v3731_v34, 2 }
 0x36a   : > { %v3883_v4 = vadd.s32 536870912, %v3882_v30  ;;  %v3733_v42 = vsub.s32 32, %v3732_v61  ;;  %v3735_v7 = vshll.u32 %v16167_v12, %v3732_v61  ;;  %v3738_v55 = vshll.u32 %v16161_v57, %v3732_v61 }
 0x36b   : > { %vm16123_vm5 = vcmp.lt.s32.totalorder %v13150_v20, 0  ;;  %v3589_v31 = vor.u32 4788187, %v3588_v22  ;;  %v3592_v1 = vcvt.s32.f32 %v3585_v9  ;;  %v3741_v38 = vshll.u32 %v16163_v6, %v3732_v61 }
 0x36c   : > { %v3744_v19 = vshll.u32 %v16164_v3, %v3732_v61  ;;  %v13547_v28 = vshrl.u32 %v3883_v4, 30  ;;  %v3734_v37 = vshrl.u32 %v16167_v12, %v3733_v42  ;;  %v3736_v60 = vshrl.u32 %v16161_v57, %v3733_v42 }
 0x36d   : > { %v3739_v21 = vshrl.u32 %v16163_v6, %v3733_v42  ;;  %v3590_v24 = vand.u32 2147483647, %v3589_v31  ;;  %v3742_v43 = vshrl.u32 %v16164_v3, %v3733_v42  ;;  %v3745_v47 = vshrl.u32 %v16165_v33, %v3733_v42 }
 0x36e   : > { %16409 = vst [vmem:[#allocation138_spill] sm:$0xff] %v13547_v28  ;;  %v3747_v62 = vshll.u32 %v16165_v33, %v3732_v61  ;;  %v16410_v15 = vand.u32 2147483647, %v13083_v10  ;;  %v16411_v40 = vmov 0  ;;  %v16413_v9 = vand.u32 2147483647, %v13150_v20  ;;  %v13569_v48 = vpop.eup %10744 }
 0x36f   : > { %v3885_v4 = vshll.u32 %v13547_v28, 30  ;;  %v3737_v31 = vor.u32 %v3736_v60, %v3735_v7  ;;  %v3740_v5 = vor.u32 %v3739_v21, %v3738_v55  ;;  %v3748_v32 = vshrl.u32 %v16166_v36, %v3733_v42 }
 0x370   : > { %vm13557_vm3 = vcmp.le.f32.partialorder %v16410_v15, 0.7853982  ;;  %vm13563_vm1 = vcmp.le.f32.partialorder %v16413_v9, 0.7853982  ;;  %v3593_v61 = vmul.f32 %v3592_v1, %v3590_v24  ;;  %v3743_v63 = vor.u32 %v3742_v43, %v3741_v38 }
 0x371   : > { %v16412_v40 = vsel %vm13557_vm3, 4294967295, %v16411_v40  ;;  %v3746_v15 = vor.u32 %v3745_v47, %v3744_v19  ;;  %vm3752_vm13 = vcmp.lt.s32.totalorder %v3731_v34, 3  ;;  %v13571_v45 = vsub.s32 %v3882_v30, %v3885_v4 }
 0x372   : > { %v3749_v26 = vor.u32 %v3748_v32, %v3747_v62  ;;  %vm3753_vm14 = vcmp.lt.s32.totalorder %v3731_v34, 4  ;;  %v3754_v9 = vsel %vm3750_vm6, %v3734_v37, %v3737_v31  ;;  %v3594_v0 = vxor.u32 2147483648, %v3593_v61 }
 0x373   : > { %v3755_v49 = vsel %vm3753_vm14, %v3743_v63, 2102212464  ;;  %v3758_v28 = vsel %vm3750_vm6, %v3737_v31, %v3740_v5  ;;  %v3759_v7 = vsel %vm3753_vm14, %v3746_v15, 920167782  ;;  %v3888_v55 = vsub.s32 0, %v13571_v45 }
 0x374   : > { %v3756_v42 = vsel %vm3752_vm13, %v3740_v5, %v3755_v49  ;;  %v3760_v1 = vsel %vm3752_vm13, %v3743_v63, %v3759_v7  ;;  %v3762_v38 = vsel %vm3750_vm6, %v3740_v5, %v3743_v63  ;;  %v3763_v19 = vsel %vm3753_vm14, %v3749_v26, 1326507024 }
 0x375   : > { %v3761_v30 = vsel %vm3751_vm9, %v3758_v28, %v3760_v1  ;;  %v9278_v32 = vadd.s32 4294967169, %v4034_v16  ;;  %v13582_v37 = vadd.f32 %v13364_v27, %v13045_v46  ;;  %v3595_v60 = vsel %vm16123_vm5, %v3594_v0, %v3593_v61 }
 0x376   : > { %v9271_v21 = vmin.u32 %v3888_v55, %v13571_v45  ;;  %v3764_v24 = vsel %vm3752_vm13, %v3746_v15, %v3763_v19  ;;  %v4038_v49 = vor.u32 8388608, %v13537_v14  ;;  %v3757_v43 = vsel %vm3751_vm9, %v3754_v9, %v3756_v42 }
 0x377   : > { %v3765_v63 = vsel %vm3751_vm9, %v3762_v38, %v3764_v24  ;;  %v13592_v26 = vmul.u32.u64.low %v13540_v58, %v3761_v30  ;;  %v13593_v5 = vmul.u32.u64.high %v13540_v58, %v3761_v30, %v13592_v26  ;;  %10746 = vsinq.f32 %v13518_v41 }
 0x378   : > { %v3890_v46 = vclz %v9271_v21  ;;  %v13598_v27 = vmul.u32.u64.low %v13540_v58, %v3765_v63  ;;  %v13599_v0 = vmul.u32.u64.high %v13540_v58, %v3765_v63, %v13598_v27  ;;  %v13605_v14 = vsel %vm13557_vm3, %v13083_v10, %v13531_v56 }
 0x379   : > { %v13610_v34 = vsel %vm13563_vm1, %v13150_v20, %v3595_v60  ;;  %v3878_v16 = vadd.s32 %v13506_v44, %v13512_v39  ;;  %v4040_v41 = vadd.s32 1, %v9278_v32  ;;  %v3773_v47 = vmul.u32 %v13540_v58, %v3757_v43 }
 0x37a   : > { %v9272_v28 = vadd.s32 4294967294, %v3890_v46  ;;  %v13615_v62 = vshll.u32 %v4038_v49, 8  ;;  %v3776_v4 = vadd.s32 1, %v13593_v5  ;;  %v16129_v56 = vand.u32 2147483647, %v13582_v37 }
 0x37b   : > { %vm4041_vm6 = vcmp.gt.s32.totalorder %v4040_v41, 0  ;;  %v16121_v61 = vmov 0   ;;  %vm3775_vm13 = vc.u32 %v13599_v0, %v13592_v26  ;;  %vm16124_vm14 = vcmp.lt.s32.totalorder %v13368_v51, 0 }
 0x37c   : > { %4314 = vmatprep.mubr.bf16.mxu1 %v16121_v61  ;;  %10273 = vset.pattern.permute.xlu0 %v16121_v61  ;;  %vm9273_vm9 = vcmp.lt.s32.totalorder %v9272_v28, 0  ;;  %v4042_v44 = vsel %vm4041_vm6, %v4040_v41, 0  ;;  %v3777_v15 = vsel %vm3775_vm13, %v3776_v4, %v13593_v5  ;;  %10748 = vcosq.f32 %v13605_v14 }
 0x37d   : > { %10274 = vset.pattern.permute.xlu1 %v16121_v61  ;;  %v3893_v58 = vsel %vm9273_vm9, 0, %v9272_v28  ;;  %v4043_v9 = vshrl.u32 %v4042_v44, 5  ;;  %v4044_v7 = vand.u32 31, %v4042_v44  ;;  %v3778_v38 = vadd.s32 %v3777_v15, %v3773_v47 }
 0x37e   : > { %v3894_v55 = vsub.s32 32, %v3893_v58  ;;  %v3895_v42 = vshll.u32 %v13571_v45, %v3893_v58  ;;  %v3898_v1 = vsub.s32 4294967266, %v3893_v58  ;;  %10750 = vsinq.f32 %v13605_v14 }
 0x37f   : > { %v4045_v30 = vsub.s32 32, %v4044_v7  ;;  %v4047_v19 = vshll.u32 %v16167_v12, %v4044_v7  ;;  %v4050_v32 = vshll.u32 %v16161_v57, %v4044_v7  ;;  %v4053_v60 = vshll.u32 %v16163_v6, %v4044_v7 }
 0x380   : > { %v3896_v21 = vshrl.u32 %v3878_v16, %v3894_v55  ;;  %v3899_v24 = vadd.s32 127, %v3898_v1  ;;  %v3779_v49 = vadd.s32 536870912, %v3778_v38  ;;  %v4056_v43 = vshll.u32 %v16164_v3, %v4044_v7 }
 0x381   : > { %v4046_v63 = vshrl.u32 %v16167_v12, %v4045_v30  ;;  %v4048_v5 = vshrl.u32 %v16161_v57, %v4045_v30  ;;  %v4051_v45 = vshrl.u32 %v16163_v6, %v4045_v30  ;;  %v4054_v46 = vshrl.u32 %v16164_v3, %v4045_v30  ;;  %v13636_v27 = vpop.eup %10746 }
 0x382   : > { %v3897_v41 = vor.u32 %v3896_v21, %v3895_v42  ;;  %v3900_v28 = vshll.u32 %v3899_v24, 23  ;;  %v13638_v47 = vshrl.u32 %v3779_v49, 30  ;;  %v4057_v16 = vshrl.u32 %v16165_v33, %v4045_v30 }
 0x383   : > { %v4049_v4 = vor.u32 %v4048_v5, %v4047_v19  ;;  %v4052_v44 = vor.u32 %v4051_v45, %v4050_v32  ;;  %v4055_v58 = vor.u32 %v4054_v46, %v4053_v60  ;;  %v4059_v15 = vshll.u32 %v16165_v33, %v4044_v7 }
 0x384   : > { %v3901_v55 = vor.u32 4788187, %v3900_v28  ;;  %v3904_v1 = vcvt.s32.f32 %v3897_v41  ;;  %v3781_v61 = vshll.u32 %v13638_v47, 30  ;;  %v4058_v39 = vor.u32 %v4057_v16, %v4056_v43 }
 0x385   : > { %v4060_v31 = vshrl.u32 %v16166_v36, %v4045_v30  ;;  %vm4062_vm6 = vcmp.lt.s32.totalorder %v4043_v9, 1  ;;  %vm4063_vm9 = vcmp.lt.s32.totalorder %v4043_v9, 2  ;;  %vm4064_vm13 = vcmp.lt.s32.totalorder %v4043_v9, 3 }
 0x386   : > { %v3902_v42 = vand.u32 2147483647, %v3901_v55  ;;  %v13645_v21 = vsub.s32 %v3778_v38, %v3781_v61  ;;  %vm4065_vm5 = vcmp.lt.s32.totalorder %v4043_v9, 4  ;;  %v4066_v19 = vsel %vm4062_vm6, %v4046_v63, %v4049_v4 }
 0x387   : > { %v4061_v32 = vor.u32 %v4060_v31, %v4059_v15  ;;  %v4067_v7 = vsel %vm4065_vm5, %v4055_v58, 2102212464  ;;  %v4070_v60 = vsel %vm4062_vm6, %v4049_v4, %v4052_v44  ;;  %v4071_v24 = vsel %vm4065_vm5, %v4058_v39, 920167782 }
 0x388   : > { %v3905_v49 = vmul.f32 %v3904_v1, %v3902_v42  ;;  %v3784_v5 = vsub.s32 0, %v13645_v21  ;;  %v4068_v43 = vsel %vm4064_vm13, %v4052_v44, %v4067_v7  ;;  %v4072_v30 = vsel %vm4064_vm13, %v4055_v58, %v4071_v24 }
 0x389   : > { %v4073_v45 = vsel %vm4063_vm9, %v4070_v60, %v4072_v30  ;;  %v4074_v61 = vsel %vm4062_vm6, %v4052_v44, %v4055_v58  ;;  %v4075_v38 = vsel %vm4065_vm5, %v4061_v32, 1326507024  ;;  %v3933_v63 = vand.u32 8388607, %v16129_v56 }
 0x38a   : > { %v3906_v31 = vxor.u32 2147483648, %v3905_v49  ;;  %v9267_v46 = vmin.u32 %v3784_v5, %v13645_v21  ;;  %v4069_v41 = vsel %vm4063_vm9, %v4066_v19, %v4068_v43  ;;  %v4076_v28 = vsel %vm4064_vm13, %v4058_v39, %v4075_v38 }
 0x38b   : > { %v4077_v16 = vsel %vm4063_vm9, %v4074_v61, %v4076_v28  ;;  %v13661_v4 = vmul.u32.u64.low %v13615_v62, %v4073_v45  ;;  %v13662_v15 = vmul.u32.u64.high %v13615_v62, %v4073_v45, %v13661_v4  ;;  %v16416_v55 = vand.u32 2139095040, %v13582_v37 }
 0x38c   : > { %v3786_v58 = vclz %v9267_v46  ;;  %v13668_v1 = vmul.u32.u64.low %v13615_v62, %v4077_v16  ;;  %v13669_v42 = vmul.u32.u64.high %v13615_v62, %v4077_v16, %v13668_v1  ;;  %v16417_v39 = vand.u32 2147483647, %v13368_v51 }
 0x38d   : > { %v3930_v44 = vshrl.u32 %v16416_v55, 23  ;;  %v16418_v9 = vmov 0  ;;  %v3907_v19 = vsel %vm16124_vm14, %v3906_v31, %v3905_v49  ;;  %10752 = vcosq.f32 %v13610_v34 }
 0x38e   : > { %vm13674_vm5 = vcmp.le.f32.partialorder %v16417_v39, 0.7853982  ;;  %v9268_v7 = vadd.s32 4294967294, %v3786_v58  ;;  %v4085_v60 = vmul.u32 %v13615_v62, %v4069_v41  ;;  %v16420_v24 = vsub.s32 4, %v11275_v50 }
 0x38f   : > { %v16419_v9 = vsel %vm13674_vm5, 4294967295, %v16418_v9  ;;  %v9274_v32 = vadd.s32 4294967169, %v3930_v44  ;;  %vm16421_vm6 = vcmp.lt.s32.totalorder %v11122_v53, 0  ;;  %10754 = vsinq.f32 %v13610_v34 }
 0x390   : > { %v893_v14 = vsel %vm16421_vm6, %v16420_v24, %v11275_v50  ;;  %v4088_v5 = vadd.s32 1, %v13662_v15  ;;  %v3934_v43 = vor.u32 8388608, %v3933_v63  ;;  %v13692_v49 = vsel %vm13674_vm5, %v13368_v51, %v3907_v19 }
 0x391   : > { %v3936_v30 = vadd.s32 1, %v9274_v32  ;;  %v3774_v62 = vadd.s32 %v13592_v26, %v13599_v0  ;;  %vm9269_vm9 = vcmp.lt.s32.totalorder %v9268_v7, 0  ;;  %vm4087_vm13 = vc.u32 %v13669_v42, %v13661_v4 }
 0x392   : > { %v3789_v45 = vsel %vm9269_vm9, 0, %v9268_v7  ;;  %v4089_v50 = vsel %vm4087_vm13, %v4088_v5, %v13662_v15  ;;  %v895_v34 = vsel %vm11461_vm10, 0, %v893_v14  ;;  %10756 = vcosq.f32 %v13692_v49 }
 0x393   : > { %vm3937_vm6 = vcmp.gt.s32.totalorder %v3936_v30, 0  ;;  %v3790_v61 = vsub.s32 32, %v3789_v45  ;;  %v3791_v38 = vshll.u32 %v13645_v21, %v3789_v45  ;;  %v3794_v63 = vsub.s32 4294967266, %v3789_v45  ;;  %v13710_v21 = vpop.eup %10748 }
 0x394   : > { %v4090_v31 = vadd.s32 %v4089_v50, %v4085_v60  ;;  %v3938_v46 = vsel %vm3937_vm6, %v3936_v30, 0  ;;  %v13702_v41 = vshll.u32 %v3934_v43, 8  ;;  %v13707_v15 = vadd.s32 %v13661_v4, %v13669_v42  ;;  %v13715_v19 = vpop.eup %10750 }
 0x395   : > { %v3792_v26 = vshrl.u32 %v3774_v62, %v3790_v61  ;;  %v3795_v0 = vadd.s32 127, %v3794_v63  ;;  %v13704_v16 = vshrl.u32 %v3938_v46, 5  ;;  %v3940_v13 = vand.u32 31, %v3938_v46 }
 0x396   : > { %v4091_v28 = vadd.s32 536870912, %v4090_v31  ;;  %v899_v55 = vadd.s32 3, %v895_v34  ;;  %v903_v44 = vxor.u32 2147483648, %v11626_v11  ;;  %10758 = vsinq.f32 %v13692_v49 }
 0x397   : > { %v3793_v58 = vor.u32 %v3792_v26, %v3791_v38  ;;  %v3796_v1 = vshll.u32 %v3795_v0, 23  ;;  %vm3958_vm10 = vcmp.lt.s32.totalorder %v13704_v16, 1  ;;  %v3941_v32 = vsub.s32 32, %v3940_v13  ;;  %v13720_v60 = vpop.eup %10752 }
 0x398   : > { %v13712_v39 = vshrl.u32 %v4091_v28, 30  ;;  %v3943_v7 = vshll.u32 %v16167_v12, %v3940_v13  ;;  %v3946_v4 = vshll.u32 %v16161_v57, %v3940_v13  ;;  %v3949_v42 = vshll.u32 %v16163_v6, %v3940_v13 }
 0x399   : > { %v3797_v24 = vor.u32 4788187, %v3796_v1  ;;  %v3800_v14 = vcvt.s32.f32 %v3793_v58  ;;  %v3952_v43 = vshll.u32 %v16164_v3, %v3940_v13  ;;  %v13724_v30 = vpop.eup %10754  ;;  %v3942_v62 = vshrl.u32 %v16167_v12, %v3941_v32 }
 0x39a   : > { %v4093_v5 = vshll.u32 %v13712_v39, 30  ;;  %v3944_v45 = vshrl.u32 %v16161_v57, %v3941_v32  ;;  %v3947_v50 = vshrl.u32 %v16163_v6, %v3941_v32  ;;  %v3950_v34 = vshrl.u32 %v16164_v3, %v3941_v32 }
 0x39b   : > { %v3798_v61 = vand.u32 2147483647, %v3797_v24  ;;  %v3953_v63 = vshrl.u32 %v16165_v33, %v3941_v32  ;;  %v3955_v46 = vshll.u32 %v16165_v33, %v3940_v13  ;;  %v3956_v58 = vshrl.u32 %v16166_v36, %v3941_v32 }
 0x39c   : > { %v13730_v38 = vsub.s32 %v4090_v31, %v4093_v5  ;;  %v3945_v26 = vor.u32 %v3944_v45, %v3943_v7  ;;  %v3948_v0 = vor.u32 %v3947_v50, %v3946_v4  ;;  %v3951_v28 = vor.u32 %v3950_v34, %v3949_v42  ;;  %v13737_v3 = vpop.eup %10756  ;;  %v16425_v45 = vld [vmem:[#allocation24_spill] sm:$0xff] }
 0x39d   : > { %v3801_v12 = vmul.f32 %v3800_v14, %v3798_v61  ;;  %v3954_v6 = vor.u32 %v3953_v63, %v3952_v43  ;;  %v900_v1 = vand.u32 3, %v899_v55  ;;  %v3957_v31 = vor.u32 %v3956_v58, %v3955_v46 }
 0x39e   : > { %v4096_v57 = vsub.s32 0, %v13730_v38  ;;  %vm3959_vm13 = vcmp.lt.s32.totalorder %v13704_v16, 2  ;;  %vm3960_vm6 = vcmp.lt.s32.totalorder %v13704_v16, 3  ;;  %vm3961_vm14 = vcmp.lt.s32.totalorder %v13704_v16, 4 }
 0x39f   : > { %v3962_v36 = vsel %vm3958_vm10, %v3942_v62, %v3945_v26  ;;  %v3963_v13 = vsel %vm3961_vm14, %v3951_v28, 2102212464  ;;  %v3966_v32 = vsel %vm3958_vm10, %v3945_v26, %v3948_v0  ;;  %v3967_v7 = vsel %vm3961_vm14, %v3954_v6, 920167782 }
 0x3a0   : > { %v9279_v33 = vmin.u32 %v4096_v57, %v13730_v38  ;;  %v3964_v55 = vsel %vm3960_vm6, %v3948_v0, %v3963_v13  ;;  %v3970_v4 = vsel %vm3958_vm10, %v3948_v0, %v3951_v28  ;;  %v3971_v42 = vsel %vm3961_vm14, %v3957_v31, 1326507024 }
 0x3a1   : > { %v16422_v24 = vand.u32 2147483647, %v13411_v54  ;;  %v3968_v43 = vsel %vm3960_vm6, %v3951_v28, %v3967_v7  ;;  %v906_v62 = vxor.u32 2147483648, %v11613_v17  ;;  %v996_v50 = vsub.s32 4, %v16425_v45 }
 0x3a2   : > { %v4098_v5 = vclz %v9279_v33  ;;  %v3802_v34 = vxor.u32 2147483648, %v3801_v12  ;;  %v3969_v61 = vsel %vm3959_vm13, %v3966_v32, %v3968_v43  ;;  %v3972_v63 = vsel %vm3960_vm6, %v3954_v6, %v3971_v42  ;;  %v16427_v32 = vld [vmem:[#allocation21_spill] sm:$0xff] }
 0x3a3   : > { %vm13753_vm9 = vcmp.le.f32.partialorder %v16422_v24, 0.7853982  ;;  %vm901_vm10 = vcmp.lt.s32.totalorder %v900_v1, 2  ;;  %v3965_v26 = vsel %vm3959_vm13, %v3962_v36, %v3964_v55  ;;  %v3973_v0 = vsel %vm3959_vm13, %v3970_v4, %v3972_v63  ;;  %v16430_v24 = vld [vmem:[#allocation34_spill] sm:$0xff] }
 0x3a4   : > { %v9280_v46 = vadd.s32 4294967294, %v4098_v5  ;;  %vm902_vm5 = vcmp.eq.s32.totalorder %v900_v1, 0  ;;  %v13771_v28 = vmul.u32.u64.low %v13702_v41, %v3973_v0  ;;  %v13772_v58 = vmul.u32.u64.high %v13702_v41, %v3973_v0, %v13771_v28 }
 0x3a5   : > { %v904_v57 = vsel %vm902_vm5, %v11613_v17, %v903_v44  ;;  %vm905_vm6 = vcmp.eq.s32.totalorder %v900_v1, 2  ;;  %v13778_v6 = vmul.u32.u64.low %v13702_v41, %v3969_v61  ;;  %v13779_v31 = vmul.u32.u64.high %v13702_v41, %v3969_v61, %v13778_v6 }
 0x3a6   : > { %vm9281_vm3 = vcmp.lt.s32.totalorder %v9280_v46, 0  ;;  %v907_v33 = vsel %vm905_vm6, %v906_v62, %v11626_v11  ;;  %vm16426_vm14 = vcmp.lt.s32.totalorder %v13411_v54, 0  ;;  %v3981_v13 = vmul.u32 %v13702_v41, %v3965_v26  ;;  %v4184_v11 = vld [vmem:[%s15864_s4] sm:$0xff] }
 0x3a7   : > { %v3803_v16 = vsel %vm16426_vm14, %v3802_v34, %v3801_v12  ;;  %v4101_v36 = vsel %vm9281_vm3, 0, %v9280_v46  ;;  %vm16428_vm13 = vcmp.lt.s32.totalorder %v16427_v32, 0  ;;  %vm3983_vm5 = vc.u32 %v13772_v58, %v13778_v6 }
 0x3a8   : > { %v997_v55 = vsel %vm16428_vm13, %v996_v50, %v16425_v45  ;;  %v4102_v7 = vsub.s32 32, %v4101_v36  ;;  %v4103_v17 = vshll.u32 %v13730_v38, %v4101_v36  ;;  %v4106_v44 = vsub.s32 4294967266, %v4101_v36  ;;  %v16431_v45 = vld [vmem:[#allocation31_spill] sm:$0xff] }
 0x3a9   : > { %v999_v42 = vsel %vm11406_vm4, 0, %v997_v55  ;;  %v908_v12 = vsel %vm901_vm10, %v904_v57, %v907_v33  ;;  %v1007_v5 = vxor.u32 2147483648, %v16430_v24  ;;  %v3984_v38 = vadd.s32 1, %v13779_v31 }
 0x3aa   : > { %v1003_v41 = vadd.s32 3, %v999_v42  ;;  %v4104_v43 = vshrl.u32 %v13707_v15, %v4102_v7  ;;  %v4107_v62 = vadd.s32 127, %v4106_v44  ;;  %v1010_v50 = vxor.u32 2147483648, %v16431_v45 }
 0x3ab   : > { %v13803_v34 = vsel %vm13753_vm9, %v13411_v54, %v3803_v16  ;;  %v9308_v63 = vcombine.high %v4184_v11, %v4184_v11  ;;  %vm16127_vm4 = vcmask 1043456   ;;  %v3985_v26 = vsel %vm3983_vm5, %v3984_v38, %v13779_v31  ;;  %v16433_v31 = vld [vmem:[#allocation27_spill] sm:$0xff] }
 0x3ac   : > { %v1004_v61 = vand.u32 3, %v1003_v41  ;;  %v4105_v1 = vor.u32 %v4104_v43, %v4103_v17  ;;  %v4108_v46 = vshll.u32 %v4107_v62, 23  ;;  %vm16432_vm3 = vweird.f32 %v11122_v53 }
 0x3ad   : > { %v909_v15 = vsel %vm16432_vm3, nan, %v908_v12  ;;  %v3986_v0 = vadd.s32 %v3985_v26, %v3981_v13  ;;  %9309 = vmatprep.subr.msk.bf16.mxu1 %vm16127_vm4, %v9308_v63  ;;  %v9307_v28 = vcombine.low %v4184_v11, %v4184_v11  ;;  %vm1002_vm13 = vweird.f32 %v16427_v32  ;;  %v16435_v11 = vld [vmem:[#allocation23_spill] sm:$0xff] }
 0x3ae   : > { %vm1006_vm14 = vcmp.eq.s32.totalorder %v1004_v61, 0  ;;  %vm1009_vm10 = vcmp.eq.s32.totalorder %v1004_v61, 2  ;;  %v4109_v57 = vor.u32 4788187, %v4108_v46  ;;  %vm1005_vm6 = vcmp.lt.s32.totalorder %v1004_v61, 2  ;;  %v16444_v63 = vld [vmem:[#allocation47_spill] sm:$0xff] }
 0x3af   : > { %v1008_v33 = vsel %vm1006_vm14, %v16431_v45, %v1007_v5  ;;  %v1011_v16 = vsel %vm1009_vm10, %v1010_v50, %v16430_v24  ;;  %v3987_v36 = vadd.s32 536870912, %v3986_v0  ;;  %v1100_v7 = vsub.s32 4, %v16433_v31  ;;  %v16438_v24 = vld [vmem:[#allocation25_spill] sm:$0xff] }
 0x3b0   : > { %v1012_v55 = vsel %vm1005_vm6, %v1008_v33, %v1011_v16  ;;  %v4110_v53 = vand.u32 2147483647, %v4109_v57  ;;  %v4112_v17 = vcvt.s32.f32 %v4105_v1  ;;  %vm16128_vm5 = vcmask 523264   ;;  %v16447_v46 = vld [vmem:[#allocation33_spill] sm:$0xff]  ;;  %v16448_v57 = vld [vmem:[#allocation46_spill] sm:$0xff] }
 0x3b1   : > { %v1013_v13 = vsel %vm1002_vm13, nan, %v1012_v55  ;;  %v13813_v44 = vshrl.u32 %v3987_v36, 30  ;;  %v4530_v42 = vsel %vm16127_vm4, %v9307_v28, 0  ;;  %vm16436_vm3 = vcmp.lt.s32.totalorder %v16435_v11, 0 }
 0x3b2   : > { %v13815_v4 = vpack.c.bf16 %v1013_v13, %v909_v15  ;;  %v1101_v12 = vsel %vm16436_vm3, %v1100_v7, %v16433_v31  ;;  %vm16133_vm14 = vcmp.lt.s32.totalorder %v13499_v59, 0  ;;  %v1204_v5 = vsub.s32 4, %v16438_v24 }
 0x3b3   : > { %v1103_v41 = vsel %vm11621_vm2, 0, %v1101_v12  ;;  %10760 = vcosq.f32 %v13803_v34  ;;  %v13828_v43 = vadd.s32 %v13778_v6, %v13772_v58  ;;  %v3989_v62 = vshll.u32 %v13813_v44, 30  ;;  %v16445_v58 = vld [vmem:[#allocation22_spill] sm:$0xff] }
 0x3b4   : > { %16434 = vst [vmem:[#allocation24_spill] sm:$0xff] %v13815_v4  ;;  %9291 = vmatmul.mubr.msk.bf16.vlgmr.msra.gmra.mrb[0].mxu1 %vm16128_vm5, %v13815_v4  ;;  %v1107_v38 = vadd.s32 3, %v1103_v41  ;;  %v16439_v49 = vand.u32 2147483647, %v13499_v59  ;;  %v16440_v45 = vmov 0  ;;  %v4113_v50 = vmul.f32 %v4112_v17, %v4110_v53  ;;  %v16452_v17 = vld [vmem:[#allocation40_spill] sm:$0xff] }
 0x3b5   : > { %4536 = vmatpush1.bf16.msra.mxu1 %v4530_v42  ;;  %v16443_v61 = vmov 0   ;;  %v1111_v1 = vxor.u32 2147483648, %v16444_v63  ;;  %vm16446_vm2 = vcmp.lt.s32.totalorder %v16445_v58, 0  ;;  %v1308_v26 = vsub.s32 4, %v16447_v46  ;;  %v16469_v4 = vld [vmem:[#allocation65_spill] sm:$0xff] }
 0x3b6   : > { %vm13835_vm10 = vcmp.le.f32.partialorder %v16439_v49, 0.7853982  ;;  %4324 = vmatprep.mubr.bf16.mxu1 %v16443_v61  ;;  %v1205_v6 = vsel %vm16446_vm2, %v1204_v5, %v16438_v24  ;;  %v13845_v15 = vsub.s32 %v3986_v0, %v3989_v62  ;;  %v1108_v28 = vand.u32 3, %v1107_v38  ;;  %v16451_v0 = vld [vmem:[#allocation45_spill] sm:$0xff]  ;;  %v16463_v5 = vld [vmem:[#allocation54_spill] sm:$0xff] }
 0x3b7   : > { %v16441_v45 = vsel %vm13835_vm10, 4294967295, %v16440_v45  ;;  %v1114_v33 = vxor.u32 2147483648, %v16448_v57  ;;  %v1207_v36 = vsel %vm11565_vm11, 0, %v1205_v6  ;;  %vm1106_vm6 = vweird.f32 %v16435_v11 }
 0x3b8   : > { %16442 = vst [vmem:[#allocation21_spill] sm:$0xff] %v16441_v45  ;;  %v1211_v55 = vadd.s32 3, %v1207_v36  ;;  %vm16450_vm3 = vcmp.lt.s32.totalorder %v11363_v2, 0  ;;  %v3992_v7 = vsub.s32 0, %v13845_v15  ;;  %vm1110_vm2 = vcmp.eq.s32.totalorder %v1108_v28, 0 }
 0x3b9   : > { %v1309_v31 = vsel %vm16450_vm3, %v1308_v26, %v16447_v46  ;;  %v1215_v53 = vxor.u32 2147483648, %v16451_v0  ;;  %v1218_v13 = vxor.u32 2147483648, %v16452_v17  ;;  %v4114_v42 = vxor.u32 2147483648, %v4113_v50  ;;  %v13867_v26 = vpop.eup %10758 }
 0x3ba   : > { %v1112_v12 = vsel %vm1110_vm2, %v16448_v57, %v1111_v1  ;;  %vm1113_vm11 = vcmp.eq.s32.totalorder %v1108_v28, 2  ;;  %v1212_v32 = vand.u32 3, %v1211_v55  ;;  %v9275_v41 = vmin.u32 %v3992_v7, %v13845_v15 }
 0x3bb   : > { %vm1109_vm4 = vcmp.lt.s32.totalorder %v1108_v28, 2  ;;  %v1115_v24 = vsel %vm1113_vm11, %v1114_v33, %v16444_v63  ;;  %v1311_v62 = vsel %vm11895_vm0, 0, %v1309_v31  ;;  %v4115_v63 = vsel %vm16133_vm14, %v4114_v42, %v4113_v50  ;;  %v16454_v33 = vld [vmem:[#allocation30_spill] sm:$0xff]  ;;  %v16456_v31 = vld [vmem:[#allocation57_spill] sm:$0xff] }
 0x3bc   : > { %v1116_v38 = vsel %vm1109_vm4, %v1112_v12, %v1115_v24  ;;  %vm1213_vm3 = vcmp.lt.s32.totalorder %v1212_v32, 2  ;;  %vm1214_vm5 = vcmp.eq.s32.totalorder %v1212_v32, 0  ;;  %vm1217_vm13 = vcmp.eq.s32.totalorder %v1212_v32, 2  ;;  %v16459_v50 = vld [vmem:[#allocation26_spill] sm:$0xff]  ;;  %v16461_v12 = vld [vmem:[#allocation41_spill] sm:$0xff] }
 0x3bd   : > { %v3994_v49 = vclz %v9275_v41  ;;  %v1117_v6 = vsel %vm1106_vm6, nan, %v1116_v38  ;;  %v1216_v1 = vsel %vm1214_vm5, %v16452_v17, %v1215_v53  ;;  %v1219_v46 = vsel %vm1217_vm13, %v1218_v13, %v16451_v0  ;;  %v13873_v36 = vpop.eup %10760  ;;  %v16457_v0 = vld [vmem:[#allocation56_spill] sm:$0xff] }
 0x3be   : > { %v1220_v28 = vsel %vm1213_vm3, %v1216_v1, %v1219_v46  ;;  %vm1314_vm0 = vweird.f32 %v11363_v2  ;;  %v1315_v57 = vadd.s32 3, %v1311_v62  ;;  %v1412_v16 = vsub.s32 4, %v16454_v33 }
 0x3bf   : > { %v9276_v55 = vadd.s32 4294967294, %v3994_v49  ;;  %vm16455_vm4 = vweird.f32 %v16445_v58  ;;  %v1319_v7 = vxor.u32 2147483648, %v16456_v31  ;;  %v1322_v53 = vxor.u32 2147483648, %v16457_v0  ;;  %v16465_v49 = vld [vmem:[#allocation48_spill] sm:$0xff] }
 0x3c0   : > { %v1221_v11 = vsel %vm16455_vm4, nan, %v1220_v28  ;;  %v1316_v13 = vand.u32 3, %v1315_v57  ;;  %vm16460_vm5 = vcmp.lt.s32.totalorder %v16459_v50, 0  ;;  %v1516_v32 = vsub.s32 4, %v16461_v12 }
 0x3c1   : > { %v13879_v17 = vpack.c.bf16 %v1221_v11, %v1117_v6  ;;  %v1413_v42 = vsel %vm16460_vm5, %v1412_v16, %v16454_v33  ;;  %v13888_v41 = vsel %vm13835_vm10, %v13499_v59, %v4115_v63  ;;  %vm9277_vm6 = vcmp.lt.s32.totalorder %v9276_v55, 0  ;;  %v16466_v16 = vld [vmem:[#allocation32_spill] sm:$0xff] }
 0x3c2   : > { %v1415_v24 = vsel %vm11748_vm15, 0, %v1413_v42  ;;  %v1423_v62 = vxor.u32 2147483648, %v16463_v5  ;;  %v3997_v38 = vsel %vm9277_vm6, 0, %v9276_v55  ;;  %vm16464_vm13 = vcmask 523264  }
 0x3c3   : > { %16458 = vst [vmem:[#allocation28_spill] sm:$0xff] %v13879_v17  ;;  %9292 = vmatmul.mubr.msk.bf16.gmra.mrb[4].mxu1 %vm16464_vm13, %v13879_v17  ;;  %vm1318_vm2 = vcmp.eq.s32.totalorder %v1316_v13, 0  ;;  %vm1321_vm11 = vcmp.eq.s32.totalorder %v1316_v13, 2  ;;  %v1426_v6 = vxor.u32 2147483648, %v16465_v49  ;;  %v3998_v1 = vsub.s32 32, %v3997_v38 }
 0x3c4   : > { %v3999_v46 = vshll.u32 %v13845_v15, %v3997_v38  ;;  %v4002_v28 = vsub.s32 4294967266, %v3997_v38  ;;  %4334 = vmatprep.mubr.bf16.mxu1 %v16443_v61  ;;  %v1320_v63 = vsel %vm1318_vm2, %v16457_v0, %v1319_v7  ;;  %vm1317_vm3 = vcmp.lt.s32.totalorder %v1316_v13, 2  ;;  %v16470_v7 = vld [vmem:[#allocation63_spill] sm:$0xff] }
 0x3c5   : > { %v1323_v57 = vsel %vm1321_vm11, %v1322_v53, %v16456_v31  ;;  %v1419_v33 = vadd.s32 3, %v1415_v24  ;;  %vm16467_vm15 = vcmp.lt.s32.totalorder %v16466_v16, 0  ;;  %v4000_v11 = vshrl.u32 %v13828_v43, %v3998_v1  ;;  %v16471_v24 = vld [vmem:[#allocation37_spill] sm:$0xff] }
 0x3c6   : > { %v1517_v55 = vsel %vm16467_vm15, %v1516_v32, %v16461_v12  ;;  %v4003_v42 = vadd.s32 127, %v4002_v28  ;;  %v1324_v58 = vsel %vm1317_vm3, %v1320_v63, %v1323_v57  ;;  %v1527_v45 = vxor.u32 2147483648, %v16469_v4 }
 0x3c7   : > { %v1519_v15 = vsel %vm11973_vm8, 0, %v1517_v55  ;;  %v1420_v38 = vand.u32 3, %v1419_v33  ;;  %v1530_v0 = vxor.u32 2147483648, %v16470_v7  ;;  %v4001_v13 = vor.u32 %v4000_v11, %v3999_v46  ;;  %v16475_v11 = vld [vmem:[#allocation50_spill] sm:$0xff] }
 0x3c8   : > { %v1523_v17 = vadd.s32 3, %v1519_v15  ;;  %v4004_v31 = vshll.u32 %v4003_v42, 23  ;;  %v1325_v53 = vsel %vm1314_vm0, nan, %v1324_v58  ;;  %v1620_v12 = vsub.s32 4, %v16471_v24  ;;  %v16480_v58 = vld [vmem:[#allocation62_spill] sm:$0xff] }
 0x3c9   : > { %vm1421_vm4 = vcmp.lt.s32.totalorder %v1420_v38, 2  ;;  %vm1422_vm5 = vcmp.eq.s32.totalorder %v1420_v38, 0  ;;  %vm1425_vm6 = vcmp.eq.s32.totalorder %v1420_v38, 2  ;;  %v4008_v56 = vcvt.s32.f32 %v4001_v13  ;;  %v16481_v38 = vld [vmem:[#allocation58_spill] sm:$0xff] }
 0x3ca   : > { %v1524_v43 = vand.u32 3, %v1523_v17  ;;  %v4005_v32 = vor.u32 4788187, %v4004_v31  ;;  %v1424_v1 = vsel %vm1422_vm5, %v16465_v49, %v1423_v62  ;;  %v1427_v28 = vsel %vm1425_vm6, %v1426_v6, %v16463_v5  ;;  %v16472_v5 = vld [vmem:[#allocation29_spill] sm:$0xff] }
 0x3cb   : > { %vm1418_vm8 = vweird.f32 %v16459_v50  ;;  %v1428_v63 = vsel %vm1421_vm4, %v1424_v1, %v1427_v28  ;;  %vm3928_vm11 = vcmp.lt.s32.totalorder %v13582_v37, 0  ;;  %10762 = vsinq.f32 %v13803_v34  ;;  %v16487_v1 = vld [vmem:[#allocation36_spill] sm:$0xff] }
 0x3cc   : > { %vm1526_vm13 = vcmp.eq.s32.totalorder %v1524_v43, 0  ;;  %vm1529_vm2 = vcmp.eq.s32.totalorder %v1524_v43, 2  ;;  %v4006_v2 = vand.u32 2147483647, %v4005_v32  ;;  %v1429_v46 = vsel %vm1418_vm8, nan, %v1428_v63  ;;  %v16489_v63 = vld [vmem:[#allocation61_spill] sm:$0xff] }
 0x3cd   : > { %v1528_v57 = vsel %vm1526_vm13, %v16470_v7, %v1527_v45  ;;  %v1531_v33 = vsel %vm1529_vm2, %v1530_v0, %v16469_v4  ;;  %v13918_v17 = vpack.c.bf16 %v1429_v46, %v1325_v53  ;;  %vm1525_vm0 = vcmp.lt.s32.totalorder %v1524_v43, 2  ;;  %v16482_v0 = vld [vmem:[#allocation39_spill] sm:$0xff]  ;;  %v16490_v46 = vld [vmem:[#allocation76_spill] sm:$0xff] }
 0x3ce   : > { %vm16473_vm3 = vcmp.lt.s32.totalorder %v16472_v5, 0  ;;  %v4009_v62 = vmul.f32 %v4008_v56, %v4006_v2  ;;  %v1532_v49 = vsel %vm1525_vm0, %v1528_v57, %v1531_v33  ;;  %v1724_v42 = vsub.s32 4, %v16475_v11  ;;  %v16485_v43 = vld [vmem:[#allocation67_spill] sm:$0xff] }
 0x3cf   : > { %v1621_v50 = vsel %vm16473_vm3, %v1620_v12, %v16471_v24  ;;  %10764 = vcosq.f32 %v13888_v41  ;;  %vm16476_vm15 = vcmask 523264   ;;  %vm1522_vm4 = vweird.f32 %v16466_v16  ;;  %v16484_v16 = vld [vmem:[#allocation44_spill] sm:$0xff]  ;;  %v16491_v33 = vld [vmem:[#allocation75_spill] sm:$0xff] }
 0x3d0   : > { %v1623_v55 = vsel %vm11904_vm12, 0, %v1621_v50  ;;  %9293 = vmatmul.mubr.msk.bf16.gmra.mrb[8].mxu1 %vm16476_vm15, %v13918_v17  ;;  %vm1626_vm5 = vweird.f32 %v16472_v5  ;;  %v16477_v4 = vand.u32 2147483647, %v13582_v37  ;;  %v1631_v15 = vxor.u32 2147483648, %v16480_v58 }
 0x3d1   : > { %v1627_v34 = vadd.s32 3, %v1623_v55  ;;  %4344 = vmatprep.mubr.bf16.mxu1 %v16443_v61  ;;  %v1634_v7 = vxor.u32 2147483648, %v16481_v38  ;;  %vm16483_vm12 = vcmp.lt.s32.totalorder %v16482_v0, 0  ;;  %v1828_v31 = vsub.s32 4, %v16484_v16 }
 0x3d2   : > { %vm13933_vm6 = vcmp.le.f32.partialorder %v16477_v4, 0.7853982  ;;  %v1725_v13 = vsel %vm16483_vm12, %v1724_v42, %v16475_v11  ;;  %v4010_v53 = vxor.u32 2147483648, %v4009_v62  ;;  %v1533_v24 = vsel %vm1522_vm4, nan, %v1532_v49 }
 0x3d3   : > { %v1628_v12 = vand.u32 3, %v1627_v34  ;;  %vm16486_vm8 = vnez %v16485_v43  ;;  %vm1730_vm13 = vweird.f32 %v16482_v0  ;;  %vm16488_vm2 = vcmp.lt.s32.totalorder %v16487_v1, 0  ;;  %v16492_v34 = vld [vmem:[#allocation64_spill] sm:$0xff]  ;;  %v16504_v0 = vld [vmem:[#allocation71_spill] sm:$0xff] }
 0x3d4   : > { %v1727_v32 = vsel %vm16486_vm8, 0, %v1725_v13  ;;  %v1829_v28 = vsel %vm16488_vm2, %v1828_v31, %v16484_v16  ;;  %v1932_v2 = vsub.s32 4, %v16489_v63  ;;  %v1735_v57 = vxor.u32 2147483648, %v16490_v46  ;;  %v16496_v43 = vld [vmem:[#allocation68_spill] sm:$0xff] }
 0x3d5   : > { %v1731_v56 = vadd.s32 3, %v1727_v32  ;;  %vm1630_vm0 = vcmp.eq.s32.totalorder %v1628_v12, 0  ;;  %vm1633_vm3 = vcmp.eq.s32.totalorder %v1628_v12, 2  ;;  %v1738_v50 = vxor.u32 2147483648, %v16491_v33 }
 0x3d6   : > { %vm1629_vm15 = vcmp.lt.s32.totalorder %v1628_v12, 2  ;;  %v1632_v49 = vsel %vm1630_vm0, %v16481_v38, %v1631_v15  ;;  %v1635_v6 = vsel %vm1633_vm3, %v1634_v7, %v16480_v58  ;;  %v4011_v11 = vsel %vm3928_vm11, %v4010_v53, %v4009_v62  ;;  %v13965_v58 = vpop.eup %10762  ;;  %v16495_v53 = vld [vmem:[#allocation69_spill] sm:$0xff] }
 0x3d7   : > { %v1732_v55 = vand.u32 3, %v1731_v56  ;;  %v1636_v42 = vsel %vm1629_vm15, %v1632_v49, %v1635_v6  ;;  %vm16493_vm4 = vnez %v16492_v34  ;;  %vm1834_vm12 = vweird.f32 %v16487_v1 }
 0x3d8   : > { %v1831_v4 = vsel %vm16493_vm4, 0, %v1829_v28  ;;  %vm16494_vm8 = vcmp.lt.s32.totalorder %v11871_v52, 0  ;;  %v1637_v16 = vsel %vm1626_vm5, nan, %v1636_v42  ;;  %v1839_v12 = vxor.u32 2147483648, %v16495_v53  ;;  %v16502_v42 = vld [vmem:[#allocation43_spill] sm:$0xff] }
 0x3d9   : > { %v1933_v13 = vsel %vm16494_vm8, %v1932_v2, %v16489_v63  ;;  %vm1733_vm2 = vcmp.lt.s32.totalorder %v1732_v55, 2  ;;  %vm1734_vm0 = vcmp.eq.s32.totalorder %v1732_v55, 0  ;;  %vm1737_vm3 = vcmp.eq.s32.totalorder %v1732_v55, 2  ;;  %v13975_v56 = vpop.eup %10764  ;;  %v16499_v2 = vld [vmem:[#allocation89_spill] sm:$0xff] }
 0x3da   : > { %v13967_v15 = vpack.c.bf16 %v1637_v16, %v1533_v24  ;;  %v1736_v62 = vsel %vm1734_vm0, %v16491_v33, %v1735_v57  ;;  %v1739_v38 = vsel %vm1737_vm3, %v1738_v50, %v16490_v46  ;;  %v1835_v7 = vadd.s32 3, %v1831_v4  ;;  %v16500_v57 = vld [vmem:[#allocation88_spill] sm:$0xff]  ;;  %v16501_v50 = vld [vmem:[#allocation53_spill] sm:$0xff] }
 0x3db   : > { %v1740_v31 = vsel %vm1733_vm2, %v1736_v62, %v1739_v38  ;;  %v1842_v32 = vxor.u32 2147483648, %v16496_v43  ;;  %vm16497_vm15 = vnez %v16268_v23  ;;  %v13980_v24 = vsel %vm13933_vm6, %v13582_v37, %v4011_v11 }
 0x3dc   : > { %v1935_v5 = vsel %vm16497_vm15, 0, %v1933_v13  ;;  %vm16498_vm5 = vcmask 523264   ;;  %v1836_v28 = vand.u32 3, %v1835_v7  ;;  %vm1938_vm4 = vweird.f32 %v11871_v52  ;;  %v16505_v7 = vld [vmem:[#allocation72_spill] sm:$0xff] }
 0x3dd   : > { %9294 = vmatmul.mubr.msk.bf16.gmra.mrb[12].mxu1 %vm16498_vm5, %v13967_v15  ;;  %v1939_v63 = vadd.s32 3, %v1935_v5  ;;  %v1741_v23 = vsel %vm1730_vm13, nan, %v1740_v31  ;;  %v1943_v46 = vxor.u32 2147483648, %v16499_v2  ;;  %v1946_v33 = vxor.u32 2147483648, %v16500_v57 }
 0x3de   : > { %4354 = vmatprep.mubr.bf16.mxu1 %v16443_v61  ;;  %v2036_v49 = vsub.s32 4, %v16501_v50  ;;  %vm1837_vm8 = vcmp.lt.s32.totalorder %v1836_v28, 2  ;;  %vm1838_vm2 = vcmp.eq.s32.totalorder %v1836_v28, 0  ;;  %vm1841_vm0 = vcmp.eq.s32.totalorder %v1836_v28, 2  ;;  %v16510_v28 = vld [vmem:[#allocation79_spill] sm:$0xff] }
 0x3df   : > { %v1940_v6 = vand.u32 3, %v1939_v63  ;;  %v1840_v55 = vsel %vm1838_vm2, %v16496_v43, %v1839_v12  ;;  %v1843_v11 = vsel %vm1841_vm0, %v1842_v32, %v16495_v53  ;;  %vm16503_vm3 = vcmp.lt.s32.totalorder %v16502_v42, 0  ;;  %v16508_v32 = vld [vmem:[#allocation59_spill] sm:$0xff]  ;;  %v16511_v63 = vld [vmem:[#allocation77_spill] sm:$0xff] }
 0x3e0   : > { %v2037_v34 = vsel %vm16503_vm3, %v2036_v49, %v16501_v50  ;;  %v2140_v4 = vsub.s32 4, %v16504_v0  ;;  %v1844_v13 = vsel %vm1837_vm8, %v1840_v55, %v1843_v11  ;;  %vm16506_vm2 = vnez %v16505_v7  ;;  %v16515_v49 = vld [vmem:[#allocation66_spill] sm:$0xff] }
 0x3e1   : > { %vm1941_vm13 = vcmp.lt.s32.totalorder %v1940_v6, 2  ;;  %vm1942_vm15 = vcmp.eq.s32.totalorder %v1940_v6, 0  ;;  %vm1945_vm5 = vcmp.eq.s32.totalorder %v1940_v6, 2  ;;  %v1845_v16 = vsel %vm1834_vm12, nan, %v1844_v13  ;;  %v16516_v55 = vld [vmem:[#allocation98_spill] sm:$0xff] }
 0x3e2   : > { %v1944_v62 = vsel %vm1942_vm15, %v16500_v57, %v1943_v46  ;;  %v1947_v38 = vsel %vm1945_vm5, %v1946_v33, %v16499_v2  ;;  %v2039_v31 = vsel %vm16506_vm2, 0, %v2037_v34  ;;  %v14003_v53 = vpack.c.bf16 %v1845_v16, %v1741_v23  ;;  %v16512_v46 = vld [vmem:[#allocation83_spill] sm:$0xff]  ;;  %v16517_v34 = vld [vmem:[#allocation92_spill] sm:$0xff] }
 0x3e3   : > { %v1948_v12 = vsel %vm1941_vm13, %v1944_v62, %v1947_v38  ;;  %v2043_v43 = vadd.s32 3, %v2039_v31  ;;  %vm16509_vm8 = vcmp.lt.s32.totalorder %v16508_v32, 0  ;;  %vm2042_vm0 = vweird.f32 %v16502_v42  ;;  %v16519_v38 = vld [vmem:[#allocation52_spill] sm:$0xff]  ;;  %v16521_v31 = vld [vmem:[#allocation70_spill] sm:$0xff] }
 0x3e4   : > { %16507 = vst [vmem:[#allocation34_spill] sm:$0xff] %v14003_v53  ;;  %v2141_v5 = vsel %vm16509_vm8, %v2140_v4, %v16504_v0  ;;  %v2047_v1 = vxor.u32 2147483648, %v16510_v28  ;;  %v2050_v50 = vxor.u32 2147483648, %v16511_v63  ;;  %vm16513_vm12 = vnez %v16512_v46  ;;  %v16518_v4 = vld [vmem:[#allocation78_spill] sm:$0xff] }
 0x3e5   : > { %v2143_v2 = vsel %vm16513_vm12, 0, %v2141_v5  ;;  %vm16514_vm3 = vcmask 523264   ;;  %v1949_v23 = vsel %vm1938_vm4, nan, %v1948_v12  ;;  %v2044_v57 = vand.u32 3, %v2043_v43  ;;  %v16529_v42 = vld [vmem:[#allocation90_spill] sm:$0xff] }
 0x3e6   : > { %9295 = vmatmul.mubr.msk.bf16.gmra.mrb[16].mxu1 %vm16514_vm3, %v14003_v53  ;;  %v2147_v33 = vadd.s32 3, %v2143_v2  ;;  %v2244_v6 = vsub.s32 4, %v16515_v49  ;;  %vm2146_vm13 = vweird.f32 %v16508_v32  ;;  %v2151_v11 = vxor.u32 2147483648, %v16516_v55  ;;  %v16536_v32 = vld [vmem:[#allocation60_spill] sm:$0xff] }
 0x3e7   : > { %4364 = vmatprep.mubr.bf16.mxu1 %v16443_v61  ;;  %v2154_v0 = vxor.u32 2147483648, %v16517_v34  ;;  %v2348_v13 = vsub.s32 4, %v16518_v4  ;;  %vm2045_vm15 = vcmp.lt.s32.totalorder %v2044_v57, 2  ;;  %vm2046_vm5 = vcmp.eq.s32.totalorder %v2044_v57, 0 }
 0x3e8   : > { %vm2049_vm2 = vcmp.eq.s32.totalorder %v2044_v57, 2  ;;  %v2148_v16 = vand.u32 3, %v2147_v33  ;;  %v2048_v52 = vsel %vm2046_vm5, %v16511_v63, %v2047_v1  ;;  %vm16520_vm4 = vcmp.lt.s32.totalorder %v16519_v38, 0  ;;  %v16526_v33 = vld [vmem:[#allocation93_spill] sm:$0xff] }
 0x3e9   : > { %v2051_v62 = vsel %vm2049_vm2, %v2050_v50, %v16510_v28  ;;  %v2245_v7 = vsel %vm16520_vm4, %v2244_v6, %v16515_v49  ;;  %vm16522_vm8 = vcmp.lt.s32.totalorder %v16521_v31, 0  ;;  %v16523_v28 = vld [vmem:[#allocation80_spill] sm:$0xff]  ;;  %vm16527_vm2 = vnez %v16526_v33  ;;  %v16528_v6 = vld [vmem:[#allocation91_spill] sm:$0xff] }
 0x3ea   : > { %v2349_v12 = vsel %vm16522_vm8, %v2348_v13, %v16518_v4  ;;  %v2052_v43 = vsel %vm2045_vm15, %v2048_v52, %v2051_v62  ;;  %vm2149_vm12 = vcmp.lt.s32.totalorder %v2148_v16, 2  ;;  %vm2150_vm3 = vcmp.eq.s32.totalorder %v2148_v16, 0 }
 0x3eb   : > { %vm2153_vm14 = vcmp.eq.s32.totalorder %v2148_v16, 2  ;;  %v2053_v5 = vsel %vm2042_vm0, nan, %v2052_v43  ;;  %v2152_v46 = vsel %vm2150_vm3, %v16517_v34, %v2151_v11  ;;  %vm16524_vm5 = vnez %v16523_v28  ;;  %v16531_v11 = vld [vmem:[#allocation103_spill] sm:$0xff]  ;;  %v16534_v43 = vld [vmem:[#allocation100_spill] sm:$0xff] }
 0x3ec   : > { %v2155_v1 = vsel %vm2153_vm14, %v2154_v0, %v16516_v55  ;;  %v2247_v63 = vsel %vm16524_vm5, 0, %v2245_v7  ;;  %v14037_v50 = vpack.c.bf16 %v2053_v5, %v1949_v23  ;;  %v2351_v49 = vsel %vm16527_vm2, 0, %v2349_v12  ;;  %v16532_v0 = vld [vmem:[#allocation74_spill] sm:$0xff]  ;;  %v16533_v7 = vld [vmem:[#allocation101_spill] sm:$0xff] }
 0x3ed   : > { %v2156_v2 = vsel %vm2149_vm12, %v2152_v46, %v2155_v1  ;;  %v2251_v57 = vadd.s32 3, %v2247_v63  ;;  %vm2250_vm15 = vweird.f32 %v16519_v38  ;;  %v2255_v4 = vxor.u32 2147483648, %v16528_v6  ;;  %v16535_v46 = vld [vmem:[#allocation87_spill] sm:$0xff] }
 0x3ee   : > { %16525 = vst [vmem:[#allocation31_spill] sm:$0xff] %v14037_v50  ;;  %v2258_v13 = vxor.u32 2147483648, %v16529_v42  ;;  %v2355_v16 = vadd.s32 3, %v2351_v49  ;;  %vm16530_vm0 = vcmask 523264   ;;  %v2157_v55 = vsel %vm2146_vm13, nan, %v2156_v2  ;;  %v16538_v49 = vld [vmem:[#allocation85_spill] sm:$0xff] }
 0x3ef   : > { %9296 = vmatmul.mubr.msk.bf16.gmra.mrb[20].mxu1 %vm16530_vm0, %v14037_v50  ;;  %v2252_v23 = vand.u32 3, %v2251_v57  ;;  %v2359_v34 = vxor.u32 2147483648, %v16531_v11  ;;  %v2452_v52 = vsub.s32 4, %v16532_v0  ;;  %v2362_v12 = vxor.u32 2147483648, %v16533_v7 }
 0x3f0   : > { %4374 = vmatprep.mubr.bf16.mxu1 %v16443_v61  ;;  %v2356_v62 = vand.u32 3, %v2355_v16  ;;  %v2463_v5 = vxor.u32 2147483648, %v16534_v43  ;;  %v2556_v1 = vsub.s32 4, %v16535_v46  ;;  %vm16537_vm13 = vcmp.lt.s32.totalorder %v16536_v32, 0 }
 0x3f1   : > { %vm2253_vm14 = vcmp.lt.s32.totalorder %v2252_v23, 2  ;;  %vm2254_vm4 = vcmp.eq.s32.totalorder %v2252_v23, 0  ;;  %vm2257_vm8 = vcmp.eq.s32.totalorder %v2252_v23, 2  ;;  %v2453_v28 = vsel %vm16537_vm13, %v2452_v52, %v16532_v0 }
 0x3f2   : > { %v2256_v63 = vsel %vm2254_vm4, %v16529_v42, %v2255_v4  ;;  %v2259_v2 = vsel %vm2257_vm8, %v2258_v13, %v16528_v6  ;;  %vm2357_vm12 = vcmp.lt.s32.totalorder %v2356_v62, 2  ;;  %vm2358_vm3 = vcmp.eq.s32.totalorder %v2356_v62, 0  ;;  %v16541_v13 = vld [vmem:[#allocation99_spill] sm:$0xff] }
 0x3f3   : > { %v2260_v57 = vsel %vm2253_vm14, %v2256_v63, %v2259_v2  ;;  %v2360_v33 = vsel %vm2358_vm3, %v16533_v7, %v2359_v34  ;;  %vm2361_vm5 = vcmp.eq.s32.totalorder %v2356_v62, 2  ;;  %vm16539_vm2 = vnez %v16538_v49  ;;  %v16549_v49 = vld [vmem:[#allocation97_spill] sm:$0xff] }
 0x3f4   : > { %v2455_v16 = vsel %vm16539_vm2, 0, %v2453_v28  ;;  %v2261_v23 = vsel %vm2250_vm15, nan, %v2260_v57  ;;  %v2363_v50 = vsel %vm2361_vm5, %v2362_v12, %v16531_v11  ;;  %vm16540_vm0 = vcmp.lt.s32.totalorder %v12323_v18, 0  ;;  %v16544_v11 = vld [vmem:[#allocation82_spill] sm:$0xff]  ;;  %v16545_v12 = vld [vmem:[#allocation73_spill] sm:$0xff] }
 0x3f5   : > { %v2459_v53 = vadd.s32 3, %v2455_v16  ;;  %v2557_v4 = vsel %vm16540_vm0, %v2556_v1, %v16535_v46  ;;  %v14068_v6 = vpack.c.bf16 %v2261_v23, %v2157_v55  ;;  %v2364_v42 = vsel %vm2357_vm12, %v2360_v33, %v2363_v50  ;;  %v16547_v57 = vld [vmem:[#allocation102_spill] sm:$0xff] }
 0x3f6   : > { %v2466_v0 = vxor.u32 2147483648, %v16541_v13  ;;  %vm16542_vm14 = vnez %v16322_v8  ;;  %vm2354_vm4 = vweird.f32 %v16521_v31  ;;  %vm2458_vm8 = vweird.f32 %v16536_v32 }
 0x3f7   : > { %v2559_v34 = vsel %vm16542_vm14, 0, %v2557_v4  ;;  %v2460_v38 = vand.u32 3, %v2459_v53  ;;  %vm16543_vm15 = vcmask 523264   ;;  %vm2562_vm13 = vweird.f32 %v12323_v18  ;;  %v16556_v18 = vld [vmem:[#allocation110_spill] sm:$0xff] }
 0x3f8   : > { %v2563_v52 = vadd.s32 3, %v2559_v34  ;;  %9297 = vmatmul.mubr.msk.bf16.gmra.mrb[24].mxu1 %vm16543_vm15, %v14068_v6  ;;  %v2567_v55 = vxor.u32 2147483648, %v13016_v35  ;;  %v2570_v50 = vxor.u32 2147483648, %v12942_v29  ;;  %v2660_v62 = vsub.s32 4, %v16544_v11  ;;  %v16553_v34 = vld [vmem:[#allocation120_spill] sm:$0xff] }
 0x3f9   : > { %4384 = vmatprep.mubr.bf16.mxu1 %v16443_v61  ;;  %v2365_v8 = vsel %vm2354_vm4, nan, %v2364_v42  ;;  %vm2462_vm12 = vcmp.eq.s32.totalorder %v2460_v38, 0  ;;  %vm2465_vm3 = vcmp.eq.s32.totalorder %v2460_v38, 2  ;;  %vm2461_vm5 = vcmp.lt.s32.totalorder %v2460_v38, 2  ;;  %v16550_v42 = vld [vmem:[#allocation107_spill] sm:$0xff] }
 0x3fa   : > { %v2564_v31 = vand.u32 3, %v2563_v52  ;;  %v2464_v53 = vsel %vm2462_vm12, %v16541_v13, %v2463_v5  ;;  %v2467_v7 = vsel %vm2465_vm3, %v2466_v0, %v16534_v43  ;;  %vm16546_vm2 = vcmp.lt.s32.totalorder %v16545_v12, 0  ;;  %v16554_v52 = vld [vmem:[#allocation94_spill] sm:$0xff] }
 0x3fb   : > { %v2661_v46 = vsel %vm16546_vm2, %v2660_v62, %v16544_v11  ;;  %v2468_v1 = vsel %vm2461_vm5, %v2464_v53, %v2467_v7  ;;  %vm16548_vm4 = vnez %v16547_v57  ;;  %vm2666_vm12 = vweird.f32 %v16545_v12  ;;  %v16558_v11 = vld [vmem:[#allocation116_spill] sm:$0xff]  ;;  %v16560_v53 = vld [vmem:[#allocation106_spill] sm:$0xff]  ;;  %v16563_v57 = vld [vmem:[#allocation95_spill] sm:$0xff] }
 0x3fc   : > { %vm2565_vm0 = vcmp.lt.s32.totalorder %v2564_v31, 2  ;;  %vm2566_vm14 = vcmp.eq.s32.totalorder %v2564_v31, 0  ;;  %vm2569_vm15 = vcmp.eq.s32.totalorder %v2564_v31, 2  ;;  %v2469_v28 = vsel %vm2458_vm8, nan, %v2468_v1  ;;  %v16571_v12 = vld [vmem:[#allocation124_spill] sm:$0xff] }
 0x3fd   : > { %v2568_v63 = vsel %vm2566_vm14, %v12942_v29, %v2567_v55  ;;  %v2571_v2 = vsel %vm2569_vm15, %v2570_v50, %v13016_v35  ;;  %v2663_v5 = vsel %vm16548_vm4, 0, %v2661_v46  ;;  %v2764_v16 = vsub.s32 4, %v16549_v49  ;;  %v16551_v35 = vld [vmem:[#allocation84_spill] sm:$0xff] }
 0x3fe   : > { %v2572_v33 = vsel %vm2565_vm0, %v2568_v63, %v2571_v2  ;;  %v2667_v43 = vadd.s32 3, %v2663_v5  ;;  %v14095_v23 = vpack.c.bf16 %v2469_v28, %v2365_v8  ;;  %v2671_v32 = vxor.u32 2147483648, %v12939_v25  ;;  %v16559_v8 = vld [vmem:[#allocation114_spill] sm:$0xff]  ;;  %v16561_v63 = vld [vmem:[#allocation81_spill] sm:$0xff] }
 0x3ff   : > { %v2573_v4 = vsel %vm2562_vm13, nan, %v2572_v33  ;;  %v2674_v29 = vxor.u32 2147483648, %v16550_v42  ;;  %vm16552_vm8 = vcmp.lt.s32.totalorder %v16551_v35, 0  ;;  %vm2770_vm3 = vweird.f32 %v16551_v35 }
 0x400   : > { %v2668_v13 = vand.u32 3, %v2667_v43  ;;  %v2765_v0 = vsel %vm16552_vm8, %v2764_v16, %v16549_v49  ;;  %v2775_v38 = vxor.u32 2147483648, %v16553_v34  ;;  %v2868_v55 = vsub.s32 4, %v16554_v52  ;;  %v16565_v49 = vld [vmem:[#allocation105_spill] sm:$0xff] }
 0x401   : > { %vm16555_vm5 = vcmask 523264   ;;  %vm16557_vm13 = vnez %v16556_v18  ;;  %v2778_v62 = vxor.u32 2147483648, %v16558_v11  ;;  %v2879_v31 = vxor.u32 2147483648, %v16559_v8 }
 0x402   : > { %9298 = vmatmul.mubr.msk.bf16.gmra.mrb[28].mxu1 %vm16555_vm5, %v14095_v23  ;;  %v2767_v50 = vsel %vm16557_vm13, 0, %v2765_v0  ;;  %v2972_v7 = vsub.s32 4, %v16560_v53  ;;  %vm2669_vm2 = vcmp.lt.s32.totalorder %v2668_v13, 2  ;;  %vm2670_vm0 = vcmp.eq.s32.totalorder %v2668_v13, 0  ;;  %v16567_v0 = vld [vmem:[#allocation118_spill] sm:$0xff] }
 0x403   : > { %4394 = vmatprep.mubr.bf16.mxu1 %v16443_v61  ;;  %vm2673_vm14 = vcmp.eq.s32.totalorder %v2668_v13, 2  ;;  %v2771_v46 = vadd.s32 3, %v2767_v50  ;;  %v2672_v1 = vsel %vm2670_vm0, %v16550_v42, %v2671_v32  ;;  %vm16562_vm15 = vcmp.lt.s32.totalorder %v16561_v63, 0  ;;  %v16569_v42 = vld [vmem:[#allocation113_spill] sm:$0xff] }
 0x404   : > { %v2675_v28 = vsel %vm2673_vm14, %v2674_v29, %v12939_v25  ;;  %v2869_v2 = vsel %vm16562_vm15, %v2868_v55, %v16554_v52  ;;  %vm16564_vm4 = vcmp.lt.s32.totalorder %v16563_v57, 0  ;;  %vm16566_vm8 = vnez %v16565_v49 }
 0x405   : > { %v2973_v5 = vsel %vm16564_vm4, %v2972_v7, %v16560_v53  ;;  %v2676_v33 = vsel %vm2669_vm2, %v2672_v1, %v2675_v28  ;;  %v2772_v43 = vand.u32 3, %v2771_v46  ;;  %v2871_v16 = vsel %vm16566_vm8, 0, %v2869_v2  ;;  %v16570_v1 = vld [vmem:[#allocation125_spill] sm:$0xff] }
 0x406   : > { %vm16568_vm5 = vnez %v16567_v0  ;;  %v2677_v32 = vsel %vm2666_vm12, nan, %v2676_v33  ;;  %v2875_v25 = vadd.s32 3, %v2871_v16  ;;  %v2882_v29 = vxor.u32 2147483648, %v16569_v42  ;;  %v16576_v16 = vld [vmem:[#allocation115_spill] sm:$0xff] }
 0x407   : > { %v2975_v13 = vsel %vm16568_vm5, 0, %v2973_v5  ;;  %v14130_v52 = vpack.c.bf16 %v2677_v32, %v2573_v4  ;;  %vm2773_vm13 = vcmp.lt.s32.totalorder %v2772_v43, 2  ;;  %vm2774_vm0 = vcmp.eq.s32.totalorder %v2772_v43, 0  ;;  %v16572_v5 = vld [vmem:[#allocation104_spill] sm:$0xff] }
 0x408   : > { %v2979_v18 = vadd.s32 3, %v2975_v13  ;;  %vm2777_vm14 = vcmp.eq.s32.totalorder %v2772_v43, 2  ;;  %v2776_v55 = vsel %vm2774_vm0, %v16558_v11, %v2775_v38  ;;  %v2876_v53 = vand.u32 3, %v2875_v25  ;;  %v16574_v43 = vld [vmem:[#allocation86_spill] sm:$0xff]  ;;  %v16578_v13 = vld [vmem:[#allocation123_spill] sm:$0xff] }
 0x409   : > { %v2779_v50 = vsel %vm2777_vm14, %v2778_v62, %v16553_v34  ;;  %v2983_v28 = vxor.u32 2147483648, %v16570_v1  ;;  %v2986_v2 = vxor.u32 2147483648, %v16571_v12  ;;  %v3076_v33 = vsub.s32 4, %v16572_v5  ;;  %v16579_v25 = vld [vmem:[#allocation122_spill] sm:$0xff] }
 0x40a   : > { %v2980_v7 = vand.u32 3, %v2979_v18  ;;  %v2780_v46 = vsel %vm2773_vm13, %v2776_v55, %v2779_v50  ;;  %vm16573_vm12 = vcmask 523264   ;;  %vm2874_vm2 = vweird.f32 %v16561_v63 }
 0x40b   : > { %9299 = vmatmul.mubr.msk.bf16.gmra.mrb[32].mxu1 %vm16573_vm12, %v14130_v52  ;;  %v2781_v4 = vsel %vm2770_vm3, nan, %v2780_v46  ;;  %vm2878_vm15 = vcmp.eq.s32.totalorder %v2876_v53, 0  ;;  %vm2881_vm4 = vcmp.eq.s32.totalorder %v2876_v53, 2  ;;  %vm2877_vm8 = vcmp.lt.s32.totalorder %v2876_v53, 2  ;;  %v16581_v53 = vld [vmem:[#allocation112_spill] sm:$0xff] }
 0x40c   : > { %4404 = vmatprep.mubr.bf16.mxu1 %v16443_v61  ;;  %v2880_v34 = vsel %vm2878_vm15, %v16569_v42, %v2879_v31  ;;  %v2883_v38 = vsel %vm2881_vm4, %v2882_v29, %v16559_v8  ;;  %vm2982_vm5 = vcmp.eq.s32.totalorder %v2980_v7, 0  ;;  %vm2985_vm13 = vcmp.eq.s32.totalorder %v2980_v7, 2  ;;  %v16580_v29 = vld [vmem:[#allocation117_spill] sm:$0xff] }
 0x40d   : > { %v2884_v11 = vsel %vm2877_vm8, %v2880_v34, %v2883_v38  ;;  %v2984_v62 = vsel %vm2982_vm5, %v16571_v12, %v2983_v28  ;;  %vm16575_vm0 = vcmp.lt.s32.totalorder %v16574_v43, 0  ;;  %vm2981_vm3 = vcmp.lt.s32.totalorder %v2980_v7, 2  ;;  %v16584_v28 = vld [vmem:[#allocation134_spill] sm:$0xff]  ;;  %v16588_v34 = vld [vmem:[#allocation96_spill] sm:$0xff] }
 0x40e   : > { %v3077_v35 = vsel %vm16575_vm0, %v3076_v33, %v16572_v5  ;;  %v2885_v49 = vsel %vm2874_vm2, nan, %v2884_v11  ;;  %v2987_v63 = vsel %vm2985_vm13, %v2986_v2, %v16570_v1  ;;  %vm16577_vm14 = vnez %v16576_v16  ;;  %v16586_v2 = vld [vmem:[#allocation128_spill] sm:$0xff]  ;;  %v16593_v16 = vld [vmem:[#allocation127_spill] sm:$0xff] }
 0x40f   : > { %v3079_v0 = vsel %vm16577_vm14, 0, %v3077_v35  ;;  %10766 = vsinq.f32 %v13888_v41  ;;  %v2988_v31 = vsel %vm2981_vm3, %v2984_v62, %v2987_v63  ;;  %v3087_v32 = vxor.u32 2147483648, %v16578_v13  ;;  %v16582_v41 = vld [vmem:[#allocation108_spill] sm:$0xff] }
 0x410   : > { %v3083_v8 = vadd.s32 3, %v3079_v0  ;;  %10768 = vcosq.f32 %v13980_v24  ;;  %v3090_v42 = vxor.u32 2147483648, %v16579_v25  ;;  %v3180_v18 = vsub.s32 4, %v16580_v29  ;;  %v16590_v62 = vld [vmem:[#allocation132_spill] sm:$0xff] }
 0x411   : > { %v14157_v55 = vpack.c.bf16 %v2885_v49, %v2781_v4  ;;  %vm2978_vm12 = vweird.f32 %v16563_v57  ;;  %v3284_v7 = vsub.s32 4, %v16581_v53  ;;  %vm3082_vm2 = vweird.f32 %v16574_v43  ;;  %v16591_v49 = vld [vmem:[#allocation119_spill] sm:$0xff] }
 0x412   : > { %v3084_v50 = vand.u32 3, %v3083_v8  ;;  %v2989_v46 = vsel %vm2978_vm12, nan, %v2988_v31  ;;  %vm16583_vm15 = vcmp.lt.s32.totalorder %v16582_v41, 0  ;;  %v3191_v12 = vxor.u32 2147483648, %v16584_v28 }
 0x413   : > { %v3181_v1 = vsel %vm16583_vm15, %v3180_v18, %v16580_v29  ;;  %vm16585_vm4 = vcmask 523264   ;;  %vm16587_vm0 = vnez %v16586_v2  ;;  %vm16589_vm3 = vcmp.lt.s32.totalorder %v16588_v34, 0  ;;  %v16595_v29 = vld [vmem:[#allocation126_spill] sm:$0xff] }
 0x414   : > { %9300 = vmatmul.mubr.msk.bf16.gmra.mrb[36].mxu1 %vm16585_vm4, %v14157_v55  ;;  %vm3085_vm8 = vcmp.lt.s32.totalorder %v3084_v50, 2  ;;  %vm3086_vm5 = vcmp.eq.s32.totalorder %v3084_v50, 0  ;;  %vm3089_vm13 = vcmp.eq.s32.totalorder %v3084_v50, 2  ;;  %v3183_v57 = vsel %vm16587_vm0, 0, %v3181_v1  ;;  %v16596_v50 = vld [vmem:[#allocation111_spill] sm:$0xff] }
 0x415   : > { %4414 = vmatprep.mubr.bf16.mxu1 %v16443_v61  ;;  %v3088_v5 = vsel %vm3086_vm5, %v16579_v25, %v3087_v32  ;;  %v3091_v33 = vsel %vm3089_vm13, %v3090_v42, %v16578_v13  ;;  %v3187_v4 = vadd.s32 3, %v3183_v57  ;;  %v3285_v38 = vsel %vm16589_vm3, %v3284_v7, %v16581_v53  ;;  %v16594_v25 = vld [vmem:[#allocation130_spill] sm:$0xff]  ;;  %v16598_v7 = vld [vmem:[#allocation121_spill] sm:$0xff] }
 0x416   : > { %v3092_v11 = vsel %vm3085_vm8, %v3088_v5, %v3091_v33  ;;  %v3194_v35 = vxor.u32 2147483648, %v16590_v62  ;;  %vm16592_vm14 = vnez %v16591_v49  ;;  %v3388_v0 = vsub.s32 4, %v16593_v16 }
 0x417   : > { %v3287_v63 = vsel %vm16592_vm14, 0, %v3285_v38  ;;  %v3093_v31 = vsel %vm3082_vm2, nan, %v3092_v11  ;;  %v3188_v8 = vand.u32 3, %v3187_v4  ;;  %v3295_v13 = vxor.u32 2147483648, %v16594_v25  ;;  %v16600_v4 = vld [vmem:[#allocation109_spill] sm:$0xff] }
 0x418   : > { %v3291_v32 = vadd.s32 3, %v3287_v63  ;;  %v14183_v42 = vpack.c.bf16 %v3093_v31, %v2989_v46  ;;  %v3298_v18 = vxor.u32 2147483648, %v16595_v29  ;;  %vm16597_vm12 = vcmp.lt.s32.totalorder %v16596_v50, 0 }
 0x419   : > { %v3389_v53 = vsel %vm16597_vm12, %v3388_v0, %v16593_v16  ;;  %v3492_v1 = vsub.s32 4, %v16598_v7  ;;  %vm3189_vm15 = vcmp.lt.s32.totalorder %v3188_v8, 2  ;;  %vm3190_vm4 = vcmp.eq.s32.totalorder %v3188_v8, 0  ;;  %v14190_v43 = vpop.eup %10766 }
 0x41a   : > { %vm3193_vm8 = vcmp.eq.s32.totalorder %v3188_v8, 2  ;;  %v3292_v2 = vand.u32 3, %v3291_v32  ;;  %v3192_v57 = vsel %vm3190_vm4, %v16590_v62, %v3191_v12  ;;  %v3391_v33 = vsel %vm13463_vm7, 0, %v3389_v53  ;;  %v14199_v11 = vpop.eup %10768 }
 0x41b   : > { %v3195_v5 = vsel %vm3193_vm8, %v3194_v35, %v16584_v28  ;;  %vm16601_vm2 = vcmp.lt.s32.totalorder %v16600_v4, 0  ;;  %vm3186_vm5 = vweird.f32 %v16582_v41  ;;  %vm16602_vm3 = vcmask 523264   ;;  %v16603_v41 = vld [vmem:[#allocation131_spill] sm:$0xff] }
 0x41c   : > { %v3493_v38 = vsel %vm16601_vm2, %v3492_v1, %v16598_v7  ;;  %v3196_v49 = vsel %vm3189_vm15, %v3192_v57, %v3195_v5  ;;  %vm3294_vm13 = vcmp.eq.s32.totalorder %v3292_v2, 0  ;;  %vm3297_vm0 = vcmp.eq.s32.totalorder %v3292_v2, 2  ;;  %9301 = vmatmul.mubr.msk.bf16.gmra.mrb[40].mxu1 %vm16602_vm3, %v14183_v42  ;;  %v16607_v7 = vld [vmem:[#allocation133_spill] sm:$0xff] }
 0x41d   : > { %vm3293_vm14 = vcmp.lt.s32.totalorder %v3292_v2, 2  ;;  %v3296_v28 = vsel %vm3294_vm13, %v16595_v29, %v3295_v13  ;;  %v3299_v12 = vsel %vm3297_vm0, %v3298_v18, %v16594_v25  ;;  %v3395_v62 = vadd.s32 3, %v3391_v33  ;;  %4424 = vmatprep.mubr.bf16.mxu1 %v16443_v61  ;;  %v16605_v13 = vld [vmem:[#allocation137_spill] sm:$0xff]  ;;  %v16606_v25 = vld [vmem:[#allocation136_spill] sm:$0xff] }
 0x41e   : > { %v3300_v35 = vsel %vm3293_vm14, %v3296_v28, %v3299_v12  ;;  %v3399_v63 = vxor.u32 2147483648, %v13636_v27  ;;  %v3402_v16 = vxor.u32 2147483648, %v13569_v48  ;;  %vm16604_vm7 = vnez %v16603_v41  ;;  %v16609_v28 = vld [vmem:[#allocation129_spill] sm:$0xff] }
 0x41f   : > { %v3495_v0 = vsel %vm16604_vm7, 0, %v3493_v38  ;;  %v3197_v31 = vsel %vm3186_vm5, nan, %v3196_v49  ;;  %vm3290_vm12 = vweird.f32 %v16588_v34  ;;  %v3396_v8 = vand.u32 3, %v3395_v62 }
 0x420   : > { %v3499_v32 = vadd.s32 3, %v3495_v0  ;;  %v3301_v53 = vsel %vm3290_vm12, nan, %v3300_v35  ;;  %v3503_v29 = vxor.u32 2147483648, %v16605_v13  ;;  %v3506_v18 = vxor.u32 2147483648, %v16606_v25 }
 0x421   : > { %v3596_v1 = vsub.s32 4, %v16607_v7  ;;  %10770 = vsinq.f32 %v13980_v24  ;;  %vm3398_vm15 = vcmp.eq.s32.totalorder %v3396_v8, 0  ;;  %vm3401_vm4 = vcmp.eq.s32.totalorder %v3396_v8, 2 }
 0x422   : > { %v3500_v2 = vand.u32 3, %v3499_v32  ;;  %vm3397_vm8 = vcmp.lt.s32.totalorder %v3396_v8, 2  ;;  %v3400_v57 = vsel %vm3398_vm15, %v13569_v48, %v3399_v63  ;;  %v3403_v5 = vsel %vm3401_vm4, %v3402_v16, %v13636_v27 }
 0x423   : > { %vm16608_vm2 = vcmp.lt.s32.totalorder %v13150_v20, 0  ;;  %v14221_v46 = vpack.c.bf16 %v3301_v53, %v3197_v31  ;;  %v3404_v33 = vsel %vm3397_vm8, %v3400_v57, %v3403_v5  ;;  %vm3394_vm14 = vweird.f32 %v16596_v50 }
 0x424   : > { %v3597_v34 = vsel %vm16608_vm2, %v3596_v1, %v16607_v7  ;;  %vm3502_vm5 = vcmp.eq.s32.totalorder %v3500_v2, 0  ;;  %vm3505_vm13 = vcmp.eq.s32.totalorder %v3500_v2, 2  ;;  %vm3501_vm0 = vcmp.lt.s32.totalorder %v3500_v2, 2 }
 0x425   : > { %v3504_v24 = vsel %vm3502_vm5, %v16606_v25, %v3503_v29  ;;  %v3507_v38 = vsel %vm3505_vm13, %v3506_v18, %v16605_v13  ;;  %v3599_v49 = vsel %vm13563_vm1, 0, %v3597_v34  ;;  %9302 = vmatmul.mubr.msk.bf16.gmra.mrb[44].mxu1 %vm16602_vm3, %v14221_v46  ;;  %v3700_v12 = vsub.s32 4, %v16609_v28 }
 0x426   : > { %v3508_v48 = vsel %vm3501_vm0, %v3504_v24, %v3507_v38  ;;  %v3603_v27 = vadd.s32 3, %v3599_v49  ;;  %4434 = vmatprep.mubr.bf16.mxu1 %v16443_v61  ;;  %vm3498_vm7 = vweird.f32 %v16600_v4  ;;  %v3607_v62 = vxor.u32 2147483648, %v13724_v30  ;;  %vm16615_vm0 = vmmov %vm16602_vm3 }
 0x427   : > { %v3610_v35 = vxor.u32 2147483648, %v13720_v60  ;;  %v3804_v22 = vsub.s32 4, %v13638_v47  ;;  %v3405_v63 = vsel %vm3394_vm14, nan, %v3404_v33  ;;  %vm3602_vm1 = vweird.f32 %v13150_v20 }
 0x428   : > { %v3604_v16 = vand.u32 3, %v3603_v27  ;;  %vm16610_vm12 = vcmp.lt.s32.totalorder %v13083_v10, 0  ;;  %v3509_v41 = vsel %vm3498_vm7, nan, %v3508_v48  ;;  %vm16611_vm15 = vnez %v16412_v40  ;;  %v16613_v40 = vld [vmem:[#allocation138_spill] sm:$0xff] }
 0x429   : > { %v3701_v50 = vsel %vm16610_vm12, %v3700_v12, %v16609_v28  ;;  %v3711_v4 = vxor.u32 2147483648, %v13715_v19  ;;  %vm16612_vm4 = vcmp.lt.s32.totalorder %v13411_v54, 0  ;;  %v3714_v32 = vxor.u32 2147483648, %v13710_v21 }
 0x42a   : > { %v3703_v0 = vsel %vm16611_vm15, 0, %v3701_v50  ;;  %v3805_v31 = vsel %vm16612_vm4, %v3804_v22, %v13638_v47  ;;  %vm3606_vm8 = vcmp.eq.s32.totalorder %v3604_v16, 0  ;;  %vm3609_vm2 = vcmp.eq.s32.totalorder %v3604_v16, 2 }
 0x42b   : > { %v3707_v8 = vadd.s32 3, %v3703_v0  ;;  %v3608_v53 = vsel %vm3606_vm8, %v13720_v60, %v3607_v62  ;;  %v3611_v13 = vsel %vm3609_vm2, %v3610_v35, %v13724_v30  ;;  %v3807_v29 = vsel %vm13753_vm9, 0, %v3805_v31  ;;  %v10771_v18 = vpop.eup %10770  ;;  %v16636_v0 = vld [vmem:[#allocation12_spill] sm:$0xff] }
 0x42c   : > { %v3908_v25 = vsub.s32 4, %v16613_v40  ;;  %v14252_v7 = vpack.c.bf16 %v3509_v41, %v3405_v63  ;;  %vm3605_vm5 = vcmp.lt.s32.totalorder %v3604_v16, 2  ;;  %v3811_v47 = vadd.s32 3, %v3807_v29 }
 0x42d   : > { %v3708_v1 = vand.u32 3, %v3707_v8  ;;  %v3612_v2 = vsel %vm3605_vm5, %v3608_v53, %v3611_v13  ;;  %v3815_v57 = vxor.u32 2147483648, %v13965_v58  ;;  %v3818_v5 = vxor.u32 2147483648, %v13873_v36 }
 0x42e   : > { %vm16614_vm13 = vcmp.lt.s32.totalorder %v13368_v51, 0  ;;  %9303 = vmatmul.mubr.msk.bf16.gmra.mrb[48].mxu1 %vm16615_vm0, %v14252_v7  ;;  %v3812_v30 = vand.u32 3, %v3811_v47  ;;  %vm16616_vm7 = vnez %v16419_v9  ;;  %v4012_v24 = vsub.s32 4, %v13813_v44  ;;  %v10297_v47 = vld [vmem:[%s15866_s6 + $0x24] ss:$8 sps:$4 sm:$0xff]  }
 0x42f   : > { %v3909_v60 = vsel %vm16614_vm13, %v3908_v25, %v16613_v40  ;;  %vm3709_vm9 = vcmp.lt.s32.totalorder %v3708_v1, 2  ;;  %vm3710_vm3 = vcmp.eq.s32.totalorder %v3708_v1, 0  ;;  %vm3713_vm14 = vcmp.eq.s32.totalorder %v3708_v1, 2  ;;  %4444 = vmatprep.mubr.bf16.mxu1 %v16443_v61  ;;  %vm16617_vm13 = vmmov %vm16615_vm0 }
 0x430   : > { %v3712_v14 = vsel %vm3710_vm3, %v13710_v21, %v3711_v4  ;;  %v3715_v34 = vsel %vm3713_vm14, %v3714_v32, %v13715_v19  ;;  %v3911_v33 = vsel %vm16616_vm7, 0, %v3909_v60  ;;  %v3613_v38 = vsel %vm3602_vm1, nan, %v3612_v2  ;;  %v10295_v2 = vld [vmem:[%s15866_s6 + $0x20] ss:$8 sps:$4 sm:$0xff]   ;;  %v10298_v60 = vld [vmem:[%s15866_s6 + $0x30] ss:$8 sps:$4 sm:$0xff]  }
 0x431   : > { %vm3706_vm12 = vweird.f32 %v13083_v10  ;;  %v3716_v49 = vsel %vm3709_vm9, %v3712_v14, %v3715_v34  ;;  %v3919_v48 = vxor.u32 2147483648, %v13867_v26  ;;  %vm3814_vm15 = vcmp.eq.s32.totalorder %v3812_v30, 0  ;;  %v10301_v14 = vld [vmem:[%s15866_s6 + $0x40] ss:$8 sps:$4 sm:$0xff]  }
 0x432   : > { %v3717_v27 = vsel %vm3706_vm12, nan, %v3716_v49  ;;  %vm3817_vm4 = vcmp.eq.s32.totalorder %v3812_v30, 2  ;;  %v3915_v28 = vadd.s32 3, %v3911_v33  ;;  %v3816_v21 = vsel %vm3814_vm15, %v13873_v36, %v3815_v57  ;;  %vm16620_vm12 = vmmov %vm16617_vm13  ;;  %v16622_v57 = vld [vmem:[#allocation5_spill] sm:$0xff]  ;;  %v16624_v34 = vld [vmem:[#allocation6_spill] sm:$0xff] }
 0x433   : > { %v3819_v19 = vsel %vm3817_vm4, %v3818_v5, %v13965_v58  ;;  %v3922_v9 = vxor.u32 2147483648, %v13737_v3  ;;  %v4013_v20 = vsel %vm3928_vm11, %v4012_v24, %v13813_v44  ;;  %v14279_v62 = vpack.c.bf16 %v3717_v27, %v3613_v38  ;;  %v10300_v5 = vld [vmem:[%s15866_s6 + $0x34] ss:$8 sps:$4 sm:$0xff]   ;;  %v10304_v24 = vld [vmem:[%s15866_s6 + $0x50] ss:$8 sps:$4 sm:$0xff]  }
 0x434   : > { %v3916_v12 = vand.u32 3, %v3915_v28  ;;  %v4015_v10 = vsel %vm13933_vm6, 0, %v4013_v20  ;;  %vm3813_vm1 = vcmp.lt.s32.totalorder %v3812_v30, 2  ;;  %v4116_v22 = vsub.s32 4, %v13712_v39  ;;  %v10303_v30 = vld [vmem:[%s15866_s6 + $0x44] ss:$8 sps:$4 sm:$0xff]  }
 0x435   : > { %v4019_v35 = vadd.s32 3, %v4015_v10  ;;  %v3820_v63 = vsel %vm3813_vm1, %v3816_v21, %v3819_v19  ;;  %vm16618_vm11 = vcmp.lt.s32.totalorder %v13499_v59, 0  ;;  %v4023_v50 = vxor.u32 2147483648, %v10771_v18  ;;  %v10306_v33 = vld [vmem:[%s15866_s6 + $0x54] ss:$8 sps:$4 sm:$0xff]  }
 0x436   : > { %vm3917_vm8 = vcmp.lt.s32.totalorder %v3916_v12, 2  ;;  %vm3918_vm2 = vcmp.eq.s32.totalorder %v3916_v12, 0  ;;  %vm3921_vm5 = vcmp.eq.s32.totalorder %v3916_v12, 2  ;;  %9304 = vmatmul.mubr.msk.bf16.gmra.mrb[52].mxu1 %vm16617_vm13, %v14279_v62  ;;  %v4117_v45 = vsel %vm16618_vm11, %v4116_v22, %v13712_v39  ;;  %v10309_v38 = vld [vmem:[%s15866_s6 + $0x64] ss:$8 sps:$4 sm:$0xff]  }
 0x437   : > { %v3920_v36 = vsel %vm3918_vm2, %v13737_v3, %v3919_v48  ;;  %v3923_v44 = vsel %vm3921_vm5, %v3922_v9, %v13867_v26  ;;  %v4020_v58 = vand.u32 3, %v4019_v35  ;;  %4454 = vmatprep.mubr.bf16.mxu1 %v16443_v61  ;;  %v4026_v41 = vxor.u32 2147483648, %v14199_v11  ;;  %v10307_v49 = vld [vmem:[%s15866_s6 + $0x60] ss:$8 sps:$4 sm:$0xff]   ;;  %v16626_v48 = vld [vmem:[#allocation7_spill] sm:$0xff]  ;;  %v16628_v9 = vld [vmem:[#allocation8_spill] sm:$0xff] }
 0x438   : > { %v3924_v16 = vsel %vm3917_vm8, %v3920_v36, %v3923_v44  ;;  %v4119_v4 = vsel %vm13835_vm10, 0, %v4117_v45  ;;  %vm3810_vm6 = vweird.f32 %v13411_v54  ;;  %vm3914_vm0 = vweird.f32 %v13368_v51  ;;  %vm16621_vm8 = vmmov %vm16620_vm12  ;;  %v10312_v27 = vld [vmem:[%s15866_s6 + $0x74] ss:$8 sps:$4 sm:$0xff]   ;;  %v10310_v28 = vld [vmem:[%s15866_s6 + $0x70] ss:$8 sps:$4 sm:$0xff]  }
 0x439   : > { %v3821_v3 = vsel %vm3810_vm6, nan, %v3820_v63  ;;  %v3925_v26 = vsel %vm3914_vm0, nan, %v3924_v16  ;;  %v4123_v31 = vadd.s32 3, %v4119_v4  ;;  %vm4022_vm9 = vcmp.eq.s32.totalorder %v4020_v58, 0  ;;  %v10315_v21 = vld [vmem:[%s15866_s6 + $0x84] ss:$8 sps:$4 sm:$0xff]  }
 0x43a   : > { %vm4025_vm3 = vcmp.eq.s32.totalorder %v4020_v58, 2  ;;  %v4127_v39 = vxor.u32 2147483648, %v14190_v43  ;;  %v4130_v8 = vxor.u32 2147483648, %v13975_v56  ;;  %v4024_v32 = vsel %vm4022_vm9, %v14199_v11, %v4023_v50  ;;  %v10313_v19 = vld [vmem:[%s15866_s6 + $0x80] ss:$8 sps:$4 sm:$0xff]  }
 0x43b   : > { %v4027_v53 = vsel %vm4025_vm3, %v4026_v41, %v10771_v18  ;;  %v4124_v13 = vand.u32 3, %v4123_v31  ;;  %v14298_v29 = vpack.c.bf16 %v3925_v26, %v3821_v3  ;;  %vm4021_vm10 = vcmp.lt.s32.totalorder %v4020_v58, 2  ;;  %v10318_v20 = vld [vmem:[%s15866_s6 + $0x94] ss:$8 sps:$4 sm:$0xff]   ;;  %v10316_v12 = vld [vmem:[%s15866_s6 + $0x90] ss:$8 sps:$4 sm:$0xff]  }
 0x43c   : > { %v4028_v51 = vsel %vm4021_vm10, %v4024_v32, %v4027_v53  ;;  %vm4018_vm4 = vweird.f32 %v13582_v37  ;;  %vm4122_vm1 = vweird.f32 %v13499_v59  ;;  %v10294_v59 = vld [vmem:[%s15866_s6 + $0x14] ss:$8 sps:$4 sm:$0xff]   ;;  %v10292_v37 = vld [vmem:[%s15866_s6 + $0x10] ss:$8 sps:$4 sm:$0xff]   ;;  %vm16623_vm2 = vcmask 64512   ;;  %v16630_v22 = vld [vmem:[#allocation9_spill] sm:$0xff] }
 0x43d   : > { %vm4126_vm14 = vcmp.eq.s32.totalorder %v4124_v13, 0  ;;  %vm4129_vm7 = vcmp.eq.s32.totalorder %v4124_v13, 2  ;;  %vm4125_vm15 = vcmp.lt.s32.totalorder %v4124_v13, 2  ;;  %v4029_v11 = vsel %vm4018_vm4, nan, %v4028_v51  ;;  %vm16625_vm5 = vmmov %vm16623_vm2  ;;  %v10321_v10 = vld [vmem:[%s15866_s6 + $0xa4] ss:$8 sps:$4 sm:$0xff]  }
 0x43e   : > { %9305 = vmatmul.mubr.msk.bf16.gmra.mrb[56].mxu1 %vm16620_vm12, %v14298_v29  ;;  %v4128_v54 = vsel %vm4126_vm14, %v13975_v56, %v4127_v39  ;;  %v4131_v40 = vsel %vm4129_vm7, %v4130_v8, %v14190_v43  ;;  %v10289_v56 = vld [vmem:[%s15866_s6] ss:$8 sps:$4 sm:$0xff]   ;;  %v10291_v43 = vld [vmem:[%s15866_s6 + $0x4] ss:$8 sps:$4 sm:$0xff]   ;;  %vm16627_vm13 = vmmov %vm16623_vm2 }
 0x43f   : > { %4464 = vmatprep.mubr.bf16.mxu1 %v16443_v61  ;;  %v4132_v25 = vsel %vm4125_vm15, %v4128_v54, %v4131_v40  ;;  %5030 = vmatprep.subr.bf16.mxu0 %v10291_v43  ;;  %vm16629_vm11 = vmmov %vm16623_vm2  ;;  %v10319_v35 = vld [vmem:[%s15866_s6 + $0xa0] ss:$8 sps:$4 sm:$0xff]   ;;  %v10324_v63 = vld [vmem:[%s15866_s6 + $0xb4] ss:$8 sps:$4 sm:$0xff]  }
 0x440   : > { %v4133_v18 = vsel %vm4122_vm1, nan, %v4132_v25  ;;  %5031 = vmatpush1.bf16.msra.mxu0 %v10289_v56  ;;  %vm16631_vm6 = vmmov %vm16623_vm2  ;;  %v10322_v36 = vld [vmem:[%s15866_s6 + $0xb0] ss:$8 sps:$4 sm:$0xff]   ;;  %v10327_v44 = vld [vmem:[%s15866_s6 + $0xc4] ss:$8 sps:$4 sm:$0xff]  }
 0x441   : > { %v14307_v1 = vpack.c.bf16 %v4133_v18, %v4029_v11  ;;  %5032 = vmatprep.subr.bf16.mxu0 %v10294_v59  ;;  %v10325_v58 = vld [vmem:[%s15866_s6 + $0xc0] ss:$8 sps:$4 sm:$0xff]   ;;  %vm16633_vm0 = vmmov %vm16623_vm2  ;;  %v10330_v16 = vld [vmem:[%s15866_s6 + $0xd4] ss:$8 sps:$4 sm:$0xff]   ;;  %v4763_v18 = vlaneseq }
 0x442   : > { %v16632_v45 = vld [vmem:[#allocation10_spill] sm:$0xff]  ;;  %v10328_v50 = vld [vmem:[%s15866_s6 + $0xd0] ss:$8 sps:$4 sm:$0xff]   ;;  %vm16635_vm9 = vmmov %vm16633_vm0 }
 0x443   : > { %v16634_v41 = vld [vmem:[#allocation11_spill] sm:$0xff]  ;;  %vm16637_vm3 = vmmov %vm16633_vm0  ;;  %v16638_v4 = vld [vmem:[#allocation13_spill] sm:$0xff]  ;;  %v14464_v59 = vshrl.u32 %v4763_v18, 7 }
 0x444   : > { %5033 = vmatpush1.bf16.msra.mxu0 %v10292_v37  ;;  %vm16639_vm10 = vmmov %vm16633_vm0  ;;  %v16640_v3 = vld [vmem:[#allocation14_spill] sm:$0xff]  ;;  %v16642_v26 = vld [vmem:[#allocation15_spill] sm:$0xff] }
 0x445   : > { %5034 = vmatprep.subr.bf16.mxu0 %v10297_v47  ;;  %vm16641_vm14 = vmmov %vm16633_vm0  ;;  %v16644_v31 = vld [vmem:[#allocation16_spill] sm:$0xff]  ;;  %v10331_v39 = vld [vmem:[%s15866_s6 + $0xe0] ss:$8 sps:$4 sm:$0xff]  }
 0x446   : > { %9306 = vmatmul.mubr.msk.bf16.gmra.mrb[60].mxu1 %vm16621_vm8, %v14307_v1  ;;  %vm16643_vm7 = vmmov %vm16633_vm0  ;;  %v10333_v8 = vld [vmem:[%s15866_s6 + $0xe4] ss:$8 sps:$4 sm:$0xff]   ;;  %v10336_v32 = vld [vmem:[%s15866_s6 + $0xf4] ss:$8 sps:$4 sm:$0xff]  }
 0x447   : > { %4567 = vmatprep.mubr.bf16.mxu1 %v16443_v61  ;;  %vm16645_vm12 = vmmov %vm16633_vm0  ;;  %v10334_v53 = vld [vmem:[%s15866_s6 + $0xf0] ss:$8 sps:$4 sm:$0xff]   ;;  %v16646_v13 = vld [vmem:[#allocation17_spill] sm:$0xff] }
 0x448   : > { %5035 = vmatpush1.bf16.msra.mxu0 %v10295_v2  ;;  %vm16647_vm15 = vmmov %vm16633_vm0  ;;  %v16648_v51 = vld [vmem:[#allocation18_spill] sm:$0xff]  ;;  %v16650_v54 = vld [vmem:[#allocation19_spill] sm:$0xff]  ;;  %v14471_v2 = vsub.s32 0, %v14464_v59 }
 0x449   : > { %5036 = vmatprep.subr.bf16.mxu0 %v10300_v5  ;;  %vm16649_vm4 = vmmov %vm16633_vm0  ;;  %v16652_v40 = vld [vmem:[#allocation20_spill] sm:$0xff]  ;;  %v10339_v25 = vld [vmem:[%s15866_s6 + $0x104] ss:$8 sps:$4 sm:$0xff]  }
 0x44a   : > { %vm16651_vm1 = vmmov %vm16633_vm0  ;;  %v9282_v11 = vld.sshfl [vmem:[%s443_s12] sm:$0x33 pattern:$0x76325410]  ;;  %s418_s12 = scalar_lea.vmem [#allocation2], %s10078_s30 }
 0x44b   : > { %vm16653_vm8 = vmmov %vm16633_vm0  ;;  %v4179_v56 = vcombine.high %v9282_v11, %v9282_v11  ;;  %v14462_v43 = vpack.c.bf16 %v9282_v11, %v9282_v11  ;;  %v10343_v11 = vld [vmem:[%s15866_s6 + $0x120] ss:$8 sps:$4 sm:$0xff]   ;;  %s9002_s19 = sshll.u32 %s418_s12, 4  ;;  %s15812_s19 = int_to_ptr.vmem [resolvable:$true] %s9002_s19 }
 0x44c   : > { %5037 = vmatpush1.bf16.msra.mxu0 %v10298_v60  ;;  %s10804_s27 = scalar_lea.vmem %s15812_s19, 768 }
 0x44d   : > { %5038 = vmatprep.subr.bf16.mxu0 %v10303_v30  ;;  %v14466_v37 = vpack.c.bf16 %v4179_v56, %v4179_v56  ;;  %v4761_v47 = vpack.i.b16 %v14462_v43, %v14462_v43  ;;  %p10805_p12 = scmp.ne.s32.totalorder %s15812_s19, %s10804_s27 }
 0x44e   : > { %9310 = vmatmul.mubr.msk.bf16.vlgmr.msra.gmra.mrb[0].mxu1 %vm16623_vm2, %v16622_v57  ;;  %vm16654_vm2 = vcmask 1043456  }
 0x44f   : > { %4577 = vmatprep.mubr.bf16.mxu1 %v16443_v61  ;;  %v4768_v5 = vpack.i.b16 %v14466_v37, %v14466_v37  ;;  %p10806_p13 = pnand %p10805_p12, %p10989_p4 }
 0x450   : > { %5039 = vmatpush1.bf16.msra.mxu0 %v10301_v14  ;;  %v14476_v14 = vrot.slane %v4761_v47, %v14471_v2  ;;  %v10348_v47 = vld [vmem:[%s15866_s6 + $0x134] ss:$8 sps:$4 sm:$0xff]  }
 0x451   : > { %5040 = vmatprep.subr.bf16.mxu0 %v10306_v33  ;;  %p10807_p0 = pneg %p10806_p13 }
 0x454   : > { %5041 = vmatpush1.bf16.msra.mxu0 %v10304_v24  ;;  %v14479_v24 = vrot.slane %v4768_v5, %v14471_v2 }
 0x455   : > { %5042 = vmatprep.subr.bf16.mxu0 %v10309_v38 }
 0x456   : > { %9311 = vmatmul.mubr.msk.bf16.gmra.mrb[4].mxu1 %vm16625_vm5, %v16624_v34  ;;  %vm16655_vm5 = vmmov %vm16654_vm2 }
 0x457   : > { %4587 = vmatprep.mubr.bf16.mxu1 %v16443_v61 }
 0x458   : > { %5043 = vmatpush1.bf16.msra.mxu0 %v10307_v49 }
 0x459   : > { %5044 = vmatprep.subr.bf16.mxu0 %v10312_v27 }
 0x45c   : > { %5045 = vmatpush1.bf16.msra.mxu0 %v10310_v28 }
 0x45d   : > { %5046 = vmatprep.subr.bf16.mxu0 %v10315_v21 }
 0x45e   : > { %9312 = vmatmul.mubr.msk.bf16.gmra.mrb[8].mxu1 %vm16627_vm13, %v16626_v48  ;;  %vm16657_vm13 = vcmask 523264  }
 0x45f   : > { %4597 = vmatprep.mubr.bf16.mxu1 %v16443_v61 }
 0x460   : > { %5047 = vmatpush1.bf16.msra.mxu0 %v10313_v19 }
 0x461   : > { %5048 = vmatprep.subr.bf16.mxu0 %v10318_v20 }
 0x464   : > { %5049 = vmatpush1.bf16.msra.mxu0 %v10316_v12  ;;  %v10337_v12 = vld [vmem:[%s15866_s6 + $0x100] ss:$8 sps:$4 sm:$0xff]  }
 0x465   : > { %5050 = vmatprep.subr.bf16.mxu0 %v10321_v10 }
 0x466   : > { %9313 = vmatmul.mubr.msk.bf16.gmra.mrb[12].mxu1 %vm16629_vm11, %v16628_v9  ;;  %vm16659_vm11 = vmmov %vm16657_vm13 }
 0x467   : > { %4607 = vmatprep.mubr.bf16.mxu1 %v16443_v61 }
 0x468   : > { %5051 = vmatpush1.bf16.msra.mxu0 %v10319_v35 }
 0x469   : > { %5052 = vmatprep.subr.bf16.mxu0 %v10324_v63  ;;  %v10342_v63 = vld [vmem:[%s15866_s6 + $0x114] ss:$8 sps:$4 sm:$0xff]  }
 0x46c   : > { %5053 = vmatpush1.bf16.msra.mxu0 %v10322_v36 }
 0x46d   : > { %5054 = vmatprep.subr.bf16.mxu0 %v10327_v44 }
 0x46e   : > { %9314 = vmatmul.mubr.msk.bf16.gmra.mrb[16].mxu1 %vm16631_vm6, %v16630_v22  ;;  %vm16660_vm6 = vmmov %vm16659_vm11 }
 0x46f   : > { %4617 = vmatprep.mubr.bf16.mxu1 %v16443_v61 }
 0x470   : > { %5055 = vmatpush1.bf16.msra.mxu0 %v10325_v58 }
 0x471   : > { %5056 = vmatprep.subr.bf16.mxu0 %v10330_v16 }
 0x474   : > { %5057 = vmatpush1.bf16.msra.mxu0 %v10328_v50  ;;  %v10340_v50 = vld [vmem:[%s15866_s6 + $0x110] ss:$8 sps:$4 sm:$0xff]  }
 0x475   : > { %5058 = vmatprep.subr.bf16.mxu0 %v10333_v8  ;;  %v10345_v8 = vld [vmem:[%s15866_s6 + $0x124] ss:$8 sps:$4 sm:$0xff]  }
 0x476   : > { %9315 = vmatmul.mubr.msk.bf16.gmra.mrb[20].mxu1 %vm16633_vm0, %v16632_v45  ;;  %vm16661_vm0 = vmmov %vm16660_vm6 }
 0x477   : > { %4627 = vmatprep.mubr.bf16.mxu1 %v16443_v61 }
 0x478   : > { %5059 = vmatpush1.bf16.msra.mxu0 %v10331_v39 }
 0x479   : > { %5060 = vmatprep.subr.bf16.mxu0 %v10336_v32 }
 0x47c   : > { %5061 = vmatpush1.bf16.msra.mxu0 %v10334_v53 }
 0x47d   : > { %5526 = vmatprep.subr.bf16.mxu0 %v10339_v25 }
 0x47e   : > { %9316 = vmatmul.mubr.msk.bf16.gmra.mrb[24].mxu1 %vm16635_vm9, %v16634_v41  ;;  %vm16663_vm9 = vmmov %vm16661_vm0 }
 0x47f   : > { %4637 = vmatprep.mubr.bf16.mxu1 %v16443_v61 }
 0x486   : > { %9317 = vmatmul.mubr.msk.bf16.gmra.mrb[28].mxu1 %vm16637_vm3, %v16636_v0  ;;  %vm16665_vm3 = vmmov %vm16661_vm0 }
 0x487   : > { %4647 = vmatprep.mubr.bf16.mxu1 %v16443_v61 }
 0x48e   : > { %9318 = vmatmul.mubr.msk.bf16.gmra.mrb[32].mxu1 %vm16639_vm10, %v16638_v4  ;;  %vm16666_vm10 = vmmov %vm16661_vm0 }
 0x48f   : > { %4657 = vmatprep.mubr.bf16.mxu1 %v16443_v61 }
 0x496   : > { %9319 = vmatmul.mubr.msk.bf16.gmra.mrb[36].mxu1 %vm16641_vm14, %v16640_v3  ;;  %vm16667_vm14 = vmmov %vm16661_vm0 }
 0x497   : > { %4667 = vmatprep.mubr.bf16.mxu1 %v16443_v61 }
 0x49e   : > { %9320 = vmatmul.mubr.msk.bf16.gmra.mrb[40].mxu1 %vm16643_vm7, %v16642_v26  ;;  %vm16668_vm7 = vmmov %vm16661_vm0 }
 0x49f   : > { %4677 = vmatprep.mubr.bf16.mxu1 %v16443_v61 }
 0x4a6   : > { %9321 = vmatmul.mubr.msk.bf16.gmra.mrb[44].mxu1 %vm16645_vm12, %v16644_v31  ;;  %vm16669_vm12 = vmmov %vm16661_vm0 }
 0x4a7   : > { %4687 = vmatprep.mubr.bf16.mxu1 %v16443_v61 }
 0x4ae   : > { %9322 = vmatmul.mubr.msk.bf16.gmra.mrb[48].mxu1 %vm16647_vm15, %v16646_v13  ;;  %vm16670_vm15 = vmmov %vm16661_vm0 }
 0x4af   : > { %4697 = vmatprep.mubr.bf16.mxu1 %v16443_v61 }
 0x4b6   : > { %9323 = vmatmul.mubr.msk.bf16.gmra.mrb[52].mxu1 %vm16649_vm4, %v16648_v51  ;;  %vm16671_vm4 = vmmov %vm16661_vm0 }
 0x4b7   : > { %4707 = vmatprep.mubr.bf16.mxu1 %v16443_v61 }
 0x4be   : > { %9324 = vmatmul.mubr.msk.bf16.gmra.mrb[56].mxu1 %vm16651_vm1, %v16650_v54  ;;  %vm16672_vm1 = vmmov %vm16661_vm0 }
 0x4bf   : > { %4717 = vmatprep.mubr.bf16.mxu1 %v16443_v61 }
 0x4c6   : > { %9325 = vmatmul.mubr.msk.bf16.gmra.mrb[60].mxu1 %vm16653_vm8, %v16652_v40  ;;  %vm16673_vm8 = vmmov %vm16661_vm0 }
 0x521   : > { %v4569_v60 = vpop.f32.mrb[0].mxu1 }
 0x522   : > { %v4571_v30 = vpop.f32.mrb[1].mxu1 }
 0x523   : > { %v4573_v33 = vpop.f32.mrb[2].mxu1 }
 0x524   : > { %v4728_v38 = vpack.c.bf16 %v4573_v33, %v4569_v60  ;;  %v4575_v49 = vpop.f32.mrb[3].mxu1 }
 0x525   : > { %v4729_v27 = vpack.c.bf16 %v4575_v49, %v4571_v30 }
 0x526   : > { %v4774_v28 = vadd.bf16 %v14476_v14, %v4728_v38  ;;  %v10346_v38 = vld [vmem:[%s15866_s6 + $0x130] ss:$8 sps:$4 sm:$0xff]  }
 0x527   : > { %v4775_v21 = vadd.bf16 %v14479_v24, %v4729_v27  ;;  %v10351_v27 = vld [vmem:[%s15866_s6 + $0x144] ss:$8 sps:$4 sm:$0xff]  }
 0x528   : > { %v4806_v10 = vmax.bf16 %v16443_v61, %v4774_v28 }
 0x529   : > { %v4579_v19 = vpop.f32.mrb[4].mxu1  ;;  %v4807_v20 = vmax.bf16 %v16443_v61, %v4775_v21 }
 0x52a   : > { %v4581_v35 = vpop.f32.mrb[5].mxu1 }
 0x52b   : > { %v4583_v36 = vpop.f32.mrb[6].mxu1  ;;  %5062 = vmatprep.mubr.bf16.mxu0 %v4807_v20  ;;  %v10349_v20 = vld [vmem:[%s15866_s6 + $0x140] ss:$8 sps:$4 sm:$0xff]  }
 0x52c   : > { %v4730_v44 = vpack.c.bf16 %v4583_v36, %v4579_v19  ;;  %v4585_v58 = vpop.f32.mrb[7].mxu1  ;;  %5063 = vmatmul.mubr.bf16.vlgmr.msra.gmra.mrb[32].mxu0 %v4806_v10 }
 0x52d   : > { %v4731_v16 = vpack.c.bf16 %v4585_v58, %v4581_v35  ;;  %5527 = vmatpush1.bf16.msra.mxu0 %v10337_v12  ;;  %v10354_v35 = vld [vmem:[%s15866_s6 + $0x154] ss:$8 sps:$4 sm:$0xff]  }
 0x52e   : > { %v4776_v39 = vadd.bf16 %v14476_v14, %v4730_v44  ;;  %5528 = vmatprep.subr.bf16.mxu0 %v10342_v63 }
 0x52f   : > { %v4777_v32 = vadd.bf16 %v14479_v24, %v4731_v16  ;;  %v10352_v16 = vld [vmem:[%s15866_s6 + $0x150] ss:$8 sps:$4 sm:$0xff]  }
 0x530   : > { %v4808_v56 = vmax.bf16 %v16443_v61, %v4776_v39  ;;  %v10357_v39 = vld [vmem:[%s15866_s6 + $0x164] ss:$8 sps:$4 sm:$0xff]  }
 0x531   : > { %v4589_v53 = vpop.f32.mrb[8].mxu1  ;;  %v4809_v25 = vmax.bf16 %v16443_v61, %v4777_v32  ;;  %5529 = vmatpush1.bf16.msra.mxu0 %v10340_v50 }
 0x532   : > { %v4591_v18 = vpop.f32.mrb[9].mxu1  ;;  %5530 = vmatprep.subr.bf16.mxu0 %v10345_v8 }
 0x533   : > { %v4593_v5 = vpop.f32.mrb[10].mxu1  ;;  %5072 = vmatprep.mubr.bf16.mxu0 %v4809_v25  ;;  %v10355_v25 = vld [vmem:[%s15866_s6 + $0x160] ss:$8 sps:$4 sm:$0xff]  }
 0x534   : > { %v4732_v60 = vpack.c.bf16 %v4593_v5, %v4589_v53  ;;  %v4595_v30 = vpop.f32.mrb[11].mxu1  ;;  %5073 = vmatmul.mubr.bf16.gmra.mrb[36].mxu0 %v4808_v56  ;;  %v10360_v56 = vld [vmem:[%s15866_s6 + $0x174] ss:$8 sps:$4 sm:$0xff]  }
 0x535   : > { %v4733_v33 = vpack.c.bf16 %v4595_v30, %v4591_v18  ;;  %5531 = vmatpush1.bf16.msra.mxu0 %v10343_v11 }
 0x536   : > { %v4778_v49 = vadd.bf16 %v14476_v14, %v4732_v60  ;;  %5532 = vmatprep.subr.bf16.mxu0 %v10348_v47 }
 0x537   : > { %v4779_v28 = vadd.bf16 %v14479_v24, %v4733_v33  ;;  %v10358_v33 = vld [vmem:[%s15866_s6 + $0x170] ss:$8 sps:$4 sm:$0xff]  }
 0x538   : > { %v4810_v10 = vmax.bf16 %v16443_v61, %v4778_v49  ;;  %v10363_v49 = vld [vmem:[%s15866_s6 + $0x184] ss:$8 sps:$4 sm:$0xff]  }
 0x539   : > { %v4599_v21 = vpop.f32.mrb[12].mxu1  ;;  %v4811_v19 = vmax.bf16 %v16443_v61, %v4779_v28  ;;  %5533 = vmatpush1.bf16.msra.mxu0 %v10346_v38 }
 0x53a   : > { %v4601_v12 = vpop.f32.mrb[13].mxu1  ;;  %5534 = vmatprep.subr.bf16.mxu0 %v10351_v27 }
 0x53b   : > { %v4603_v63 = vpop.f32.mrb[14].mxu1  ;;  %5082 = vmatprep.mubr.bf16.mxu0 %v4811_v19  ;;  %v10361_v19 = vld [vmem:[%s15866_s6 + $0x180] ss:$8 sps:$4 sm:$0xff]  }
 0x53c   : > { %v4734_v36 = vpack.c.bf16 %v4603_v63, %v4599_v21  ;;  %v4605_v44 = vpop.f32.mrb[15].mxu1  ;;  %5083 = vmatmul.mubr.bf16.gmra.mrb[40].mxu0 %v4810_v10  ;;  %v10366_v10 = vld [vmem:[%s15866_s6 + $0x194] ss:$8 sps:$4 sm:$0xff]  }
 0x53d   : > { %v4735_v58 = vpack.c.bf16 %v4605_v44, %v4601_v12  ;;  %5535 = vmatpush1.bf16.msra.mxu0 %v10349_v20 }
 0x53e   : > { %v4780_v50 = vadd.bf16 %v14476_v14, %v4734_v36  ;;  %5536 = vmatprep.subr.bf16.mxu0 %v10354_v35 }
 0x53f   : > { %v4781_v8 = vadd.bf16 %v14479_v24, %v4735_v58  ;;  %v10364_v58 = vld [vmem:[%s15866_s6 + $0x190] ss:$8 sps:$4 sm:$0xff]  }
 0x540   : > { %v4812_v18 = vmax.bf16 %v16443_v61, %v4780_v50  ;;  %v10369_v50 = vld [vmem:[%s15866_s6 + $0x1a4] ss:$8 sps:$4 sm:$0xff]  }
 0x541   : > { %v4609_v32 = vpop.f32.mrb[16].mxu1  ;;  %v4813_v53 = vmax.bf16 %v16443_v61, %v4781_v8  ;;  %5537 = vmatpush1.bf16.msra.mxu0 %v10352_v16 }
 0x542   : > { %v4611_v11 = vpop.f32.mrb[17].mxu1  ;;  %5538 = vmatprep.subr.bf16.mxu0 %v10357_v39 }
 0x543   : > { %v4613_v47 = vpop.f32.mrb[18].mxu1  ;;  %5092 = vmatprep.mubr.bf16.mxu0 %v4813_v53  ;;  %v10367_v53 = vld [vmem:[%s15866_s6 + $0x1a0] ss:$8 sps:$4 sm:$0xff]  }
 0x544   : > { %v4736_v5 = vpack.c.bf16 %v4613_v47, %v4609_v32  ;;  %v4615_v60 = vpop.f32.mrb[19].mxu1  ;;  %5093 = vmatmul.mubr.bf16.gmra.mrb[44].mxu0 %v4812_v18  ;;  %v10372_v18 = vld [vmem:[%s15866_s6 + $0x1b4] ss:$8 sps:$4 sm:$0xff]  }
 0x545   : > { %v4737_v30 = vpack.c.bf16 %v4615_v60, %v4611_v11  ;;  %5539 = vmatpush1.bf16.msra.mxu0 %v10355_v25 }
 0x546   : > { %v4782_v38 = vadd.bf16 %v14476_v14, %v4736_v5  ;;  %5540 = vmatprep.subr.bf16.mxu0 %v10360_v56 }
 0x547   : > { %v4783_v27 = vadd.bf16 %v14479_v24, %v4737_v30  ;;  %v10370_v30 = vld [vmem:[%s15866_s6 + $0x1b0] ss:$8 sps:$4 sm:$0xff]  }
 0x548   : > { %v4814_v12 = vmax.bf16 %v16443_v61, %v4782_v38  ;;  %v10375_v38 = vld [vmem:[%s15866_s6 + $0x1c4] ss:$8 sps:$4 sm:$0xff]  }
 0x549   : > { %v4619_v28 = vpop.f32.mrb[20].mxu1  ;;  %v4815_v21 = vmax.bf16 %v16443_v61, %v4783_v27  ;;  %5541 = vmatpush1.bf16.msra.mxu0 %v10358_v33 }
 0x54a   : > { %v4621_v20 = vpop.f32.mrb[21].mxu1  ;;  %5542 = vmatprep.subr.bf16.mxu0 %v10363_v49 }
 0x54b   : > { %v4623_v35 = vpop.f32.mrb[22].mxu1  ;;  %5102 = vmatprep.mubr.bf16.mxu0 %v4815_v21  ;;  %v10373_v21 = vld [vmem:[%s15866_s6 + $0x1c0] ss:$8 sps:$4 sm:$0xff]  }
 0x54c   : > { %v4738_v63 = vpack.c.bf16 %v4623_v35, %v4619_v28  ;;  %v4625_v36 = vpop.f32.mrb[23].mxu1  ;;  %5103 = vmatmul.mubr.bf16.gmra.mrb[48].mxu0 %v4814_v12  ;;  %v10378_v12 = vld [vmem:[%s15866_s6 + $0x1d4] ss:$8 sps:$4 sm:$0xff]  }
 0x54d   : > { %v4739_v44 = vpack.c.bf16 %v4625_v36, %v4621_v20  ;;  %5543 = vmatpush1.bf16.msra.mxu0 %v10361_v19 }
 0x54e   : > { %v4784_v16 = vadd.bf16 %v14476_v14, %v4738_v63  ;;  %5544 = vmatprep.subr.bf16.mxu0 %v10366_v10 }
 0x54f   : > { %v4785_v39 = vadd.bf16 %v14479_v24, %v4739_v44  ;;  %v10376_v44 = vld [vmem:[%s15866_s6 + $0x1d0] ss:$8 sps:$4 sm:$0xff]  }
 0x550   : > { %v4816_v11 = vmax.bf16 %v16443_v61, %v4784_v16  ;;  %v10381_v16 = vld [vmem:[%s15866_s6 + $0x1e4] ss:$8 sps:$4 sm:$0xff]  }
 0x551   : > { %v4629_v8 = vpop.f32.mrb[24].mxu1  ;;  %v4817_v32 = vmax.bf16 %v16443_v61, %v4785_v39  ;;  %5545 = vmatpush1.bf16.msra.mxu0 %v10364_v58 }
 0x552   : > { %v4631_v25 = vpop.f32.mrb[25].mxu1  ;;  %5546 = vmatprep.subr.bf16.mxu0 %v10369_v50 }
 0x553   : > { %v4633_v56 = vpop.f32.mrb[26].mxu1  ;;  %5112 = vmatprep.mubr.bf16.mxu0 %v4817_v32  ;;  %v10379_v32 = vld [vmem:[%s15866_s6 + $0x1e0] ss:$8 sps:$4 sm:$0xff]  }
 0x554   : > { %v4740_v47 = vpack.c.bf16 %v4633_v56, %v4629_v8  ;;  %v4635_v5 = vpop.f32.mrb[27].mxu1  ;;  %5113 = vmatmul.mubr.bf16.gmra.mrb[52].mxu0 %v4816_v11 }
 0x555   : > { %v4741_v60 = vpack.c.bf16 %v4635_v5, %v4631_v25  ;;  %5547 = vmatpush1.bf16.msra.mxu0 %v10367_v53 }
 0x556   : > { %v4786_v33 = vadd.bf16 %v14476_v14, %v4740_v47  ;;  %5548 = vmatprep.subr.bf16.mxu0 %v10372_v18 }
 0x557   : > { %v4787_v49 = vadd.bf16 %v14479_v24, %v4741_v60 }
 0x558   : > { %v4818_v20 = vmax.bf16 %v16443_v61, %v4786_v33 }
 0x559   : > { %v4639_v27 = vpop.f32.mrb[28].mxu1  ;;  %v4819_v28 = vmax.bf16 %v16443_v61, %v4787_v49  ;;  %5549 = vmatpush1.bf16.msra.mxu0 %v10370_v30 }
 0x55a   : > { %v4641_v19 = vpop.f32.mrb[29].mxu1  ;;  %5550 = vmatprep.subr.bf16.mxu0 %v10375_v38 }
 0x55b   : > { %v4643_v10 = vpop.f32.mrb[30].mxu1  ;;  %5122 = vmatprep.mubr.bf16.mxu0 %v4819_v28 }
 0x55c   : > { %v4742_v35 = vpack.c.bf16 %v4643_v10, %v4639_v27  ;;  %v4645_v63 = vpop.f32.mrb[31].mxu1  ;;  %5123 = vmatmul.mubr.bf16.gmra.mrb[56].mxu0 %v4818_v20 }
 0x55d   : > { %v4743_v36 = vpack.c.bf16 %v4645_v63, %v4641_v19  ;;  %5551 = vmatpush1.bf16.msra.mxu0 %v10373_v21 }
 0x55e   : > { %v4788_v58 = vadd.bf16 %v14476_v14, %v4742_v35  ;;  %5552 = vmatprep.subr.bf16.mxu0 %v10378_v12 }
 0x55f   : > { %v4789_v50 = vadd.bf16 %v14479_v24, %v4743_v36 }
 0x560   : > { %v4820_v25 = vmax.bf16 %v16443_v61, %v4788_v58 }
 0x561   : > { %v4649_v39 = vpop.f32.mrb[32].mxu1  ;;  %v4821_v8 = vmax.bf16 %v16443_v61, %v4789_v50  ;;  %5553 = vmatpush1.bf16.msra.mxu0 %v10376_v44 }
 0x562   : > { %v4651_v53 = vpop.f32.mrb[33].mxu1  ;;  %5554 = vmatprep.subr.bf16.mxu0 %v10381_v16 }
 0x563   : > { %v4653_v11 = vpop.f32.mrb[34].mxu1  ;;  %5132 = vmatprep.mubr.bf16.mxu0 %v4821_v8 }
 0x564   : > { %v4744_v18 = vpack.c.bf16 %v4653_v11, %v4649_v39  ;;  %v4655_v56 = vpop.f32.mrb[35].mxu1  ;;  %5133 = vmatmul.mubr.bf16.gmra.mrb[60].mxu0 %v4820_v25 }
 0x565   : > { %v4745_v47 = vpack.c.bf16 %v4655_v56, %v4651_v53  ;;  %5555 = vmatpush1.bf16.msra.mxu0 %v10379_v32 }
 0x566   : > { %v4790_v5 = vadd.bf16 %v14476_v14, %v4744_v18 }
 0x567   : > { %v4791_v60 = vadd.bf16 %v14479_v24, %v4745_v47 }
 0x568   : > { %v4822_v49 = vmax.bf16 %v16443_v61, %v4790_v5 }
 0x569   : > { %v4659_v30 = vpop.f32.mrb[36].mxu1  ;;  %v4823_v33 = vmax.bf16 %v16443_v61, %v4791_v60 }
 0x56a   : > { %v4661_v38 = vpop.f32.mrb[37].mxu1 }
 0x56b   : > { %v4663_v27 = vpop.f32.mrb[38].mxu1  ;;  %5142 = vmatprep.mubr.bf16.mxu0 %v4823_v33 }
 0x56c   : > { %v4746_v28 = vpack.c.bf16 %v4663_v27, %v4659_v30  ;;  %v4665_v21 = vpop.f32.mrb[39].mxu1  ;;  %5143 = vmatmul.mubr.bf16.gmra.mrb[64].mxu0 %v4822_v49 }
 0x56d   : > { %v4747_v19 = vpack.c.bf16 %v4665_v21, %v4661_v38 }
 0x56e   : > { %v4792_v20 = vadd.bf16 %v14476_v14, %v4746_v28 }
 0x56f   : > { %v4793_v12 = vadd.bf16 %v14479_v24, %v4747_v19 }
 0x570   : > { %v4824_v36 = vmax.bf16 %v16443_v61, %v4792_v20 }
 0x571   : > { %v4669_v10 = vpop.f32.mrb[40].mxu1  ;;  %v4825_v35 = vmax.bf16 %v16443_v61, %v4793_v12 }
 0x572   : > { %v4671_v63 = vpop.f32.mrb[41].mxu1 }
 0x573   : > { %v4673_v44 = vpop.f32.mrb[42].mxu1  ;;  %5152 = vmatprep.mubr.bf16.mxu0 %v4825_v35  ;;  %v10384_v35 = vld [vmem:[%s15866_s6 + $0x1f4] ss:$8 sps:$4 sm:$0xff]  }
 0x574   : > { %v4748_v58 = vpack.c.bf16 %v4673_v44, %v4669_v10  ;;  %v4675_v16 = vpop.f32.mrb[43].mxu1  ;;  %5153 = vmatmul.mubr.bf16.gmra.mrb[68].mxu0 %v4824_v36  ;;  %v10382_v10 = vld [vmem:[%s15866_s6 + $0x1f0] ss:$8 sps:$4 sm:$0xff]   ;;  %5556 = vmatprep.subr.bf16.mxu0 %v10384_v35 }
 0x575   : > { %v4749_v50 = vpack.c.bf16 %v4675_v16, %v4671_v63  ;;  %5557 = vmatpush1.bf16.msra.mxu0 %v10382_v10 }
 0x576   : > { %v4794_v39 = vadd.bf16 %v14476_v14, %v4748_v58 }
 0x577   : > { %v4795_v8 = vadd.bf16 %v14479_v24, %v4749_v50 }
 0x578   : > { %v4826_v11 = vmax.bf16 %v16443_v61, %v4794_v39 }
 0x579   : > { %v4679_v32 = vpop.f32.mrb[44].mxu1  ;;  %v4827_v53 = vmax.bf16 %v16443_v61, %v4795_v8 }
 0x57a   : > { %v4681_v25 = vpop.f32.mrb[45].mxu1 }
 0x57b   : > { %v4683_v18 = vpop.f32.mrb[46].mxu1  ;;  %5162 = vmatprep.mubr.bf16.mxu0 %v4827_v53 }
 0x57c   : > { %v4750_v56 = vpack.c.bf16 %v4683_v18, %v4679_v32  ;;  %v4685_v47 = vpop.f32.mrb[47].mxu1  ;;  %5163 = vmatmul.mubr.bf16.gmra.mrb[72].mxu0 %v4826_v11 }
 0x57d   : > { %v4751_v5 = vpack.c.bf16 %v4685_v47, %v4681_v25 }
 0x57e   : > { %v4796_v60 = vadd.bf16 %v14476_v14, %v4750_v56 }
 0x57f   : > { %v4797_v30 = vadd.bf16 %v14479_v24, %v4751_v5 }
 0x580   : > { %v4828_v27 = vmax.bf16 %v16443_v61, %v4796_v60 }
 0x581   : > { %v4689_v33 = vpop.f32.mrb[48].mxu1  ;;  %v4829_v38 = vmax.bf16 %v16443_v61, %v4797_v30 }
 0x582   : > { %v4691_v49 = vpop.f32.mrb[49].mxu1 }
 0x583   : > { %v4693_v28 = vpop.f32.mrb[50].mxu1  ;;  %5172 = vmatprep.mubr.bf16.mxu0 %v4829_v38 }
 0x584   : > { %v4752_v21 = vpack.c.bf16 %v4693_v28, %v4689_v33  ;;  %v4695_v19 = vpop.f32.mrb[51].mxu1  ;;  %5173 = vmatmul.mubr.bf16.gmra.mrb[76].mxu0 %v4828_v27 }
 0x585   : > { %v4753_v20 = vpack.c.bf16 %v4695_v19, %v4691_v49 }
 0x586   : > { %v4798_v12 = vadd.bf16 %v14476_v14, %v4752_v21 }
 0x587   : > { %v4799_v63 = vadd.bf16 %v14479_v24, %v4753_v20 }
 0x588   : > { %v4830_v16 = vmax.bf16 %v16443_v61, %v4798_v12 }
 0x589   : > { %v4699_v36 = vpop.f32.mrb[52].mxu1  ;;  %v4831_v44 = vmax.bf16 %v16443_v61, %v4799_v63 }
 0x58a   : > { %v4701_v58 = vpop.f32.mrb[53].mxu1 }
 0x58b   : > { %v4703_v50 = vpop.f32.mrb[54].mxu1  ;;  %5182 = vmatprep.mubr.bf16.mxu0 %v4831_v44 }
 0x58c   : > { %v4754_v39 = vpack.c.bf16 %v4703_v50, %v4699_v36  ;;  %v4705_v8 = vpop.f32.mrb[55].mxu1  ;;  %5183 = vmatmul.mubr.bf16.gmra.mrb[80].mxu0 %v4830_v16  ;;  %v10385_v16 = vld [vmem:[%s15866_s6 + $0x200] ss:$8 sps:$4 sm:$0xff]   ;;  %v10387_v50 = vld [vmem:[%s15866_s6 + $0x204] ss:$8 sps:$4 sm:$0xff]  }
 0x58d   : > { %v4755_v32 = vpack.c.bf16 %v4705_v8, %v4701_v58  ;;  %6022 = vmatprep.subr.bf16.mxu1 %v10387_v50  ;;  %v4167_v8 = vld [vmem:[%s15868_s8 + $0x8] sm:$0xff] }
 0x58e   : > { %v4800_v53 = vadd.bf16 %v14476_v14, %v4754_v39  ;;  %6023 = vmatpush1.bf16.msra.mxu1 %v10385_v16  ;;  %v4166_v39 = vld [vmem:[%s15868_s8] sm:$0xff] }
 0x58f   : > { %v4801_v25 = vadd.bf16 %v14479_v24, %v4755_v32  ;;  %v14656_v32 = vpack.c.bf16 %v4166_v39, %v4166_v39 }
 0x590   : > { %v4832_v47 = vmax.bf16 %v16443_v61, %v4800_v53  ;;  %v10391_v53 = vld [vmem:[%s15866_s6 + $0x220] ss:$8 sps:$4 sm:$0xff]  }
 0x591   : > { %v4709_v11 = vpop.f32.mrb[56].mxu1  ;;  %v4833_v18 = vmax.bf16 %v16443_v61, %v4801_v25  ;;  %v10393_v25 = vld [vmem:[%s15866_s6 + $0x224] ss:$8 sps:$4 sm:$0xff]  }
 0x592   : > { %v4711_v56 = vpop.f32.mrb[57].mxu1 }
 0x593   : > { %v4713_v5 = vpop.f32.mrb[58].mxu1  ;;  %5192 = vmatprep.mubr.bf16.mxu0 %v4833_v18  ;;  %v14668_v18 = vpack.i.b16 %v14656_v32, %v14656_v32 }
 0x594   : > { %v4756_v60 = vpack.c.bf16 %v4713_v5, %v4709_v11  ;;  %v4715_v30 = vpop.f32.mrb[59].mxu1  ;;  %5193 = vmatmul.mubr.bf16.gmra.mrb[84].mxu0 %v4832_v47  ;;  %v14664_v11 = vpack.c.bf16 %v4167_v8, %v4167_v8  ;;  %v10394_v47 = vld [vmem:[%s15866_s6 + $0x230] ss:$8 sps:$4 sm:$0xff]   ;;  %v10396_v5 = vld [vmem:[%s15866_s6 + $0x234] ss:$8 sps:$4 sm:$0xff]  }
 0x595   : > { %v4757_v33 = vpack.c.bf16 %v4715_v30, %v4711_v56 }
 0x596   : > { %v4802_v38 = vadd.bf16 %v14476_v14, %v4756_v60  ;;  %v14672_v56 = vpack.i.b16 %v14664_v11, %v14664_v11 }
 0x597   : > { %v4803_v49 = vadd.bf16 %v14479_v24, %v4757_v33  ;;  %v14682_v33 = vrot.slane %v14668_v18, %v14471_v2 }
 0x598   : > { %v4834_v19 = vmax.bf16 %v16443_v61, %v4802_v38 }
 0x599   : > { %v4719_v27 = vpop.f32.mrb[60].mxu1  ;;  %v4835_v28 = vmax.bf16 %v16443_v61, %v4803_v49  ;;  %v14686_v49 = vrot.slane %v14672_v56, %v14471_v2 }
 0x59a   : > { %v4721_v21 = vpop.f32.mrb[61].mxu1 }
 0x59b   : > { %v4723_v20 = vpop.f32.mrb[62].mxu1  ;;  %5202 = vmatprep.mubr.bf16.mxu0 %v4835_v28 }
 0x59c   : > { %v4758_v12 = vpack.c.bf16 %v4723_v20, %v4719_v27  ;;  %v4725_v10 = vpop.f32.mrb[63].mxu1  ;;  %5203 = vmatmul.mubr.bf16.gmra.mrb[88].mxu0 %v4834_v19  ;;  %v10399_v19 = vld [vmem:[%s15866_s6 + $0x244] ss:$8 sps:$4 sm:$0xff]  }
 0x59d   : > { %v4759_v35 = vpack.c.bf16 %v4725_v10, %v4721_v21  ;;  %v10397_v21 = vld [vmem:[%s15866_s6 + $0x240] ss:$8 sps:$4 sm:$0xff]  }
 0x59e   : > { %v4804_v63 = vadd.bf16 %v14476_v14, %v4758_v12  ;;  %v10388_v14 = vld [vmem:[%s15866_s6 + $0x210] ss:$8 sps:$4 sm:$0xff]   ;;  %v10402_v12 = vld [vmem:[%s15866_s6 + $0x254] ss:$8 sps:$4 sm:$0xff]  }
 0x59f   : > { %v4805_v36 = vadd.bf16 %v14479_v24, %v4759_v35  ;;  %v10390_v24 = vld [vmem:[%s15866_s6 + $0x214] ss:$8 sps:$4 sm:$0xff]  }
 0x5a0   : > { %v4836_v58 = vmax.bf16 %v16443_v61, %v4804_v63  ;;  %6024 = vmatprep.subr.bf16.mxu1 %v10390_v24  ;;  %v10400_v63 = vld [vmem:[%s15866_s6 + $0x250] ss:$8 sps:$4 sm:$0xff]   ;;  %v10403_v24 = vld [vmem:[%s15866_s6 + $0x260] ss:$8 sps:$4 sm:$0xff]  }
 0x5a1   : > { %v4837_v44 = vmax.bf16 %v16443_v61, %v4805_v36  ;;  %6025 = vmatpush1.bf16.msra.mxu1 %v10388_v14  ;;  %v10405_v36 = vld [vmem:[%s15866_s6 + $0x264] ss:$8 sps:$4 sm:$0xff]  }
 0x5a2   : > { %6026 = vmatprep.subr.bf16.mxu1 %v10393_v25 }
 0x5a3   : > { %5212 = vmatprep.mubr.bf16.mxu0 %v4837_v44 }
 0x5a4   : > { %5213 = vmatmul.mubr.bf16.gmra.mrb[92].mxu0 %v4836_v58 }
 0x5a5   : > { %6027 = vmatpush1.bf16.msra.mxu1 %v10391_v53  ;;  %v10408_v53 = vld [vmem:[%s15866_s6 + $0x274] ss:$8 sps:$4 sm:$0xff]  }
 0x5a6   : > { %6028 = vmatprep.subr.bf16.mxu1 %v10396_v5 }
 0x5a9   : > { %6029 = vmatpush1.bf16.msra.mxu1 %v10394_v47 }
 0x5aa   : > { %6030 = vmatprep.subr.bf16.mxu1 %v10399_v19 }
 0x5ad   : > { %6031 = vmatpush1.bf16.msra.mxu1 %v10397_v21 }
 0x5ae   : > { %6032 = vmatprep.subr.bf16.mxu1 %v10402_v12 }
 0x5b1   : > { %6033 = vmatpush1.bf16.msra.mxu1 %v10400_v63 }
 0x5b2   : > { %6034 = vmatprep.subr.bf16.mxu1 %v10405_v36 }
 0x5b5   : > { %6035 = vmatpush1.bf16.msra.mxu1 %v10403_v24 }
 0x5b6   : > { %6036 = vmatprep.subr.bf16.mxu1 %v10408_v53  ;;  %v10415_v53 = vld [vmem:[%s15866_s6 + $0x2a0] ss:$8 sps:$4 sm:$0xff]  }
 0x5ff   : > { %v5064_v60 = vpop.f32.mrb[32].mxu0 }
 0x600   : > { %v5066_v30 = vpop.f32.mrb[33].mxu0 }
 0x601   : > { %v5068_v38 = vpop.f32.mrb[34].mxu0 }
 0x602   : > { %v5223_v27 = vpack.c.bf16 %v5068_v38, %v5064_v60  ;;  %v5070_v28 = vpop.f32.mrb[35].mxu0  ;;  %v10406_v60 = vld [vmem:[%s15866_s6 + $0x270] ss:$8 sps:$4 sm:$0xff]  }
 0x603   : > { %v5224_v20 = vpack.c.bf16 %v5070_v28, %v5066_v30  ;;  %v10411_v30 = vld [vmem:[%s15866_s6 + $0x284] ss:$8 sps:$4 sm:$0xff]   ;;  %6037 = vmatpush1.bf16.msra.mxu1 %v10406_v60 }
 0x604   : > { %v5269_v10 = vadd.bf16 %v14682_v33, %v5223_v27  ;;  %6038 = vmatprep.subr.bf16.mxu1 %v10411_v30 }
 0x605   : > { %v5270_v35 = vadd.bf16 %v14686_v49, %v5224_v20  ;;  %v10409_v20 = vld [vmem:[%s15866_s6 + $0x280] ss:$8 sps:$4 sm:$0xff]  }
 0x606   : > { %v5301_v16 = vmax.bf16 %v16443_v61, %v5269_v10 }
 0x607   : > { %v5074_v44 = vpop.f32.mrb[36].mxu0  ;;  %v5302_v58 = vmax.bf16 %v16443_v61, %v5270_v35  ;;  %v10414_v35 = vld [vmem:[%s15866_s6 + $0x294] ss:$8 sps:$4 sm:$0xff]   ;;  %6039 = vmatpush1.bf16.msra.mxu1 %v10409_v20 }
 0x608   : > { %v5076_v50 = vpop.f32.mrb[37].mxu0  ;;  %6040 = vmatprep.subr.bf16.mxu1 %v10414_v35  ;;  %v10421_v35 = vld [vmem:[%s15866_s6 + $0x2c0] ss:$8 sps:$4 sm:$0xff]  }
 0x609   : > { %v5078_v14 = vpop.f32.mrb[38].mxu0  ;;  %5558 = vmatprep.mubr.bf16.mxu0 %v5302_v58  ;;  %v10412_v58 = vld [vmem:[%s15866_s6 + $0x290] ss:$8 sps:$4 sm:$0xff]  }
 0x60a   : > { %v5225_v39 = vpack.c.bf16 %v5078_v14, %v5074_v44  ;;  %v5080_v8 = vpop.f32.mrb[39].mxu0  ;;  %5559 = vmatmul.mubr.bf16.vlgmr.msra.gmra.mrb[96].mxu0 %v5301_v16  ;;  %v10417_v16 = vld [vmem:[%s15866_s6 + $0x2a4] ss:$8 sps:$4 sm:$0xff]  }
 0x60b   : > { %v5226_v25 = vpack.c.bf16 %v5080_v8, %v5076_v50  ;;  %6041 = vmatpush1.bf16.msra.mxu1 %v10412_v58 }
 0x60c   : > { %v5271_v47 = vadd.bf16 %v14682_v33, %v5225_v39  ;;  %6042 = vmatprep.subr.bf16.mxu1 %v10417_v16 }
 0x60d   : > { %v5272_v5 = vadd.bf16 %v14686_v49, %v5226_v25 }
 0x60e   : > { %v5303_v21 = vmax.bf16 %v16443_v61, %v5271_v47 }
 0x60f   : > { %v5084_v38 = vpop.f32.mrb[40].mxu0  ;;  %v5304_v27 = vmax.bf16 %v16443_v61, %v5272_v5  ;;  %v10420_v5 = vld [vmem:[%s15866_s6 + $0x2b4] ss:$8 sps:$4 sm:$0xff]   ;;  %6043 = vmatpush1.bf16.msra.mxu1 %v10415_v53 }
 0x610   : > { %v5086_v28 = vpop.f32.mrb[41].mxu0  ;;  %6044 = vmatprep.subr.bf16.mxu1 %v10420_v5  ;;  %v10427_v5 = vld [vmem:[%s15866_s6 + $0x2e0] ss:$8 sps:$4 sm:$0xff]  }
 0x611   : > { %v5088_v19 = vpop.f32.mrb[42].mxu0  ;;  %5568 = vmatprep.mubr.bf16.mxu0 %v5304_v27  ;;  %v10418_v27 = vld [vmem:[%s15866_s6 + $0x2b0] ss:$8 sps:$4 sm:$0xff]  }
 0x612   : > { %v5227_v12 = vpack.c.bf16 %v5088_v19, %v5084_v38  ;;  %v5090_v10 = vpop.f32.mrb[43].mxu0  ;;  %5569 = vmatmul.mubr.bf16.gmra.mrb[100].mxu0 %v5303_v21 }
 0x613   : > { %v5228_v63 = vpack.c.bf16 %v5090_v10, %v5086_v28  ;;  %v10423_v28 = vld [vmem:[%s15866_s6 + $0x2c4] ss:$8 sps:$4 sm:$0xff]   ;;  %6045 = vmatpush1.bf16.msra.mxu1 %v10418_v27 }
 0x614   : > { %v5273_v36 = vadd.bf16 %v14682_v33, %v5227_v12  ;;  %6046 = vmatprep.subr.bf16.mxu1 %v10423_v28 }
 0x615   : > { %v5274_v44 = vadd.bf16 %v14686_v49, %v5228_v63 }
 0x616   : > { %v5305_v39 = vmax.bf16 %v16443_v61, %v5273_v36 }
 0x617   : > { %v5094_v50 = vpop.f32.mrb[44].mxu0  ;;  %v5306_v14 = vmax.bf16 %v16443_v61, %v5274_v44  ;;  %v10426_v44 = vld [vmem:[%s15866_s6 + $0x2d4] ss:$8 sps:$4 sm:$0xff]   ;;  %6047 = vmatpush1.bf16.msra.mxu1 %v10421_v35 }
 0x618   : > { %v5096_v24 = vpop.f32.mrb[45].mxu0  ;;  %6048 = vmatprep.subr.bf16.mxu1 %v10426_v44 }
 0x619   : > { %v5098_v8 = vpop.f32.mrb[46].mxu0  ;;  %5578 = vmatprep.mubr.bf16.mxu0 %v5306_v14  ;;  %v10424_v14 = vld [vmem:[%s15866_s6 + $0x2d0] ss:$8 sps:$4 sm:$0xff]  }
 0x61a   : > { %v5229_v25 = vpack.c.bf16 %v5098_v8, %v5094_v50  ;;  %v5100_v47 = vpop.f32.mrb[47].mxu0  ;;  %5579 = vmatmul.mubr.bf16.gmra.mrb[104].mxu0 %v5305_v39 }
 0x61b   : > { %v5230_v60 = vpack.c.bf16 %v5100_v47, %v5096_v24  ;;  %v10429_v24 = vld [vmem:[%s15866_s6 + $0x2e4] ss:$8 sps:$4 sm:$0xff]   ;;  %6049 = vmatpush1.bf16.msra.mxu1 %v10424_v14 }
 0x61c   : > { %v5275_v30 = vadd.bf16 %v14682_v33, %v5229_v25  ;;  %6050 = vmatprep.subr.bf16.mxu1 %v10429_v24 }
 0x61d   : > { %v5276_v38 = vadd.bf16 %v14686_v49, %v5230_v60 }
 0x61e   : > { %v5307_v12 = vmax.bf16 %v16443_v61, %v5275_v30 }
 0x61f   : > { %v5104_v21 = vpop.f32.mrb[48].mxu0  ;;  %v5308_v19 = vmax.bf16 %v16443_v61, %v5276_v38  ;;  %6051 = vmatpush1.bf16.msra.mxu1 %v10427_v5 }
 0x620   : > { %v5106_v20 = vpop.f32.mrb[49].mxu0 }
 0x621   : > { %v5108_v10 = vpop.f32.mrb[50].mxu0  ;;  %5588 = vmatprep.mubr.bf16.mxu0 %v5308_v19 }
 0x622   : > { %v5231_v63 = vpack.c.bf16 %v5108_v10, %v5104_v21  ;;  %v5110_v36 = vpop.f32.mrb[51].mxu0  ;;  %5589 = vmatmul.mubr.bf16.gmra.mrb[108].mxu0 %v5307_v12 }
 0x623   : > { %v5232_v58 = vpack.c.bf16 %v5110_v36, %v5106_v20 }
 0x624   : > { %v5277_v16 = vadd.bf16 %v14682_v33, %v5231_v63 }
 0x625   : > { %v5278_v50 = vadd.bf16 %v14686_v49, %v5232_v58 }
 0x626   : > { %v5309_v25 = vmax.bf16 %v16443_v61, %v5277_v16 }
 0x627   : > { %v5114_v39 = vpop.f32.mrb[52].mxu0  ;;  %v5310_v8 = vmax.bf16 %v16443_v61, %v5278_v50 }
 0x628   : > { %v5116_v53 = vpop.f32.mrb[53].mxu0 }
 0x629   : > { %v5118_v47 = vpop.f32.mrb[54].mxu0  ;;  %5598 = vmatprep.mubr.bf16.mxu0 %v5310_v8 }
 0x62a   : > { %v5233_v60 = vpack.c.bf16 %v5118_v47, %v5114_v39  ;;  %v5120_v30 = vpop.f32.mrb[55].mxu0  ;;  %5599 = vmatmul.mubr.bf16.gmra.mrb[112].mxu0 %v5309_v25 }
 0x62b   : > { %v5234_v38 = vpack.c.bf16 %v5120_v30, %v5116_v53 }
 0x62c   : > { %v5279_v27 = vadd.bf16 %v14682_v33, %v5233_v60 }
 0x62d   : > { %v5280_v28 = vadd.bf16 %v14686_v49, %v5234_v38 }
 0x62e   : > { %v5311_v12 = vmax.bf16 %v16443_v61, %v5279_v27 }
 0x62f   : > { %v5124_v21 = vpop.f32.mrb[56].mxu0  ;;  %v5312_v19 = vmax.bf16 %v16443_v61, %v5280_v28 }
 0x630   : > { %v5126_v20 = vpop.f32.mrb[57].mxu0 }
 0x631   : > { %v5128_v10 = vpop.f32.mrb[58].mxu0  ;;  %5608 = vmatprep.mubr.bf16.mxu0 %v5312_v19 }
 0x632   : > { %v5235_v35 = vpack.c.bf16 %v5128_v10, %v5124_v21  ;;  %v5130_v63 = vpop.f32.mrb[59].mxu0  ;;  %5609 = vmatmul.mubr.bf16.gmra.mrb[116].mxu0 %v5311_v12 }
 0x633   : > { %v5236_v36 = vpack.c.bf16 %v5130_v63, %v5126_v20 }
 0x634   : > { %v5281_v44 = vadd.bf16 %v14682_v33, %v5235_v35 }
 0x635   : > { %v5282_v58 = vadd.bf16 %v14686_v49, %v5236_v36 }
 0x636   : > { %v5313_v24 = vmax.bf16 %v16443_v61, %v5281_v44 }
 0x637   : > { %v5134_v16 = vpop.f32.mrb[60].mxu0  ;;  %v5314_v50 = vmax.bf16 %v16443_v61, %v5282_v58 }
 0x638   : > { %v5136_v14 = vpop.f32.mrb[61].mxu0 }
 0x639   : > { %v5138_v39 = vpop.f32.mrb[62].mxu0  ;;  %5618 = vmatprep.mubr.bf16.mxu0 %v5314_v50 }
 0x63a   : > { %v5237_v8 = vpack.c.bf16 %v5138_v39, %v5134_v16  ;;  %v5140_v53 = vpop.f32.mrb[63].mxu0  ;;  %5619 = vmatmul.mubr.bf16.gmra.mrb[120].mxu0 %v5313_v24 }
 0x63b   : > { %v5238_v25 = vpack.c.bf16 %v5140_v53, %v5136_v14 }
 0x63c   : > { %v5283_v47 = vadd.bf16 %v14682_v33, %v5237_v8 }
 0x63d   : > { %v5284_v5 = vadd.bf16 %v14686_v49, %v5238_v25 }
 0x63e   : > { %v5315_v27 = vmax.bf16 %v16443_v61, %v5283_v47 }
 0x63f   : > { %v5144_v60 = vpop.f32.mrb[64].mxu0  ;;  %v5316_v30 = vmax.bf16 %v16443_v61, %v5284_v5 }
 0x640   : > { %v5146_v38 = vpop.f32.mrb[65].mxu0 }
 0x641   : > { %v5148_v28 = vpop.f32.mrb[66].mxu0  ;;  %5628 = vmatprep.mubr.bf16.mxu0 %v5316_v30 }
 0x642   : > { %v5239_v21 = vpack.c.bf16 %v5148_v28, %v5144_v60  ;;  %v5150_v19 = vpop.f32.mrb[67].mxu0  ;;  %5629 = vmatmul.mubr.bf16.gmra.mrb[124].mxu0 %v5315_v27 }
 0x643   : > { %v5240_v20 = vpack.c.bf16 %v5150_v19, %v5146_v38 }
 0x644   : > { %v5285_v12 = vadd.bf16 %v14682_v33, %v5239_v21 }
 0x645   : > { %v5286_v10 = vadd.bf16 %v14686_v49, %v5240_v20 }
 0x646   : > { %v5317_v44 = vmax.bf16 %v16443_v61, %v5285_v12 }
 0x647   : > { %v5154_v35 = vpop.f32.mrb[68].mxu0  ;;  %v5318_v63 = vmax.bf16 %v16443_v61, %v5286_v10 }
 0x648   : > { %v5156_v36 = vpop.f32.mrb[69].mxu0 }
 0x649   : > { %v5158_v58 = vpop.f32.mrb[70].mxu0  ;;  %5638 = vmatprep.mubr.bf16.mxu0 %v5318_v63 }
 0x64a   : > { %v5241_v16 = vpack.c.bf16 %v5158_v58, %v5154_v35  ;;  %v5160_v50 = vpop.f32.mrb[71].mxu0  ;;  %5639 = vmatmul.mubr.bf16.gmra.mrb[128].mxu0 %v5317_v44 }
 0x64b   : > { %v5242_v14 = vpack.c.bf16 %v5160_v50, %v5156_v36 }
 0x64c   : > { %v5287_v24 = vadd.bf16 %v14682_v33, %v5241_v16 }
 0x64d   : > { %v5288_v39 = vadd.bf16 %v14686_v49, %v5242_v14 }
 0x64e   : > { %v5319_v47 = vmax.bf16 %v16443_v61, %v5287_v24 }
 0x64f   : > { %v5164_v8 = vpop.f32.mrb[72].mxu0  ;;  %v5320_v53 = vmax.bf16 %v16443_v61, %v5288_v39 }
 0x650   : > { %v5166_v25 = vpop.f32.mrb[73].mxu0 }
 0x651   : > { %v5168_v5 = vpop.f32.mrb[74].mxu0  ;;  %5648 = vmatprep.mubr.bf16.mxu0 %v5320_v53 }
 0x652   : > { %v5243_v60 = vpack.c.bf16 %v5168_v5, %v5164_v8  ;;  %v5170_v30 = vpop.f32.mrb[75].mxu0  ;;  %5649 = vmatmul.mubr.bf16.gmra.mrb[132].mxu0 %v5319_v47  ;;  %v10430_v5 = vld [vmem:[%s15866_s6 + $0x2f0] ss:$8 sps:$4 sm:$0xff]  }
 0x653   : > { %v5244_v38 = vpack.c.bf16 %v5170_v30, %v5166_v25 }
 0x654   : > { %v5289_v27 = vadd.bf16 %v14682_v33, %v5243_v60  ;;  %v10432_v60 = vld [vmem:[%s15866_s6 + $0x2f4] ss:$8 sps:$4 sm:$0xff]  }
 0x655   : > { %v5290_v28 = vadd.bf16 %v14686_v49, %v5244_v38  ;;  %6052 = vmatprep.subr.bf16.mxu1 %v10432_v60 }
 0x656   : > { %v5321_v12 = vmax.bf16 %v16443_v61, %v5289_v27  ;;  %6053 = vmatpush1.bf16.msra.mxu1 %v10430_v5 }
 0x657   : > { %v5174_v21 = vpop.f32.mrb[76].mxu0  ;;  %v5322_v19 = vmax.bf16 %v16443_v61, %v5290_v28 }
 0x658   : > { %v5176_v20 = vpop.f32.mrb[77].mxu0 }
 0x659   : > { %v5178_v10 = vpop.f32.mrb[78].mxu0  ;;  %5658 = vmatprep.mubr.bf16.mxu0 %v5322_v19 }
 0x65a   : > { %v5245_v35 = vpack.c.bf16 %v5178_v10, %v5174_v21  ;;  %v5180_v63 = vpop.f32.mrb[79].mxu0  ;;  %5659 = vmatmul.mubr.bf16.gmra.mrb[136].mxu0 %v5321_v12 }
 0x65b   : > { %v5246_v36 = vpack.c.bf16 %v5180_v63, %v5176_v20 }
 0x65c   : > { %v5291_v44 = vadd.bf16 %v14682_v33, %v5245_v35 }
 0x65d   : > { %v5292_v58 = vadd.bf16 %v14686_v49, %v5246_v36 }
 0x65e   : > { %v5323_v24 = vmax.bf16 %v16443_v61, %v5291_v44 }
 0x65f   : > { %v5184_v16 = vpop.f32.mrb[80].mxu0  ;;  %v5324_v50 = vmax.bf16 %v16443_v61, %v5292_v58 }
 0x660   : > { %v5186_v14 = vpop.f32.mrb[81].mxu0 }
 0x661   : > { %v5188_v39 = vpop.f32.mrb[82].mxu0  ;;  %5668 = vmatprep.mubr.bf16.mxu0 %v5324_v50 }
 0x662   : > { %v5247_v8 = vpack.c.bf16 %v5188_v39, %v5184_v16  ;;  %v5190_v53 = vpop.f32.mrb[83].mxu0  ;;  %5669 = vmatmul.mubr.bf16.gmra.mrb[140].mxu0 %v5323_v24 }
 0x663   : > { %v5248_v25 = vpack.c.bf16 %v5190_v53, %v5186_v14 }
 0x664   : > { %v5293_v47 = vadd.bf16 %v14682_v33, %v5247_v8 }
 0x665   : > { %v5294_v30 = vadd.bf16 %v14686_v49, %v5248_v25 }
 0x666   : > { %v5325_v21 = vmax.bf16 %v16443_v61, %v5293_v47 }
 0x667   : > { %v5194_v38 = vpop.f32.mrb[84].mxu0  ;;  %v5326_v27 = vmax.bf16 %v16443_v61, %v5294_v30 }
 0x668   : > { %v5196_v28 = vpop.f32.mrb[85].mxu0 }
 0x669   : > { %v5198_v19 = vpop.f32.mrb[86].mxu0  ;;  %5678 = vmatprep.mubr.bf16.mxu0 %v5326_v27 }
 0x66a   : > { %v5249_v20 = vpack.c.bf16 %v5198_v19, %v5194_v38  ;;  %v5200_v12 = vpop.f32.mrb[87].mxu0  ;;  %5679 = vmatmul.mubr.bf16.gmra.mrb[144].mxu0 %v5325_v21 }
 0x66b   : > { %v5250_v10 = vpack.c.bf16 %v5200_v12, %v5196_v28 }
 0x66c   : > { %v5295_v35 = vadd.bf16 %v14682_v33, %v5249_v20 }
 0x66d   : > { %v5296_v63 = vadd.bf16 %v14686_v49, %v5250_v10  ;;  %v10435_v10 = vld [vmem:[%s15865_s5 + $0x44] ss:$8 sps:$4 sm:$0xff]  }
 0x66e   : > { %v5327_v16 = vmax.bf16 %v16443_v61, %v5295_v35  ;;  %6860 = vmatprep.subr.bf16.mxu1 %v10435_v10  ;;  %v10439_v35 = vld [vmem:[%s15866_s6 + $0x300] ss:$8 sps:$4 sm:$0xff]  }
 0x66f   : > { %v5204_v36 = vpop.f32.mrb[88].mxu0  ;;  %v5328_v44 = vmax.bf16 %v16443_v61, %v5296_v63  ;;  %v10444_v63 = vld [vmem:[%s15866_s6 + $0x314] ss:$8 sps:$4 sm:$0xff]  }
 0x670   : > { %v5206_v58 = vpop.f32.mrb[89].mxu0 }
 0x671   : > { %v5208_v50 = vpop.f32.mrb[90].mxu0  ;;  %5688 = vmatprep.mubr.bf16.mxu0 %v5328_v44  ;;  %v10445_v44 = vld [vmem:[%s15866_s6 + $0x320] ss:$8 sps:$4 sm:$0xff]  }
 0x672   : > { %v5251_v14 = vpack.c.bf16 %v5208_v50, %v5204_v36  ;;  %v5210_v24 = vpop.f32.mrb[91].mxu0  ;;  %5689 = vmatmul.mubr.bf16.gmra.mrb[148].mxu0 %v5327_v16  ;;  %v5751_v36 = vshrl.u32 %v14656_v32, 16  ;;  %v5758_v16 = vshrl.u32 %v14664_v11, 16  ;;  %v10448_v32 = vld [vmem:[%s15866_s6 + $0x330] ss:$8 sps:$4 sm:$0xff]  }
 0x673   : > { %v5252_v39 = vpack.c.bf16 %v5210_v24, %v5206_v58  ;;  %v10447_v58 = vld [vmem:[%s15866_s6 + $0x324] ss:$8 sps:$4 sm:$0xff]   ;;  %v10450_v24 = vld [vmem:[%s15866_s6 + $0x334] ss:$8 sps:$4 sm:$0xff]  }
 0x674   : > { %v5297_v8 = vadd.bf16 %v14682_v33, %v5251_v14  ;;  %v14847_v50 = vpack.i.b16 %v5751_v36, %v5751_v36  ;;  %v14849_v14 = vpack.i.b16 %v5758_v16, %v5758_v16  ;;  %v10460_v36 = vld [vmem:[%s15866_s6 + $0x350] ss:$8 sps:$4 sm:$0xff]  }
 0x675   : > { %v5298_v53 = vadd.bf16 %v14686_v49, %v5252_v39  ;;  %v10436_v16 = vld [vmem:[%s15865_s5 + $0x50] ss:$8 sps:$4 sm:$0xff]  }
 0x676   : > { %v5329_v60 = vmax.bf16 %v16443_v61, %v5297_v8  ;;  %v14859_v11 = vrot.slane %v14847_v50, %v14471_v2 }
 0x677   : > { %v5214_v25 = vpop.f32.mrb[92].mxu0  ;;  %v5330_v47 = vmax.bf16 %v16443_v61, %v5298_v53 }
 0x678   : > { %v5216_v5 = vpop.f32.mrb[93].mxu0 }
 0x679   : > { %v5218_v30 = vpop.f32.mrb[94].mxu0  ;;  %5698 = vmatprep.mubr.bf16.mxu0 %v5330_v47 }
 0x67a   : > { %v5253_v38 = vpack.c.bf16 %v5218_v30, %v5214_v25  ;;  %v5220_v27 = vpop.f32.mrb[95].mxu0  ;;  %5699 = vmatmul.mubr.bf16.gmra.mrb[152].mxu0 %v5329_v60  ;;  %v14863_v25 = vrot.slane %v14849_v14, %v14471_v2  ;;  %v10457_v30 = vld [vmem:[%s15866_s6 + $0x340] ss:$8 sps:$4 sm:$0xff]  }
 0x67b   : > { %v5254_v28 = vpack.c.bf16 %v5220_v27, %v5216_v5  ;;  %v10459_v27 = vld [vmem:[%s15866_s6 + $0x344] ss:$8 sps:$4 sm:$0xff]  }
 0x67c   : > { %v5299_v21 = vadd.bf16 %v14682_v33, %v5253_v38  ;;  %v10441_v33 = vld [vmem:[%s15866_s6 + $0x304] ss:$8 sps:$4 sm:$0xff]  }
 0x67d   : > { %v5300_v19 = vadd.bf16 %v14686_v49, %v5254_v28  ;;  %6512 = vmatprep.subr.bf16.mxu0 %v10441_v33  ;;  %v10442_v49 = vld [vmem:[%s15866_s6 + $0x310] ss:$8 sps:$4 sm:$0xff]  }
 0x67e   : > { %v5331_v12 = vmax.bf16 %v16443_v61, %v5299_v21  ;;  %6513 = vmatpush1.bf16.msra.mxu0 %v10439_v35  ;;  %v10438_v35 = vld [vmem:[%s15865_s5 + $0x54] ss:$8 sps:$4 sm:$0xff]  }
 0x67f   : > { %v5332_v20 = vmax.bf16 %v16443_v61, %v5300_v19  ;;  %6514 = vmatprep.subr.bf16.mxu0 %v10444_v63 }
 0x681   : > { %5708 = vmatprep.mubr.bf16.mxu0 %v5332_v20  ;;  %v10433_v20 = vld [vmem:[%s15865_s5 + $0x40] ss:$8 sps:$4 sm:$0xff]  }
 0x682   : > { %5709 = vmatmul.mubr.bf16.gmra.mrb[156].mxu0 %v5331_v12 }
 0x683   : > { %6515 = vmatpush1.bf16.msra.mxu0 %v10442_v49 }
 0x684   : > { %6516 = vmatprep.subr.bf16.mxu0 %v10447_v58 }
 0x687   : > { %6517 = vmatpush1.bf16.msra.mxu0 %v10445_v44  ;;  %v10462_v44 = vld [vmem:[%s15866_s6 + $0x354] ss:$8 sps:$4 sm:$0xff]  }
 0x688   : > { %6518 = vmatprep.subr.bf16.mxu0 %v10450_v24  ;;  %v10453_v24 = vld [vmem:[%s15865_s5 + $0x64] ss:$8 sps:$4 sm:$0xff]  }
 0x68b   : > { %6519 = vmatpush1.bf16.msra.mxu0 %v10448_v32 }
 0x68c   : > { %6520 = vmatprep.subr.bf16.mxu0 %v10459_v27 }
 0x68f   : > { %6521 = vmatpush1.bf16.msra.mxu0 %v10457_v30  ;;  %v10456_v30 = vld [vmem:[%s15865_s5 + $0x74] ss:$8 sps:$4 sm:$0xff]  }
 0x690   : > { %6522 = vmatprep.subr.bf16.mxu0 %v10462_v44 }
 0x693   : > { %6523 = vmatpush1.bf16.msra.mxu0 %v10460_v36 }
 0x6dd   : > { %v5560_v39 = vpop.f32.mrb[96].mxu0 }
 0x6de   : > { %v5562_v8 = vpop.f32.mrb[97].mxu0 }
 0x6df   : > { %v5564_v53 = vpop.f32.mrb[98].mxu0 }
 0x6e0   : > { %v5719_v47 = vpack.c.bf16 %v5564_v53, %v5560_v39  ;;  %v5566_v5 = vpop.f32.mrb[99].mxu0 }
 0x6e1   : > { %v5720_v60 = vpack.c.bf16 %v5566_v5, %v5562_v8 }
 0x6e2   : > { %v5765_v38 = vadd.bf16 %v14859_v11, %v5719_v47  ;;  %v10451_v47 = vld [vmem:[%s15865_s5 + $0x60] ss:$8 sps:$4 sm:$0xff]  }
 0x6e3   : > { %v5766_v28 = vadd.bf16 %v14863_v25, %v5720_v60 }
 0x6e4   : > { %v5797_v12 = vmax.bf16 %v16443_v61, %v5765_v38 }
 0x6e5   : > { %v5570_v21 = vpop.f32.mrb[100].mxu0  ;;  %v5798_v19 = vmax.bf16 %v16443_v61, %v5766_v28 }
 0x6e6   : > { %v5572_v10 = vpop.f32.mrb[101].mxu0 }
 0x6e7   : > { %v5574_v33 = vpop.f32.mrb[102].mxu0  ;;  %6054 = vmatprep.mubr.bf16.mxu1 %v5798_v19  ;;  %v10465_v19 = vld [vmem:[%s15866_s6 + $0x364] ss:$8 sps:$4 sm:$0xff]  }
 0x6e8   : > { %v5721_v49 = vpack.c.bf16 %v5574_v33, %v5570_v21  ;;  %v5576_v63 = vpop.f32.mrb[103].mxu0  ;;  %6055 = vmatmul.mubr.bf16.vlgmr.msra.gmra.mrb[64].mxu1 %v5797_v12  ;;  %v10463_v21 = vld [vmem:[%s15866_s6 + $0x360] ss:$8 sps:$4 sm:$0xff]   ;;  %v10454_v12 = vld [vmem:[%s15865_s5 + $0x70] ss:$8 sps:$4 sm:$0xff]   ;;  %6524 = vmatprep.subr.bf16.mxu0 %v10465_v19 }
 0x6e9   : > { %v5722_v58 = vpack.c.bf16 %v5576_v63, %v5572_v10  ;;  %6861 = vmatpush1.bf16.msra.mxu1 %v10433_v20  ;;  %6525 = vmatpush1.bf16.msra.mxu0 %v10463_v21  ;;  %v10469_v21 = vld [vmem:[%s15866_s6 + $0x380] ss:$8 sps:$4 sm:$0xff]   ;;  %v10471_v19 = vld [vmem:[%s15866_s6 + $0x384] ss:$8 sps:$4 sm:$0xff]  }
 0x6ea   : > { %v5767_v32 = vadd.bf16 %v14859_v11, %v5721_v49  ;;  %6862 = vmatprep.subr.bf16.mxu1 %v10438_v35 }
 0x6eb   : > { %v5768_v39 = vadd.bf16 %v14863_v25, %v5722_v58 }
 0x6ec   : > { %v5799_v60 = vmax.bf16 %v16443_v61, %v5767_v32  ;;  %v10466_v32 = vld [vmem:[%s15866_s6 + $0x370] ss:$8 sps:$4 sm:$0xff]  }
 0x6ed   : > { %v5580_v8 = vpop.f32.mrb[104].mxu0  ;;  %v5800_v53 = vmax.bf16 %v16443_v61, %v5768_v39  ;;  %6863 = vmatpush1.bf16.msra.mxu1 %v10436_v16 }
 0x6ee   : > { %v5582_v5 = vpop.f32.mrb[105].mxu0  ;;  %6864 = vmatprep.subr.bf16.mxu1 %v10453_v24  ;;  %v10468_v24 = vld [vmem:[%s15866_s6 + $0x374] ss:$8 sps:$4 sm:$0xff]  }
 0x6ef   : > { %v5584_v38 = vpop.f32.mrb[106].mxu0  ;;  %6064 = vmatprep.mubr.bf16.mxu1 %v5800_v53  ;;  %6526 = vmatprep.subr.bf16.mxu0 %v10468_v24 }
 0x6f0   : > { %v5723_v27 = vpack.c.bf16 %v5584_v38, %v5580_v8  ;;  %v5586_v28 = vpop.f32.mrb[107].mxu0  ;;  %6065 = vmatmul.mubr.bf16.gmra.mrb[68].mxu1 %v5799_v60  ;;  %6527 = vmatpush1.bf16.msra.mxu0 %v10466_v32  ;;  %v10474_v32 = vld [vmem:[%s15866_s6 + $0x394] ss:$8 sps:$4 sm:$0xff]  }
 0x6f1   : > { %v5724_v20 = vpack.c.bf16 %v5586_v28, %v5582_v5  ;;  %6865 = vmatpush1.bf16.msra.mxu1 %v10451_v47  ;;  %6528 = vmatprep.subr.bf16.mxu0 %v10471_v19 }
 0x6f2   : > { %v5769_v10 = vadd.bf16 %v14859_v11, %v5723_v27  ;;  %6866 = vmatprep.subr.bf16.mxu1 %v10456_v30 }
 0x6f3   : > { %v5770_v35 = vadd.bf16 %v14863_v25, %v5724_v20 }
 0x6f4   : > { %v5801_v36 = vmax.bf16 %v16443_v61, %v5769_v10  ;;  %6529 = vmatpush1.bf16.msra.mxu0 %v10469_v21  ;;  %v10477_v21 = vld [vmem:[%s15866_s6 + $0x3a4] ss:$8 sps:$4 sm:$0xff]  }
 0x6f5   : > { %v5590_v33 = vpop.f32.mrb[108].mxu0  ;;  %v5802_v49 = vmax.bf16 %v16443_v61, %v5770_v35  ;;  %6867 = vmatpush1.bf16.msra.mxu1 %v10454_v12  ;;  %6530 = vmatprep.subr.bf16.mxu0 %v10474_v32 }
 0x6f6   : > { %v5592_v63 = vpop.f32.mrb[109].mxu0 }
 0x6f7   : > { %v5594_v44 = vpop.f32.mrb[110].mxu0  ;;  %6074 = vmatprep.mubr.bf16.mxu1 %v5802_v49 }
 0x6f8   : > { %v5725_v58 = vpack.c.bf16 %v5594_v44, %v5590_v33  ;;  %v5596_v16 = vpop.f32.mrb[111].mxu0  ;;  %6075 = vmatmul.mubr.bf16.gmra.mrb[72].mxu1 %v5801_v36 }
 0x6f9   : > { %v5726_v39 = vpack.c.bf16 %v5596_v16, %v5592_v63  ;;  %v10472_v16 = vld [vmem:[%s15866_s6 + $0x390] ss:$8 sps:$4 sm:$0xff]  }
 0x6fa   : > { %v5771_v8 = vadd.bf16 %v14859_v11, %v5725_v58  ;;  %6531 = vmatpush1.bf16.msra.mxu0 %v10472_v16  ;;  %v10480_v16 = vld [vmem:[%s15866_s6 + $0x3b4] ss:$8 sps:$4 sm:$0xff]  }
 0x6fb   : > { %v5772_v53 = vadd.bf16 %v14863_v25, %v5726_v39  ;;  %6532 = vmatprep.subr.bf16.mxu0 %v10477_v21  ;;  %v10485_v21 = vld [vmem:[%s15866_s6 + $0x3c4] ss:$8 sps:$4 sm:$0xff]  }
 0x6fc   : > { %v5803_v30 = vmax.bf16 %v16443_v61, %v5771_v8 }
 0x6fd   : > { %v5600_v47 = vpop.f32.mrb[112].mxu0  ;;  %v5804_v5 = vmax.bf16 %v16443_v61, %v5772_v53 }
 0x6fe   : > { %v5602_v60 = vpop.f32.mrb[113].mxu0 }
 0x6ff   : > { %v5604_v38 = vpop.f32.mrb[114].mxu0  ;;  %6084 = vmatprep.mubr.bf16.mxu1 %v5804_v5 }
 0x700   : > { %v5727_v27 = vpack.c.bf16 %v5604_v38, %v5600_v47  ;;  %v5606_v28 = vpop.f32.mrb[115].mxu0  ;;  %6085 = vmatmul.mubr.bf16.gmra.mrb[76].mxu1 %v5803_v30 }
 0x701   : > { %v5728_v20 = vpack.c.bf16 %v5606_v28, %v5602_v60  ;;  %v10475_v28 = vld [vmem:[%s15866_s6 + $0x3a0] ss:$8 sps:$4 sm:$0xff]  }
 0x702   : > { %v5773_v12 = vadd.bf16 %v14859_v11, %v5727_v27  ;;  %6533 = vmatpush1.bf16.msra.mxu0 %v10475_v28  ;;  %v10483_v28 = vld [vmem:[%s15866_s6 + $0x3c0] ss:$8 sps:$4 sm:$0xff]  }
 0x703   : > { %v5774_v10 = vadd.bf16 %v14863_v25, %v5728_v20  ;;  %6534 = vmatprep.subr.bf16.mxu0 %v10480_v16  ;;  %v10486_v16 = vld [vmem:[%s15866_s6 + $0x3d0] ss:$8 sps:$4 sm:$0xff]  }
 0x704   : > { %v5805_v63 = vmax.bf16 %v16443_v61, %v5773_v12 }
 0x705   : > { %v5610_v35 = vpop.f32.mrb[116].mxu0  ;;  %v5806_v33 = vmax.bf16 %v16443_v61, %v5774_v10 }
 0x706   : > { %v5612_v49 = vpop.f32.mrb[117].mxu0 }
 0x707   : > { %v5614_v36 = vpop.f32.mrb[118].mxu0  ;;  %6094 = vmatprep.mubr.bf16.mxu1 %v5806_v33 }
 0x708   : > { %v5729_v44 = vpack.c.bf16 %v5614_v36, %v5610_v35  ;;  %v5616_v58 = vpop.f32.mrb[119].mxu0  ;;  %6095 = vmatmul.mubr.bf16.gmra.mrb[80].mxu1 %v5805_v63 }
 0x709   : > { %v5730_v24 = vpack.c.bf16 %v5616_v58, %v5612_v49  ;;  %v10478_v58 = vld [vmem:[%s15866_s6 + $0x3b0] ss:$8 sps:$4 sm:$0xff]  }
 0x70a   : > { %v5775_v39 = vadd.bf16 %v14859_v11, %v5729_v44  ;;  %6535 = vmatpush1.bf16.msra.mxu0 %v10478_v58 }
 0x70b   : > { %v5776_v8 = vadd.bf16 %v14863_v25, %v5730_v24  ;;  %6536 = vmatprep.subr.bf16.mxu0 %v10485_v21  ;;  %v10489_v21 = vld [vmem:[%s15866_s6 + $0x3e0] ss:$8 sps:$4 sm:$0xff]  }
 0x70c   : > { %v5807_v60 = vmax.bf16 %v16443_v61, %v5775_v39 }
 0x70d   : > { %v5620_v53 = vpop.f32.mrb[120].mxu0  ;;  %v5808_v47 = vmax.bf16 %v16443_v61, %v5776_v8 }
 0x70e   : > { %v5622_v5 = vpop.f32.mrb[121].mxu0  ;;  %6537 = vmatpush1.bf16.msra.mxu0 %v10483_v28 }
 0x70f   : > { %v5624_v30 = vpop.f32.mrb[122].mxu0  ;;  %6104 = vmatprep.mubr.bf16.mxu1 %v5808_v47 }
 0x710   : > { %v5731_v38 = vpack.c.bf16 %v5624_v30, %v5620_v53  ;;  %v5626_v27 = vpop.f32.mrb[123].mxu0  ;;  %6105 = vmatmul.mubr.bf16.gmra.mrb[84].mxu1 %v5807_v60 }
 0x711   : > { %v5732_v19 = vpack.c.bf16 %v5626_v27, %v5622_v5  ;;  %v14969_v27 = vld [vmem:[%s15864_s4 + $0x8] sm:$0xff] }
 0x712   : > { %v5777_v20 = vadd.bf16 %v14859_v11, %v5731_v38 }
 0x713   : > { %v5778_v12 = vadd.bf16 %v14863_v25, %v5732_v19 }
 0x714   : > { %v5809_v49 = vmax.bf16 %v16443_v61, %v5777_v20  ;;  %v9584_v20 = vcombine.high %v14969_v27, %v14969_v27 }
 0x715   : > { %v5630_v10 = vpop.f32.mrb[124].mxu0  ;;  %v5810_v35 = vmax.bf16 %v16443_v61, %v5778_v12 }
 0x716   : > { %v5632_v33 = vpop.f32.mrb[125].mxu0  ;;  %9585 = vmatprep.subr.msk.bf16.mxu1 %vm16654_vm2, %v9584_v20  ;;  %vm16674_vm2 = vmmov %vm16661_vm0 }
 0x717   : > { %v5634_v63 = vpop.f32.mrb[126].mxu0  ;;  %6114 = vmatprep.mubr.bf16.mxu1 %v5810_v35 }
 0x718   : > { %v5733_v36 = vpack.c.bf16 %v5634_v63, %v5630_v10  ;;  %v5636_v44 = vpop.f32.mrb[127].mxu0  ;;  %6115 = vmatmul.mubr.bf16.gmra.mrb[88].mxu1 %v5809_v49 }
 0x719   : > { %v5734_v32 = vpack.c.bf16 %v5636_v44, %v5632_v33 }
 0x71a   : > { %v5779_v24 = vadd.bf16 %v14859_v11, %v5733_v36 }
 0x71b   : > { %v5780_v39 = vadd.bf16 %v14863_v25, %v5734_v32  ;;  %v10488_v32 = vld [vmem:[%s15866_s6 + $0x3d4] ss:$8 sps:$4 sm:$0xff]  }
 0x71c   : > { %v5811_v5 = vmax.bf16 %v16443_v61, %v5779_v24  ;;  %6538 = vmatprep.subr.bf16.mxu0 %v10488_v32 }
 0x71d   : > { %v5640_v8 = vpop.f32.mrb[128].mxu0  ;;  %v5812_v53 = vmax.bf16 %v16443_v61, %v5780_v39  ;;  %6539 = vmatpush1.bf16.msra.mxu0 %v10486_v16 }
 0x71e   : > { %v5642_v47 = vpop.f32.mrb[129].mxu0 }
 0x71f   : > { %v5644_v60 = vpop.f32.mrb[130].mxu0  ;;  %6124 = vmatprep.mubr.bf16.mxu1 %v5812_v53 }
 0x720   : > { %v5735_v30 = vpack.c.bf16 %v5644_v60, %v5640_v8  ;;  %v5646_v38 = vpop.f32.mrb[131].mxu0  ;;  %6125 = vmatmul.mubr.bf16.gmra.mrb[92].mxu1 %v5811_v5 }
 0x721   : > { %v5736_v19 = vpack.c.bf16 %v5646_v38, %v5642_v47 }
 0x722   : > { %v5781_v12 = vadd.bf16 %v14859_v11, %v5735_v30 }
 0x723   : > { %v5782_v10 = vadd.bf16 %v14863_v25, %v5736_v19  ;;  %v10491_v19 = vld [vmem:[%s15866_s6 + $0x3e4] ss:$8 sps:$4 sm:$0xff]  }
 0x724   : > { %v5813_v63 = vmax.bf16 %v16443_v61, %v5781_v12  ;;  %6540 = vmatprep.subr.bf16.mxu0 %v10491_v19  ;;  %v10494_v19 = vld [vmem:[%s15866_s6 + $0x3f4] ss:$8 sps:$4 sm:$0xff]  }
 0x725   : > { %v5650_v35 = vpop.f32.mrb[132].mxu0  ;;  %v5814_v33 = vmax.bf16 %v16443_v61, %v5782_v10  ;;  %6541 = vmatpush1.bf16.msra.mxu0 %v10489_v21  ;;  %v10492_v21 = vld [vmem:[%s15866_s6 + $0x3f0] ss:$8 sps:$4 sm:$0xff]  }
 0x726   : > { %v5652_v49 = vpop.f32.mrb[133].mxu0  ;;  %6542 = vmatprep.subr.bf16.mxu0 %v10494_v19 }
 0x727   : > { %v5654_v36 = vpop.f32.mrb[134].mxu0  ;;  %6134 = vmatprep.mubr.bf16.mxu1 %v5814_v33 }
 0x728   : > { %v5737_v44 = vpack.c.bf16 %v5654_v36, %v5650_v35  ;;  %v5656_v58 = vpop.f32.mrb[135].mxu0  ;;  %6135 = vmatmul.mubr.bf16.gmra.mrb[96].mxu1 %v5813_v63 }
 0x729   : > { %v5738_v24 = vpack.c.bf16 %v5656_v58, %v5652_v49  ;;  %6543 = vmatpush1.bf16.msra.mxu0 %v10492_v21 }
 0x72a   : > { %v5783_v39 = vadd.bf16 %v14859_v11, %v5737_v44 }
 0x72b   : > { %v5784_v8 = vadd.bf16 %v14863_v25, %v5738_v24 }
 0x72c   : > { %v5815_v60 = vmax.bf16 %v16443_v61, %v5783_v39 }
 0x72d   : > { %v5660_v53 = vpop.f32.mrb[136].mxu0  ;;  %v5816_v47 = vmax.bf16 %v16443_v61, %v5784_v8 }
 0x72e   : > { %v5662_v5 = vpop.f32.mrb[137].mxu0 }
 0x72f   : > { %v5664_v30 = vpop.f32.mrb[138].mxu0  ;;  %6144 = vmatprep.mubr.bf16.mxu1 %v5816_v47 }
 0x730   : > { %v5739_v38 = vpack.c.bf16 %v5664_v30, %v5660_v53  ;;  %v5666_v28 = vpop.f32.mrb[139].mxu0  ;;  %6145 = vmatmul.mubr.bf16.gmra.mrb[100].mxu1 %v5815_v60 }
 0x731   : > { %v5740_v20 = vpack.c.bf16 %v5666_v28, %v5662_v5 }
 0x732   : > { %v5785_v12 = vadd.bf16 %v14859_v11, %v5739_v38 }
 0x733   : > { %v5786_v10 = vadd.bf16 %v14863_v25, %v5740_v20 }
 0x734   : > { %v5817_v63 = vmax.bf16 %v16443_v61, %v5785_v12 }
 0x735   : > { %v5670_v35 = vpop.f32.mrb[140].mxu0  ;;  %v5818_v33 = vmax.bf16 %v16443_v61, %v5786_v10 }
 0x736   : > { %v5672_v49 = vpop.f32.mrb[141].mxu0 }
 0x737   : > { %v5674_v36 = vpop.f32.mrb[142].mxu0  ;;  %6154 = vmatprep.mubr.bf16.mxu1 %v5818_v33 }
 0x738   : > { %v5741_v44 = vpack.c.bf16 %v5674_v36, %v5670_v35  ;;  %v5676_v58 = vpop.f32.mrb[143].mxu0  ;;  %6155 = vmatmul.mubr.bf16.gmra.mrb[104].mxu1 %v5817_v63 }
 0x739   : > { %v5742_v16 = vpack.c.bf16 %v5676_v58, %v5672_v49 }
 0x73a   : > { %v5787_v32 = vadd.bf16 %v14859_v11, %v5741_v44 }
 0x73b   : > { %v5788_v24 = vadd.bf16 %v14863_v25, %v5742_v16 }
 0x73c   : > { %v5819_v47 = vmax.bf16 %v16443_v61, %v5787_v32 }
 0x73d   : > { %v5680_v39 = vpop.f32.mrb[144].mxu0  ;;  %v5820_v8 = vmax.bf16 %v16443_v61, %v5788_v24 }
 0x73e   : > { %v5682_v53 = vpop.f32.mrb[145].mxu0 }
 0x73f   : > { %v5684_v5 = vpop.f32.mrb[146].mxu0  ;;  %6164 = vmatprep.mubr.bf16.mxu1 %v5820_v8 }
 0x740   : > { %v5743_v60 = vpack.c.bf16 %v5684_v5, %v5680_v39  ;;  %v5686_v30 = vpop.f32.mrb[147].mxu0  ;;  %6165 = vmatmul.mubr.bf16.gmra.mrb[108].mxu1 %v5819_v47 }
 0x741   : > { %v5744_v38 = vpack.c.bf16 %v5686_v30, %v5682_v53 }
 0x742   : > { %v5789_v28 = vadd.bf16 %v14859_v11, %v5743_v60 }
 0x743   : > { %v5790_v20 = vadd.bf16 %v14863_v25, %v5744_v38 }
 0x744   : > { %v5821_v33 = vmax.bf16 %v16443_v61, %v5789_v28 }
 0x745   : > { %v5690_v12 = vpop.f32.mrb[148].mxu0  ;;  %v5822_v10 = vmax.bf16 %v16443_v61, %v5790_v20 }
 0x746   : > { %v5692_v35 = vpop.f32.mrb[149].mxu0 }
 0x747   : > { %v5694_v49 = vpop.f32.mrb[150].mxu0  ;;  %6174 = vmatprep.mubr.bf16.mxu1 %v5822_v10 }
 0x748   : > { %v5745_v63 = vpack.c.bf16 %v5694_v49, %v5690_v12  ;;  %v5696_v36 = vpop.f32.mrb[151].mxu0  ;;  %6175 = vmatmul.mubr.bf16.gmra.mrb[112].mxu1 %v5821_v33 }
 0x749   : > { %v5746_v44 = vpack.c.bf16 %v5696_v36, %v5692_v35 }
 0x74a   : > { %v5791_v58 = vadd.bf16 %v14859_v11, %v5745_v63 }
 0x74b   : > { %v5792_v16 = vadd.bf16 %v14863_v25, %v5746_v44 }
 0x74c   : > { %v5823_v8 = vmax.bf16 %v16443_v61, %v5791_v58  ;;  %v9583_v58 = vcombine.low %v14969_v27, %v14969_v27  ;;  %v16664_v27 = vld [vmem:[#allocation31_spill] sm:$0xff] }
 0x74d   : > { %v5700_v32 = vpop.f32.mrb[152].mxu0  ;;  %v5824_v24 = vmax.bf16 %v16443_v61, %v5792_v16 }
 0x74e   : > { %v5702_v39 = vpop.f32.mrb[153].mxu0  ;;  %v7059_v16 = vsel %vm16655_vm5, %v9583_v58, 0  ;;  %vm16675_vm5 = vmmov %vm16661_vm0 }
 0x74f   : > { %v5704_v53 = vpop.f32.mrb[154].mxu0  ;;  %6184 = vmatprep.mubr.bf16.mxu1 %v5824_v24 }
 0x750   : > { %v5747_v47 = vpack.c.bf16 %v5704_v53, %v5700_v32  ;;  %v5706_v5 = vpop.f32.mrb[155].mxu0  ;;  %6185 = vmatmul.mubr.bf16.gmra.mrb[116].mxu1 %v5823_v8  ;;  %v16656_v32 = vld [vmem:[#allocation24_spill] sm:$0xff] }
 0x751   : > { %v5748_v60 = vpack.c.bf16 %v5706_v5, %v5702_v39 }
 0x752   : > { %v5793_v30 = vadd.bf16 %v14859_v11, %v5747_v47 }
 0x753   : > { %v5794_v38 = vadd.bf16 %v14863_v25, %v5748_v60 }
 0x754   : > { %v5825_v20 = vmax.bf16 %v16443_v61, %v5793_v30 }
 0x755   : > { %v5710_v28 = vpop.f32.mrb[156].mxu0  ;;  %v5826_v21 = vmax.bf16 %v16443_v61, %v5794_v38 }
 0x756   : > { %v5712_v19 = vpop.f32.mrb[157].mxu0 }
 0x757   : > { %v5714_v12 = vpop.f32.mrb[158].mxu0  ;;  %6194 = vmatprep.mubr.bf16.mxu1 %v5826_v21 }
 0x758   : > { %v5749_v10 = vpack.c.bf16 %v5714_v12, %v5710_v28  ;;  %v5716_v35 = vpop.f32.mrb[159].mxu0  ;;  %6195 = vmatmul.mubr.bf16.gmra.mrb[120].mxu1 %v5825_v20 }
 0x759   : > { %v5750_v33 = vpack.c.bf16 %v5716_v35, %v5712_v19 }
 0x75a   : > { %v5795_v49 = vadd.bf16 %v14859_v11, %v5749_v10  ;;  %v16658_v11 = vld [vmem:[#allocation28_spill] sm:$0xff] }
 0x75b   : > { %v5796_v63 = vadd.bf16 %v14863_v25, %v5750_v33  ;;  %v16662_v25 = vld [vmem:[#allocation34_spill] sm:$0xff] }
 0x75c   : > { %v5827_v44 = vmax.bf16 %v16443_v61, %v5795_v49 }
 0x75d   : > { %v5828_v36 = vmax.bf16 %v16443_v61, %v5796_v63 }
 0x75f   : > { %6204 = vmatprep.mubr.bf16.mxu1 %v5828_v36 }
 0x760   : > { %6205 = vmatmul.mubr.bf16.gmra.mrb[124].mxu1 %v5827_v44 }
 0x761   : > { %6892 = vmatprep.mubr.bf16.mxu1 %v16443_v61 }
 0x768   : > { %9567 = vmatmul.mubr.msk.bf16.vlgmr.msra.gmra.mrb[128].mxu1 %vm16657_vm13, %v16656_v32  ;;  %vm16676_vm13 = vcmask 64512  }
 0x769   : > { %6902 = vmatprep.mubr.bf16.mxu1 %v16443_v61  ;;  %7065 = vmatpush1.bf16.msra.mxu1 %v7059_v16 }
 0x770   : > { %9568 = vmatmul.mubr.msk.bf16.gmra.mrb[132].mxu1 %vm16659_vm11, %v16658_v11  ;;  %vm16677_vm11 = vmmov %vm16676_vm13 }
 0x771   : > { %6912 = vmatprep.mubr.bf16.mxu1 %v16443_v61 }
 0x778   : > { %9569 = vmatmul.mubr.msk.bf16.gmra.mrb[136].mxu1 %vm16660_vm6, %v13918_v17  ;;  %v10497_v17 = vld [vmem:[%s15866_s6 + $0x404] ss:$8 sps:$4 sm:$0xff]   ;;  %vm16678_vm6 = vmmov %vm16677_vm11 }
 0x779   : > { %6922 = vmatprep.mubr.bf16.mxu1 %v16443_v61  ;;  %7450 = vmatprep.subr.bf16.mxu1 %v10497_v17 }
 0x780   : > { %9570 = vmatmul.mubr.msk.bf16.gmra.mrb[140].mxu1 %vm16661_vm0, %v13967_v15  ;;  %v15070_v15 = vsub.s32 1, %v14464_v59  ;;  %vm16679_vm0 = vmmov %vm16678_vm6 }
 0x781   : > { %6932 = vmatprep.mubr.bf16.mxu1 %v16443_v61 }
 0x788   : > { %9571 = vmatmul.mubr.msk.bf16.gmra.mrb[144].mxu1 %vm16663_vm9, %v16662_v25  ;;  %vm16680_vm9 = vmmov %vm16679_vm0 }
 0x789   : > { %6942 = vmatprep.mubr.bf16.mxu1 %v16443_v61 }
 0x790   : > { %9572 = vmatmul.mubr.msk.bf16.gmra.mrb[148].mxu1 %vm16665_vm3, %v16664_v27  ;;  %vm16681_vm3 = vmmov %vm16679_vm0 }
 0x791   : > { %6952 = vmatprep.mubr.bf16.mxu1 %v16443_v61 }
 0x798   : > { %9573 = vmatmul.mubr.msk.bf16.gmra.mrb[152].mxu1 %vm16666_vm10, %v14068_v6  ;;  %vm16682_vm10 = vmmov %vm16679_vm0 }
 0x799   : > { %6962 = vmatprep.mubr.bf16.mxu1 %v16443_v61 }
 0x7a0   : > { %9574 = vmatmul.mubr.msk.bf16.gmra.mrb[156].mxu1 %vm16667_vm14, %v14095_v23  ;;  %vm16683_vm14 = vmmov %vm16679_vm0 }
 0x7a1   : > { %6972 = vmatprep.mubr.bf16.mxu1 %v16443_v61 }
 0x7a8   : > { %9575 = vmatmul.mubr.msk.bf16.gmra.mrb[160].mxu1 %vm16668_vm7, %v14130_v52  ;;  %v15075_v52 = vrot.slane %v14668_v18, %v15070_v15  ;;  %vm16684_vm7 = vmmov %vm16679_vm0 }
 0x7a9   : > { %6982 = vmatprep.mubr.bf16.mxu1 %v16443_v61 }
 0x7b0   : > { %9576 = vmatmul.mubr.msk.bf16.gmra.mrb[164].mxu1 %vm16669_vm12, %v14157_v55  ;;  %v15079_v55 = vrot.slane %v14672_v56, %v15070_v15  ;;  %vm16685_vm12 = vmmov %vm16679_vm0 }
 0x7b1   : > { %6992 = vmatprep.mubr.bf16.mxu1 %v16443_v61 }
 0x7b8   : > { %9577 = vmatmul.mubr.msk.bf16.gmra.mrb[168].mxu1 %vm16670_vm15, %v14183_v42  ;;  %vm16686_vm15 = vmmov %vm16679_vm0 }
 0x7b9   : > { %7002 = vmatprep.mubr.bf16.mxu1 %v16443_v61 }
 0x7bb   : > { %v6056_v6 = vpop.f32.mrb[64].mxu1 }
 0x7bc   : > { %v6058_v23 = vpop.f32.mrb[65].mxu1 }
 0x7bd   : > { %v6060_v24 = vpop.f32.mrb[66].mxu1 }
 0x7be   : > { %v6215_v39 = vpack.c.bf16 %v6060_v24, %v6056_v6  ;;  %v6062_v8 = vpop.f32.mrb[67].mxu1 }
 0x7bf   : > { %v6216_v53 = vpack.c.bf16 %v6062_v8, %v6058_v23 }
 0x7c0   : > { %v6255_v42 = vadd.bf16 %v15075_v52, %v6215_v39  ;;  %9578 = vmatmul.mubr.msk.bf16.gmra.mrb[172].mxu1 %vm16671_vm4, %v14221_v46  ;;  %vm16687_vm4 = vmmov %vm16679_vm0 }
 0x7c1   : > { %v6256_v47 = vadd.bf16 %v15079_v55, %v6216_v53  ;;  %7012 = vmatprep.mubr.bf16.mxu1 %v16443_v61 }
 0x7c2   : > { %v6287_v30 = vmax.bf16 %v16443_v61, %v6255_v42 }
 0x7c3   : > { %v6066_v5 = vpop.f32.mrb[68].mxu1  ;;  %v6288_v60 = vmax.bf16 %v16443_v61, %v6256_v47 }
 0x7c4   : > { %v6068_v38 = vpop.f32.mrb[69].mxu1 }
 0x7c5   : > { %v6070_v28 = vpop.f32.mrb[70].mxu1  ;;  %6544 = vmatprep.mubr.bf16.mxu0 %v6288_v60 }
 0x7c6   : > { %v6217_v21 = vpack.c.bf16 %v6070_v28, %v6066_v5  ;;  %v6072_v19 = vpop.f32.mrb[71].mxu1  ;;  %6545 = vmatmul.mubr.bf16.vlgmr.msra.gmra.mrb[160].mxu0 %v6287_v30 }
 0x7c7   : > { %v6218_v20 = vpack.c.bf16 %v6072_v19, %v6068_v38 }
 0x7c8   : > { %v6257_v12 = vadd.bf16 %v15075_v52, %v6217_v21  ;;  %9579 = vmatmul.mubr.msk.bf16.gmra.mrb[176].mxu1 %vm16672_vm1, %v14252_v7  ;;  %vm16688_vm1 = vmmov %vm16679_vm0 }
 0x7c9   : > { %v6258_v46 = vadd.bf16 %v15079_v55, %v6218_v20  ;;  %7022 = vmatprep.mubr.bf16.mxu1 %v16443_v61 }
 0x7ca   : > { %v6289_v49 = vmax.bf16 %v16443_v61, %v6257_v12 }
 0x7cb   : > { %v6076_v10 = vpop.f32.mrb[72].mxu1  ;;  %v6290_v35 = vmax.bf16 %v16443_v61, %v6258_v46 }
 0x7cc   : > { %v6078_v33 = vpop.f32.mrb[73].mxu1 }
 0x7cd   : > { %v6080_v63 = vpop.f32.mrb[74].mxu1  ;;  %6554 = vmatprep.mubr.bf16.mxu0 %v6290_v35 }
 0x7ce   : > { %v6219_v36 = vpack.c.bf16 %v6080_v63, %v6076_v10  ;;  %v6082_v44 = vpop.f32.mrb[75].mxu1  ;;  %6555 = vmatmul.mubr.bf16.gmra.mrb[164].mxu0 %v6289_v49  ;;  %v10495_v10 = vld [vmem:[%s15866_s6 + $0x400] ss:$8 sps:$4 sm:$0xff]  }
 0x7cf   : > { %v6220_v58 = vpack.c.bf16 %v6082_v44, %v6078_v33  ;;  %v10498_v44 = vld [vmem:[%s15866_s6 + $0x410] ss:$8 sps:$4 sm:$0xff]  }
 0x7d0   : > { %v6259_v16 = vadd.bf16 %v15075_v52, %v6219_v36  ;;  %9580 = vmatmul.mubr.msk.bf16.gmra.mrb[180].mxu1 %vm16673_vm8, %v14279_v62  ;;  %vm16689_vm8 = vmmov %vm16679_vm0 }
 0x7d1   : > { %v6260_v7 = vadd.bf16 %v15079_v55, %v6220_v58  ;;  %7032 = vmatprep.mubr.bf16.mxu1 %v16443_v61  ;;  %v10503_v58 = vld [vmem:[%s15866_s6 + $0x424] ss:$8 sps:$4 sm:$0xff]  }
 0x7d2   : > { %v6291_v27 = vmax.bf16 %v16443_v61, %v6259_v16 }
 0x7d3   : > { %v6086_v32 = vpop.f32.mrb[76].mxu1  ;;  %v6292_v11 = vmax.bf16 %v16443_v61, %v6260_v7 }
 0x7d4   : > { %v6088_v25 = vpop.f32.mrb[77].mxu1 }
 0x7d5   : > { %v6090_v17 = vpop.f32.mrb[78].mxu1  ;;  %6564 = vmatprep.mubr.bf16.mxu0 %v6292_v11 }
 0x7d6   : > { %v6221_v6 = vpack.c.bf16 %v6090_v17, %v6086_v32  ;;  %v6092_v23 = vpop.f32.mrb[79].mxu1  ;;  %6565 = vmatmul.mubr.bf16.gmra.mrb[168].mxu0 %v6291_v27 }
 0x7d7   : > { %v6222_v24 = vpack.c.bf16 %v6092_v23, %v6088_v25  ;;  %v10501_v25 = vld [vmem:[%s15866_s6 + $0x420] ss:$8 sps:$4 sm:$0xff]  }
 0x7d8   : > { %v6261_v39 = vadd.bf16 %v15075_v52, %v6221_v6  ;;  %9581 = vmatmul.mubr.msk.bf16.gmra.mrb[184].mxu1 %vm16674_vm2, %v14298_v29  ;;  %v10506_v6 = vld [vmem:[%s15866_s6 + $0x434] ss:$8 sps:$4 sm:$0xff]   ;;  %vm16690_vm2 = vmmov %vm16679_vm0 }
 0x7d9   : > { %v6262_v62 = vadd.bf16 %v15079_v55, %v6222_v24  ;;  %7042 = vmatprep.mubr.bf16.mxu1 %v16443_v61 }
 0x7da   : > { %v6293_v47 = vmax.bf16 %v16443_v61, %v6261_v39 }
 0x7db   : > { %v6096_v8 = vpop.f32.mrb[80].mxu1  ;;  %v6294_v53 = vmax.bf16 %v16443_v61, %v6262_v62  ;;  %v10504_v62 = vld [vmem:[%s15866_s6 + $0x430] ss:$8 sps:$4 sm:$0xff]  }
 0x7dc   : > { %v6098_v42 = vpop.f32.mrb[81].mxu1 }
 0x7dd   : > { %v6100_v5 = vpop.f32.mrb[82].mxu1  ;;  %6574 = vmatprep.mubr.bf16.mxu0 %v6294_v53 }
 0x7de   : > { %v6223_v60 = vpack.c.bf16 %v6100_v5, %v6096_v8  ;;  %v6102_v30 = vpop.f32.mrb[83].mxu1  ;;  %6575 = vmatmul.mubr.bf16.gmra.mrb[172].mxu0 %v6293_v47  ;;  %v10509_v8 = vld [vmem:[%s15866_s6 + $0x444] ss:$8 sps:$4 sm:$0xff]  }
 0x7df   : > { %v6224_v38 = vpack.c.bf16 %v6102_v30, %v6098_v42 }
 0x7e0   : > { %v6263_v28 = vadd.bf16 %v15075_v52, %v6223_v60  ;;  %9582 = vmatmul.mubr.msk.bf16.gmra.mrb[188].mxu1 %vm16675_vm5, %v14307_v1  ;;  %v10500_v1 = vld [vmem:[%s15866_s6 + $0x414] ss:$8 sps:$4 sm:$0xff]   ;;  %v10507_v60 = vld [vmem:[%s15866_s6 + $0x440] ss:$8 sps:$4 sm:$0xff]   ;;  %vm16691_vm5 = vmmov %vm16679_vm0 }
 0x7e1   : > { %v6264_v29 = vadd.bf16 %v15079_v55, %v6224_v38  ;;  %7096 = vmatprep.mubr.bf16.mxu1 %v16443_v61 }
 0x7e2   : > { %v6295_v12 = vmax.bf16 %v16443_v61, %v6263_v28  ;;  %v10512_v28 = vld [vmem:[%s15866_s6 + $0x454] ss:$8 sps:$4 sm:$0xff]  }
 0x7e3   : > { %v6106_v21 = vpop.f32.mrb[84].mxu1  ;;  %v6296_v19 = vmax.bf16 %v16443_v61, %v6264_v29 }
 0x7e4   : > { %v6108_v20 = vpop.f32.mrb[85].mxu1 }
 0x7e5   : > { %v6110_v46 = vpop.f32.mrb[86].mxu1  ;;  %6584 = vmatprep.mubr.bf16.mxu0 %v6296_v19 }
 0x7e6   : > { %v6225_v35 = vpack.c.bf16 %v6110_v46, %v6106_v21  ;;  %v6112_v33 = vpop.f32.mrb[87].mxu1  ;;  %6585 = vmatmul.mubr.bf16.gmra.mrb[176].mxu0 %v6295_v12  ;;  %v10515_v12 = vld [vmem:[%s15866_s6 + $0x464] ss:$8 sps:$4 sm:$0xff]  }
 0x7e7   : > { %v6226_v49 = vpack.c.bf16 %v6112_v33, %v6108_v20  ;;  %v10510_v20 = vld [vmem:[%s15866_s6 + $0x450] ss:$8 sps:$4 sm:$0xff]  }
 0x7e8   : > { %v6265_v63 = vadd.bf16 %v15075_v52, %v6225_v35  ;;  %9586 = vmatmul.mubr.msk.bf16.vlgmr.msra.gmra.mrb[128].mxu1 %vm16676_vm13, %v16622_v57 }
 0x7e9   : > { %v6266_v36 = vadd.bf16 %v15079_v55, %v6226_v49  ;;  %7451 = vmatpush1.bf16.msra.mxu1 %v10495_v10  ;;  %7106 = vmatprep.mubr.bf16.mxu1 %v16443_v61 }
 0x7ea   : > { %7452 = vmatprep.subr.bf16.mxu1 %v10500_v1  ;;  %v6297_v57 = vmax.bf16 %v16443_v61, %v6265_v63  ;;  %v10513_v1 = vld [vmem:[%s15866_s6 + $0x460] ss:$8 sps:$4 sm:$0xff]  }
 0x7eb   : > { %v6116_v16 = vpop.f32.mrb[88].mxu1  ;;  %v6298_v7 = vmax.bf16 %v16443_v61, %v6266_v36  ;;  %v10518_v36 = vld [vmem:[%s15866_s6 + $0x474] ss:$8 sps:$4 sm:$0xff]  }
 0x7ec   : > { %v6118_v32 = vpop.f32.mrb[89].mxu1 }
 0x7ed   : > { %v6120_v11 = vpop.f32.mrb[90].mxu1  ;;  %6594 = vmatprep.mubr.bf16.mxu0 %v6298_v7  ;;  %7453 = vmatpush1.bf16.msra.mxu1 %v10498_v44  ;;  %v10516_v7 = vld [vmem:[%s15866_s6 + $0x470] ss:$8 sps:$4 sm:$0xff]  }
 0x7ee   : > { %v6227_v27 = vpack.c.bf16 %v6120_v11, %v6116_v16  ;;  %v6122_v17 = vpop.f32.mrb[91].mxu1  ;;  %6595 = vmatmul.mubr.bf16.gmra.mrb[180].mxu0 %v6297_v57  ;;  %7454 = vmatprep.subr.bf16.mxu1 %v10503_v58 }
 0x7ef   : > { %v6228_v23 = vpack.c.bf16 %v6122_v17, %v6118_v32  ;;  %v10521_v32 = vld [vmem:[%s15866_s6 + $0x484] ss:$8 sps:$4 sm:$0xff]   ;;  %v10519_v17 = vld [vmem:[%s15866_s6 + $0x480] ss:$8 sps:$4 sm:$0xff]  }
 0x7f0   : > { %v6267_v24 = vadd.bf16 %v15075_v52, %v6227_v27  ;;  %9587 = vmatmul.mubr.msk.bf16.gmra.mrb[132].mxu1 %vm16677_vm11, %v16624_v34 }
 0x7f1   : > { %v6268_v39 = vadd.bf16 %v15079_v55, %v6228_v23  ;;  %7116 = vmatprep.mubr.bf16.mxu1 %v16443_v61  ;;  %7455 = vmatpush1.bf16.msra.mxu1 %v10501_v25 }
 0x7f2   : > { %7456 = vmatprep.subr.bf16.mxu1 %v10506_v6  ;;  %v6299_v34 = vmax.bf16 %v16443_v61, %v6267_v24  ;;  %v10524_v24 = vld [vmem:[%s15866_s6 + $0x494] ss:$8 sps:$4 sm:$0xff]  }
 0x7f3   : > { %v6126_v53 = vpop.f32.mrb[92].mxu1  ;;  %v6300_v42 = vmax.bf16 %v16443_v61, %v6268_v39 }
 0x7f4   : > { %v6128_v47 = vpop.f32.mrb[93].mxu1 }
 0x7f5   : > { %v6130_v5 = vpop.f32.mrb[94].mxu1  ;;  %6604 = vmatprep.mubr.bf16.mxu0 %v6300_v42  ;;  %7457 = vmatpush1.bf16.msra.mxu1 %v10504_v62  ;;  %v10527_v42 = vld [vmem:[%s15866_s6 + $0x4a4] ss:$8 sps:$4 sm:$0xff]  }
 0x7f6   : > { %v6229_v30 = vpack.c.bf16 %v6130_v5, %v6126_v53  ;;  %v6132_v38 = vpop.f32.mrb[95].mxu1  ;;  %6605 = vmatmul.mubr.bf16.gmra.mrb[184].mxu0 %v6299_v34  ;;  %7458 = vmatprep.subr.bf16.mxu1 %v10509_v8  ;;  %v10522_v53 = vld [vmem:[%s15866_s6 + $0x490] ss:$8 sps:$4 sm:$0xff]  }
 0x7f7   : > { %v6230_v29 = vpack.c.bf16 %v6132_v38, %v6128_v47 }
 0x7f8   : > { %v6269_v21 = vadd.bf16 %v15075_v52, %v6229_v30  ;;  %9588 = vmatmul.mubr.msk.bf16.gmra.mrb[136].mxu1 %vm16678_vm6, %v16626_v48  ;;  %v10525_v30 = vld [vmem:[%s15866_s6 + $0x4a0] ss:$8 sps:$4 sm:$0xff]  }
 0x7f9   : > { %v6270_v19 = vadd.bf16 %v15079_v55, %v6230_v29  ;;  %7126 = vmatprep.mubr.bf16.mxu1 %v16443_v61  ;;  %7459 = vmatpush1.bf16.msra.mxu1 %v10507_v60  ;;  %v10530_v29 = vld [vmem:[%s15866_s6 + $0x4b4] ss:$8 sps:$4 sm:$0xff]  }
 0x7fa   : > { %7460 = vmatprep.subr.bf16.mxu1 %v10512_v28  ;;  %v6301_v48 = vmax.bf16 %v16443_v61, %v6269_v21 }
 0x7fb   : > { %v6136_v46 = vpop.f32.mrb[96].mxu1  ;;  %v6302_v10 = vmax.bf16 %v16443_v61, %v6270_v19 }
 0x7fc   : > { %v6138_v35 = vpop.f32.mrb[97].mxu1 }
 0x7fd   : > { %v6140_v33 = vpop.f32.mrb[98].mxu1  ;;  %6614 = vmatprep.mubr.bf16.mxu0 %v6302_v10  ;;  %7461 = vmatpush1.bf16.msra.mxu1 %v10510_v20 }
 0x7fe   : > { %v6231_v49 = vpack.c.bf16 %v6140_v33, %v6136_v46  ;;  %v6142_v63 = vpop.f32.mrb[99].mxu1  ;;  %6615 = vmatmul.mubr.bf16.gmra.mrb[188].mxu0 %v6301_v48  ;;  %7462 = vmatprep.subr.bf16.mxu1 %v10515_v12  ;;  %v10528_v12 = vld [vmem:[%s15866_s6 + $0x4b0] ss:$8 sps:$4 sm:$0xff]   ;;  %v10533_v46 = vld [vmem:[%s15866_s6 + $0x4c4] ss:$8 sps:$4 sm:$0xff]  }
 0x7ff   : > { %v6232_v44 = vpack.c.bf16 %v6142_v63, %v6138_v35 }
 0x800   : > { %v6271_v58 = vadd.bf16 %v15075_v52, %v6231_v49  ;;  %9589 = vmatmul.mubr.msk.bf16.gmra.mrb[140].mxu1 %vm16679_vm0, %v16628_v9 }
 0x801   : > { %v6272_v16 = vadd.bf16 %v15079_v55, %v6232_v44  ;;  %7136 = vmatprep.mubr.bf16.mxu1 %v16443_v61  ;;  %7463 = vmatpush1.bf16.msra.mxu1 %v10513_v1  ;;  %v10531_v1 = vld [vmem:[%s15866_s6 + $0x4c0] ss:$8 sps:$4 sm:$0xff]  }
 0x802   : > { %7464 = vmatprep.subr.bf16.mxu1 %v10518_v36  ;;  %v6303_v9 = vmax.bf16 %v16443_v61, %v6271_v58  ;;  %v10536_v36 = vld [vmem:[%s15866_s6 + $0x4d4] ss:$8 sps:$4 sm:$0xff]  }
 0x803   : > { %v6146_v57 = vpop.f32.mrb[100].mxu1  ;;  %v6304_v11 = vmax.bf16 %v16443_v61, %v6272_v16 }
 0x804   : > { %v6148_v25 = vpop.f32.mrb[101].mxu1 }
 0x805   : > { %v6150_v27 = vpop.f32.mrb[102].mxu1  ;;  %6624 = vmatprep.mubr.bf16.mxu0 %v6304_v11  ;;  %7465 = vmatpush1.bf16.msra.mxu1 %v10516_v7  ;;  %v10534_v7 = vld [vmem:[%s15866_s6 + $0x4d0] ss:$8 sps:$4 sm:$0xff]  }
 0x806   : > { %v6233_v6 = vpack.c.bf16 %v6150_v27, %v6146_v57  ;;  %v6152_v23 = vpop.f32.mrb[103].mxu1  ;;  %6625 = vmatmul.mubr.bf16.gmra.mrb[192].mxu0 %v6303_v9  ;;  %7466 = vmatprep.subr.bf16.mxu1 %v10521_v32  ;;  %v10539_v32 = vld [vmem:[%s15866_s6 + $0x4e4] ss:$8 sps:$4 sm:$0xff]   ;;  %v10537_v27 = vld [vmem:[%s15866_s6 + $0x4e0] ss:$8 sps:$4 sm:$0xff]  }
 0x807   : > { %v6234_v39 = vpack.c.bf16 %v6152_v23, %v6148_v25 }
 0x808   : > { %v6273_v62 = vadd.bf16 %v15075_v52, %v6233_v6  ;;  %9590 = vmatmul.mubr.msk.bf16.gmra.mrb[144].mxu1 %vm16680_vm9, %v16630_v22 }
 0x809   : > { %v6274_v8 = vadd.bf16 %v15079_v55, %v6234_v39  ;;  %7146 = vmatprep.mubr.bf16.mxu1 %v16443_v61  ;;  %7467 = vmatpush1.bf16.msra.mxu1 %v10519_v17  ;;  %v10542_v39 = vld [vmem:[%s15866_s6 + $0x4f4] ss:$8 sps:$4 sm:$0xff]  }
 0x80a   : > { %7468 = vmatprep.subr.bf16.mxu1 %v10524_v24  ;;  %v6305_v22 = vmax.bf16 %v16443_v61, %v6273_v62 }
 0x80b   : > { %v6156_v47 = vpop.f32.mrb[104].mxu1  ;;  %v6306_v34 = vmax.bf16 %v16443_v61, %v6274_v8  ;;  %v10540_v8 = vld [vmem:[%s15866_s6 + $0x4f0] ss:$8 sps:$4 sm:$0xff]  }
 0x80c   : > { %v6158_v5 = vpop.f32.mrb[105].mxu1 }
 0x80d   : > { %v6160_v60 = vpop.f32.mrb[106].mxu1  ;;  %6634 = vmatprep.mubr.bf16.mxu0 %v6306_v34  ;;  %7469 = vmatpush1.bf16.msra.mxu1 %v10522_v53 }
 0x80e   : > { %v6235_v38 = vpack.c.bf16 %v6160_v60, %v6156_v47  ;;  %v6162_v28 = vpop.f32.mrb[107].mxu1  ;;  %6635 = vmatmul.mubr.bf16.gmra.mrb[196].mxu0 %v6305_v22  ;;  %7470 = vmatprep.subr.bf16.mxu1 %v10527_v42 }
 0x80f   : > { %v6236_v21 = vpack.c.bf16 %v6162_v28, %v6158_v5 }
 0x810   : > { %v6275_v19 = vadd.bf16 %v15075_v52, %v6235_v38  ;;  %9591 = vmatmul.mubr.msk.bf16.gmra.mrb[148].mxu1 %vm16681_vm3, %v16632_v45 }
 0x811   : > { %v6276_v20 = vadd.bf16 %v15079_v55, %v6236_v21  ;;  %7156 = vmatprep.mubr.bf16.mxu1 %v16443_v61  ;;  %7471 = vmatpush1.bf16.msra.mxu1 %v10525_v30 }
 0x812   : > { %7472 = vmatprep.subr.bf16.mxu1 %v10530_v29  ;;  %v6307_v45 = vmax.bf16 %v16443_v61, %v6275_v19 }
 0x813   : > { %v6166_v10 = vpop.f32.mrb[108].mxu1  ;;  %v6308_v35 = vmax.bf16 %v16443_v61, %v6276_v20 }
 0x814   : > { %v6168_v48 = vpop.f32.mrb[109].mxu1 }
 0x815   : > { %v6170_v33 = vpop.f32.mrb[110].mxu1  ;;  %6644 = vmatprep.mubr.bf16.mxu0 %v6308_v35  ;;  %7473 = vmatpush1.bf16.msra.mxu1 %v10528_v12 }
 0x816   : > { %v6237_v49 = vpack.c.bf16 %v6170_v33, %v6166_v10  ;;  %v6172_v63 = vpop.f32.mrb[111].mxu1  ;;  %6645 = vmatmul.mubr.bf16.gmra.mrb[200].mxu0 %v6307_v45  ;;  %7474 = vmatprep.subr.bf16.mxu1 %v10533_v46 }
 0x817   : > { %v6238_v44 = vpack.c.bf16 %v6172_v63, %v6168_v48 }
 0x818   : > { %v6277_v58 = vadd.bf16 %v15075_v52, %v6237_v49  ;;  %9592 = vmatmul.mubr.msk.bf16.gmra.mrb[152].mxu1 %vm16682_vm10, %v16634_v41 }
 0x819   : > { %v6278_v16 = vadd.bf16 %v15079_v55, %v6238_v44  ;;  %7166 = vmatprep.mubr.bf16.mxu1 %v16443_v61  ;;  %7475 = vmatpush1.bf16.msra.mxu1 %v10531_v1 }
 0x81a   : > { %7476 = vmatprep.subr.bf16.mxu1 %v10536_v36  ;;  %v6309_v41 = vmax.bf16 %v16443_v61, %v6277_v58 }
 0x81b   : > { %v6176_v57 = vpop.f32.mrb[112].mxu1  ;;  %v6310_v11 = vmax.bf16 %v16443_v61, %v6278_v16 }
 0x81c   : > { %v6178_v25 = vpop.f32.mrb[113].mxu1 }
 0x81d   : > { %v6180_v9 = vpop.f32.mrb[114].mxu1  ;;  %6654 = vmatprep.mubr.bf16.mxu0 %v6310_v11  ;;  %7477 = vmatpush1.bf16.msra.mxu1 %v10534_v7  ;;  %v15326_v11 = vrot.slane %v14847_v50, %v15070_v15 }
 0x81e   : > { %v6239_v17 = vpack.c.bf16 %v6180_v9, %v6176_v57  ;;  %v6182_v6 = vpop.f32.mrb[115].mxu1  ;;  %6655 = vmatmul.mubr.bf16.gmra.mrb[204].mxu0 %v6309_v41  ;;  %7478 = vmatprep.subr.bf16.mxu1 %v10539_v32  ;;  %v15330_v41 = vrot.slane %v14849_v14, %v15070_v15 }
 0x81f   : > { %v6240_v23 = vpack.c.bf16 %v6182_v6, %v6178_v25  ;;  %v10557_v6 = vld [vmem:[%s15866_s6 + $0x544] ss:$8 sps:$4 sm:$0xff]  }
 0x820   : > { %v6279_v24 = vadd.bf16 %v15075_v52, %v6239_v17  ;;  %9593 = vmatmul.mubr.msk.bf16.gmra.mrb[156].mxu1 %vm16683_vm14, %v16636_v0  ;;  %v10555_v17 = vld [vmem:[%s15866_s6 + $0x540] ss:$8 sps:$4 sm:$0xff]  }
 0x821   : > { %v6280_v62 = vadd.bf16 %v15079_v55, %v6240_v23  ;;  %7176 = vmatprep.mubr.bf16.mxu1 %v16443_v61  ;;  %7479 = vmatpush1.bf16.msra.mxu1 %v10537_v27 }
 0x822   : > { %7480 = vmatprep.subr.bf16.mxu1 %v10542_v39  ;;  %v6311_v0 = vmax.bf16 %v16443_v61, %v6279_v24  ;;  %v10560_v24 = vld [vmem:[%s15866_s6 + $0x554] ss:$8 sps:$4 sm:$0xff]  }
 0x823   : > { %v6186_v53 = vpop.f32.mrb[116].mxu1  ;;  %v6312_v42 = vmax.bf16 %v16443_v61, %v6280_v62  ;;  %v10558_v62 = vld [vmem:[%s15866_s6 + $0x550] ss:$8 sps:$4 sm:$0xff]  }
 0x824   : > { %v6188_v47 = vpop.f32.mrb[117].mxu1 }
 0x825   : > { %v6190_v34 = vpop.f32.mrb[118].mxu1  ;;  %6664 = vmatprep.mubr.bf16.mxu0 %v6312_v42  ;;  %7481 = vmatpush1.bf16.msra.mxu1 %v10540_v8  ;;  %v10563_v8 = vld [vmem:[%s15866_s6 + $0x564] ss:$8 sps:$4 sm:$0xff]  }
 0x826   : > { %v6241_v5 = vpack.c.bf16 %v6190_v34, %v6186_v53  ;;  %v6192_v22 = vpop.f32.mrb[119].mxu1  ;;  %6665 = vmatmul.mubr.bf16.gmra.mrb[208].mxu0 %v6311_v0 }
 0x827   : > { %v6242_v60 = vpack.c.bf16 %v6192_v22, %v6188_v47 }
 0x828   : > { %v6281_v30 = vadd.bf16 %v15075_v52, %v6241_v5  ;;  %9594 = vmatmul.mubr.msk.bf16.gmra.mrb[160].mxu1 %vm16684_vm7, %v16638_v4  ;;  %v10561_v5 = vld [vmem:[%s15866_s6 + $0x560] ss:$8 sps:$4 sm:$0xff]  }
 0x829   : > { %v6282_v38 = vadd.bf16 %v15079_v55, %v6242_v60  ;;  %7186 = vmatprep.mubr.bf16.mxu1 %v16443_v61 }
 0x82a   : > { %v6313_v19 = vmax.bf16 %v16443_v61, %v6281_v30  ;;  %v10566_v30 = vld [vmem:[%s15866_s6 + $0x574] ss:$8 sps:$4 sm:$0xff]  }
 0x82b   : > { %v6196_v28 = vpop.f32.mrb[120].mxu1  ;;  %v6314_v29 = vmax.bf16 %v16443_v61, %v6282_v38 }
 0x82c   : > { %v6198_v21 = vpop.f32.mrb[121].mxu1 }
 0x82d   : > { %v6200_v20 = vpop.f32.mrb[122].mxu1  ;;  %6674 = vmatprep.mubr.bf16.mxu0 %v6314_v29 }
 0x82e   : > { %v6243_v12 = vpack.c.bf16 %v6200_v20, %v6196_v28  ;;  %v6202_v46 = vpop.f32.mrb[123].mxu1  ;;  %6675 = vmatmul.mubr.bf16.gmra.mrb[212].mxu0 %v6313_v19  ;;  %v10569_v19 = vld [vmem:[%s15866_s6 + $0x584] ss:$8 sps:$4 sm:$0xff]  }
 0x82f   : > { %v6244_v10 = vpack.c.bf16 %v6202_v46, %v6198_v21  ;;  %v10564_v21 = vld [vmem:[%s15866_s6 + $0x570] ss:$8 sps:$4 sm:$0xff]  }
 0x830   : > { %v6283_v35 = vadd.bf16 %v15075_v52, %v6243_v12  ;;  %9595 = vmatmul.mubr.msk.bf16.gmra.mrb[164].mxu1 %vm16685_vm12, %v16640_v3 }
 0x831   : > { %v6284_v4 = vadd.bf16 %v15079_v55, %v6244_v10  ;;  %7196 = vmatprep.mubr.bf16.mxu1 %v16443_v61 }
 0x832   : > { %v6315_v1 = vmax.bf16 %v16443_v61, %v6283_v35 }
 0x833   : > { %v6206_v48 = vpop.f32.mrb[124].mxu1  ;;  %v6316_v45 = vmax.bf16 %v16443_v61, %v6284_v4  ;;  %v10567_v4 = vld [vmem:[%s15866_s6 + $0x580] ss:$8 sps:$4 sm:$0xff]  }
 0x834   : > { %v6208_v33 = vpop.f32.mrb[125].mxu1 }
 0x835   : > { %v6210_v49 = vpop.f32.mrb[126].mxu1  ;;  %6684 = vmatprep.mubr.bf16.mxu0 %v6316_v45 }
 0x836   : > { %v6245_v63 = vpack.c.bf16 %v6210_v49, %v6206_v48  ;;  %v6212_v36 = vpop.f32.mrb[127].mxu1  ;;  %6685 = vmatmul.mubr.bf16.gmra.mrb[216].mxu0 %v6315_v1 }
 0x837   : > { %v6246_v44 = vpack.c.bf16 %v6212_v36, %v6208_v33  ;;  %v10572_v33 = vld [vmem:[%s15866_s6 + $0x594] ss:$8 sps:$4 sm:$0xff]   ;;  %v10570_v36 = vld [vmem:[%s15866_s6 + $0x590] ss:$8 sps:$4 sm:$0xff]  }
 0x838   : > { %v6285_v58 = vadd.bf16 %v15075_v52, %v6245_v63  ;;  %9596 = vmatmul.mubr.msk.bf16.gmra.mrb[168].mxu1 %vm16686_vm15, %v16642_v26  ;;  %v10543_v26 = vld [vmem:[%s15866_s6 + $0x500] ss:$8 sps:$4 sm:$0xff]   ;;  %v10552_v52 = vld [vmem:[%s15866_s6 + $0x530] ss:$8 sps:$4 sm:$0xff]  }
 0x839   : > { %v6286_v3 = vadd.bf16 %v15079_v55, %v6246_v44  ;;  %7206 = vmatprep.mubr.bf16.mxu1 %v16443_v61  ;;  %v10554_v55 = vld [vmem:[%s15866_s6 + $0x534] ss:$8 sps:$4 sm:$0xff]   ;;  %v10575_v44 = vld [vmem:[%s15866_s6 + $0x5a4] ss:$8 sps:$4 sm:$0xff]  }
 0x83a   : > { %v6317_v7 = vmax.bf16 %v16443_v61, %v6285_v58 }
 0x83b   : > { %v6318_v16 = vmax.bf16 %v16443_v61, %v6286_v3 }
 0x83d   : > { %6694 = vmatprep.mubr.bf16.mxu0 %v6318_v16 }
 0x83e   : > { %6695 = vmatmul.mubr.bf16.gmra.mrb[220].mxu0 %v6317_v7 }
 0x840   : > { %9597 = vmatmul.mubr.msk.bf16.gmra.mrb[172].mxu1 %vm16687_vm4, %v16644_v31  ;;  %v10545_v31 = vld [vmem:[%s15866_s6 + $0x504] ss:$8 sps:$4 sm:$0xff]  }
 0x841   : > { %7216 = vmatprep.mubr.bf16.mxu1 %v16443_v61  ;;  %8010 = vmatprep.subr.bf16.mxu0 %v10545_v31  ;;  %v10573_v31 = vld [vmem:[%s15866_s6 + $0x5a0] ss:$8 sps:$4 sm:$0xff]  }
 0x842   : > { %8011 = vmatpush1.bf16.msra.mxu0 %v10543_v26 }
 0x848   : > { %9598 = vmatmul.mubr.msk.bf16.gmra.mrb[176].mxu1 %vm16688_vm1, %v16646_v13  ;;  %v10546_v13 = vld [vmem:[%s15866_s6 + $0x510] ss:$8 sps:$4 sm:$0xff]  }
 0x849   : > { %7226 = vmatprep.mubr.bf16.mxu1 %v16443_v61 }
 0x850   : > { %9599 = vmatmul.mubr.msk.bf16.gmra.mrb[180].mxu1 %vm16689_vm8, %v16648_v51  ;;  %v10548_v51 = vld [vmem:[%s15866_s6 + $0x514] ss:$8 sps:$4 sm:$0xff]  }
 0x851   : > { %7236 = vmatprep.mubr.bf16.mxu1 %v16443_v61  ;;  %8012 = vmatprep.subr.bf16.mxu0 %v10548_v51 }
 0x852   : > { %8013 = vmatpush1.bf16.msra.mxu0 %v10546_v13 }
 0x858   : > { %9600 = vmatmul.mubr.msk.bf16.gmra.mrb[184].mxu1 %vm16690_vm2, %v16650_v54  ;;  %v10549_v54 = vld [vmem:[%s15866_s6 + $0x520] ss:$8 sps:$4 sm:$0xff]  }
 0x859   : > { %7246 = vmatprep.mubr.bf16.mxu1 %v16443_v61 }
 0x860   : > { %9601 = vmatmul.mubr.msk.bf16.gmra.mrb[188].mxu1 %vm16691_vm5, %v16652_v40  ;;  %v10551_v40 = vld [vmem:[%s15866_s6 + $0x524] ss:$8 sps:$4 sm:$0xff]  }
 0x861   : > { %8014 = vmatprep.subr.bf16.mxu0 %v10551_v40 }
 0x862   : > { %8015 = vmatpush1.bf16.msra.mxu0 %v10549_v54  ;;  %v10578_v54 = vld [vmem:[%s15866_s6 + $0x5b4] ss:$8 sps:$4 sm:$0xff]  }
 0x863   : > { %8016 = vmatprep.subr.bf16.mxu0 %v10554_v55 }
 0x866   : > { %8017 = vmatpush1.bf16.msra.mxu0 %v10552_v52 }
 0x867   : > { %8018 = vmatprep.subr.bf16.mxu0 %v10557_v6 }
 0x86a   : > { %8019 = vmatpush1.bf16.msra.mxu0 %v10555_v17 }
 0x86b   : > { %8020 = vmatprep.subr.bf16.mxu0 %v10560_v24 }
 0x86e   : > { %8021 = vmatpush1.bf16.msra.mxu0 %v10558_v62 }
 0x86f   : > { %8022 = vmatprep.subr.bf16.mxu0 %v10563_v8 }
 0x872   : > { %8023 = vmatpush1.bf16.msra.mxu0 %v10561_v5 }
 0x873   : > { %8024 = vmatprep.subr.bf16.mxu0 %v10566_v30  ;;  %v10585_v30 = vld [vmem:[%s15866_s6 + $0x5e0] ss:$8 sps:$4 sm:$0xff]  }
 0x876   : > { %8025 = vmatpush1.bf16.msra.mxu0 %v10564_v21 }
 0x877   : > { %8026 = vmatprep.subr.bf16.mxu0 %v10569_v19 }
 0x87a   : > { %8027 = vmatpush1.bf16.msra.mxu0 %v10567_v4 }
 0x87b   : > { %8028 = vmatprep.subr.bf16.mxu0 %v10572_v33 }
 0x87e   : > { %8029 = vmatpush1.bf16.msra.mxu0 %v10570_v36 }
 0x87f   : > { %8030 = vmatprep.subr.bf16.mxu0 %v10575_v44 }
 0x882   : > { %8031 = vmatpush1.bf16.msra.mxu0 %v10573_v31 }
 0x883   : > { %8032 = vmatprep.subr.bf16.mxu0 %v10578_v54 }
 0x899   : > { %v6546_v32 = vpop.f32.mrb[160].mxu0 }
 0x89a   : > { %v6548_v57 = vpop.f32.mrb[161].mxu0 }
 0x89b   : > { %v6550_v25 = vpop.f32.mrb[162].mxu0 }
 0x89c   : > { %v6705_v9 = vpack.c.bf16 %v6550_v25, %v6546_v32  ;;  %v6552_v27 = vpop.f32.mrb[163].mxu0  ;;  %v10576_v32 = vld [vmem:[%s15866_s6 + $0x5b0] ss:$8 sps:$4 sm:$0xff]  }
 0x89d   : > { %v6706_v23 = vpack.c.bf16 %v6552_v27, %v6548_v57  ;;  %v10581_v57 = vld [vmem:[%s15866_s6 + $0x5c4] ss:$8 sps:$4 sm:$0xff]   ;;  %8033 = vmatpush1.bf16.msra.mxu0 %v10576_v32 }
 0x89e   : > { %v6745_v39 = vadd.bf16 %v15326_v11, %v6705_v9  ;;  %8034 = vmatprep.subr.bf16.mxu0 %v10581_v57 }
 0x89f   : > { %v6746_v15 = vadd.bf16 %v15330_v41, %v6706_v23  ;;  %v10579_v23 = vld [vmem:[%s15866_s6 + $0x5c0] ss:$8 sps:$4 sm:$0xff]  }
 0x8a0   : > { %v6777_v47 = vmax.bf16 %v16443_v61, %v6745_v39 }
 0x8a1   : > { %v6556_v53 = vpop.f32.mrb[164].mxu0  ;;  %v6778_v42 = vmax.bf16 %v16443_v61, %v6746_v15  ;;  %v10584_v15 = vld [vmem:[%s15866_s6 + $0x5d4] ss:$8 sps:$4 sm:$0xff]   ;;  %8035 = vmatpush1.bf16.msra.mxu0 %v10579_v23 }
 0x8a2   : > { %v6558_v0 = vpop.f32.mrb[165].mxu0  ;;  %8036 = vmatprep.subr.bf16.mxu0 %v10584_v15 }
 0x8a3   : > { %v6560_v34 = vpop.f32.mrb[166].mxu0  ;;  %7482 = vmatprep.mubr.bf16.mxu1 %v6778_v42  ;;  %v10582_v42 = vld [vmem:[%s15866_s6 + $0x5d0] ss:$8 sps:$4 sm:$0xff]  }
 0x8a4   : > { %v6707_v22 = vpack.c.bf16 %v6560_v34, %v6556_v53  ;;  %v6562_v60 = vpop.f32.mrb[167].mxu0  ;;  %7483 = vmatmul.mubr.bf16.vlgmr.msra.gmra.mrb[128].mxu1 %v6777_v47  ;;  %v10587_v47 = vld [vmem:[%s15866_s6 + $0x5e4] ss:$8 sps:$4 sm:$0xff]  }
 0x8a5   : > { %v6708_v38 = vpack.c.bf16 %v6562_v60, %v6558_v0  ;;  %8037 = vmatpush1.bf16.msra.mxu0 %v10582_v42 }
 0x8a6   : > { %v6747_v28 = vadd.bf16 %v15326_v11, %v6707_v22  ;;  %8038 = vmatprep.subr.bf16.mxu0 %v10587_v47 }
 0x8a7   : > { %v6748_v29 = vadd.bf16 %v15330_v41, %v6708_v38 }
 0x8a8   : > { %v6779_v10 = vmax.bf16 %v16443_v61, %v6747_v28 }
 0x8a9   : > { %v6566_v20 = vpop.f32.mrb[168].mxu0  ;;  %v6780_v12 = vmax.bf16 %v16443_v61, %v6748_v29  ;;  %8039 = vmatpush1.bf16.msra.mxu0 %v10585_v30 }
 0x8aa   : > { %v6568_v46 = vpop.f32.mrb[169].mxu0 }
 0x8ab   : > { %v6570_v35 = vpop.f32.mrb[170].mxu0  ;;  %7492 = vmatprep.mubr.bf16.mxu1 %v6780_v12 }
 0x8ac   : > { %v6709_v48 = vpack.c.bf16 %v6570_v35, %v6566_v20  ;;  %v6572_v45 = vpop.f32.mrb[171].mxu0  ;;  %7493 = vmatmul.mubr.bf16.gmra.mrb[132].mxu1 %v6779_v10 }
 0x8ad   : > { %v6710_v1 = vpack.c.bf16 %v6572_v45, %v6568_v46 }
 0x8ae   : > { %v6749_v49 = vadd.bf16 %v15326_v11, %v6709_v48 }
 0x8af   : > { %v6750_v63 = vadd.bf16 %v15330_v41, %v6710_v1 }
 0x8b0   : > { %v6781_v7 = vmax.bf16 %v16443_v61, %v6749_v49 }
 0x8b1   : > { %v6576_v58 = vpop.f32.mrb[172].mxu0  ;;  %v6782_v3 = vmax.bf16 %v16443_v61, %v6750_v63 }
 0x8b2   : > { %v6578_v16 = vpop.f32.mrb[173].mxu0 }
 0x8b3   : > { %v6580_v26 = vpop.f32.mrb[174].mxu0  ;;  %7502 = vmatprep.mubr.bf16.mxu1 %v6782_v3 }
 0x8b4   : > { %v6711_v13 = vpack.c.bf16 %v6580_v26, %v6576_v58  ;;  %v6582_v51 = vpop.f32.mrb[175].mxu0  ;;  %7503 = vmatmul.mubr.bf16.gmra.mrb[136].mxu1 %v6781_v7 }
 0x8b5   : > { %v6712_v40 = vpack.c.bf16 %v6582_v51, %v6578_v16 }
 0x8b6   : > { %v6751_v52 = vadd.bf16 %v15326_v11, %v6711_v13 }
 0x8b7   : > { %v6752_v55 = vadd.bf16 %v15330_v41, %v6712_v40 }
 0x8b8   : > { %v6783_v17 = vmax.bf16 %v16443_v61, %v6751_v52 }
 0x8b9   : > { %v6586_v25 = vpop.f32.mrb[176].mxu0  ;;  %v6784_v9 = vmax.bf16 %v16443_v61, %v6752_v55 }
 0x8ba   : > { %v6588_v27 = vpop.f32.mrb[177].mxu0 }
 0x8bb   : > { %v6590_v6 = vpop.f32.mrb[178].mxu0  ;;  %7512 = vmatprep.mubr.bf16.mxu1 %v6784_v9 }
 0x8bc   : > { %v6713_v24 = vpack.c.bf16 %v6590_v6, %v6586_v25  ;;  %v6592_v39 = vpop.f32.mrb[179].mxu0  ;;  %7513 = vmatmul.mubr.bf16.gmra.mrb[140].mxu1 %v6783_v17 }
 0x8bd   : > { %v6714_v62 = vpack.c.bf16 %v6592_v39, %v6588_v27 }
 0x8be   : > { %v6753_v8 = vadd.bf16 %v15326_v11, %v6713_v24 }
 0x8bf   : > { %v6754_v53 = vadd.bf16 %v15330_v41, %v6714_v62 }
 0x8c0   : > { %v6785_v22 = vmax.bf16 %v16443_v61, %v6753_v8 }
 0x8c1   : > { %v6596_v0 = vpop.f32.mrb[180].mxu0  ;;  %v6786_v34 = vmax.bf16 %v16443_v61, %v6754_v53 }
 0x8c2   : > { %v6598_v5 = vpop.f32.mrb[181].mxu0 }
 0x8c3   : > { %v6600_v60 = vpop.f32.mrb[182].mxu0  ;;  %7522 = vmatprep.mubr.bf16.mxu1 %v6786_v34 }
 0x8c4   : > { %v6715_v38 = vpack.c.bf16 %v6600_v60, %v6596_v0  ;;  %v6602_v28 = vpop.f32.mrb[183].mxu0  ;;  %7523 = vmatmul.mubr.bf16.gmra.mrb[144].mxu1 %v6785_v22 }
 0x8c5   : > { %v6716_v29 = vpack.c.bf16 %v6602_v28, %v6598_v5 }
 0x8c6   : > { %v6755_v21 = vadd.bf16 %v15326_v11, %v6715_v38 }
 0x8c7   : > { %v6756_v19 = vadd.bf16 %v15330_v41, %v6716_v29 }
 0x8c8   : > { %v6787_v10 = vmax.bf16 %v16443_v61, %v6755_v21 }
 0x8c9   : > { %v6606_v20 = vpop.f32.mrb[184].mxu0  ;;  %v6788_v12 = vmax.bf16 %v16443_v61, %v6756_v19 }
 0x8ca   : > { %v6608_v46 = vpop.f32.mrb[185].mxu0 }
 0x8cb   : > { %v6610_v35 = vpop.f32.mrb[186].mxu0  ;;  %7532 = vmatprep.mubr.bf16.mxu1 %v6788_v12 }
 0x8cc   : > { %v6717_v4 = vpack.c.bf16 %v6610_v35, %v6606_v20  ;;  %v6612_v48 = vpop.f32.mrb[187].mxu0  ;;  %7533 = vmatmul.mubr.bf16.gmra.mrb[148].mxu1 %v6787_v10 }
 0x8cd   : > { %v6718_v45 = vpack.c.bf16 %v6612_v48, %v6608_v46 }
 0x8ce   : > { %v6757_v33 = vadd.bf16 %v15326_v11, %v6717_v4 }
 0x8cf   : > { %v6758_v1 = vadd.bf16 %v15330_v41, %v6718_v45 }
 0x8d0   : > { %v6789_v44 = vmax.bf16 %v16443_v61, %v6757_v33 }
 0x8d1   : > { %v6616_v49 = vpop.f32.mrb[188].mxu0  ;;  %v6790_v63 = vmax.bf16 %v16443_v61, %v6758_v1 }
 0x8d2   : > { %v6618_v36 = vpop.f32.mrb[189].mxu0 }
 0x8d3   : > { %v6620_v58 = vpop.f32.mrb[190].mxu0  ;;  %7542 = vmatprep.mubr.bf16.mxu1 %v6790_v63 }
 0x8d4   : > { %v6719_v3 = vpack.c.bf16 %v6620_v58, %v6616_v49  ;;  %v6622_v16 = vpop.f32.mrb[191].mxu0  ;;  %7543 = vmatmul.mubr.bf16.gmra.mrb[152].mxu1 %v6789_v44 }
 0x8d5   : > { %v6720_v7 = vpack.c.bf16 %v6622_v16, %v6618_v36  ;;  %v10588_v16 = vld [vmem:[%s15866_s6 + $0x5f0] ss:$8 sps:$4 sm:$0xff]  }
 0x8d6   : > { %v6759_v26 = vadd.bf16 %v15326_v11, %v6719_v3 }
 0x8d7   : > { %v6760_v31 = vadd.bf16 %v15330_v41, %v6720_v7  ;;  %v10590_v7 = vld [vmem:[%s15866_s6 + $0x5f4] ss:$8 sps:$4 sm:$0xff]  }
 0x8d8   : > { %v6791_v40 = vmax.bf16 %v16443_v61, %v6759_v26  ;;  %8040 = vmatprep.subr.bf16.mxu0 %v10590_v7 }
 0x8d9   : > { %v6626_v13 = vpop.f32.mrb[192].mxu0  ;;  %v6792_v51 = vmax.bf16 %v16443_v61, %v6760_v31  ;;  %8041 = vmatpush1.bf16.msra.mxu0 %v10588_v16 }
 0x8da   : > { %v6628_v54 = vpop.f32.mrb[193].mxu0 }
 0x8db   : > { %v6630_v52 = vpop.f32.mrb[194].mxu0  ;;  %7552 = vmatprep.mubr.bf16.mxu1 %v6792_v51 }
 0x8dc   : > { %v6721_v55 = vpack.c.bf16 %v6630_v52, %v6626_v13  ;;  %v6632_v32 = vpop.f32.mrb[195].mxu0  ;;  %7553 = vmatmul.mubr.bf16.gmra.mrb[156].mxu1 %v6791_v40 }
 0x8dd   : > { %v6722_v57 = vpack.c.bf16 %v6632_v32, %v6628_v54 }
 0x8de   : > { %v6761_v25 = vadd.bf16 %v15326_v11, %v6721_v55 }
 0x8df   : > { %v6762_v9 = vadd.bf16 %v15330_v41, %v6722_v57 }
 0x8e0   : > { %v6793_v23 = vmax.bf16 %v16443_v61, %v6761_v25 }
 0x8e1   : > { %v6636_v27 = vpop.f32.mrb[196].mxu0  ;;  %v6794_v17 = vmax.bf16 %v16443_v61, %v6762_v9 }
 0x8e2   : > { %v6638_v6 = vpop.f32.mrb[197].mxu0 }
 0x8e3   : > { %v6640_v24 = vpop.f32.mrb[198].mxu0  ;;  %7562 = vmatprep.mubr.bf16.mxu1 %v6794_v17 }
 0x8e4   : > { %v6723_v39 = vpack.c.bf16 %v6640_v24, %v6636_v27  ;;  %v6642_v15 = vpop.f32.mrb[199].mxu0  ;;  %7563 = vmatmul.mubr.bf16.gmra.mrb[160].mxu1 %v6793_v23 }
 0x8e5   : > { %v6724_v62 = vpack.c.bf16 %v6642_v15, %v6638_v6 }
 0x8e6   : > { %v6763_v8 = vadd.bf16 %v15326_v11, %v6723_v39 }
 0x8e7   : > { %v6764_v53 = vadd.bf16 %v15330_v41, %v6724_v62 }
 0x8e8   : > { %v6795_v34 = vmax.bf16 %v16443_v61, %v6763_v8 }
 0x8e9   : > { %v6646_v42 = vpop.f32.mrb[200].mxu0  ;;  %v6796_v47 = vmax.bf16 %v16443_v61, %v6764_v53 }
 0x8ea   : > { %v6648_v0 = vpop.f32.mrb[201].mxu0 }
 0x8eb   : > { %v6650_v5 = vpop.f32.mrb[202].mxu0  ;;  %7572 = vmatprep.mubr.bf16.mxu1 %v6796_v47 }
 0x8ec   : > { %v6725_v22 = vpack.c.bf16 %v6650_v5, %v6646_v42  ;;  %v6652_v60 = vpop.f32.mrb[203].mxu0  ;;  %7573 = vmatmul.mubr.bf16.gmra.mrb[164].mxu1 %v6795_v34 }
 0x8ed   : > { %v6726_v30 = vpack.c.bf16 %v6652_v60, %v6648_v0 }
 0x8ee   : > { %v6765_v38 = vadd.bf16 %v15326_v11, %v6725_v22 }
 0x8ef   : > { %v6766_v28 = vadd.bf16 %v15330_v41, %v6726_v30 }
 0x8f0   : > { %v6797_v20 = vmax.bf16 %v16443_v61, %v6765_v38 }
 0x8f1   : > { %v6656_v29 = vpop.f32.mrb[204].mxu0  ;;  %v6798_v21 = vmax.bf16 %v16443_v61, %v6766_v28 }
 0x8f2   : > { %v6658_v19 = vpop.f32.mrb[205].mxu0 }
 0x8f3   : > { %v6660_v12 = vpop.f32.mrb[206].mxu0  ;;  %7582 = vmatprep.mubr.bf16.mxu1 %v6798_v21  ;;  %v10593_v21 = vld [vmem:[%s15866_s6 + $0x604] ss:$8 sps:$4 sm:$0xff]  }
 0x8f4   : > { %v6727_v46 = vpack.c.bf16 %v6660_v12, %v6656_v29  ;;  %v6662_v10 = vpop.f32.mrb[207].mxu0  ;;  %7583 = vmatmul.mubr.bf16.gmra.mrb[168].mxu1 %v6797_v20  ;;  %8500 = vmatprep.subr.bf16.mxu0 %v10593_v21  ;;  %v7746_v20 = vshrl.u32 %v14466_v37, 16 }
 0x8f5   : > { %v6728_v35 = vpack.c.bf16 %v6662_v10, %v6658_v19  ;;  %v7739_v19 = vshrl.u32 %v14462_v43, 16 }
 0x8f6   : > { %v6767_v4 = vadd.bf16 %v15326_v11, %v6727_v46  ;;  %v7747_v46 = vpack.i.b16 %v7746_v20, %v7746_v20 }
 0x8f7   : > { %v6768_v48 = vadd.bf16 %v15330_v41, %v6728_v35  ;;  %v7740_v12 = vpack.i.b16 %v7739_v19, %v7739_v19  ;;  %v10609_v19 = vld [vmem:[%s15866_s6 + $0x660] ss:$8 sps:$4 sm:$0xff]  }
 0x8f8   : > { %v6799_v49 = vmax.bf16 %v16443_v61, %v6767_v4  ;;  %v15477_v4 = vrot.slane %v7747_v46, %v14471_v2  ;;  %v10614_v46 = vld [vmem:[%s15866_s6 + $0x674] ss:$8 sps:$4 sm:$0xff]  }
 0x8f9   : > { %v6666_v45 = vpop.f32.mrb[208].mxu0  ;;  %v6800_v33 = vmax.bf16 %v16443_v61, %v6768_v48 }
 0x8fa   : > { %v6668_v1 = vpop.f32.mrb[209].mxu0 }
 0x8fb   : > { %v6670_v63 = vpop.f32.mrb[210].mxu0  ;;  %7592 = vmatprep.mubr.bf16.mxu1 %v6800_v33 }
 0x8fc   : > { %v6729_v36 = vpack.c.bf16 %v6670_v63, %v6666_v45  ;;  %v6672_v44 = vpop.f32.mrb[211].mxu0  ;;  %7593 = vmatmul.mubr.bf16.gmra.mrb[172].mxu1 %v6799_v49  ;;  %v10591_v63 = vld [vmem:[%s15866_s6 + $0x600] ss:$8 sps:$4 sm:$0xff]  }
 0x8fd   : > { %v6730_v58 = vpack.c.bf16 %v6672_v44, %v6668_v1 }
 0x8fe   : > { %v6769_v3 = vadd.bf16 %v15326_v11, %v6729_v36 }
 0x8ff   : > { %v6770_v26 = vadd.bf16 %v15330_v41, %v6730_v58 }
 0x900   : > { %v6801_v54 = vmax.bf16 %v16443_v61, %v6769_v3 }
 0x901   : > { %v6676_v31 = vpop.f32.mrb[212].mxu0  ;;  %v6802_v13 = vmax.bf16 %v16443_v61, %v6770_v26  ;;  %v10594_v26 = vld [vmem:[%s15866_s6 + $0x610] ss:$8 sps:$4 sm:$0xff]  }
 0x902   : > { %v6678_v51 = vpop.f32.mrb[213].mxu0 }
 0x903   : > { %v6680_v40 = vpop.f32.mrb[214].mxu0  ;;  %7602 = vmatprep.mubr.bf16.mxu1 %v6802_v13  ;;  %v10599_v13 = vld [vmem:[%s15866_s6 + $0x624] ss:$8 sps:$4 sm:$0xff]  }
 0x904   : > { %v6731_v52 = vpack.c.bf16 %v6680_v40, %v6676_v31  ;;  %v6682_v55 = vpop.f32.mrb[215].mxu0  ;;  %7603 = vmatmul.mubr.bf16.gmra.mrb[176].mxu1 %v6801_v54 }
 0x905   : > { %v6732_v32 = vpack.c.bf16 %v6682_v55, %v6678_v51 }
 0x906   : > { %v6771_v57 = vadd.bf16 %v15326_v11, %v6731_v52  ;;  %v10597_v52 = vld [vmem:[%s15866_s6 + $0x620] ss:$8 sps:$4 sm:$0xff]  }
 0x907   : > { %v6772_v25 = vadd.bf16 %v15330_v41, %v6732_v32 }
 0x908   : > { %v6803_v6 = vmax.bf16 %v16443_v61, %v6771_v57  ;;  %v10602_v57 = vld [vmem:[%s15866_s6 + $0x634] ss:$8 sps:$4 sm:$0xff]  }
 0x909   : > { %v6686_v9 = vpop.f32.mrb[216].mxu0  ;;  %v6804_v27 = vmax.bf16 %v16443_v61, %v6772_v25 }
 0x90a   : > { %v6688_v17 = vpop.f32.mrb[217].mxu0 }
 0x90b   : > { %v6690_v23 = vpop.f32.mrb[218].mxu0  ;;  %7612 = vmatprep.mubr.bf16.mxu1 %v6804_v27 }
 0x90c   : > { %v6733_v24 = vpack.c.bf16 %v6690_v23, %v6686_v9  ;;  %v6692_v39 = vpop.f32.mrb[219].mxu0  ;;  %7613 = vmatmul.mubr.bf16.gmra.mrb[180].mxu1 %v6803_v6  ;;  %v10600_v6 = vld [vmem:[%s15866_s6 + $0x630] ss:$8 sps:$4 sm:$0xff]  }
 0x90d   : > { %v6734_v15 = vpack.c.bf16 %v6692_v39, %v6688_v17 }
 0x90e   : > { %v6773_v62 = vadd.bf16 %v15326_v11, %v6733_v24  ;;  %v10605_v24 = vld [vmem:[%s15866_s6 + $0x644] ss:$8 sps:$4 sm:$0xff]  }
 0x90f   : > { %v6774_v8 = vadd.bf16 %v15330_v41, %v6734_v15 }
 0x910   : > { %v6805_v0 = vmax.bf16 %v16443_v61, %v6773_v62 }
 0x911   : > { %v6696_v53 = vpop.f32.mrb[220].mxu0  ;;  %v6806_v42 = vmax.bf16 %v16443_v61, %v6774_v8  ;;  %v10603_v8 = vld [vmem:[%s15866_s6 + $0x640] ss:$8 sps:$4 sm:$0xff]  }
 0x912   : > { %v6698_v47 = vpop.f32.mrb[221].mxu0 }
 0x913   : > { %v6700_v34 = vpop.f32.mrb[222].mxu0  ;;  %7622 = vmatprep.mubr.bf16.mxu1 %v6806_v42 }
 0x914   : > { %v6735_v5 = vpack.c.bf16 %v6700_v34, %v6696_v53  ;;  %v6702_v22 = vpop.f32.mrb[223].mxu0  ;;  %7623 = vmatmul.mubr.bf16.gmra.mrb[184].mxu1 %v6805_v0 }
 0x915   : > { %v6736_v60 = vpack.c.bf16 %v6702_v22, %v6698_v47  ;;  %v10608_v47 = vld [vmem:[%s15866_s6 + $0x654] ss:$8 sps:$4 sm:$0xff]  }
 0x916   : > { %v6775_v30 = vadd.bf16 %v15326_v11, %v6735_v5 }
 0x917   : > { %v6776_v38 = vadd.bf16 %v15330_v41, %v6736_v60  ;;  %v15474_v41 = vrot.slane %v7740_v12, %v14471_v2  ;;  %v10596_v2 = vld [vmem:[%s15866_s6 + $0x614] ss:$8 sps:$4 sm:$0xff]   ;;  %v10606_v60 = vld [vmem:[%s15866_s6 + $0x650] ss:$8 sps:$4 sm:$0xff]  }
 0x918   : > { %v6807_v29 = vmax.bf16 %v16443_v61, %v6775_v30 }
 0x919   : > { %v6808_v28 = vmax.bf16 %v16443_v61, %v6776_v38  ;;  %v10611_v38 = vld [vmem:[%s15866_s6 + $0x664] ss:$8 sps:$4 sm:$0xff]  }
 0x91b   : > { %7632 = vmatprep.mubr.bf16.mxu1 %v6808_v28 }
 0x91c   : > { %7633 = vmatmul.mubr.bf16.gmra.mrb[188].mxu1 %v6807_v29 }
 0x977   : > { %v7484_v11 = vpop.f32.mrb[128].mxu1 }
 0x978   : > { %v7486_v10 = vpop.f32.mrb[129].mxu1 }
 0x979   : > { %v7488_v35 = vpop.f32.mrb[130].mxu1 }
 0x97a   : > { %v7707_v48 = vpack.c.bf16 %v7488_v35, %v7484_v11  ;;  %v7490_v45 = vpop.f32.mrb[131].mxu1 }
 0x97b   : > { %v7708_v33 = vpack.c.bf16 %v7490_v45, %v7486_v10  ;;  %v10612_v45 = vld [vmem:[%s15866_s6 + $0x670] ss:$8 sps:$4 sm:$0xff]  }
 0x97c   : > { %v7753_v1 = vadd.bf16 %v15474_v41, %v7707_v48 }
 0x97d   : > { %v7754_v43 = vadd.bf16 %v15477_v4, %v7708_v33 }
 0x97e   : > { %v7785_v36 = vmax.bf16 %v16443_v61, %v7753_v1  ;;  %v10617_v1 = vld [vmem:[%s15866_s6 + $0x684] ss:$8 sps:$4 sm:$0xff]  }
 0x97f   : > { %v7494_v49 = vpop.f32.mrb[132].mxu1  ;;  %v7786_v37 = vmax.bf16 %v16443_v61, %v7754_v43 }
 0x980   : > { %v7496_v44 = vpop.f32.mrb[133].mxu1 }
 0x981   : > { %v7498_v58 = vpop.f32.mrb[134].mxu1  ;;  %8042 = vmatprep.mubr.bf16.mxu0 %v7786_v37 }
 0x982   : > { %v7709_v3 = vpack.c.bf16 %v7498_v58, %v7494_v49  ;;  %v7500_v16 = vpop.f32.mrb[135].mxu1  ;;  %8043 = vmatmul.mubr.bf16.vlgmr.msra.gmra.mrb[224].mxu0 %v7785_v36 }
 0x983   : > { %v7710_v7 = vpack.c.bf16 %v7500_v16, %v7496_v44  ;;  %8501 = vmatpush1.bf16.msra.mxu0 %v10591_v63  ;;  %v10615_v63 = vld [vmem:[%s15866_s6 + $0x680] ss:$8 sps:$4 sm:$0xff]  }
 0x984   : > { %v7755_v31 = vadd.bf16 %v15474_v41, %v7709_v3  ;;  %8502 = vmatprep.subr.bf16.mxu0 %v10596_v2  ;;  %v10620_v2 = vld [vmem:[%s15866_s6 + $0x694] ss:$8 sps:$4 sm:$0xff]  }
 0x985   : > { %v7756_v51 = vadd.bf16 %v15477_v4, %v7710_v7 }
 0x986   : > { %v7787_v32 = vmax.bf16 %v16443_v61, %v7755_v31 }
 0x987   : > { %v7504_v54 = vpop.f32.mrb[136].mxu1  ;;  %v7788_v40 = vmax.bf16 %v16443_v61, %v7756_v51  ;;  %8503 = vmatpush1.bf16.msra.mxu0 %v10594_v26  ;;  %v10618_v26 = vld [vmem:[%s15866_s6 + $0x690] ss:$8 sps:$4 sm:$0xff]  }
 0x988   : > { %v7506_v55 = vpop.f32.mrb[137].mxu1  ;;  %8504 = vmatprep.subr.bf16.mxu0 %v10599_v13  ;;  %v10623_v13 = vld [vmem:[%s15866_s6 + $0x6a4] ss:$8 sps:$4 sm:$0xff]  }
 0x989   : > { %v7508_v25 = vpop.f32.mrb[138].mxu1  ;;  %8052 = vmatprep.mubr.bf16.mxu0 %v7788_v40 }
 0x98a   : > { %v7711_v9 = vpack.c.bf16 %v7508_v25, %v7504_v54  ;;  %v7510_v27 = vpop.f32.mrb[139].mxu1  ;;  %8053 = vmatmul.mubr.bf16.gmra.mrb[228].mxu0 %v7787_v32 }
 0x98b   : > { %v7712_v17 = vpack.c.bf16 %v7510_v27, %v7506_v55  ;;  %8505 = vmatpush1.bf16.msra.mxu0 %v10597_v52  ;;  %v10621_v52 = vld [vmem:[%s15866_s6 + $0x6a0] ss:$8 sps:$4 sm:$0xff]  }
 0x98c   : > { %v7757_v23 = vadd.bf16 %v15474_v41, %v7711_v9  ;;  %8506 = vmatprep.subr.bf16.mxu0 %v10602_v57  ;;  %v10626_v57 = vld [vmem:[%s15866_s6 + $0x6b4] ss:$8 sps:$4 sm:$0xff]  }
 0x98d   : > { %v7758_v39 = vadd.bf16 %v15477_v4, %v7712_v17 }
 0x98e   : > { %v7789_v42 = vmax.bf16 %v16443_v61, %v7757_v23 }
 0x98f   : > { %v7514_v15 = vpop.f32.mrb[140].mxu1  ;;  %v7790_v62 = vmax.bf16 %v16443_v61, %v7758_v39  ;;  %8507 = vmatpush1.bf16.msra.mxu0 %v10600_v6  ;;  %v10624_v6 = vld [vmem:[%s15866_s6 + $0x6b0] ss:$8 sps:$4 sm:$0xff]  }
 0x990   : > { %v7516_v53 = vpop.f32.mrb[141].mxu1  ;;  %8508 = vmatprep.subr.bf16.mxu0 %v10605_v24  ;;  %v10629_v24 = vld [vmem:[%s15866_s6 + $0x6c4] ss:$8 sps:$4 sm:$0xff]  }
 0x991   : > { %v7518_v0 = vpop.f32.mrb[142].mxu1  ;;  %8062 = vmatprep.mubr.bf16.mxu0 %v7790_v62 }
 0x992   : > { %v7713_v34 = vpack.c.bf16 %v7518_v0, %v7514_v15  ;;  %v7520_v5 = vpop.f32.mrb[143].mxu1  ;;  %8063 = vmatmul.mubr.bf16.gmra.mrb[232].mxu0 %v7789_v42 }
 0x993   : > { %v7714_v22 = vpack.c.bf16 %v7520_v5, %v7516_v53  ;;  %8509 = vmatpush1.bf16.msra.mxu0 %v10603_v8  ;;  %v10627_v8 = vld [vmem:[%s15866_s6 + $0x6c0] ss:$8 sps:$4 sm:$0xff]  }
 0x994   : > { %v7759_v30 = vadd.bf16 %v15474_v41, %v7713_v34  ;;  %8510 = vmatprep.subr.bf16.mxu0 %v10608_v47  ;;  %v10632_v47 = vld [vmem:[%s15866_s6 + $0x6d4] ss:$8 sps:$4 sm:$0xff]  }
 0x995   : > { %v7760_v28 = vadd.bf16 %v15477_v4, %v7714_v22 }
 0x996   : > { %v7791_v12 = vmax.bf16 %v16443_v61, %v7759_v30 }
 0x997   : > { %v7524_v29 = vpop.f32.mrb[144].mxu1  ;;  %v7792_v21 = vmax.bf16 %v16443_v61, %v7760_v28  ;;  %8511 = vmatpush1.bf16.msra.mxu0 %v10606_v60  ;;  %v10630_v60 = vld [vmem:[%s15866_s6 + $0x6d0] ss:$8 sps:$4 sm:$0xff]  }
 0x998   : > { %v7526_v20 = vpop.f32.mrb[145].mxu1  ;;  %8512 = vmatprep.subr.bf16.mxu0 %v10611_v38  ;;  %v10635_v38 = vld [vmem:[%s15866_s6 + $0x6e4] ss:$8 sps:$4 sm:$0xff]  }
 0x999   : > { %v7528_v11 = vpop.f32.mrb[146].mxu1  ;;  %8072 = vmatprep.mubr.bf16.mxu0 %v7792_v21 }
 0x99a   : > { %v7715_v10 = vpack.c.bf16 %v7528_v11, %v7524_v29  ;;  %v7530_v35 = vpop.f32.mrb[147].mxu1  ;;  %8073 = vmatmul.mubr.bf16.gmra.mrb[236].mxu0 %v7791_v12 }
 0x99b   : > { %v7716_v48 = vpack.c.bf16 %v7530_v35, %v7526_v20  ;;  %8513 = vmatpush1.bf16.msra.mxu0 %v10609_v19  ;;  %v10633_v19 = vld [vmem:[%s15866_s6 + $0x6e0] ss:$8 sps:$4 sm:$0xff]  }
 0x99c   : > { %v7761_v33 = vadd.bf16 %v15474_v41, %v7715_v10  ;;  %8514 = vmatprep.subr.bf16.mxu0 %v10614_v46 }
 0x99d   : > { %v7762_v43 = vadd.bf16 %v15477_v4, %v7716_v48 }
 0x99e   : > { %v7793_v44 = vmax.bf16 %v16443_v61, %v7761_v33 }
 0x99f   : > { %v7534_v49 = vpop.f32.mrb[148].mxu1  ;;  %v7794_v37 = vmax.bf16 %v16443_v61, %v7762_v43  ;;  %8515 = vmatpush1.bf16.msra.mxu0 %v10612_v45 }
 0x9a0   : > { %v7536_v36 = vpop.f32.mrb[149].mxu1  ;;  %8516 = vmatprep.subr.bf16.mxu0 %v10617_v1 }
 0x9a1   : > { %v7538_v58 = vpop.f32.mrb[150].mxu1  ;;  %8082 = vmatprep.mubr.bf16.mxu0 %v7794_v37 }
 0x9a2   : > { %v7717_v3 = vpack.c.bf16 %v7538_v58, %v7534_v49  ;;  %v7540_v16 = vpop.f32.mrb[151].mxu1  ;;  %8083 = vmatmul.mubr.bf16.gmra.mrb[240].mxu0 %v7793_v44 }
 0x9a3   : > { %v7718_v7 = vpack.c.bf16 %v7540_v16, %v7536_v36  ;;  %8517 = vmatpush1.bf16.msra.mxu0 %v10615_v63 }
 0x9a4   : > { %v7763_v31 = vadd.bf16 %v15474_v41, %v7717_v3  ;;  %8518 = vmatprep.subr.bf16.mxu0 %v10620_v2 }
 0x9a5   : > { %v7764_v51 = vadd.bf16 %v15477_v4, %v7718_v7 }
 0x9a6   : > { %v7795_v32 = vmax.bf16 %v16443_v61, %v7763_v31 }
 0x9a7   : > { %v7544_v54 = vpop.f32.mrb[152].mxu1  ;;  %v7796_v40 = vmax.bf16 %v16443_v61, %v7764_v51  ;;  %8519 = vmatpush1.bf16.msra.mxu0 %v10618_v26 }
 0x9a8   : > { %v7546_v55 = vpop.f32.mrb[153].mxu1  ;;  %8520 = vmatprep.subr.bf16.mxu0 %v10623_v13 }
 0x9a9   : > { %v7548_v25 = vpop.f32.mrb[154].mxu1  ;;  %8092 = vmatprep.mubr.bf16.mxu0 %v7796_v40 }
 0x9aa   : > { %v7719_v9 = vpack.c.bf16 %v7548_v25, %v7544_v54  ;;  %v7550_v27 = vpop.f32.mrb[155].mxu1  ;;  %8093 = vmatmul.mubr.bf16.gmra.mrb[244].mxu0 %v7795_v32 }
 0x9ab   : > { %v7720_v17 = vpack.c.bf16 %v7550_v27, %v7546_v55  ;;  %8521 = vmatpush1.bf16.msra.mxu0 %v10621_v52 }
 0x9ac   : > { %v7765_v23 = vadd.bf16 %v15474_v41, %v7719_v9  ;;  %8522 = vmatprep.subr.bf16.mxu0 %v10626_v57 }
 0x9ad   : > { %v7766_v39 = vadd.bf16 %v15477_v4, %v7720_v17 }
 0x9ae   : > { %v7797_v42 = vmax.bf16 %v16443_v61, %v7765_v23 }
 0x9af   : > { %v7554_v15 = vpop.f32.mrb[156].mxu1  ;;  %v7798_v62 = vmax.bf16 %v16443_v61, %v7766_v39  ;;  %8523 = vmatpush1.bf16.msra.mxu0 %v10624_v6 }
 0x9b0   : > { %v7556_v53 = vpop.f32.mrb[157].mxu1  ;;  %8524 = vmatprep.subr.bf16.mxu0 %v10629_v24 }
 0x9b1   : > { %v7558_v0 = vpop.f32.mrb[158].mxu1  ;;  %8102 = vmatprep.mubr.bf16.mxu0 %v7798_v62 }
 0x9b2   : > { %v7721_v34 = vpack.c.bf16 %v7558_v0, %v7554_v15  ;;  %v7560_v5 = vpop.f32.mrb[159].mxu1  ;;  %8103 = vmatmul.mubr.bf16.gmra.mrb[248].mxu0 %v7797_v42 }
 0x9b3   : > { %v7722_v22 = vpack.c.bf16 %v7560_v5, %v7556_v53  ;;  %8525 = vmatpush1.bf16.msra.mxu0 %v10627_v8  ;;  %v10636_v5 = vld [vmem:[%s15866_s6 + $0x6f0] ss:$8 sps:$4 sm:$0xff]  }
 0x9b4   : > { %v7767_v30 = vadd.bf16 %v15474_v41, %v7721_v34  ;;  %8526 = vmatprep.subr.bf16.mxu0 %v10632_v47 }
 0x9b5   : > { %v7768_v28 = vadd.bf16 %v15477_v4, %v7722_v22  ;;  %v10638_v22 = vld [vmem:[%s15866_s6 + $0x6f4] ss:$8 sps:$4 sm:$0xff]  }
 0x9b6   : > { %v7799_v12 = vmax.bf16 %v16443_v61, %v7767_v30 }
 0x9b7   : > { %v7564_v29 = vpop.f32.mrb[160].mxu1  ;;  %v7800_v21 = vmax.bf16 %v16443_v61, %v7768_v28  ;;  %8527 = vmatpush1.bf16.msra.mxu0 %v10630_v60 }
 0x9b8   : > { %v7566_v20 = vpop.f32.mrb[161].mxu1  ;;  %8528 = vmatprep.subr.bf16.mxu0 %v10635_v38 }
 0x9b9   : > { %v7568_v46 = vpop.f32.mrb[162].mxu1  ;;  %8112 = vmatprep.mubr.bf16.mxu0 %v7800_v21 }
 0x9ba   : > { %v7723_v11 = vpack.c.bf16 %v7568_v46, %v7564_v29  ;;  %v7570_v10 = vpop.f32.mrb[163].mxu1  ;;  %8113 = vmatmul.mubr.bf16.gmra.mrb[252].mxu0 %v7799_v12 }
 0x9bb   : > { %v7724_v35 = vpack.c.bf16 %v7570_v10, %v7566_v20  ;;  %8529 = vmatpush1.bf16.msra.mxu0 %v10633_v19 }
 0x9bc   : > { %v7769_v48 = vadd.bf16 %v15474_v41, %v7723_v11  ;;  %8530 = vmatprep.subr.bf16.mxu0 %v10638_v22 }
 0x9bd   : > { %v7770_v45 = vadd.bf16 %v15477_v4, %v7724_v35 }
 0x9be   : > { %v7801_v43 = vmax.bf16 %v16443_v61, %v7769_v48 }
 0x9bf   : > { %v7574_v33 = vpop.f32.mrb[164].mxu1  ;;  %v7802_v1 = vmax.bf16 %v16443_v61, %v7770_v45  ;;  %8531 = vmatpush1.bf16.msra.mxu0 %v10636_v5 }
 0x9c0   : > { %v7576_v49 = vpop.f32.mrb[165].mxu1 }
 0x9c1   : > { %v7578_v37 = vpop.f32.mrb[166].mxu1  ;;  %8122 = vmatprep.mubr.bf16.mxu0 %v7802_v1 }
 0x9c2   : > { %v7725_v63 = vpack.c.bf16 %v7578_v37, %v7574_v33  ;;  %v7580_v36 = vpop.f32.mrb[167].mxu1  ;;  %8123 = vmatmul.mubr.bf16.gmra.mrb[0].mxu0 %v7801_v43 }
 0x9c3   : > { %v7726_v44 = vpack.c.bf16 %v7580_v36, %v7576_v49 }
 0x9c4   : > { %v7771_v2 = vadd.bf16 %v15474_v41, %v7725_v63 }
 0x9c5   : > { %v7772_v58 = vadd.bf16 %v15477_v4, %v7726_v44 }
 0x9c6   : > { %v7803_v7 = vmax.bf16 %v16443_v61, %v7771_v2 }
 0x9c7   : > { %v7584_v3 = vpop.f32.mrb[168].mxu1  ;;  %v7804_v16 = vmax.bf16 %v16443_v61, %v7772_v58 }
 0x9c8   : > { %v7586_v26 = vpop.f32.mrb[169].mxu1 }
 0x9c9   : > { %v7588_v31 = vpop.f32.mrb[170].mxu1  ;;  %8132 = vmatprep.mubr.bf16.mxu0 %v7804_v16 }
 0x9ca   : > { %v7727_v13 = vpack.c.bf16 %v7588_v31, %v7584_v3  ;;  %v7590_v51 = vpop.f32.mrb[171].mxu1  ;;  %8133 = vmatmul.mubr.bf16.gmra.mrb[4].mxu0 %v7803_v7 }
 0x9cb   : > { %v7728_v54 = vpack.c.bf16 %v7590_v51, %v7586_v26 }
 0x9cc   : > { %v7773_v40 = vadd.bf16 %v15474_v41, %v7727_v13 }
 0x9cd   : > { %v7774_v52 = vadd.bf16 %v15477_v4, %v7728_v54 }
 0x9ce   : > { %v7805_v57 = vmax.bf16 %v16443_v61, %v7773_v40  ;;  %v15637_v40 = vsub.s32 2, %v14464_v59 }
 0x9cf   : > { %v7594_v55 = vpop.f32.mrb[172].mxu1  ;;  %v7806_v32 = vmax.bf16 %v16443_v61, %v7774_v52 }
 0x9d0   : > { %v7596_v25 = vpop.f32.mrb[173].mxu1 }
 0x9d1   : > { %v7598_v9 = vpop.f32.mrb[174].mxu1  ;;  %8142 = vmatprep.mubr.bf16.mxu0 %v7806_v32  ;;  %v15641_v32 = vrot.slane %v14668_v18, %v15637_v40 }
 0x9d2   : > { %v7729_v27 = vpack.c.bf16 %v7598_v9, %v7594_v55  ;;  %v7600_v17 = vpop.f32.mrb[175].mxu1  ;;  %8143 = vmatmul.mubr.bf16.gmra.mrb[8].mxu0 %v7805_v57 }
 0x9d3   : > { %v7730_v6 = vpack.c.bf16 %v7600_v17, %v7596_v25 }
 0x9d4   : > { %v7775_v23 = vadd.bf16 %v15474_v41, %v7729_v27 }
 0x9d5   : > { %v7776_v24 = vadd.bf16 %v15477_v4, %v7730_v6 }
 0x9d6   : > { %v7807_v62 = vmax.bf16 %v16443_v61, %v7775_v23 }
 0x9d7   : > { %v7604_v39 = vpop.f32.mrb[176].mxu1  ;;  %v7808_v15 = vmax.bf16 %v16443_v61, %v7776_v24 }
 0x9d8   : > { %v7606_v8 = vpop.f32.mrb[177].mxu1 }
 0x9d9   : > { %v7608_v53 = vpop.f32.mrb[178].mxu1  ;;  %8152 = vmatprep.mubr.bf16.mxu0 %v7808_v15 }
 0x9da   : > { %v7731_v42 = vpack.c.bf16 %v7608_v53, %v7604_v39  ;;  %v7610_v47 = vpop.f32.mrb[179].mxu1  ;;  %8153 = vmatmul.mubr.bf16.gmra.mrb[12].mxu0 %v7807_v62 }
 0x9db   : > { %v7732_v0 = vpack.c.bf16 %v7610_v47, %v7606_v8 }
 0x9dc   : > { %v7777_v34 = vadd.bf16 %v15474_v41, %v7731_v42 }
 0x9dd   : > { %v7778_v60 = vadd.bf16 %v15477_v4, %v7732_v0 }
 0x9de   : > { %v7809_v28 = vmax.bf16 %v16443_v61, %v7777_v34 }
 0x9df   : > { %v7614_v30 = vpop.f32.mrb[180].mxu1  ;;  %v7810_v38 = vmax.bf16 %v16443_v61, %v7778_v60 }
 0x9e0   : > { %v7616_v29 = vpop.f32.mrb[181].mxu1 }
 0x9e1   : > { %v7618_v21 = vpop.f32.mrb[182].mxu1  ;;  %8162 = vmatprep.mubr.bf16.mxu0 %v7810_v38 }
 0x9e2   : > { %v7733_v19 = vpack.c.bf16 %v7618_v21, %v7614_v30  ;;  %v7620_v20 = vpop.f32.mrb[183].mxu1  ;;  %8163 = vmatmul.mubr.bf16.gmra.mrb[16].mxu0 %v7809_v28 }
 0x9e3   : > { %v7734_v12 = vpack.c.bf16 %v7620_v20, %v7616_v29 }
 0x9e4   : > { %v7779_v46 = vadd.bf16 %v15474_v41, %v7733_v19 }
 0x9e5   : > { %v7780_v11 = vadd.bf16 %v15477_v4, %v7734_v12 }
 0x9e6   : > { %v7811_v48 = vmax.bf16 %v16443_v61, %v7779_v46 }
 0x9e7   : > { %v7624_v10 = vpop.f32.mrb[184].mxu1  ;;  %v7812_v35 = vmax.bf16 %v16443_v61, %v7780_v11 }
 0x9e8   : > { %v7626_v45 = vpop.f32.mrb[185].mxu1 }
 0x9e9   : > { %v7628_v33 = vpop.f32.mrb[186].mxu1  ;;  %8172 = vmatprep.mubr.bf16.mxu0 %v7812_v35 }
 0x9ea   : > { %v7735_v1 = vpack.c.bf16 %v7628_v33, %v7624_v10  ;;  %v7630_v43 = vpop.f32.mrb[187].mxu1  ;;  %8173 = vmatmul.mubr.bf16.gmra.mrb[20].mxu0 %v7811_v48 }
 0x9eb   : > { %v7736_v49 = vpack.c.bf16 %v7630_v43, %v7626_v45 }
 0x9ec   : > { %v7781_v37 = vadd.bf16 %v15474_v41, %v7735_v1 }
 0x9ed   : > { %v7782_v63 = vadd.bf16 %v15477_v4, %v7736_v49 }
 0x9ee   : > { %v7813_v2 = vmax.bf16 %v16443_v61, %v7781_v37 }
 0x9ef   : > { %v7634_v36 = vpop.f32.mrb[188].mxu1  ;;  %v7814_v44 = vmax.bf16 %v16443_v61, %v7782_v63 }
 0x9f0   : > { %v7636_v58 = vpop.f32.mrb[189].mxu1 }
 0x9f1   : > { %v7638_v3 = vpop.f32.mrb[190].mxu1  ;;  %8182 = vmatprep.mubr.bf16.mxu0 %v7814_v44 }
 0x9f2   : > { %v7737_v16 = vpack.c.bf16 %v7638_v3, %v7634_v36  ;;  %v7640_v7 = vpop.f32.mrb[191].mxu1  ;;  %8183 = vmatmul.mubr.bf16.gmra.mrb[24].mxu0 %v7813_v2 }
 0x9f3   : > { %v7738_v26 = vpack.c.bf16 %v7640_v7, %v7636_v58 }
 0x9f4   : > { %v7783_v31 = vadd.bf16 %v15474_v41, %v7737_v16  ;;  %v15645_v41 = vrot.slane %v14672_v56, %v15637_v40 }
 0x9f5   : > { %v7784_v13 = vadd.bf16 %v15477_v4, %v7738_v26 }
 0x9f6   : > { %v7815_v54 = vmax.bf16 %v16443_v61, %v7783_v31 }
 0x9f7   : > { %v7816_v51 = vmax.bf16 %v16443_v61, %v7784_v13 }
 0x9f9   : > { %8192 = vmatprep.mubr.bf16.mxu0 %v7816_v51 }
 0x9fa   : > { %8193 = vmatmul.mubr.bf16.gmra.mrb[28].mxu0 %v7815_v54 }
 0xa55   : > { %v8044_v52 = vpop.f32.mrb[224].mxu0 }
 0xa56   : > { %v8046_v55 = vpop.f32.mrb[225].mxu0 }
 0xa57   : > { %v8048_v57 = vpop.f32.mrb[226].mxu0 }
 0xa58   : > { %v8203_v4 = vpack.c.bf16 %v8048_v57, %v8044_v52  ;;  %v8050_v25 = vpop.f32.mrb[227].mxu0 }
 0xa59   : > { %v8204_v9 = vpack.c.bf16 %v8050_v25, %v8046_v55 }
 0xa5a   : > { %v8243_v27 = vadd.bf16 %v15641_v32, %v8203_v4 }
 0xa5b   : > { %v8244_v17 = vadd.bf16 %v15645_v41, %v8204_v9 }
 0xa5c   : > { %v8275_v23 = vmax.bf16 %v16443_v61, %v8243_v27 }
 0xa5d   : > { %v8054_v59 = vpop.f32.mrb[228].mxu0  ;;  %v8276_v6 = vmax.bf16 %v16443_v61, %v8244_v17 }
 0xa5e   : > { %v8056_v24 = vpop.f32.mrb[229].mxu0 }
 0xa5f   : > { %v8058_v18 = vpop.f32.mrb[230].mxu0  ;;  %8532 = vmatprep.mubr.bf16.mxu0 %v8276_v6 }
 0xa60   : > { %v8205_v39 = vpack.c.bf16 %v8058_v18, %v8054_v59  ;;  %v8060_v15 = vpop.f32.mrb[231].mxu0  ;;  %8533 = vmatmul.mubr.bf16.vlgmr.msra.gmra.mrb[32].mxu0 %v8275_v23 }
 0xa61   : > { %v8206_v56 = vpack.c.bf16 %v8060_v15, %v8056_v24 }
 0xa62   : > { %v8245_v62 = vadd.bf16 %v15641_v32, %v8205_v39 }
 0xa63   : > { %v8246_v8 = vadd.bf16 %v15645_v41, %v8206_v56 }
 0xa64   : > { %v8277_v47 = vmax.bf16 %v16443_v61, %v8245_v62 }
 0xa65   : > { %v8064_v53 = vpop.f32.mrb[232].mxu0  ;;  %v8278_v42 = vmax.bf16 %v16443_v61, %v8246_v8 }
 0xa66   : > { %v8066_v0 = vpop.f32.mrb[233].mxu0 }
 0xa67   : > { %v8068_v34 = vpop.f32.mrb[234].mxu0  ;;  %8542 = vmatprep.mubr.bf16.mxu0 %v8278_v42 }
 0xa68   : > { %v8207_v5 = vpack.c.bf16 %v8068_v34, %v8064_v53  ;;  %v8070_v22 = vpop.f32.mrb[235].mxu0  ;;  %8543 = vmatmul.mubr.bf16.gmra.mrb[36].mxu0 %v8277_v47 }
 0xa69   : > { %v8208_v60 = vpack.c.bf16 %v8070_v22, %v8066_v0 }
 0xa6a   : > { %v8247_v30 = vadd.bf16 %v15641_v32, %v8207_v5 }
 0xa6b   : > { %v8248_v38 = vadd.bf16 %v15645_v41, %v8208_v60 }
 0xa6c   : > { %v8279_v21 = vmax.bf16 %v16443_v61, %v8247_v30 }
 0xa6d   : > { %v8074_v28 = vpop.f32.mrb[236].mxu0  ;;  %v8280_v29 = vmax.bf16 %v16443_v61, %v8248_v38 }
 0xa6e   : > { %v8076_v19 = vpop.f32.mrb[237].mxu0 }
 0xa6f   : > { %v8078_v20 = vpop.f32.mrb[238].mxu0  ;;  %8552 = vmatprep.mubr.bf16.mxu0 %v8280_v29 }
 0xa70   : > { %v8209_v12 = vpack.c.bf16 %v8078_v20, %v8074_v28  ;;  %v8080_v46 = vpop.f32.mrb[239].mxu0  ;;  %8553 = vmatmul.mubr.bf16.gmra.mrb[40].mxu0 %v8279_v21 }
 0xa71   : > { %v8210_v11 = vpack.c.bf16 %v8080_v46, %v8076_v19 }
 0xa72   : > { %v8249_v10 = vadd.bf16 %v15641_v32, %v8209_v12 }
 0xa73   : > { %v8250_v35 = vadd.bf16 %v15645_v41, %v8210_v11 }
 0xa74   : > { %v8281_v33 = vmax.bf16 %v16443_v61, %v8249_v10 }
 0xa75   : > { %v8084_v48 = vpop.f32.mrb[240].mxu0  ;;  %v8282_v45 = vmax.bf16 %v16443_v61, %v8250_v35 }
 0xa76   : > { %v8086_v1 = vpop.f32.mrb[241].mxu0 }
 0xa77   : > { %v8088_v43 = vpop.f32.mrb[242].mxu0  ;;  %8562 = vmatprep.mubr.bf16.mxu0 %v8282_v45 }
 0xa78   : > { %v8211_v49 = vpack.c.bf16 %v8088_v43, %v8084_v48  ;;  %v8090_v37 = vpop.f32.mrb[243].mxu0  ;;  %8563 = vmatmul.mubr.bf16.gmra.mrb[44].mxu0 %v8281_v33 }
 0xa79   : > { %v8212_v63 = vpack.c.bf16 %v8090_v37, %v8086_v1 }
 0xa7a   : > { %v8251_v36 = vadd.bf16 %v15641_v32, %v8211_v49 }
 0xa7b   : > { %v8252_v44 = vadd.bf16 %v15645_v41, %v8212_v63 }
 0xa7c   : > { %v8283_v3 = vmax.bf16 %v16443_v61, %v8251_v36 }
 0xa7d   : > { %v8094_v2 = vpop.f32.mrb[244].mxu0  ;;  %v8284_v58 = vmax.bf16 %v16443_v61, %v8252_v44 }
 0xa7e   : > { %v8096_v16 = vpop.f32.mrb[245].mxu0 }
 0xa7f   : > { %v8098_v7 = vpop.f32.mrb[246].mxu0  ;;  %8572 = vmatprep.mubr.bf16.mxu0 %v8284_v58 }
 0xa80   : > { %v8213_v26 = vpack.c.bf16 %v8098_v7, %v8094_v2  ;;  %v8100_v31 = vpop.f32.mrb[247].mxu0  ;;  %8573 = vmatmul.mubr.bf16.gmra.mrb[48].mxu0 %v8283_v3 }
 0xa81   : > { %v8214_v13 = vpack.c.bf16 %v8100_v31, %v8096_v16 }
 0xa82   : > { %v8253_v51 = vadd.bf16 %v15641_v32, %v8213_v26 }
 0xa83   : > { %v8254_v54 = vadd.bf16 %v15645_v41, %v8214_v13 }
 0xa84   : > { %v8285_v57 = vmax.bf16 %v16443_v61, %v8253_v51 }
 0xa85   : > { %v8104_v52 = vpop.f32.mrb[248].mxu0  ;;  %v8286_v55 = vmax.bf16 %v16443_v61, %v8254_v54 }
 0xa86   : > { %v8106_v4 = vpop.f32.mrb[249].mxu0 }
 0xa87   : > { %v8108_v25 = vpop.f32.mrb[250].mxu0  ;;  %8582 = vmatprep.mubr.bf16.mxu0 %v8286_v55 }
 0xa88   : > { %v8215_v9 = vpack.c.bf16 %v8108_v25, %v8104_v52  ;;  %v8110_v27 = vpop.f32.mrb[251].mxu0  ;;  %8583 = vmatmul.mubr.bf16.gmra.mrb[52].mxu0 %v8285_v57 }
 0xa89   : > { %v8216_v17 = vpack.c.bf16 %v8110_v27, %v8106_v4 }
 0xa8a   : > { %v8255_v59 = vadd.bf16 %v15641_v32, %v8215_v9 }
 0xa8b   : > { %v8256_v6 = vadd.bf16 %v15645_v41, %v8216_v17 }
 0xa8c   : > { %v8287_v18 = vmax.bf16 %v16443_v61, %v8255_v59 }
 0xa8d   : > { %v8114_v23 = vpop.f32.mrb[252].mxu0  ;;  %v8288_v24 = vmax.bf16 %v16443_v61, %v8256_v6 }
 0xa8e   : > { %v8116_v39 = vpop.f32.mrb[253].mxu0 }
 0xa8f   : > { %v8118_v15 = vpop.f32.mrb[254].mxu0  ;;  %8592 = vmatprep.mubr.bf16.mxu0 %v8288_v24 }
 0xa90   : > { %v8217_v56 = vpack.c.bf16 %v8118_v15, %v8114_v23  ;;  %v8120_v62 = vpop.f32.mrb[255].mxu0  ;;  %8593 = vmatmul.mubr.bf16.gmra.mrb[56].mxu0 %v8287_v18 }
 0xa91   : > { %v8218_v8 = vpack.c.bf16 %v8120_v62, %v8116_v39 }
 0xa92   : > { %v8257_v53 = vadd.bf16 %v15641_v32, %v8217_v56 }
 0xa93   : > { %v8258_v42 = vadd.bf16 %v15645_v41, %v8218_v8 }
 0xa94   : > { %v8289_v34 = vmax.bf16 %v16443_v61, %v8257_v53 }
 0xa95   : > { %v8124_v47 = vpop.f32.mrb[0].mxu0  ;;  %v8290_v0 = vmax.bf16 %v16443_v61, %v8258_v42 }
 0xa96   : > { %v8126_v5 = vpop.f32.mrb[1].mxu0 }
 0xa97   : > { %v8128_v22 = vpop.f32.mrb[2].mxu0  ;;  %8602 = vmatprep.mubr.bf16.mxu0 %v8290_v0 }
 0xa98   : > { %v8219_v60 = vpack.c.bf16 %v8128_v22, %v8124_v47  ;;  %v8130_v30 = vpop.f32.mrb[3].mxu0  ;;  %8603 = vmatmul.mubr.bf16.gmra.mrb[60].mxu0 %v8289_v34 }
 0xa99   : > { %v8220_v38 = vpack.c.bf16 %v8130_v30, %v8126_v5 }
 0xa9a   : > { %v8259_v28 = vadd.bf16 %v15641_v32, %v8219_v60 }
 0xa9b   : > { %v8260_v29 = vadd.bf16 %v15645_v41, %v8220_v38 }
 0xa9c   : > { %v8291_v20 = vmax.bf16 %v16443_v61, %v8259_v28 }
 0xa9d   : > { %v8134_v21 = vpop.f32.mrb[4].mxu0  ;;  %v8292_v19 = vmax.bf16 %v16443_v61, %v8260_v29 }
 0xa9e   : > { %v8136_v12 = vpop.f32.mrb[5].mxu0 }
 0xa9f   : > { %v8138_v46 = vpop.f32.mrb[6].mxu0  ;;  %8612 = vmatprep.mubr.bf16.mxu0 %v8292_v19 }
 0xaa0   : > { %v8221_v11 = vpack.c.bf16 %v8138_v46, %v8134_v21  ;;  %v8140_v10 = vpop.f32.mrb[7].mxu0  ;;  %8613 = vmatmul.mubr.bf16.gmra.mrb[64].mxu0 %v8291_v20 }
 0xaa1   : > { %v8222_v35 = vpack.c.bf16 %v8140_v10, %v8136_v12 }
 0xaa2   : > { %v8261_v48 = vadd.bf16 %v15641_v32, %v8221_v11 }
 0xaa3   : > { %v8262_v45 = vadd.bf16 %v15645_v41, %v8222_v35 }
 0xaa4   : > { %v8293_v43 = vmax.bf16 %v16443_v61, %v8261_v48 }
 0xaa5   : > { %v8144_v33 = vpop.f32.mrb[8].mxu0  ;;  %v8294_v1 = vmax.bf16 %v16443_v61, %v8262_v45 }
 0xaa6   : > { %v8146_v49 = vpop.f32.mrb[9].mxu0 }
 0xaa7   : > { %v8148_v37 = vpop.f32.mrb[10].mxu0  ;;  %8622 = vmatprep.mubr.bf16.mxu0 %v8294_v1 }
 0xaa8   : > { %v8223_v63 = vpack.c.bf16 %v8148_v37, %v8144_v33  ;;  %v8150_v36 = vpop.f32.mrb[11].mxu0  ;;  %8623 = vmatmul.mubr.bf16.gmra.mrb[68].mxu0 %v8293_v43 }
 0xaa9   : > { %v8224_v44 = vpack.c.bf16 %v8150_v36, %v8146_v49  ;;  %v15713_v36 = vrot.slane %v14847_v50, %v15637_v40 }
 0xaaa   : > { %v8263_v2 = vadd.bf16 %v15641_v32, %v8223_v63 }
 0xaab   : > { %v8264_v58 = vadd.bf16 %v15645_v41, %v8224_v44 }
 0xaac   : > { %v8295_v7 = vmax.bf16 %v16443_v61, %v8263_v2  ;;  %v15717_v2 = vrot.slane %v14849_v14, %v15637_v40 }
 0xaad   : > { %v8154_v3 = vpop.f32.mrb[12].mxu0  ;;  %v8296_v16 = vmax.bf16 %v16443_v61, %v8264_v58 }
 0xaae   : > { %v8156_v26 = vpop.f32.mrb[13].mxu0 }
 0xaaf   : > { %v8158_v31 = vpop.f32.mrb[14].mxu0  ;;  %8632 = vmatprep.mubr.bf16.mxu0 %v8296_v16 }
 0xab0   : > { %v8225_v13 = vpack.c.bf16 %v8158_v31, %v8154_v3  ;;  %v8160_v51 = vpop.f32.mrb[15].mxu0  ;;  %8633 = vmatmul.mubr.bf16.gmra.mrb[72].mxu0 %v8295_v7 }
 0xab1   : > { %v8226_v54 = vpack.c.bf16 %v8160_v51, %v8156_v26 }
 0xab2   : > { %v8265_v52 = vadd.bf16 %v15641_v32, %v8225_v13 }
 0xab3   : > { %v8266_v55 = vadd.bf16 %v15645_v41, %v8226_v54 }
 0xab4   : > { %v8297_v25 = vmax.bf16 %v16443_v61, %v8265_v52 }
 0xab5   : > { %v8164_v57 = vpop.f32.mrb[16].mxu0  ;;  %v8298_v4 = vmax.bf16 %v16443_v61, %v8266_v55 }
 0xab6   : > { %v8166_v9 = vpop.f32.mrb[17].mxu0 }
 0xab7   : > { %v8168_v27 = vpop.f32.mrb[18].mxu0  ;;  %8642 = vmatprep.mubr.bf16.mxu0 %v8298_v4 }
 0xab8   : > { %v8227_v17 = vpack.c.bf16 %v8168_v27, %v8164_v57  ;;  %v8170_v59 = vpop.f32.mrb[19].mxu0  ;;  %8643 = vmatmul.mubr.bf16.gmra.mrb[76].mxu0 %v8297_v25 }
 0xab9   : > { %v8228_v6 = vpack.c.bf16 %v8170_v59, %v8166_v9  ;;  %v8801_v59 = vld [vmem:[%s15869_s9 + $0x8] sm:$0xff] }
 0xaba   : > { %v8267_v23 = vadd.bf16 %v15641_v32, %v8227_v17  ;;  %v8800_v17 = vld [vmem:[%s15869_s9] sm:$0xff]  ;;  %8810 = vperm.xlu1 %10274, %v8801_v59  }
 0xabb   : > { %v8268_v24 = vadd.bf16 %v15645_v41, %v8228_v6  ;;  %8805 = vperm.xlu0 %10273, %v8800_v17  }
 0xabc   : > { %v8299_v15 = vmax.bf16 %v16443_v61, %v8267_v23 }
 0xabd   : > { %v8174_v18 = vpop.f32.mrb[20].mxu0  ;;  %v8300_v39 = vmax.bf16 %v16443_v61, %v8268_v24 }
 0xabe   : > { %v8176_v56 = vpop.f32.mrb[21].mxu0 }
 0xabf   : > { %v8178_v62 = vpop.f32.mrb[22].mxu0  ;;  %8652 = vmatprep.mubr.bf16.mxu0 %v8300_v39 }
 0xac0   : > { %v8229_v8 = vpack.c.bf16 %v8178_v62, %v8174_v18  ;;  %v8180_v53 = vpop.f32.mrb[23].mxu0  ;;  %8653 = vmatmul.mubr.bf16.gmra.mrb[80].mxu0 %v8299_v15  ;;  %v8802_v18 = vld [vmem:[%s15869_s9 + $0x10] sm:$0xff] }
 0xac1   : > { %v8230_v42 = vpack.c.bf16 %v8180_v53, %v8176_v56  ;;  %8815 = vperm.xlu0 %10273, %v8802_v18  }
 0xac2   : > { %v8269_v47 = vadd.bf16 %v15641_v32, %v8229_v8 }
 0xac3   : > { %v8270_v0 = vadd.bf16 %v15645_v41, %v8230_v42 }
 0xac4   : > { %v8301_v22 = vmax.bf16 %v16443_v61, %v8269_v47 }
 0xac5   : > { %v8184_v34 = vpop.f32.mrb[24].mxu0  ;;  %v8302_v5 = vmax.bf16 %v16443_v61, %v8270_v0 }
 0xac6   : > { %v8186_v60 = vpop.f32.mrb[25].mxu0 }
 0xac7   : > { %v8188_v30 = vpop.f32.mrb[26].mxu0  ;;  %8662 = vmatprep.mubr.bf16.mxu0 %v8302_v5 }
 0xac8   : > { %v8231_v38 = vpack.c.bf16 %v8188_v30, %v8184_v34  ;;  %v8190_v28 = vpop.f32.mrb[27].mxu0  ;;  %8663 = vmatmul.mubr.bf16.gmra.mrb[84].mxu0 %v8301_v22 }
 0xac9   : > { %v8232_v29 = vpack.c.bf16 %v8190_v28, %v8186_v60 }
 0xaca   : > { %v8271_v21 = vadd.bf16 %v15641_v32, %v8231_v38 }
 0xacb   : > { %v8272_v19 = vadd.bf16 %v15645_v41, %v8232_v29 }
 0xacc   : > { %v8303_v46 = vmax.bf16 %v16443_v61, %v8271_v21 }
 0xacd   : > { %v8194_v20 = vpop.f32.mrb[28].mxu0  ;;  %v8304_v12 = vmax.bf16 %v16443_v61, %v8272_v19 }
 0xace   : > { %v8196_v11 = vpop.f32.mrb[29].mxu0 }
 0xacf   : > { %v8198_v10 = vpop.f32.mrb[30].mxu0  ;;  %8672 = vmatprep.mubr.bf16.mxu0 %v8304_v12 }
 0xad0   : > { %v8233_v35 = vpack.c.bf16 %v8198_v10, %v8194_v20  ;;  %v8200_v48 = vpop.f32.mrb[31].mxu0  ;;  %8673 = vmatmul.mubr.bf16.gmra.mrb[88].mxu0 %v8303_v46 }
 0xad1   : > { %v8234_v45 = vpack.c.bf16 %v8200_v48, %v8196_v11 }
 0xad2   : > { %v8273_v33 = vadd.bf16 %v15641_v32, %v8233_v35 }
 0xad3   : > { %v8274_v1 = vadd.bf16 %v15645_v41, %v8234_v45  ;;  %v10641_v41 = vld [vmem:[%s15867_s7 + $0x4] ss:$8 sps:$4 sm:$0xff]  }
 0xad4   : > { %v8305_v49 = vmax.bf16 %v16443_v61, %v8273_v33 }
 0xad5   : > { %v8306_v43 = vmax.bf16 %v16443_v61, %v8274_v1 }
 0xad7   : > { %8682 = vmatprep.mubr.bf16.mxu0 %v8306_v43 }
 0xad8   : > { %8683 = vmatmul.mubr.bf16.gmra.mrb[92].mxu0 %v8305_v49 }
 0xad9   : > { %8867 = vmatprep.mubr.bf16.mxu0 %v10641_v41 }
 0xb33   : > { %v8534_v37 = vpop.f32.mrb[32].mxu0 }
 0xb34   : > { %v8536_v63 = vpop.f32.mrb[33].mxu0 }
 0xb35   : > { %v8538_v44 = vpop.f32.mrb[34].mxu0 }
 0xb36   : > { %v8693_v32 = vpack.c.bf16 %v8538_v44, %v8534_v37  ;;  %v8540_v58 = vpop.f32.mrb[35].mxu0 }
 0xb37   : > { %v8694_v3 = vpack.c.bf16 %v8540_v58, %v8536_v63 }
 0xb38   : > { %v8733_v16 = vadd.bf16 %v15713_v36, %v8693_v32 }
 0xb39   : > { %v8734_v7 = vadd.bf16 %v15717_v2, %v8694_v3 }
 0xb3a   : > { %v8765_v31 = vmax.bf16 %v16443_v61, %v8733_v16 }
 0xb3b   : > { %v8544_v26 = vpop.f32.mrb[36].mxu0  ;;  %v8766_v50 = vmax.bf16 %v16443_v61, %v8734_v7 }
 0xb3c   : > { %v8546_v13 = vpop.f32.mrb[37].mxu0 }
 0xb3d   : > { %v8548_v14 = vpop.f32.mrb[38].mxu0  ;;  %8835 = vmatprep.subr.bf16.mxu0 %v8766_v50 }
 0xb3e   : > { %v8695_v40 = vpack.c.bf16 %v8548_v14, %v8544_v26  ;;  %v8550_v51 = vpop.f32.mrb[39].mxu0  ;;  %8836 = vmatpush1.bf16.xpose.msra.mxu0 %v8765_v31 }
 0xb3f   : > { %v8696_v54 = vpack.c.bf16 %v8550_v51, %v8546_v13 }
 0xb40   : > { %v8735_v52 = vadd.bf16 %v15713_v36, %v8695_v40 }
 0xb41   : > { %v8736_v55 = vadd.bf16 %v15717_v2, %v8696_v54 }
 0xb42   : > { %v8767_v25 = vmax.bf16 %v16443_v61, %v8735_v52 }
 0xb43   : > { %v8554_v57 = vpop.f32.mrb[40].mxu0  ;;  %v8768_v4 = vmax.bf16 %v16443_v61, %v8736_v55 }
 0xb44   : > { %v8556_v9 = vpop.f32.mrb[41].mxu0 }
 0xb45   : > { %v8558_v27 = vpop.f32.mrb[42].mxu0  ;;  %8837 = vmatprep.subr.bf16.mxu0 %v8768_v4 }
 0xb46   : > { %v8697_v6 = vpack.c.bf16 %v8558_v27, %v8554_v57  ;;  %v8560_v23 = vpop.f32.mrb[43].mxu0  ;;  %8838 = vmatpush1.bf16.xpose.msra.mxu0 %v8767_v25 }
 0xb47   : > { %v8698_v24 = vpack.c.bf16 %v8560_v23, %v8556_v9 }
 0xb48   : > { %v8737_v39 = vadd.bf16 %v15713_v36, %v8697_v6 }
 0xb49   : > { %v8738_v15 = vadd.bf16 %v15717_v2, %v8698_v24 }
 0xb4a   : > { %v8769_v8 = vmax.bf16 %v16443_v61, %v8737_v39 }
 0xb4b   : > { %v8564_v56 = vpop.f32.mrb[44].mxu0  ;;  %v8770_v62 = vmax.bf16 %v16443_v61, %v8738_v15 }
 0xb4c   : > { %v8566_v53 = vpop.f32.mrb[45].mxu0 }
 0xb4d   : > { %v8568_v42 = vpop.f32.mrb[46].mxu0  ;;  %8839 = vmatprep.subr.bf16.mxu0 %v8770_v62 }
 0xb4e   : > { %v8699_v47 = vpack.c.bf16 %v8568_v42, %v8564_v56  ;;  %v8570_v0 = vpop.f32.mrb[47].mxu0  ;;  %8840 = vmatpush1.bf16.xpose.msra.mxu0 %v8769_v8 }
 0xb4f   : > { %v8700_v34 = vpack.c.bf16 %v8570_v0, %v8566_v53 }
 0xb50   : > { %v8739_v5 = vadd.bf16 %v15713_v36, %v8699_v47 }
 0xb51   : > { %v8740_v22 = vadd.bf16 %v15717_v2, %v8700_v34 }
 0xb52   : > { %v8771_v38 = vmax.bf16 %v16443_v61, %v8739_v5 }
 0xb53   : > { %v8574_v60 = vpop.f32.mrb[48].mxu0  ;;  %v8772_v30 = vmax.bf16 %v16443_v61, %v8740_v22 }
 0xb54   : > { %v8576_v28 = vpop.f32.mrb[49].mxu0 }
 0xb55   : > { %v8578_v29 = vpop.f32.mrb[50].mxu0  ;;  %8841 = vmatprep.subr.bf16.mxu0 %v8772_v30 }
 0xb56   : > { %v8701_v21 = vpack.c.bf16 %v8578_v29, %v8574_v60  ;;  %v8580_v19 = vpop.f32.mrb[51].mxu0  ;;  %8842 = vmatpush1.bf16.xpose.msra.mxu0 %v8771_v38 }
 0xb57   : > { %v8702_v20 = vpack.c.bf16 %v8580_v19, %v8576_v28 }
 0xb58   : > { %v8741_v12 = vadd.bf16 %v15713_v36, %v8701_v21 }
 0xb59   : > { %v8742_v46 = vadd.bf16 %v15717_v2, %v8702_v20 }
 0xb5a   : > { %v8773_v35 = vmax.bf16 %v16443_v61, %v8741_v12 }
 0xb5b   : > { %v8584_v11 = vpop.f32.mrb[52].mxu0  ;;  %v8774_v10 = vmax.bf16 %v16443_v61, %v8742_v46 }
 0xb5c   : > { %v8586_v48 = vpop.f32.mrb[53].mxu0 }
 0xb5d   : > { %v8588_v45 = vpop.f32.mrb[54].mxu0  ;;  %8843 = vmatprep.subr.bf16.mxu0 %v8774_v10 }
 0xb5e   : > { %v8703_v33 = vpack.c.bf16 %v8588_v45, %v8584_v11  ;;  %v8590_v1 = vpop.f32.mrb[55].mxu0  ;;  %8844 = vmatpush1.bf16.xpose.msra.mxu0 %v8773_v35 }
 0xb5f   : > { %v8704_v43 = vpack.c.bf16 %v8590_v1, %v8586_v48 }
 0xb60   : > { %v8743_v49 = vadd.bf16 %v15713_v36, %v8703_v33 }
 0xb61   : > { %v8744_v37 = vadd.bf16 %v15717_v2, %v8704_v43 }
 0xb62   : > { %v8775_v32 = vmax.bf16 %v16443_v61, %v8743_v49 }
 0xb63   : > { %v8594_v63 = vpop.f32.mrb[56].mxu0  ;;  %v8776_v44 = vmax.bf16 %v16443_v61, %v8744_v37 }
 0xb64   : > { %v8596_v58 = vpop.f32.mrb[57].mxu0 }
 0xb65   : > { %v8598_v41 = vpop.f32.mrb[58].mxu0  ;;  %8845 = vmatprep.subr.bf16.mxu0 %v8776_v44 }
 0xb66   : > { %v8705_v3 = vpack.c.bf16 %v8598_v41, %v8594_v63  ;;  %v8600_v16 = vpop.f32.mrb[59].mxu0  ;;  %8846 = vmatpush1.bf16.xpose.msra.mxu0 %v8775_v32 }
 0xb67   : > { %v8706_v7 = vpack.c.bf16 %v8600_v16, %v8596_v58 }
 0xb68   : > { %v8745_v26 = vadd.bf16 %v15713_v36, %v8705_v3 }
 0xb69   : > { %v8746_v50 = vadd.bf16 %v15717_v2, %v8706_v7 }
 0xb6a   : > { %v8777_v14 = vmax.bf16 %v16443_v61, %v8745_v26 }
 0xb6b   : > { %v8604_v31 = vpop.f32.mrb[60].mxu0  ;;  %v8778_v13 = vmax.bf16 %v16443_v61, %v8746_v50 }
 0xb6c   : > { %v8606_v40 = vpop.f32.mrb[61].mxu0 }
 0xb6d   : > { %v8608_v51 = vpop.f32.mrb[62].mxu0  ;;  %8847 = vmatprep.subr.bf16.mxu0 %v8778_v13 }
 0xb6e   : > { %v8707_v54 = vpack.c.bf16 %v8608_v51, %v8604_v31  ;;  %v8610_v52 = vpop.f32.mrb[63].mxu0  ;;  %8848 = vmatpush1.bf16.xpose.msra.mxu0 %v8777_v14 }
 0xb6f   : > { %v8708_v55 = vpack.c.bf16 %v8610_v52, %v8606_v40 }
 0xb70   : > { %v8747_v57 = vadd.bf16 %v15713_v36, %v8707_v54 }
 0xb71   : > { %v8748_v4 = vadd.bf16 %v15717_v2, %v8708_v55 }
 0xb72   : > { %v8779_v27 = vmax.bf16 %v16443_v61, %v8747_v57 }
 0xb73   : > { %v8614_v25 = vpop.f32.mrb[64].mxu0  ;;  %v8780_v9 = vmax.bf16 %v16443_v61, %v8748_v4 }
 0xb74   : > { %v8616_v17 = vpop.f32.mrb[65].mxu0 }
 0xb75   : > { %v8618_v59 = vpop.f32.mrb[66].mxu0  ;;  %8849 = vmatprep.subr.bf16.mxu0 %v8780_v9 }
 0xb76   : > { %v8709_v6 = vpack.c.bf16 %v8618_v59, %v8614_v25  ;;  %v8620_v23 = vpop.f32.mrb[67].mxu0  ;;  %8850 = vmatpush1.bf16.xpose.msra.mxu0 %v8779_v27 }
 0xb77   : > { %v8710_v24 = vpack.c.bf16 %v8620_v23, %v8616_v17 }
 0xb78   : > { %v8749_v18 = vadd.bf16 %v15713_v36, %v8709_v6 }
 0xb79   : > { %v8750_v39 = vadd.bf16 %v15717_v2, %v8710_v24 }
 0xb7a   : > { %v8781_v62 = vmax.bf16 %v16443_v61, %v8749_v18 }
 0xb7b   : > { %v8624_v15 = vpop.f32.mrb[68].mxu0  ;;  %v8782_v56 = vmax.bf16 %v16443_v61, %v8750_v39 }
 0xb7c   : > { %v8626_v8 = vpop.f32.mrb[69].mxu0 }
 0xb7d   : > { %v8628_v53 = vpop.f32.mrb[70].mxu0  ;;  %8851 = vmatprep.subr.bf16.mxu0 %v8782_v56 }
 0xb7e   : > { %v8711_v42 = vpack.c.bf16 %v8628_v53, %v8624_v15  ;;  %v8630_v47 = vpop.f32.mrb[71].mxu0  ;;  %8852 = vmatpush1.bf16.xpose.msra.mxu0 %v8781_v62 }
 0xb7f   : > { %v8712_v0 = vpack.c.bf16 %v8630_v47, %v8626_v8 }
 0xb80   : > { %v8751_v34 = vadd.bf16 %v15713_v36, %v8711_v42 }
 0xb81   : > { %v8752_v5 = vadd.bf16 %v15717_v2, %v8712_v0 }
 0xb82   : > { %v8783_v30 = vmax.bf16 %v16443_v61, %v8751_v34 }
 0xb83   : > { %v8634_v22 = vpop.f32.mrb[72].mxu0  ;;  %v8784_v60 = vmax.bf16 %v16443_v61, %v8752_v5 }
 0xb84   : > { %v8636_v38 = vpop.f32.mrb[73].mxu0 }
 0xb85   : > { %v8638_v28 = vpop.f32.mrb[74].mxu0  ;;  %8853 = vmatprep.subr.bf16.mxu0 %v8784_v60  ;;  %v8799_v60 = vld [vmem:[%s15867_s7 + $0x10] sm:$0xff] }
 0xb86   : > { %v8713_v29 = vpack.c.bf16 %v8638_v28, %v8634_v22  ;;  %v8640_v21 = vpop.f32.mrb[75].mxu0  ;;  %8854 = vmatpush1.bf16.xpose.msra.mxu0 %v8783_v30  ;;  %v10639_v30 = vld [vmem:[%s15867_s7] ss:$8 sps:$4 sm:$0xff]  }
 0xb87   : > { %v8714_v19 = vpack.c.bf16 %v8640_v21, %v8636_v38  ;;  %v9797_v38 = vcombine.high %v8799_v60, %v8799_v60  ;;  %v8890_v28 = vld [vmem:[%s437_s28 + $0x20] sm:$0xff]  ;;  %v8891_v21 = vld [vmem:[%s437_s28 + $0x28] sm:$0xff] }
 0xb88   : > { %v8753_v20 = vadd.bf16 %v15713_v36, %v8713_v29 }
 0xb89   : > { %v8754_v12 = vadd.bf16 %v15717_v2, %v8714_v19 }
 0xb8a   : > { %v8785_v10 = vmax.bf16 %v16443_v61, %v8753_v20  ;;  %v8888_v20 = vld [vmem:[%s437_s28 + $0x10] sm:$0xff] }
 0xb8b   : > { %v8644_v46 = vpop.f32.mrb[76].mxu0  ;;  %v8786_v11 = vmax.bf16 %v16443_v61, %v8754_v12  ;;  %v8889_v12 = vld [vmem:[%s437_s28 + $0x18] sm:$0xff] }
 0xb8c   : > { %v8646_v35 = vpop.f32.mrb[77].mxu0 }
 0xb8d   : > { %v8648_v48 = vpop.f32.mrb[78].mxu0  ;;  %8855 = vmatprep.subr.bf16.mxu0 %v8786_v11  ;;  %v8897_v11 = vadd.f32 1e-09, %v8891_v21 }
 0xb8e   : > { %v8715_v45 = vpack.c.bf16 %v8648_v48, %v8644_v46  ;;  %v8650_v33 = vpop.f32.mrb[79].mxu0  ;;  %8856 = vmatpush1.bf16.xpose.msra.mxu0 %v8785_v10  ;;  %v8896_v46 = vadd.f32 1e-09, %v8890_v28  ;;  %v8894_v10 = vadd.f32 1e-09, %v8888_v20 }
 0xb8f   : > { %v8716_v1 = vpack.c.bf16 %v8650_v33, %v8646_v35  ;;  %v8895_v35 = vadd.f32 1e-09, %v8889_v12 }
 0xb90   : > { %v8755_v43 = vadd.bf16 %v15713_v36, %v8715_v45 }
 0xb91   : > { %v8756_v49 = vadd.bf16 %v15717_v2, %v8716_v1  ;;  %v8806_v1 = vpop.permute.xlu0 %8805 }
 0xb92   : > { %v8787_v44 = vmax.bf16 %v16443_v61, %v8755_v43 }
 0xb93   : > { %v8654_v37 = vpop.f32.mrb[80].mxu0  ;;  %v8788_v63 = vmax.bf16 %v16443_v61, %v8756_v49 }
 0xb94   : > { %v8656_v32 = vpop.f32.mrb[81].mxu0 }
 0xb95   : > { %v8658_v58 = vpop.f32.mrb[82].mxu0  ;;  %8857 = vmatprep.subr.bf16.mxu0 %v8788_v63 }
 0xb96   : > { %v8717_v41 = vpack.c.bf16 %v8658_v58, %v8654_v37  ;;  %v8660_v3 = vpop.f32.mrb[83].mxu0  ;;  %8858 = vmatpush1.bf16.xpose.msra.mxu0 %v8787_v44  ;;  %v8811_v58 = vpop.permute.xlu1 %8810 }
 0xb97   : > { %v8718_v16 = vpack.c.bf16 %v8660_v3, %v8656_v32 }
 0xb98   : > { %v8757_v7 = vadd.bf16 %v15713_v36, %v8717_v41 }
 0xb99   : > { %v8758_v26 = vadd.bf16 %v15717_v2, %v8718_v16 }
 0xb9a   : > { %v8789_v13 = vmax.bf16 %v16443_v61, %v8757_v7 }
 0xb9b   : > { %v8664_v50 = vpop.f32.mrb[84].mxu0  ;;  %v8790_v31 = vmax.bf16 %v16443_v61, %v8758_v26 }
 0xb9c   : > { %v8666_v14 = vpop.f32.mrb[85].mxu0 }
 0xb9d   : > { %v8668_v40 = vpop.f32.mrb[86].mxu0  ;;  %8859 = vmatprep.subr.bf16.mxu0 %v8790_v31  ;;  %v8816_v31 = vpop.permute.xlu0 %8815 }
 0xb9e   : > { %v8719_v51 = vpack.c.bf16 %v8668_v40, %v8664_v50  ;;  %v8670_v54 = vpop.f32.mrb[87].mxu0  ;;  %8860 = vmatpush1.bf16.xpose.msra.mxu0 %v8789_v13 }
 0xb9f   : > { %v8720_v52 = vpack.c.bf16 %v8670_v54, %v8666_v14 }
 0xba0   : > { %v8759_v55 = vadd.bf16 %v15713_v36, %v8719_v51 }
 0xba1   : > { %v8760_v57 = vadd.bf16 %v15717_v2, %v8720_v52 }
 0xba2   : > { %v8791_v9 = vmax.bf16 %v16443_v61, %v8759_v55 }
 0xba3   : > { %v8674_v4 = vpop.f32.mrb[88].mxu0  ;;  %v8792_v25 = vmax.bf16 %v16443_v61, %v8760_v57 }
 0xba4   : > { %v8676_v27 = vpop.f32.mrb[89].mxu0 }
 0xba5   : > { %v8678_v17 = vpop.f32.mrb[90].mxu0  ;;  %8861 = vmatprep.subr.bf16.mxu0 %v8792_v25 }
 0xba6   : > { %v8721_v59 = vpack.c.bf16 %v8678_v17, %v8674_v4  ;;  %v8680_v6 = vpop.f32.mrb[91].mxu0  ;;  %8862 = vmatpush1.bf16.xpose.msra.mxu0 %v8791_v9 }
 0xba7   : > { %v8722_v23 = vpack.c.bf16 %v8680_v6, %v8676_v27 }
 0xba8   : > { %v8761_v24 = vadd.bf16 %v15713_v36, %v8721_v59 }
 0xba9   : > { %v8762_v18 = vadd.bf16 %v15717_v2, %v8722_v23 }
 0xbaa   : > { %v8793_v56 = vmax.bf16 %v16443_v61, %v8761_v24 }
 0xbab   : > { %v8684_v39 = vpop.f32.mrb[92].mxu0  ;;  %v8794_v15 = vmax.bf16 %v16443_v61, %v8762_v18 }
 0xbac   : > { %v8686_v62 = vpop.f32.mrb[93].mxu0 }
 0xbad   : > { %v8688_v8 = vpop.f32.mrb[94].mxu0  ;;  %8863 = vmatprep.subr.bf16.mxu0 %v8794_v15 }
 0xbae   : > { %v8723_v53 = vpack.c.bf16 %v8688_v8, %v8684_v39  ;;  %v8690_v42 = vpop.f32.mrb[95].mxu0  ;;  %8864 = vmatpush1.bf16.xpose.msra.mxu0 %v8793_v56 }
 0xbaf   : > { %v8724_v47 = vpack.c.bf16 %v8690_v42, %v8686_v62 }
 0xbb0   : > { %v8763_v0 = vadd.bf16 %v15713_v36, %v8723_v53  ;;  %v9796_v36 = vcombine.low %v8799_v60, %v8799_v60 }
 0xbb1   : > { %v8764_v34 = vadd.bf16 %v15717_v2, %v8724_v47  ;;  %v8887_v2 = vld [vmem:[%s437_s28 + $0x8] sm:$0xff] }
 0xbb2   : > { %v8795_v22 = vmax.bf16 %v16443_v61, %v8763_v0  ;;  %v8893_v19 = vadd.f32 1e-09, %v8887_v2 }
 0xbb3   : > { %v8796_v5 = vmax.bf16 %v16443_v61, %v8764_v34  ;;  %v8886_v61 = vld [vmem:[%s437_s28] sm:$0xff]  ;;  %s10808_s28 = sshll.u32 %s10891_s0, 4  ;;  %s10809_s28 = int_to_ptr.vmem [resolvable:$false] %s10808_s28 }
 0xbb4   : > { %v8892_v29 = vadd.f32 1e-09, %v8886_v61  ;;  %s10810_s30 = scalar_lea.vmem %s10809_s28, 1536  ;;  %p10811_p1 = scmp.lt.s32.totalorder %s15812_s19, %s10809_s28 }
 0xbb5   : > { %8865 = vmatprep.subr.bf16.mxu0 %v8796_v5  ;;  %p10812_p2 = scmp.lt.s32.totalorder %s10810_s30, %s10804_s27 }
 0xbb6   : > { %8866 = vmatpush1.bf16.xpose.msra.mxu0 %v8795_v22  ;;  %10772 = vlog2.f32 %v8892_v29 }
 0xbb7   : > { %10774 = vlog2.f32 %v8893_v19  ;;  %p10813_p3 = por %p10812_p2, %p10811_p1 }
 0xbb8   : > { %10776 = vlog2.f32 %v8896_v46 }
 0xbb9   : > { %10778 = vlog2.f32 %v8897_v11  ;;  %p10814_p5 = pnand %p10813_p3, %p10807_p0 }
 0xbba   : > { %10780 = vlog2.f32 %v8894_v10 }
 0xbbb   : > { %10782 = vlog2.f32 %v8895_v35 }
 0xbbd   : > { %8868 = vmatmul.mubr.bf16.vlgmr.msra.gmra.mrb[96].mxu0 %v10639_v30 }
 0xbbe   : > { %8877 = vmatprep.mubr.bf16.mxu0 %v9797_v38 }
 0xbc0   : > { %v10773_v33 = vpop.eup %10772 }
 0xbc1   : > { %v10775_v49 = vpop.eup %10774  ;;  %v8899_v16 = vmul.f32 0.6931472, %v10773_v33 }
 0xbc2   : > { %v10777_v63 = vpop.eup %10776  ;;  %v8901_v50 = vmul.f32 0.6931472, %v10775_v49 }
 0xbc3   : > { %v10779_v44 = vpop.eup %10778  ;;  %v8907_v7 = vmul.f32 0.6931472, %v10777_v63 }
 0xbc4   : > { %v10781_v32 = vpop.eup %10780  ;;  %v8909_v14 = vmul.f32 0.6931472, %v10779_v44 }
 0xbc5   : > { %8878 = vmatmul.mubr.bf16.gmra.mrb[100].mxu0 %v9796_v36  ;;  %v10783_v41 = vpop.eup %10782  ;;  %v8903_v51 = vmul.f32 0.6931472, %v10781_v32 }
 0xbc6   : > { %v8905_v57 = vmul.f32 0.6931472, %v10783_v41 }
 0xc90   : > { %v8869_v48 = vpop.f32.mrb[96].mxu0 }
 0xc91   : > { %v8871_v45 = vpop.f32.mrb[97].mxu0  ;;  %v8870_v3 = vadd.f32 %v8869_v48, %v8806_v1 }
 0xc92   : > { %v8873_v43 = vpop.f32.mrb[98].mxu0  ;;  %v8872_v26 = vadd.f32 %v8871_v45, %v8806_v1 }
 0xc93   : > { %v8875_v37 = vpop.f32.mrb[99].mxu0  ;;  %v8874_v40 = vadd.f32 %v8873_v43, %v8811_v58  ;;  %v8910_v9 = vadd.f32 %v8899_v16, %v8870_v3 }
 0xc94   : > { %v8876_v55 = vadd.f32 %v8875_v37, %v8811_v58  ;;  %v8911_v59 = vadd.f32 %v8901_v50, %v8872_v26 }
 0xc95   : > { %v8912_v23 = vadd.f32 %v8903_v51, %v8874_v40 }
 0xc96   : > { %v8913_v18 = vadd.f32 %v8905_v57, %v8876_v55 }
 0xc98   : > { %v8879_v13 = vpop.f32.mrb[100].mxu0 }
 0xc99   : > { %v8880_v54 = vadd.f32 %v8879_v13, %v8816_v31  ;;  %v8881_v52 = vpop.f32.mrb[101].mxu0 }
 0xc9a   : > { %v8882_v4 = vadd.f32 %v8881_v52, %v8816_v31  ;;  %v8883_v25 = vpop.f32.mrb[102].mxu0 }
 0xc9b   : > { %v8914_v27 = vadd.f32 %v8907_v7, %v8880_v54  ;;  %v8884_v17 = vpop.f32.mrb[103].mxu0 }
 0xc9c   : > { %v8915_v6 = vadd.f32 %v8909_v14, %v8882_v4 }
 0xc9d   : > { %v8916_v24 = vmax.f32 %v8910_v9, %v8914_v27 }
 0xc9e   : > { %v8924_v39 = vmax.f32 %v8911_v59, %v8915_v6 }
 0xc9f   : > { %v8917_v15 = vmax.f32 %v8916_v24, %v8912_v23 }
 0xca0   : > { %v8925_v56 = vmax.f32 %v8924_v39, %v8913_v18 }
 0xca1   : > { %v8918_v62 = vrot.slane %v8917_v15, 4 }
 0xca2   : > { %v8926_v8 = vrot.slane %v8925_v56, 4 }
 0xca3   : > { %v8919_v53 = vmax.f32 %v8917_v15, %v8918_v62 }
 0xca4   : > { %v8927_v42 = vmax.f32 %v8925_v56, %v8926_v8 }
 0xca5   : > { %v8920_v47 = vrot.slane %v8919_v53, 2 }
 0xca6   : > { %v8928_v0 = vrot.slane %v8927_v42, 2 }
 0xca7   : > { %v8921_v34 = vmax.f32 %v8919_v53, %v8920_v47 }
 0xca8   : > { %v8929_v5 = vmax.f32 %v8927_v42, %v8928_v0 }
 0xca9   : > { %v8922_v22 = vrot.slane %v8921_v34, 1 }
 0xcaa   : > { %v8930_v60 = vrot.slane %v8929_v5, 1 }
 0xcab   : > { %v8923_v30 = vmax.f32 %v8921_v34, %v8922_v22 }
 0xcac   : > { %v8931_v38 = vmax.f32 %v8929_v5, %v8930_v60 }
 0xcad   : > { %v8932_v36 = vsub.f32 %v8910_v9, %v8923_v30  ;;  %v8934_v61 = vsub.f32 %v8912_v23, %v8923_v30  ;;  %v8936_v2 = vsub.f32 %v8914_v27, %v8923_v30 }
 0xcae   : > { %v8933_v28 = vsub.f32 %v8911_v59, %v8931_v38  ;;  %v8935_v29 = vsub.f32 %v8913_v18, %v8931_v38  ;;  %v8937_v21 = vsub.f32 %v8915_v6, %v8931_v38 }
 0xcaf   : > { %v8938_v19 = vmul.f32 1.442695, %v8932_v36  ;;  %v8942_v20 = vmul.f32 1.442695, %v8934_v61  ;;  %v8946_v12 = vmul.f32 1.442695, %v8936_v2 }
 0xcb0   : > { %v8940_v46 = vmul.f32 1.442695, %v8933_v28  ;;  %v8944_v11 = vmul.f32 1.442695, %v8935_v29  ;;  %v8948_v10 = vmul.f32 1.442695, %v8937_v21 }
 0xcb1   : > { %10784 = vpow2.f32 %v8938_v19 }
 0xcb2   : > { %10786 = vpow2.f32 %v8942_v20 }
 0xcb3   : > { %10788 = vpow2.f32 %v8946_v12 }
 0xcb4   : > { %10790 = vpow2.f32 %v8940_v46 }
 0xcb5   : > { %10792 = vpow2.f32 %v8944_v11 }
 0xcb6   : > { %10794 = vpow2.f32 %v8948_v10 }
 0xcbb   : > { %v10785_v35 = vpop.eup %10784 }
 0xcbc   : > { %v10787_v48 = vpop.eup %10786 }
 0xcbd   : > { %v10789_v45 = vpop.eup %10788  ;;  %v8950_v33 = vadd.f32 %v10787_v48, %v10785_v35 }
 0xcbe   : > { %v10791_v1 = vpop.eup %10790 }
 0xcbf   : > { %v10793_v43 = vpop.eup %10792  ;;  %v8951_v49 = vadd.f32 %v10789_v45, %v8950_v33 }
 0xcc0   : > { %v8958_v37 = vadd.f32 %v10793_v43, %v10791_v1  ;;  %v10795_v63 = vpop.eup %10794 }
 0xcc1   : > { %v8952_v44 = vrot.slane %v8951_v49, 4 }
 0xcc2   : > { %v8959_v32 = vadd.f32 %v10795_v63, %v8958_v37 }
 0xcc3   : > { %v8953_v58 = vadd.f32 %v8952_v44, %v8951_v49 }
 0xcc4   : > { %v8960_v41 = vrot.slane %v8959_v32, 4 }
 0xcc5   : > { %v8954_v3 = vrot.slane %v8953_v58, 2 }
 0xcc6   : > { %v8961_v16 = vadd.f32 %v8960_v41, %v8959_v32 }
 0xcc7   : > { %v8955_v7 = vadd.f32 %v8954_v3, %v8953_v58 }
 0xcc8   : > { %v8962_v26 = vrot.slane %v8961_v16, 2 }
 0xcc9   : > { %v8956_v50 = vrot.slane %v8955_v7, 1 }
 0xcca   : > { %v8963_v31 = vadd.f32 %v8962_v26, %v8961_v16 }
 0xccb   : > { %v8957_v13 = vadd.f32 %v8956_v50, %v8955_v7 }
 0xccc   : > { %v8964_v14 = vrot.slane %v8963_v31, 1 }
 0xccd   : > { %10796 = vrcp.f32 %v8957_v13 }
 0xcce   : > { %v8965_v40 = vadd.f32 %v8964_v14, %v8963_v31 }
 0xcd0   : > { %10798 = vrcp.f32 %v8965_v40 }
 0xcd7   : > { %v10797_v51 = vpop.eup %10796 }
 0xcd8   : > { %v8968_v54 = vmul.f32 %v10797_v51, %v8957_v13 }
 0xcda   : > { %v10799_v52 = vpop.eup %10798  ;;  %v8970_v55 = vsub.f32 2.0, %v8968_v54 }
 0xcdb   : > { %v8969_v57 = vmul.f32 %v10799_v52, %v8965_v40 }
 0xcdc   : > { %v8972_v4 = vmul.f32 %v10797_v51, %v8970_v55 }
 0xcdd   : > { %v8971_v25 = vsub.f32 2.0, %v8969_v57 }
 0xcde   : > { %v8974_v9 = vmul.f32 %v10785_v35, %v8972_v4  ;;  %v8976_v27 = vmul.f32 %v10787_v48, %v8972_v4  ;;  %v8978_v17 = vmul.f32 %v10789_v45, %v8972_v4 }
 0xcdf   : > { %v8973_v59 = vmul.f32 %v10799_v52, %v8971_v25 }
 0xce0   : > { %8980 = vst [vmem:[%s418_s12] sm:$0xff] %v8974_v9  ;;  %8982 = vst [vmem:[%s418_s12 + $0x10] sm:$0xff] %v8976_v27 }
 0xce1   : > { %8984 = vst [vmem:[%s418_s12 + $0x20] sm:$0xff] %v8978_v17  ;;  %v8975_v6 = vmul.f32 %v10791_v1, %v8973_v59  ;;  %v8977_v23 = vmul.f32 %v10793_v43, %v8973_v59  ;;  %v8979_v24 = vmul.f32 %v10795_v63, %v8973_v59 }
 0xce3   : > { %8981 = vst [vmem:[%s418_s12 + $0x8] sm:$0xff] %v8975_v6  ;;  %8983 = vst [vmem:[%s418_s12 + $0x18] sm:$0xff] %v8977_v23 }
 0xce4   : > { %8985 = vst [vmem:[%s418_s12 + $0x28] sm:$0xff] %v8979_v24 }
 0xce5   : > { %10817 = shalt.err (!%p10814_p5)
}
 0xce6   : > { %s10818_s29 = scalar_lea.hbm %s15810_s24, 768  ;;  %s10822_s20 = scalar_lea.hbm %s15870_s10, 1536 }
 0xce7   : > { %p10819_p6 = scmp.ne.s32.totalorder %s15810_s24, %s10818_s29  ;;  %p10823_p10 = scmp.lt.u32.totalorder %s15810_s24, %s15870_s10 }
 0xce8   : > { %p10824_p11 = scmp.lt.u32.totalorder %s10822_s20, %s10818_s29  ;;  %p10826_p13 = scmp.lt.u32.totalorder %s10818_s29, %s15810_s24 }
 0xce9   : > { %p10820_p7 = pnand %p10819_p6, %p10989_p4 }
 0xcea   : > { %p10825_p12 = por %p10824_p11, %p10823_p10 }
 0xceb   : > { %p10821_p9 = pneg %p10820_p7 }
 0xcec   : > { %p10827_p0 = por %p10826_p13, %p10825_p12 }
 0xcee   : > { %p10828_p1 = pnand %p10827_p0, %p10821_p9 }
 0xcf0   : > { %10831 = shalt.err (!%p10828_p1)
}
 0xcf1   : > { %s10892_s27 = smov 256   ;;  %s10893_s28 = smov 16  }
 0xcf2   : > { %10209 = dma.vmem_to_hbm [thread:$0]  (%p10989_p4), %s15812_s19, 768, %s15810_s24, %s15814_s16, %s10892_s27, %s10892_s27, %s10893_s28  }
 0xcf3 PF: > { %p10215_p2 = scmp.ge.s32.totalorder %s10882_s18, 2  ;;  %s9017_s30 = sand.u32 1, %s10862_s13  }
 0xcf4   : > { %s9018_s29 = scalar_lea.sflag [#allocation3], %s9017_s30 }
 0xcf5   : > { %p10212_p3 = pnand %p10215_p2, %p10996_p8 }
 0xcf7   : > { %10857 = dma.done.wait (!%p10212_p3), %s9018_s29, 768  }
 0xcf8   : > { %10859 = vsyncadd (!%p10212_p3), %s9018_s29, 4294966528  ;;  %s23_s18 = sadd.s32 1, %s10882_s18   ;;  %s16692_s13 = smov %s10866_s14 }
 0xcf9   : > { %p20_p5 = scmp.ge.s32.totalorder %s23_s18, 4   ;;  %s16693_s14 = smov %s10870_s15 }
 0xcfa   : > { %s16694_s15 = smov %s11002_s26  ;;  %s16695_s16 = smov %s10878_s17 }
 0xcfb   : > { %s16696_s17 = smov %s16698_s21  ;;  %22 = sbr.rel (!%p20_p5) target bundleno = 6 (0x6), region = 109 }
 0xd02   :  { %9023 = vsyncpa [#allocation3], 1 }
 0xd03   :  { %9025 = vsyncpa [#allocation3 + $0x1], 1 }

</bundles_post_ra>
